<compile_context>
chip_gen: v5e
topology: v5e:2x2
jax: 0.10.0
libtpu: 0.0.40
codegen_flags: <defaults>
</compile_context>

<pallas_src>
import jax
import jax.numpy as jnp
from jax import lax
from jax.experimental import pallas as pl
from jax.experimental.pallas import tpu as pltpu


def _round_up(x, m):
    return ((x + m - 1) // m) * m


# -----------------------------------------------------------------------------
# Pallas kernel factory: full autoregressive decode for one batch tile.
# -----------------------------------------------------------------------------
def _make_kernel(T, H, L, out_size, K_f, hid_off, bias_lane, sos_token, slab_w):
    highest = jax.lax.Precision.HIGHEST

    def kernel(wf_ref, keys_ref, valsw_ref, wout_ref, bout_ref, slab_ref):
        bs = keys_ref.shape[0]
        inv_sqrt_h = 1.0 / jnp.sqrt(jnp.float32(H))

        # Hoisted constants (JAX does not CSE broadcast_in_dim).
        iota_pre = lax.broadcasted_iota(jnp.int32, (bs, hid_off), 1)
        iota_out = lax.broadcasted_iota(jnp.int32, (bs, out_size), 1)
        iota_slab = lax.broadcasted_iota(jnp.int32, (bs, slab_w), 1)
        zeros_cat_tail = jnp.zeros((bs, K_f - hid_off - H), jnp.float32)
        zeros_att_tail = jnp.zeros((bs, slab_w - L), jnp.float32)

        # init_batch(): zero hidden state, SOS token, empty output slab.
        hid0 = jnp.zeros((bs, H), jnp.float32)
        tok0 = jnp.full((bs, 1), sos_token, jnp.int32)
        slab0 = jnp.zeros((bs, slab_w), jnp.float32)

        def step(t, carry):
            hid, tok, slab = carry

            # Fused LHS in one 128-lane tile: [one-hot(tok) + 1.0 bias lane | hid | 0].
            pre = jnp.logical_or(iota_pre == tok,
                                 iota_pre == bias_lane).astype(jnp.float32)
            cat = jnp.concatenate([pre, hid, zeros_cat_tail], axis=1)  # (bs, K_f)

            # ONE MXU pass: embedding lookup + GRU x-path + GRU h-path + biases.
            # Output columns: [r_pre | z_pre | gi_n | gh_n].
            g = jnp.dot(cat, wf_ref[...],
                        preferred_element_type=jnp.float32, precision=highest)
            r = jax.nn.sigmoid(g[:, 0:H])
            z = jax.nn.sigmoid(g[:, H:2 * H])
            n = jnp.tanh(g[:, 2 * H:3 * H] + r * g[:, 3 * H:4 * H])
            h_new = (1.0 - z) * n + z * hid                            # (bs, H)

            # Output projection issued right after the GRU; its MXU push/pop
            # overlaps the attention softmax below (VPU/EUP/XLU work).
            proj = jnp.dot(h_new, wout_ref[...],
                           preferred_element_type=jnp.float32,
                           precision=highest) + bout_ref[...]          # (bs, out)

            # AttnMasked (length mask is all-False): scores = h K^T / sqrt(H).
            scores = jnp.sum(h_new[:, None, :] * keys_ref[...], axis=-1) * inv_sqrt_h
            smax = jnp.max(scores, axis=1, keepdims=True)
            p = jnp.exp(scores - smax)
            w = p / jnp.sum(p, axis=1, keepdims=True)                  # (bs, L)

            # weighted_values @ W_out  ==  sum_l w_l * (values @ W_out)_l.
            att = jnp.sum(w[:, :, None] * valsw_ref[...], axis=1)      # (bs, out)
            logits = att + proj

            # Categorical: log-softmax, entropy, greedy argmax (eval mode).
            lmax = jnp.max(logits, axis=1, keepdims=True)
            shifted = logits - lmax
            lse = jnp.log(jnp.sum(jnp.exp(shifted), axis=1, keepdims=True))
            logsm = shifted - lse
            probs = jnp.exp(logsm)
            ent = -jnp.sum(probs * logsm, axis=1, keepdims=True)       # (bs, 1)
            x_tok = jnp.min(jnp.where(logits == lmax, iota_out, out_size),
                            axis=1, keepdims=True).astype(jnp.int32)   # (bs, 1)
            logp = jnp.sum(jnp.where(iota_out == x_tok, logsm, 0.0),
                           axis=1, keepdims=True)                      # (bs, 1)

            # Lane-dense accumulation into ONE slab vreg:
            #   lane t -> token, T+t -> log-prob, 2T+t -> entropy,
            #   lanes [3T+t*L, 3T+(t+1)*L) -> this step's attention weights.
            slab = jnp.where(iota_slab == t, x_tok.astype(jnp.float32), slab)
            slab = jnp.where(iota_slab == T + t, logp, slab)
            slab = jnp.where(iota_slab == 2 * T + t, ent, slab)
            att_start = 3 * T + t * L
            w_roll = pltpu.roll(jnp.concatenate([w, zeros_att_tail], axis=1),
                                shift=att_start, axis=1)
            in_win = jnp.logical_and(iota_slab >= att_start,
                                     iota_slab < att_start + L)
            slab = jnp.where(in_win, w_roll, slab)

            return h_new, x_tok, slab

        _, _, slab = lax.fori_loop(0, T, step, (hid0, tok0, slab0), unroll=True)
        slab_ref[...] = slab            # single lane-dense store for all outputs

    return kernel


# -----------------------------------------------------------------------------
# Wrapper: fused-weight precompute, batch tiling, pallas_call, layout restore.
# -----------------------------------------------------------------------------
def sender_decoder_forward(params, encoder_outputs, sem_embs, max_length):
    emb = params["embedding"]                 # (V = output_size + 3, H)
    wih = params["gru_wih_t"]                 # (H, 3H)   (torch weight_ih_l0^T)
    whh = params["gru_whh_t"]                 # (H, 3H)   (torch weight_hh_l0^T)
    bih = params["gru_bih"]                   # (1, 3H)
    bhh = params["gru_bhh"]                   # (1, 3H)
    wout = params["out_w_t"]                  # (H, output_size)
    bout = params["out_b"]                    # (1, output_size)

    highest = jax.lax.Precision.HIGHEST
    bs = encoder_outputs.shape[0]
    V, H = emb.shape
    out_size = wout.shape[1]
    T = max_length

    # Batch tiling: pad to a multiple of the tile; one "parallel" grid axis.
    bs_tile = 64 if bs > 64 else _round_up(bs, 8)
    bs_pad = _round_up(bs, bs_tile)
    pad_b = bs_pad - bs
    enc = jnp.pad(encoder_outputs.astype(jnp.float32), ((0, pad_b), (0, 0), (0, 0)))
    sem = jnp.pad(sem_embs.astype(jnp.float32), ((0, pad_b), (0, 0), (0, 0)))

    # init_batch(): append fake EOS key / fake EOS-sem value.
    fake_eos = jnp.broadcast_to(emb[out_size][None, None, :], (bs_pad, 1, H))
    fake_eos_sem = jnp.broadcast_to(emb[out_size + 1][None, None, :], (bs_pad, 1, H))
    keys = jnp.concatenate([enc, fake_eos], axis=1)
    values = jnp.concatenate([sem, fake_eos_sem], axis=1)
    L = keys.shape[1]

    # Fused GRU weight packed for a single 128-lane LHS tile (parameter-only;
    # constant-folds / should be cached across calls under jit):
    #   rows [0, V)            emb @ W_ih  -> cols [r | z | gi_n | 0]
    #   row  V  (bias lane)    GRU biases  -> cols [bir+bhr | biz+bhz | bin | bhn]
    #   rows [hid_off, +H)     W_hh        -> cols [r | z | 0 | gh_n]
    hid_off = _round_up(V + 1, 8)
    bias_lane = V
    K_f = _round_up(hid_off + H, 128)
    table = jnp.dot(emb, wih, precision=highest)                          # (V, 3H)
    w_fused = jnp.zeros((K_f, 4 * H), jnp.float32)
    w_fused = w_fused.at[0:V, 0:3 * H].set(table)
    w_fused = w_fused.at[bias_lane, 0:2 * H].set(bih[0, 0:2 * H] + bhh[0, 0:2 * H])
    w_fused = w_fused.at[bias_lane, 2 * H:3 * H].set(bih[0, 2 * H:3 * H])
    w_fused = w_fused.at[bias_lane, 3 * H:4 * H].set(bhh[0, 2 * H:3 * H])
    w_fused = w_fused.at[hid_off:hid_off + H, 0:2 * H].set(whh[:, 0:2 * H])
    w_fused = w_fused.at[hid_off:hid_off + H, 3 * H:4 * H].set(whh[:, 2 * H:3 * H])

    # Output projection taken off the per-step critical path.
    valsw = jnp.matmul(values, wout, precision=highest)                   # (bs_pad, L, out)

    # One lane-dense output slab: [tokens | log-probs | entropy | attn weights].
    slab_w = _round_up(3 * T + T * L, 128)

    kernel = _make_kernel(T, H, L, out_size, K_f, hid_off, bias_lane,
                          out_size + 2, slab_w)

    slab = pl.pallas_call(
        kernel,
        out_shape=jax.ShapeDtypeStruct((bs_pad, slab_w), jnp.float32),
        grid=(bs_pad // bs_tile,),
        in_specs=[
            pl.BlockSpec((K_f, 4 * H), lambda i: (0, 0)),
            pl.BlockSpec((bs_tile, L, H), lambda i: (i, 0, 0)),
            pl.BlockSpec((bs_tile, L, out_size), lambda i: (i, 0, 0)),
            pl.BlockSpec((H, out_size), lambda i: (0, 0)),
            pl.BlockSpec((1, out_size), lambda i: (0, 0)),
        ],
        out_specs=pl.BlockSpec((bs_tile, slab_w), lambda i: (i, 0)),
        compiler_params=pltpu.CompilerParams(dimension_semantics=("parallel",)),
    )(w_fused, keys, valsw, wout, bout)

    # Decode the slab; append the trailing zero column in the wrapper.
    slab = slab[:bs]
    seq_body = slab[:, 0:T].astype(jnp.int32)          # exact small ints in f32
    logp_body = slab[:, T:2 * T]
    ent_body = slab[:, 2 * T:3 * T]
    attn_weights = slab[:, 3 * T:3 * T + T * L].reshape(bs, T, L)

    zi = jnp.zeros((bs, 1), jnp.int32)
    zf = jnp.zeros((bs, 1), jnp.float32)
    sequence = jnp.concatenate([seq_body, zi], axis=1)           # (bs, T+1)
    per_step_logits = jnp.concatenate([logp_body, zf], axis=1)   # (bs, T+1)
    entropy = jnp.concatenate([ent_body, zf], axis=1)            # (bs, T+1)
    return sequence, per_step_logits, entropy, attn_weights


# -----------------------------------------------------------------------------
# Pure-JAX reference (mirrors the PyTorch forward in eval mode) for checking.
# -----------------------------------------------------------------------------
def reference_forward(params, encoder_outputs, sem_embs, max_length):
    emb = params["embedding"]
    wih = params["gru_wih_t"]
    whh = params["gru_whh_t"]
    bih = params["gru_bih"]
    bhh = params["gru_bhh"]
    wout = params["out_w_t"]
    bout = params["out_b"]

    bs, _, H = encoder_outputs.shape
    out_size = wout.shape[1]

    fake_eos = jnp.broadcast_to(emb[out_size][None, None, :], (bs, 1, H))
    fake_eos_sem = jnp.broadcast_to(emb[out_size + 1][None, None, :], (bs, 1, H))
    keys = jnp.concatenate([encoder_outputs, fake_eos], axis=1)
    values = jnp.concatenate([sem_embs, fake_eos_sem], axis=1)

    tok = jnp.full((bs,), out_size + 2, jnp.int32)
    hid = jnp.zeros((bs, H), jnp.float32)
    seqs, logps, ents, attws = [], [], [], []
    for _ in range(max_length):
        x = emb[tok]
        gi = x @ wih + bih
        gh = hid @ whh + bhh
        r = jax.nn.sigmoid(gi[:, 0:H] + gh[:, 0:H])
        z = jax.nn.sigmoid(gi[:, H:2 * H] + gh[:, H:2 * H])
        n = jnp.tanh(gi[:, 2 * H:3 * H] + r * gh[:, 2 * H:3 * H])
        hid = (1.0 - z) * n + z * hid

        scores = jnp.einsum('bd,bld->bl', hid, keys) / jnp.sqrt(jnp.float32(H))
        w = jax.nn.softmax(scores, axis=-1)
        weighted = jnp.einsum('bl,bld->bd', w, values)

        logits = (weighted + hid) @ wout + bout
        logsm = jax.nn.log_softmax(logits, axis=-1)
        ent = -jnp.sum(jnp.exp(logsm) * logsm, axis=-1)
        tok = jnp.argmax(logits, axis=-1).astype(jnp.int32)
        logp = jnp.take_along_axis(logsm, tok[:, None], axis=1)[:, 0]

        seqs.append(tok); logps.append(logp); ents.append(ent); attws.append(w)

    zeros = jnp.zeros((bs, 1), jnp.float32)
    sequence = jnp.concatenate([jnp.stack(seqs, 1), zeros.astype(jnp.int32)], axis=-1)
    per_step_logits = jnp.concatenate([jnp.stack(logps, 1), zeros], axis=-1)
    entropy = jnp.concatenate([jnp.stack(ents, 1), zeros], axis=-1)
    attn_weights = jnp.stack(attws, 1)
    return sequence, per_step_logits, entropy, attn_weights


# -----------------------------------------------------------------------------
# Deterministic parameter init + example run.
# -----------------------------------------------------------------------------
def init_params(key, output_size, hidden_size):
    H = hidden_size
    k = jax.random.split(key, 7)
    bound = 1.0 / jnp.sqrt(jnp.float32(H))
    params = {
        "embedding": jax.random.normal(k[0], (output_size + 3, H), jnp.float32),
        "gru_wih_t": jax.random.uniform(k[1], (H, 3 * H), jnp.float32, -bound, bound),
        "gru_whh_t": jax.random.uniform(k[2], (H, 3 * H), jnp.float32, -bound, bound),
        "gru_bih":   jax.random.uniform(k[3], (1, 3 * H), jnp.float32, -bound, bound),
        "gru_bhh":   jax.random.uniform(k[4], (1, 3 * H), jnp.float32, -bound, bound),
        "out_w_t":   jax.random.uniform(k[5], (H, output_size), jnp.float32, -bound, bound),
        "out_b":     jax.random.uniform(k[6], (1, output_size), jnp.float32, -bound, bound),
    }
    return params


if __name__ == "__main__":
    output_size = 10
    hidden_size = 32
    max_length = 6
    bs = 2
    enc_len = 5

    root = jax.random.PRNGKey(0)
    kp, ke, ks = jax.random.split(root, 3)
    params = init_params(kp, output_size, hidden_size)
    encoder_outputs = jax.random.normal(ke, (bs, enc_len, hidden_size), jnp.float32)
    sem_embs = jax.random.normal(ks, (bs, enc_len, hidden_size), jnp.float32)

    outs = sender_decoder_forward(params, encoder_outputs, sem_embs, max_length)
    outs = jax.block_until_ready(outs)
    sequence, per_step_logits, entropy, attn_weights = outs

    ref = reference_forward(params, encoder_outputs, sem_embs, max_length)
    ref_seq, ref_logp, ref_ent, ref_attw = ref

    assert sequence.shape == (bs, max_length + 1)
    assert per_step_logits.shape == (bs, max_length + 1)
    assert entropy.shape == (bs, max_length + 1)
    assert attn_weights.shape == (bs, max_length, enc_len + 1)

    assert bool(jnp.all(sequence == ref_seq)), "sequence mismatch"
    assert jnp.allclose(per_step_logits, ref_logp, atol=1e-4), "log-prob mismatch"
    assert jnp.allclose(entropy, ref_ent, atol=1e-4), "entropy mismatch"
    assert jnp.allclose(attn_weights, ref_attw, atol=1e-4), "attn mismatch"

    print("KERNEL_OK")
</pallas_src>

<mosaic_0001>
module attributes {stable_mosaic.version = 11 : i64} {
  func.func @kernel(%arg0: i32, %arg1: memref<128x128xf32, #tpu.memory_space<vmem>>, %arg2: memref<8x6x32xf32, #tpu.memory_space<vmem>>, %arg3: memref<8x6x10xf32, #tpu.memory_space<vmem>>, %arg4: memref<32x10xf32, #tpu.memory_space<vmem>>, %arg5: memref<1x10xf32, #tpu.memory_space<vmem>>, %arg6: memref<8x128xf32, #tpu.memory_space<vmem>>) attributes {dimension_semantics = [#tpu.dimension_semantics<parallel>], iteration_bounds = array<i64: 1>, scalar_prefetch = 0 : i64, scratch_operands = 0 : i64, tpu.core_type = #tpu.core_type<tc>, window_params = [{pipeline_mode = #tpu.pipeline_mode<synchronous>, transform_indices = @transform_0, window_bounds = array<i64: 128, 128>}, {transform_indices = @transform_1, window_bounds = array<i64: 8, 6, 32>}, {transform_indices = @transform_2, window_bounds = array<i64: 8, 6, 10>}, {pipeline_mode = #tpu.pipeline_mode<synchronous>, transform_indices = @transform_3, window_bounds = array<i64: 32, 10>}, {pipeline_mode = #tpu.pipeline_mode<synchronous>, transform_indices = @transform_4, window_bounds = array<i64: 1, 10>}, {transform_indices = @transform_5, window_bounds = array<i64: 8, 128>}]} {
    %cst = arith.constant 3.200000e+01 : f32
    %0 = math.sqrt %cst : f32
    %cst_0 = arith.constant 1.000000e+00 : f32
    %1 = arith.divf %cst_0, %0 : f32
    %2 = tpu.iota {dimensions = array<i32: 1>} : vector<8x16xi32>
    %3 = tpu.iota {dimensions = array<i32: 1>} : vector<8x10xi32>
    %4 = tpu.iota {dimensions = array<i32: 1>} : vector<8x128xi32>
    %cst_1 = arith.constant 0.000000e+00 : f32
    %5 = vector.broadcast %cst_1 : f32 to vector<8x80xf32>
    %cst_2 = arith.constant 0.000000e+00 : f32
    %6 = vector.broadcast %cst_2 : f32 to vector<8x122xf32>
    %cst_3 = arith.constant 0.000000e+00 : f32
    %7 = vector.broadcast %cst_3 : f32 to vector<8x32xf32>
    %c12_i32 = arith.constant 12 : i32
    %8 = vector.broadcast %c12_i32 : i32 to vector<8x1xi32>
    %cst_4 = arith.constant 0.000000e+00 : f32
    %9 = vector.broadcast %cst_4 : f32 to vector<8x128xf32>
    %c0_i32 = arith.constant 0 : i32
    %10 = vector.broadcast %8 : vector<8x1xi32> to vector<8x16xi32>
    %11 = arith.cmpi eq, %2, %10 : vector<8x16xi32>
    %c13_i32 = arith.constant 13 : i32
    %12 = vector.broadcast %c13_i32 : i32 to vector<8x16xi32>
    %13 = arith.cmpi eq, %2, %12 : vector<8x16xi32>
    %14 = arith.ori %11, %13 : vector<8x16xi1>
    %15 = arith.extui %14 : vector<8x16xi1> to vector<8x16xi32>
    %16 = arith.sitofp %15 : vector<8x16xi32> to vector<8x16xf32>
    %17 = tpu.concatenate %16, %7, %5 in 1 : vector<8x16xf32>, vector<8x32xf32>, vector<8x80xf32> -> vector<8x128xf32>
    %c0 = arith.constant 0 : index
    %c0_5 = arith.constant 0 : index
    %18 = vector.load %arg1[%c0, %c0_5] : memref<128x128xf32, #tpu.memory_space<vmem>>, vector<128x128xf32>
    %cst_6 = arith.constant dense<0.000000e+00> : vector<8x128xf32>
    %19 = tpu.matmul %17, %18, %cst_6 {dimension_numbers = #tpu.dot_dimension_numbers<[1], [0], [0], [1], [0, 0, 1, 1], [], []>, precision = #tpu.contract_precision<fp32>} : vector<8x128xf32>, vector<128x128xf32>, vector<8x128xf32> -> vector<8x128xf32>
    %20 = vector.extract_strided_slice %19 {offsets = [0, 0], sizes = [8, 32], strides = [1, 1]} : vector<8x128xf32> to vector<8x32xf32>
    %21 = arith.negf %20 : vector<8x32xf32>
    %22 = math.exp %21 : vector<8x32xf32>
    %cst_7 = arith.constant 1.000000e+00 : f32
    %23 = vector.broadcast %cst_7 : f32 to vector<8x32xf32>
    %24 = arith.addf %23, %22 : vector<8x32xf32>
    %25 = arith.divf %23, %24 : vector<8x32xf32>
    %26 = vector.extract_strided_slice %19 {offsets = [0, 32], sizes = [8, 32], strides = [1, 1]} : vector<8x128xf32> to vector<8x32xf32>
    %27 = arith.negf %26 : vector<8x32xf32>
    %28 = math.exp %27 : vector<8x32xf32>
    %cst_8 = arith.constant 1.000000e+00 : f32
    %29 = vector.broadcast %cst_8 : f32 to vector<8x32xf32>
    %30 = arith.addf %29, %28 : vector<8x32xf32>
    %31 = arith.divf %29, %30 : vector<8x32xf32>
    %32 = vector.extract_strided_slice %19 {offsets = [0, 64], sizes = [8, 32], strides = [1, 1]} : vector<8x128xf32> to vector<8x32xf32>
    %33 = vector.extract_strided_slice %19 {offsets = [0, 96], sizes = [8, 32], strides = [1, 1]} : vector<8x128xf32> to vector<8x32xf32>
    %34 = arith.mulf %25, %33 : vector<8x32xf32>
    %35 = arith.addf %32, %34 : vector<8x32xf32>
    %36 = math.tanh %35 : vector<8x32xf32>
    %cst_9 = arith.constant 1.000000e+00 : f32
    %37 = vector.broadcast %cst_9 : f32 to vector<8x32xf32>
    %38 = arith.subf %37, %31 : vector<8x32xf32>
    %39 = arith.mulf %38, %36 : vector<8x32xf32>
    %40 = arith.mulf %31, %7 : vector<8x32xf32>
    %41 = arith.addf %39, %40 : vector<8x32xf32>
    %c0_10 = arith.constant 0 : index
    %c0_11 = arith.constant 0 : index
    %42 = vector.load %arg4[%c0_10, %c0_11] : memref<32x10xf32, #tpu.memory_space<vmem>>, vector<32x10xf32>
    %cst_12 = arith.constant dense<0.000000e+00> : vector<8x10xf32>
    %43 = tpu.matmul %41, %42, %cst_12 {dimension_numbers = #tpu.dot_dimension_numbers<[1], [0], [0], [1], [0, 0, 1, 1], [], []>, precision = #tpu.contract_precision<fp32>} : vector<8x32xf32>, vector<32x10xf32>, vector<8x10xf32> -> vector<8x10xf32>
    %c0_13 = arith.constant 0 : index
    %c0_14 = arith.constant 0 : index
    %44 = vector.load %arg5[%c0_13, %c0_14] : memref<1x10xf32, #tpu.memory_space<vmem>>, vector<1x10xf32>
    %45 = vector.broadcast %44 : vector<1x10xf32> to vector<8x10xf32>
    %46 = arith.addf %43, %45 : vector<8x10xf32>
    %47 = vector.shape_cast %41 : vector<8x32xf32> to vector<8x1x32xf32>
    %c0_15 = arith.constant 0 : index
    %c0_16 = arith.constant 0 : index
    %c0_17 = arith.constant 0 : index
    %48 = vector.load %arg2[%c0_15, %c0_16, %c0_17] : memref<8x6x32xf32, #tpu.memory_space<vmem>>, vector<8x6x32xf32>
    %49 = vector.broadcast %47 : vector<8x1x32xf32> to vector<8x6x32xf32>
    %50 = arith.mulf %49, %48 : vector<8x6x32xf32>
    %cst_18 = arith.constant dense<0.000000e+00> : vector<8x6xf32>
    %51 = vector.multi_reduction <add>, %50, %cst_18 [2] : vector<8x6x32xf32> to vector<8x6xf32>
    %52 = vector.broadcast %1 : f32 to vector<8x6xf32>
    %53 = arith.mulf %51, %52 : vector<8x6xf32>
    %cst_19 = arith.constant dense<0xFF800000> : vector<8xf32>
    %54 = vector.multi_reduction <maximumf>, %53, %cst_19 [1] : vector<8x6xf32> to vector<8xf32>
    %55 = vector.shape_cast %54 : vector<8xf32> to vector<8x1xf32>
    %56 = vector.broadcast %55 : vector<8x1xf32> to vector<8x6xf32>
    %57 = arith.subf %53, %56 : vector<8x6xf32>
    %58 = math.exp %57 : vector<8x6xf32>
    %cst_20 = arith.constant dense<0.000000e+00> : vector<8xf32>
    %59 = vector.multi_reduction <add>, %58, %cst_20 [1] : vector<8x6xf32> to vector<8xf32>
    %60 = vector.shape_cast %59 : vector<8xf32> to vector<8x1xf32>
    %61 = vector.broadcast %60 : vector<8x1xf32> to vector<8x6xf32>
    %62 = arith.divf %58, %61 : vector<8x6xf32>
    %63 = vector.shape_cast %62 : vector<8x6xf32> to vector<8x6x1xf32>
    %c0_21 = arith.constant 0 : index
    %c0_22 = arith.constant 0 : index
    %c0_23 = arith.constant 0 : index
    %64 = vector.load %arg3[%c0_21, %c0_22, %c0_23] : memref<8x6x10xf32, #tpu.memory_space<vmem>>, vector<8x6x10xf32>
    %65 = vector.broadcast %63 : vector<8x6x1xf32> to vector<8x6x10xf32>
    %66 = arith.mulf %65, %64 : vector<8x6x10xf32>
    %cst_24 = arith.constant dense<0.000000e+00> : vector<8x10xf32>
    %67 = vector.multi_reduction <add>, %66, %cst_24 [1] : vector<8x6x10xf32> to vector<8x10xf32>
    %68 = arith.addf %67, %46 : vector<8x10xf32>
    %cst_25 = arith.constant dense<0xFF800000> : vector<8xf32>
    %69 = vector.multi_reduction <maximumf>, %68, %cst_25 [1] : vector<8x10xf32> to vector<8xf32>
    %70 = vector.shape_cast %69 : vector<8xf32> to vector<8x1xf32>
    %71 = vector.broadcast %70 : vector<8x1xf32> to vector<8x10xf32>
    %72 = arith.subf %68, %71 : vector<8x10xf32>
    %73 = math.exp %72 : vector<8x10xf32>
    %cst_26 = arith.constant dense<0.000000e+00> : vector<8xf32>
    %74 = vector.multi_reduction <add>, %73, %cst_26 [1] : vector<8x10xf32> to vector<8xf32>
    %75 = vector.shape_cast %74 : vector<8xf32> to vector<8x1xf32>
    %76 = math.log %75 : vector<8x1xf32>
    %77 = vector.broadcast %76 : vector<8x1xf32> to vector<8x10xf32>
    %78 = arith.subf %72, %77 : vector<8x10xf32>
    %79 = math.exp %78 : vector<8x10xf32>
    %80 = arith.mulf %79, %78 : vector<8x10xf32>
    %cst_27 = arith.constant dense<0.000000e+00> : vector<8xf32>
    %81 = vector.multi_reduction <add>, %80, %cst_27 [1] : vector<8x10xf32> to vector<8xf32>
    %82 = vector.shape_cast %81 : vector<8xf32> to vector<8x1xf32>
    %cst_28 = arith.constant 0.000000e+00 : f32
    %83 = vector.broadcast %cst_28 : f32 to vector<8x1xf32>
    %84 = arith.subf %83, %82 : vector<8x1xf32>
    %85 = vector.broadcast %70 : vector<8x1xf32> to vector<8x10xf32>
    %86 = arith.cmpf oeq, %68, %85 : vector<8x10xf32>
    %c10_i32 = arith.constant 10 : i32
    %87 = vector.broadcast %c10_i32 : i32 to vector<8x10xi32>
    %88 = arith.select %86, %3, %87 : vector<8x10xi1>, vector<8x10xi32>
    %cst_29 = arith.constant dense<2147483647> : vector<8xi32>
    %89 = vector.multi_reduction <minsi>, %88, %cst_29 [1] : vector<8x10xi32> to vector<8xi32>
    %90 = vector.shape_cast %89 : vector<8xi32> to vector<8x1xi32>
    %91 = vector.broadcast %90 : vector<8x1xi32> to vector<8x10xi32>
    %92 = arith.cmpi eq, %3, %91 : vector<8x10xi32>
    %cst_30 = arith.constant 0.000000e+00 : f32
    %93 = vector.broadcast %cst_30 : f32 to vector<8x10xf32>
    %94 = arith.select %92, %78, %93 : vector<8x10xi1>, vector<8x10xf32>
    %cst_31 = arith.constant dense<0.000000e+00> : vector<8xf32>
    %95 = vector.multi_reduction <add>, %94, %cst_31 [1] : vector<8x10xf32> to vector<8xf32>
    %96 = vector.shape_cast %95 : vector<8xf32> to vector<8x1xf32>
    %97 = vector.broadcast %c0_i32 : i32 to vector<8x128xi32>
    %98 = arith.cmpi eq, %4, %97 : vector<8x128xi32>
    %99 = arith.sitofp %90 : vector<8x1xi32> to vector<8x1xf32>
    %100 = vector.shape_cast %99 : vector<8x1xf32> to vector<8x1xf32>
    %101 = vector.broadcast %100 : vector<8x1xf32> to vector<8x128xf32>
    %102 = arith.select %98, %101, %9 : vector<8x128xi1>, vector<8x128xf32>
    %c6_i32 = arith.constant 6 : i32
    %103 = arith.addi %c6_i32, %c0_i32 : i32
    %104 = vector.broadcast %103 : i32 to vector<8x128xi32>
    %105 = arith.cmpi eq, %4, %104 : vector<8x128xi32>
    %106 = vector.shape_cast %96 : vector<8x1xf32> to vector<8x1xf32>
    %107 = vector.broadcast %106 : vector<8x1xf32> to vector<8x128xf32>
    %108 = arith.select %105, %107, %102 : vector<8x128xi1>, vector<8x128xf32>
    %c12_i32_32 = arith.constant 12 : i32
    %109 = arith.addi %c12_i32_32, %c0_i32 : i32
    %110 = vector.broadcast %109 : i32 to vector<8x128xi32>
    %111 = arith.cmpi eq, %4, %110 : vector<8x128xi32>
    %112 = vector.shape_cast %84 : vector<8x1xf32> to vector<8x1xf32>
    %113 = vector.broadcast %112 : vector<8x1xf32> to vector<8x128xf32>
    %114 = arith.select %111, %113, %108 : vector<8x128xi1>, vector<8x128xf32>
    %c6_i32_33 = arith.constant 6 : i32
    %115 = arith.muli %c0_i32, %c6_i32_33 : i32
    %c18_i32 = arith.constant 18 : i32
    %116 = arith.addi %c18_i32, %115 : i32
    %117 = tpu.concatenate %62, %6 in 1 : vector<8x6xf32>, vector<8x122xf32> -> vector<8x128xf32>
    %118 = tpu.dynamic_rotate %117 by %116 dim 1 : vector<8x128xf32>, i32 -> vector<8x128xf32>
    %119 = vector.broadcast %116 : i32 to vector<8x128xi32>
    %120 = arith.cmpi sge, %4, %119 : vector<8x128xi32>
    %c6_i32_34 = arith.constant 6 : i32
    %121 = arith.addi %116, %c6_i32_34 : i32
    %122 = vector.broadcast %121 : i32 to vector<8x128xi32>
    %123 = arith.cmpi slt, %4, %122 : vector<8x128xi32>
    %124 = arith.andi %120, %123 : vector<8x128xi1>
    %125 = arith.select %124, %118, %114 : vector<8x128xi1>, vector<8x128xf32>
    %c1_i32 = arith.constant 1 : i32
    %126 = vector.broadcast %90 : vector<8x1xi32> to vector<8x16xi32>
    %127 = arith.cmpi eq, %2, %126 : vector<8x16xi32>
    %c13_i32_35 = arith.constant 13 : i32
    %128 = vector.broadcast %c13_i32_35 : i32 to vector<8x16xi32>
    %129 = arith.cmpi eq, %2, %128 : vector<8x16xi32>
    %130 = arith.ori %127, %129 : vector<8x16xi1>
    %131 = arith.extui %130 : vector<8x16xi1> to vector<8x16xi32>
    %132 = arith.sitofp %131 : vector<8x16xi32> to vector<8x16xf32>
    %133 = tpu.concatenate %132, %41, %5 in 1 : vector<8x16xf32>, vector<8x32xf32>, vector<8x80xf32> -> vector<8x128xf32>
    %c0_36 = arith.constant 0 : index
    %c0_37 = arith.constant 0 : index
    %134 = vector.load %arg1[%c0_36, %c0_37] : memref<128x128xf32, #tpu.memory_space<vmem>>, vector<128x128xf32>
    %cst_38 = arith.constant dense<0.000000e+00> : vector<8x128xf32>
    %135 = tpu.matmul %133, %134, %cst_38 {dimension_numbers = #tpu.dot_dimension_numbers<[1], [0], [0], [1], [0, 0, 1, 1], [], []>, precision = #tpu.contract_precision<fp32>} : vector<8x128xf32>, vector<128x128xf32>, vector<8x128xf32> -> vector<8x128xf32>
    %136 = vector.extract_strided_slice %135 {offsets = [0, 0], sizes = [8, 32], strides = [1, 1]} : vector<8x128xf32> to vector<8x32xf32>
    %137 = arith.negf %136 : vector<8x32xf32>
    %138 = math.exp %137 : vector<8x32xf32>
    %cst_39 = arith.constant 1.000000e+00 : f32
    %139 = vector.broadcast %cst_39 : f32 to vector<8x32xf32>
    %140 = arith.addf %139, %138 : vector<8x32xf32>
    %141 = arith.divf %139, %140 : vector<8x32xf32>
    %142 = vector.extract_strided_slice %135 {offsets = [0, 32], sizes = [8, 32], strides = [1, 1]} : vector<8x128xf32> to vector<8x32xf32>
    %143 = arith.negf %142 : vector<8x32xf32>
    %144 = math.exp %143 : vector<8x32xf32>
    %cst_40 = arith.constant 1.000000e+00 : f32
    %145 = vector.broadcast %cst_40 : f32 to vector<8x32xf32>
    %146 = arith.addf %145, %144 : vector<8x32xf32>
    %147 = arith.divf %145, %146 : vector<8x32xf32>
    %148 = vector.extract_strided_slice %135 {offsets = [0, 64], sizes = [8, 32], strides = [1, 1]} : vector<8x128xf32> to vector<8x32xf32>
    %149 = vector.extract_strided_slice %135 {offsets = [0, 96], sizes = [8, 32], strides = [1, 1]} : vector<8x128xf32> to vector<8x32xf32>
    %150 = arith.mulf %141, %149 : vector<8x32xf32>
    %151 = arith.addf %148, %150 : vector<8x32xf32>
    %152 = math.tanh %151 : vector<8x32xf32>
    %cst_41 = arith.constant 1.000000e+00 : f32
    %153 = vector.broadcast %cst_41 : f32 to vector<8x32xf32>
    %154 = arith.subf %153, %147 : vector<8x32xf32>
    %155 = arith.mulf %154, %152 : vector<8x32xf32>
    %156 = arith.mulf %147, %41 : vector<8x32xf32>
    %157 = arith.addf %155, %156 : vector<8x32xf32>
    %c0_42 = arith.constant 0 : index
    %c0_43 = arith.constant 0 : index
    %158 = vector.load %arg4[%c0_42, %c0_43] : memref<32x10xf32, #tpu.memory_space<vmem>>, vector<32x10xf32>
    %cst_44 = arith.constant dense<0.000000e+00> : vector<8x10xf32>
    %159 = tpu.matmul %157, %158, %cst_44 {dimension_numbers = #tpu.dot_dimension_numbers<[1], [0], [0], [1], [0, 0, 1, 1], [], []>, precision = #tpu.contract_precision<fp32>} : vector<8x32xf32>, vector<32x10xf32>, vector<8x10xf32> -> vector<8x10xf32>
    %c0_45 = arith.constant 0 : index
    %c0_46 = arith.constant 0 : index
    %160 = vector.load %arg5[%c0_45, %c0_46] : memref<1x10xf32, #tpu.memory_space<vmem>>, vector<1x10xf32>
    %161 = vector.broadcast %160 : vector<1x10xf32> to vector<8x10xf32>
    %162 = arith.addf %159, %161 : vector<8x10xf32>
    %163 = vector.shape_cast %157 : vector<8x32xf32> to vector<8x1x32xf32>
    %c0_47 = arith.constant 0 : index
    %c0_48 = arith.constant 0 : index
    %c0_49 = arith.constant 0 : index
    %164 = vector.load %arg2[%c0_47, %c0_48, %c0_49] : memref<8x6x32xf32, #tpu.memory_space<vmem>>, vector<8x6x32xf32>
    %165 = vector.broadcast %163 : vector<8x1x32xf32> to vector<8x6x32xf32>
    %166 = arith.mulf %165, %164 : vector<8x6x32xf32>
    %cst_50 = arith.constant dense<0.000000e+00> : vector<8x6xf32>
    %167 = vector.multi_reduction <add>, %166, %cst_50 [2] : vector<8x6x32xf32> to vector<8x6xf32>
    %168 = vector.broadcast %1 : f32 to vector<8x6xf32>
    %169 = arith.mulf %167, %168 : vector<8x6xf32>
    %cst_51 = arith.constant dense<0xFF800000> : vector<8xf32>
    %170 = vector.multi_reduction <maximumf>, %169, %cst_51 [1] : vector<8x6xf32> to vector<8xf32>
    %171 = vector.shape_cast %170 : vector<8xf32> to vector<8x1xf32>
    %172 = vector.broadcast %171 : vector<8x1xf32> to vector<8x6xf32>
    %173 = arith.subf %169, %172 : vector<8x6xf32>
    %174 = math.exp %173 : vector<8x6xf32>
    %cst_52 = arith.constant dense<0.000000e+00> : vector<8xf32>
    %175 = vector.multi_reduction <add>, %174, %cst_52 [1] : vector<8x6xf32> to vector<8xf32>
    %176 = vector.shape_cast %175 : vector<8xf32> to vector<8x1xf32>
    %177 = vector.broadcast %176 : vector<8x1xf32> to vector<8x6xf32>
    %178 = arith.divf %174, %177 : vector<8x6xf32>
    %179 = vector.shape_cast %178 : vector<8x6xf32> to vector<8x6x1xf32>
    %c0_53 = arith.constant 0 : index
    %c0_54 = arith.constant 0 : index
    %c0_55 = arith.constant 0 : index
    %180 = vector.load %arg3[%c0_53, %c0_54, %c0_55] : memref<8x6x10xf32, #tpu.memory_space<vmem>>, vector<8x6x10xf32>
    %181 = vector.broadcast %179 : vector<8x6x1xf32> to vector<8x6x10xf32>
    %182 = arith.mulf %181, %180 : vector<8x6x10xf32>
    %cst_56 = arith.constant dense<0.000000e+00> : vector<8x10xf32>
    %183 = vector.multi_reduction <add>, %182, %cst_56 [1] : vector<8x6x10xf32> to vector<8x10xf32>
    %184 = arith.addf %183, %162 : vector<8x10xf32>
    %cst_57 = arith.constant dense<0xFF800000> : vector<8xf32>
    %185 = vector.multi_reduction <maximumf>, %184, %cst_57 [1] : vector<8x10xf32> to vector<8xf32>
    %186 = vector.shape_cast %185 : vector<8xf32> to vector<8x1xf32>
    %187 = vector.broadcast %186 : vector<8x1xf32> to vector<8x10xf32>
    %188 = arith.subf %184, %187 : vector<8x10xf32>
    %189 = math.exp %188 : vector<8x10xf32>
    %cst_58 = arith.constant dense<0.000000e+00> : vector<8xf32>
    %190 = vector.multi_reduction <add>, %189, %cst_58 [1] : vector<8x10xf32> to vector<8xf32>
    %191 = vector.shape_cast %190 : vector<8xf32> to vector<8x1xf32>
    %192 = math.log %191 : vector<8x1xf32>
    %193 = vector.broadcast %192 : vector<8x1xf32> to vector<8x10xf32>
    %194 = arith.subf %188, %193 : vector<8x10xf32>
    %195 = math.exp %194 : vector<8x10xf32>
    %196 = arith.mulf %195, %194 : vector<8x10xf32>
    %cst_59 = arith.constant dense<0.000000e+00> : vector<8xf32>
    %197 = vector.multi_reduction <add>, %196, %cst_59 [1] : vector<8x10xf32> to vector<8xf32>
    %198 = vector.shape_cast %197 : vector<8xf32> to vector<8x1xf32>
    %cst_60 = arith.constant 0.000000e+00 : f32
    %199 = vector.broadcast %cst_60 : f32 to vector<8x1xf32>
    %200 = arith.subf %199, %198 : vector<8x1xf32>
    %201 = vector.broadcast %186 : vector<8x1xf32> to vector<8x10xf32>
    %202 = arith.cmpf oeq, %184, %201 : vector<8x10xf32>
    %c10_i32_61 = arith.constant 10 : i32
    %203 = vector.broadcast %c10_i32_61 : i32 to vector<8x10xi32>
    %204 = arith.select %202, %3, %203 : vector<8x10xi1>, vector<8x10xi32>
    %cst_62 = arith.constant dense<2147483647> : vector<8xi32>
    %205 = vector.multi_reduction <minsi>, %204, %cst_62 [1] : vector<8x10xi32> to vector<8xi32>
    %206 = vector.shape_cast %205 : vector<8xi32> to vector<8x1xi32>
    %207 = vector.broadcast %206 : vector<8x1xi32> to vector<8x10xi32>
    %208 = arith.cmpi eq, %3, %207 : vector<8x10xi32>
    %cst_63 = arith.constant 0.000000e+00 : f32
    %209 = vector.broadcast %cst_63 : f32 to vector<8x10xf32>
    %210 = arith.select %208, %194, %209 : vector<8x10xi1>, vector<8x10xf32>
    %cst_64 = arith.constant dense<0.000000e+00> : vector<8xf32>
    %211 = vector.multi_reduction <add>, %210, %cst_64 [1] : vector<8x10xf32> to vector<8xf32>
    %212 = vector.shape_cast %211 : vector<8xf32> to vector<8x1xf32>
    %213 = vector.broadcast %c1_i32 : i32 to vector<8x128xi32>
    %214 = arith.cmpi eq, %4, %213 : vector<8x128xi32>
    %215 = arith.sitofp %206 : vector<8x1xi32> to vector<8x1xf32>
    %216 = vector.shape_cast %215 : vector<8x1xf32> to vector<8x1xf32>
    %217 = vector.broadcast %216 : vector<8x1xf32> to vector<8x128xf32>
    %218 = arith.select %214, %217, %125 : vector<8x128xi1>, vector<8x128xf32>
    %c6_i32_65 = arith.constant 6 : i32
    %219 = arith.addi %c6_i32_65, %c1_i32 : i32
    %220 = vector.broadcast %219 : i32 to vector<8x128xi32>
    %221 = arith.cmpi eq, %4, %220 : vector<8x128xi32>
    %222 = vector.shape_cast %212 : vector<8x1xf32> to vector<8x1xf32>
    %223 = vector.broadcast %222 : vector<8x1xf32> to vector<8x128xf32>
    %224 = arith.select %221, %223, %218 : vector<8x128xi1>, vector<8x128xf32>
    %c12_i32_66 = arith.constant 12 : i32
    %225 = arith.addi %c12_i32_66, %c1_i32 : i32
    %226 = vector.broadcast %225 : i32 to vector<8x128xi32>
    %227 = arith.cmpi eq, %4, %226 : vector<8x128xi32>
    %228 = vector.shape_cast %200 : vector<8x1xf32> to vector<8x1xf32>
    %229 = vector.broadcast %228 : vector<8x1xf32> to vector<8x128xf32>
    %230 = arith.select %227, %229, %224 : vector<8x128xi1>, vector<8x128xf32>
    %c6_i32_67 = arith.constant 6 : i32
    %231 = arith.muli %c1_i32, %c6_i32_67 : i32
    %c18_i32_68 = arith.constant 18 : i32
    %232 = arith.addi %c18_i32_68, %231 : i32
    %233 = tpu.concatenate %178, %6 in 1 : vector<8x6xf32>, vector<8x122xf32> -> vector<8x128xf32>
    %234 = tpu.dynamic_rotate %233 by %232 dim 1 : vector<8x128xf32>, i32 -> vector<8x128xf32>
    %235 = vector.broadcast %232 : i32 to vector<8x128xi32>
    %236 = arith.cmpi sge, %4, %235 : vector<8x128xi32>
    %c6_i32_69 = arith.constant 6 : i32
    %237 = arith.addi %232, %c6_i32_69 : i32
    %238 = vector.broadcast %237 : i32 to vector<8x128xi32>
    %239 = arith.cmpi slt, %4, %238 : vector<8x128xi32>
    %240 = arith.andi %236, %239 : vector<8x128xi1>
    %241 = arith.select %240, %234, %230 : vector<8x128xi1>, vector<8x128xf32>
    %c2_i32 = arith.constant 2 : i32
    %242 = vector.broadcast %206 : vector<8x1xi32> to vector<8x16xi32>
    %243 = arith.cmpi eq, %2, %242 : vector<8x16xi32>
    %c13_i32_70 = arith.constant 13 : i32
    %244 = vector.broadcast %c13_i32_70 : i32 to vector<8x16xi32>
    %245 = arith.cmpi eq, %2, %244 : vector<8x16xi32>
    %246 = arith.ori %243, %245 : vector<8x16xi1>
    %247 = arith.extui %246 : vector<8x16xi1> to vector<8x16xi32>
    %248 = arith.sitofp %247 : vector<8x16xi32> to vector<8x16xf32>
    %249 = tpu.concatenate %248, %157, %5 in 1 : vector<8x16xf32>, vector<8x32xf32>, vector<8x80xf32> -> vector<8x128xf32>
    %c0_71 = arith.constant 0 : index
    %c0_72 = arith.constant 0 : index
    %250 = vector.load %arg1[%c0_71, %c0_72] : memref<128x128xf32, #tpu.memory_space<vmem>>, vector<128x128xf32>
    %cst_73 = arith.constant dense<0.000000e+00> : vector<8x128xf32>
    %251 = tpu.matmul %249, %250, %cst_73 {dimension_numbers = #tpu.dot_dimension_numbers<[1], [0], [0], [1], [0, 0, 1, 1], [], []>, precision = #tpu.contract_precision<fp32>} : vector<8x128xf32>, vector<128x128xf32>, vector<8x128xf32> -> vector<8x128xf32>
    %252 = vector.extract_strided_slice %251 {offsets = [0, 0], sizes = [8, 32], strides = [1, 1]} : vector<8x128xf32> to vector<8x32xf32>
    %253 = arith.negf %252 : vector<8x32xf32>
    %254 = math.exp %253 : vector<8x32xf32>
    %cst_74 = arith.constant 1.000000e+00 : f32
    %255 = vector.broadcast %cst_74 : f32 to vector<8x32xf32>
    %256 = arith.addf %255, %254 : vector<8x32xf32>
    %257 = arith.divf %255, %256 : vector<8x32xf32>
    %258 = vector.extract_strided_slice %251 {offsets = [0, 32], sizes = [8, 32], strides = [1, 1]} : vector<8x128xf32> to vector<8x32xf32>
    %259 = arith.negf %258 : vector<8x32xf32>
    %260 = math.exp %259 : vector<8x32xf32>
    %cst_75 = arith.constant 1.000000e+00 : f32
    %261 = vector.broadcast %cst_75 : f32 to vector<8x32xf32>
    %262 = arith.addf %261, %260 : vector<8x32xf32>
    %263 = arith.divf %261, %262 : vector<8x32xf32>
    %264 = vector.extract_strided_slice %251 {offsets = [0, 64], sizes = [8, 32], strides = [1, 1]} : vector<8x128xf32> to vector<8x32xf32>
    %265 = vector.extract_strided_slice %251 {offsets = [0, 96], sizes = [8, 32], strides = [1, 1]} : vector<8x128xf32> to vector<8x32xf32>
    %266 = arith.mulf %257, %265 : vector<8x32xf32>
    %267 = arith.addf %264, %266 : vector<8x32xf32>
    %268 = math.tanh %267 : vector<8x32xf32>
    %cst_76 = arith.constant 1.000000e+00 : f32
    %269 = vector.broadcast %cst_76 : f32 to vector<8x32xf32>
    %270 = arith.subf %269, %263 : vector<8x32xf32>
    %271 = arith.mulf %270, %268 : vector<8x32xf32>
    %272 = arith.mulf %263, %157 : vector<8x32xf32>
    %273 = arith.addf %271, %272 : vector<8x32xf32>
    %c0_77 = arith.constant 0 : index
    %c0_78 = arith.constant 0 : index
    %274 = vector.load %arg4[%c0_77, %c0_78] : memref<32x10xf32, #tpu.memory_space<vmem>>, vector<32x10xf32>
    %cst_79 = arith.constant dense<0.000000e+00> : vector<8x10xf32>
    %275 = tpu.matmul %273, %274, %cst_79 {dimension_numbers = #tpu.dot_dimension_numbers<[1], [0], [0], [1], [0, 0, 1, 1], [], []>, precision = #tpu.contract_precision<fp32>} : vector<8x32xf32>, vector<32x10xf32>, vector<8x10xf32> -> vector<8x10xf32>
    %c0_80 = arith.constant 0 : index
    %c0_81 = arith.constant 0 : index
    %276 = vector.load %arg5[%c0_80, %c0_81] : memref<1x10xf32, #tpu.memory_space<vmem>>, vector<1x10xf32>
    %277 = vector.broadcast %276 : vector<1x10xf32> to vector<8x10xf32>
    %278 = arith.addf %275, %277 : vector<8x10xf32>
    %279 = vector.shape_cast %273 : vector<8x32xf32> to vector<8x1x32xf32>
    %c0_82 = arith.constant 0 : index
    %c0_83 = arith.constant 0 : index
    %c0_84 = arith.constant 0 : index
    %280 = vector.load %arg2[%c0_82, %c0_83, %c0_84] : memref<8x6x32xf32, #tpu.memory_space<vmem>>, vector<8x6x32xf32>
    %281 = vector.broadcast %279 : vector<8x1x32xf32> to vector<8x6x32xf32>
    %282 = arith.mulf %281, %280 : vector<8x6x32xf32>
    %cst_85 = arith.constant dense<0.000000e+00> : vector<8x6xf32>
    %283 = vector.multi_reduction <add>, %282, %cst_85 [2] : vector<8x6x32xf32> to vector<8x6xf32>
    %284 = vector.broadcast %1 : f32 to vector<8x6xf32>
    %285 = arith.mulf %283, %284 : vector<8x6xf32>
    %cst_86 = arith.constant dense<0xFF800000> : vector<8xf32>
    %286 = vector.multi_reduction <maximumf>, %285, %cst_86 [1] : vector<8x6xf32> to vector<8xf32>
    %287 = vector.shape_cast %286 : vector<8xf32> to vector<8x1xf32>
    %288 = vector.broadcast %287 : vector<8x1xf32> to vector<8x6xf32>
    %289 = arith.subf %285, %288 : vector<8x6xf32>
    %290 = math.exp %289 : vector<8x6xf32>
    %cst_87 = arith.constant dense<0.000000e+00> : vector<8xf32>
    %291 = vector.multi_reduction <add>, %290, %cst_87 [1] : vector<8x6xf32> to vector<8xf32>
    %292 = vector.shape_cast %291 : vector<8xf32> to vector<8x1xf32>
    %293 = vector.broadcast %292 : vector<8x1xf32> to vector<8x6xf32>
    %294 = arith.divf %290, %293 : vector<8x6xf32>
    %295 = vector.shape_cast %294 : vector<8x6xf32> to vector<8x6x1xf32>
    %c0_88 = arith.constant 0 : index
    %c0_89 = arith.constant 0 : index
    %c0_90 = arith.constant 0 : index
    %296 = vector.load %arg3[%c0_88, %c0_89, %c0_90] : memref<8x6x10xf32, #tpu.memory_space<vmem>>, vector<8x6x10xf32>
    %297 = vector.broadcast %295 : vector<8x6x1xf32> to vector<8x6x10xf32>
    %298 = arith.mulf %297, %296 : vector<8x6x10xf32>
    %cst_91 = arith.constant dense<0.000000e+00> : vector<8x10xf32>
    %299 = vector.multi_reduction <add>, %298, %cst_91 [1] : vector<8x6x10xf32> to vector<8x10xf32>
    %300 = arith.addf %299, %278 : vector<8x10xf32>
    %cst_92 = arith.constant dense<0xFF800000> : vector<8xf32>
    %301 = vector.multi_reduction <maximumf>, %300, %cst_92 [1] : vector<8x10xf32> to vector<8xf32>
    %302 = vector.shape_cast %301 : vector<8xf32> to vector<8x1xf32>
    %303 = vector.broadcast %302 : vector<8x1xf32> to vector<8x10xf32>
    %304 = arith.subf %300, %303 : vector<8x10xf32>
    %305 = math.exp %304 : vector<8x10xf32>
    %cst_93 = arith.constant dense<0.000000e+00> : vector<8xf32>
    %306 = vector.multi_reduction <add>, %305, %cst_93 [1] : vector<8x10xf32> to vector<8xf32>
    %307 = vector.shape_cast %306 : vector<8xf32> to vector<8x1xf32>
    %308 = math.log %307 : vector<8x1xf32>
    %309 = vector.broadcast %308 : vector<8x1xf32> to vector<8x10xf32>
    %310 = arith.subf %304, %309 : vector<8x10xf32>
    %311 = math.exp %310 : vector<8x10xf32>
    %312 = arith.mulf %311, %310 : vector<8x10xf32>
    %cst_94 = arith.constant dense<0.000000e+00> : vector<8xf32>
    %313 = vector.multi_reduction <add>, %312, %cst_94 [1] : vector<8x10xf32> to vector<8xf32>
    %314 = vector.shape_cast %313 : vector<8xf32> to vector<8x1xf32>
    %cst_95 = arith.constant 0.000000e+00 : f32
    %315 = vector.broadcast %cst_95 : f32 to vector<8x1xf32>
    %316 = arith.subf %315, %314 : vector<8x1xf32>
    %317 = vector.broadcast %302 : vector<8x1xf32> to vector<8x10xf32>
    %318 = arith.cmpf oeq, %300, %317 : vector<8x10xf32>
    %c10_i32_96 = arith.constant 10 : i32
    %319 = vector.broadcast %c10_i32_96 : i32 to vector<8x10xi32>
    %320 = arith.select %318, %3, %319 : vector<8x10xi1>, vector<8x10xi32>
    %cst_97 = arith.constant dense<2147483647> : vector<8xi32>
    %321 = vector.multi_reduction <minsi>, %320, %cst_97 [1] : vector<8x10xi32> to vector<8xi32>
    %322 = vector.shape_cast %321 : vector<8xi32> to vector<8x1xi32>
    %323 = vector.broadcast %322 : vector<8x1xi32> to vector<8x10xi32>
    %324 = arith.cmpi eq, %3, %323 : vector<8x10xi32>
    %cst_98 = arith.constant 0.000000e+00 : f32
    %325 = vector.broadcast %cst_98 : f32 to vector<8x10xf32>
    %326 = arith.select %324, %310, %325 : vector<8x10xi1>, vector<8x10xf32>
    %cst_99 = arith.constant dense<0.000000e+00> : vector<8xf32>
    %327 = vector.multi_reduction <add>, %326, %cst_99 [1] : vector<8x10xf32> to vector<8xf32>
    %328 = vector.shape_cast %327 : vector<8xf32> to vector<8x1xf32>
    %329 = vector.broadcast %c2_i32 : i32 to vector<8x128xi32>
    %330 = arith.cmpi eq, %4, %329 : vector<8x128xi32>
    %331 = arith.sitofp %322 : vector<8x1xi32> to vector<8x1xf32>
    %332 = vector.shape_cast %331 : vector<8x1xf32> to vector<8x1xf32>
    %333 = vector.broadcast %332 : vector<8x1xf32> to vector<8x128xf32>
    %334 = arith.select %330, %333, %241 : vector<8x128xi1>, vector<8x128xf32>
    %c6_i32_100 = arith.constant 6 : i32
    %335 = arith.addi %c6_i32_100, %c2_i32 : i32
    %336 = vector.broadcast %335 : i32 to vector<8x128xi32>
    %337 = arith.cmpi eq, %4, %336 : vector<8x128xi32>
    %338 = vector.shape_cast %328 : vector<8x1xf32> to vector<8x1xf32>
    %339 = vector.broadcast %338 : vector<8x1xf32> to vector<8x128xf32>
    %340 = arith.select %337, %339, %334 : vector<8x128xi1>, vector<8x128xf32>
    %c12_i32_101 = arith.constant 12 : i32
    %341 = arith.addi %c12_i32_101, %c2_i32 : i32
    %342 = vector.broadcast %341 : i32 to vector<8x128xi32>
    %343 = arith.cmpi eq, %4, %342 : vector<8x128xi32>
    %344 = vector.shape_cast %316 : vector<8x1xf32> to vector<8x1xf32>
    %345 = vector.broadcast %344 : vector<8x1xf32> to vector<8x128xf32>
    %346 = arith.select %343, %345, %340 : vector<8x128xi1>, vector<8x128xf32>
    %c6_i32_102 = arith.constant 6 : i32
    %347 = arith.muli %c2_i32, %c6_i32_102 : i32
    %c18_i32_103 = arith.constant 18 : i32
    %348 = arith.addi %c18_i32_103, %347 : i32
    %349 = tpu.concatenate %294, %6 in 1 : vector<8x6xf32>, vector<8x122xf32> -> vector<8x128xf32>
    %350 = tpu.dynamic_rotate %349 by %348 dim 1 : vector<8x128xf32>, i32 -> vector<8x128xf32>
    %351 = vector.broadcast %348 : i32 to vector<8x128xi32>
    %352 = arith.cmpi sge, %4, %351 : vector<8x128xi32>
    %c6_i32_104 = arith.constant 6 : i32
    %353 = arith.addi %348, %c6_i32_104 : i32
    %354 = vector.broadcast %353 : i32 to vector<8x128xi32>
    %355 = arith.cmpi slt, %4, %354 : vector<8x128xi32>
    %356 = arith.andi %352, %355 : vector<8x128xi1>
    %357 = arith.select %356, %350, %346 : vector<8x128xi1>, vector<8x128xf32>
    %c3_i32 = arith.constant 3 : i32
    %358 = vector.broadcast %322 : vector<8x1xi32> to vector<8x16xi32>
    %359 = arith.cmpi eq, %2, %358 : vector<8x16xi32>
    %c13_i32_105 = arith.constant 13 : i32
    %360 = vector.broadcast %c13_i32_105 : i32 to vector<8x16xi32>
    %361 = arith.cmpi eq, %2, %360 : vector<8x16xi32>
    %362 = arith.ori %359, %361 : vector<8x16xi1>
    %363 = arith.extui %362 : vector<8x16xi1> to vector<8x16xi32>
    %364 = arith.sitofp %363 : vector<8x16xi32> to vector<8x16xf32>
    %365 = tpu.concatenate %364, %273, %5 in 1 : vector<8x16xf32>, vector<8x32xf32>, vector<8x80xf32> -> vector<8x128xf32>
    %c0_106 = arith.constant 0 : index
    %c0_107 = arith.constant 0 : index
    %366 = vector.load %arg1[%c0_106, %c0_107] : memref<128x128xf32, #tpu.memory_space<vmem>>, vector<128x128xf32>
    %cst_108 = arith.constant dense<0.000000e+00> : vector<8x128xf32>
    %367 = tpu.matmul %365, %366, %cst_108 {dimension_numbers = #tpu.dot_dimension_numbers<[1], [0], [0], [1], [0, 0, 1, 1], [], []>, precision = #tpu.contract_precision<fp32>} : vector<8x128xf32>, vector<128x128xf32>, vector<8x128xf32> -> vector<8x128xf32>
    %368 = vector.extract_strided_slice %367 {offsets = [0, 0], sizes = [8, 32], strides = [1, 1]} : vector<8x128xf32> to vector<8x32xf32>
    %369 = arith.negf %368 : vector<8x32xf32>
    %370 = math.exp %369 : vector<8x32xf32>
    %cst_109 = arith.constant 1.000000e+00 : f32
    %371 = vector.broadcast %cst_109 : f32 to vector<8x32xf32>
    %372 = arith.addf %371, %370 : vector<8x32xf32>
    %373 = arith.divf %371, %372 : vector<8x32xf32>
    %374 = vector.extract_strided_slice %367 {offsets = [0, 32], sizes = [8, 32], strides = [1, 1]} : vector<8x128xf32> to vector<8x32xf32>
    %375 = arith.negf %374 : vector<8x32xf32>
    %376 = math.exp %375 : vector<8x32xf32>
    %cst_110 = arith.constant 1.000000e+00 : f32
    %377 = vector.broadcast %cst_110 : f32 to vector<8x32xf32>
    %378 = arith.addf %377, %376 : vector<8x32xf32>
    %379 = arith.divf %377, %378 : vector<8x32xf32>
    %380 = vector.extract_strided_slice %367 {offsets = [0, 64], sizes = [8, 32], strides = [1, 1]} : vector<8x128xf32> to vector<8x32xf32>
    %381 = vector.extract_strided_slice %367 {offsets = [0, 96], sizes = [8, 32], strides = [1, 1]} : vector<8x128xf32> to vector<8x32xf32>
    %382 = arith.mulf %373, %381 : vector<8x32xf32>
    %383 = arith.addf %380, %382 : vector<8x32xf32>
    %384 = math.tanh %383 : vector<8x32xf32>
    %cst_111 = arith.constant 1.000000e+00 : f32
    %385 = vector.broadcast %cst_111 : f32 to vector<8x32xf32>
    %386 = arith.subf %385, %379 : vector<8x32xf32>
    %387 = arith.mulf %386, %384 : vector<8x32xf32>
    %388 = arith.mulf %379, %273 : vector<8x32xf32>
    %389 = arith.addf %387, %388 : vector<8x32xf32>
    %c0_112 = arith.constant 0 : index
    %c0_113 = arith.constant 0 : index
    %390 = vector.load %arg4[%c0_112, %c0_113] : memref<32x10xf32, #tpu.memory_space<vmem>>, vector<32x10xf32>
    %cst_114 = arith.constant dense<0.000000e+00> : vector<8x10xf32>
    %391 = tpu.matmul %389, %390, %cst_114 {dimension_numbers = #tpu.dot_dimension_numbers<[1], [0], [0], [1], [0, 0, 1, 1], [], []>, precision = #tpu.contract_precision<fp32>} : vector<8x32xf32>, vector<32x10xf32>, vector<8x10xf32> -> vector<8x10xf32>
    %c0_115 = arith.constant 0 : index
    %c0_116 = arith.constant 0 : index
    %392 = vector.load %arg5[%c0_115, %c0_116] : memref<1x10xf32, #tpu.memory_space<vmem>>, vector<1x10xf32>
    %393 = vector.broadcast %392 : vector<1x10xf32> to vector<8x10xf32>
    %394 = arith.addf %391, %393 : vector<8x10xf32>
    %395 = vector.shape_cast %389 : vector<8x32xf32> to vector<8x1x32xf32>
    %c0_117 = arith.constant 0 : index
    %c0_118 = arith.constant 0 : index
    %c0_119 = arith.constant 0 : index
    %396 = vector.load %arg2[%c0_117, %c0_118, %c0_119] : memref<8x6x32xf32, #tpu.memory_space<vmem>>, vector<8x6x32xf32>
    %397 = vector.broadcast %395 : vector<8x1x32xf32> to vector<8x6x32xf32>
    %398 = arith.mulf %397, %396 : vector<8x6x32xf32>
    %cst_120 = arith.constant dense<0.000000e+00> : vector<8x6xf32>
    %399 = vector.multi_reduction <add>, %398, %cst_120 [2] : vector<8x6x32xf32> to vector<8x6xf32>
    %400 = vector.broadcast %1 : f32 to vector<8x6xf32>
    %401 = arith.mulf %399, %400 : vector<8x6xf32>
    %cst_121 = arith.constant dense<0xFF800000> : vector<8xf32>
    %402 = vector.multi_reduction <maximumf>, %401, %cst_121 [1] : vector<8x6xf32> to vector<8xf32>
    %403 = vector.shape_cast %402 : vector<8xf32> to vector<8x1xf32>
    %404 = vector.broadcast %403 : vector<8x1xf32> to vector<8x6xf32>
    %405 = arith.subf %401, %404 : vector<8x6xf32>
    %406 = math.exp %405 : vector<8x6xf32>
    %cst_122 = arith.constant dense<0.000000e+00> : vector<8xf32>
    %407 = vector.multi_reduction <add>, %406, %cst_122 [1] : vector<8x6xf32> to vector<8xf32>
    %408 = vector.shape_cast %407 : vector<8xf32> to vector<8x1xf32>
    %409 = vector.broadcast %408 : vector<8x1xf32> to vector<8x6xf32>
    %410 = arith.divf %406, %409 : vector<8x6xf32>
    %411 = vector.shape_cast %410 : vector<8x6xf32> to vector<8x6x1xf32>
    %c0_123 = arith.constant 0 : index
    %c0_124 = arith.constant 0 : index
    %c0_125 = arith.constant 0 : index
    %412 = vector.load %arg3[%c0_123, %c0_124, %c0_125] : memref<8x6x10xf32, #tpu.memory_space<vmem>>, vector<8x6x10xf32>
    %413 = vector.broadcast %411 : vector<8x6x1xf32> to vector<8x6x10xf32>
    %414 = arith.mulf %413, %412 : vector<8x6x10xf32>
    %cst_126 = arith.constant dense<0.000000e+00> : vector<8x10xf32>
    %415 = vector.multi_reduction <add>, %414, %cst_126 [1] : vector<8x6x10xf32> to vector<8x10xf32>
    %416 = arith.addf %415, %394 : vector<8x10xf32>
    %cst_127 = arith.constant dense<0xFF800000> : vector<8xf32>
    %417 = vector.multi_reduction <maximumf>, %416, %cst_127 [1] : vector<8x10xf32> to vector<8xf32>
    %418 = vector.shape_cast %417 : vector<8xf32> to vector<8x1xf32>
    %419 = vector.broadcast %418 : vector<8x1xf32> to vector<8x10xf32>
    %420 = arith.subf %416, %419 : vector<8x10xf32>
    %421 = math.exp %420 : vector<8x10xf32>
    %cst_128 = arith.constant dense<0.000000e+00> : vector<8xf32>
    %422 = vector.multi_reduction <add>, %421, %cst_128 [1] : vector<8x10xf32> to vector<8xf32>
    %423 = vector.shape_cast %422 : vector<8xf32> to vector<8x1xf32>
    %424 = math.log %423 : vector<8x1xf32>
    %425 = vector.broadcast %424 : vector<8x1xf32> to vector<8x10xf32>
    %426 = arith.subf %420, %425 : vector<8x10xf32>
    %427 = math.exp %426 : vector<8x10xf32>
    %428 = arith.mulf %427, %426 : vector<8x10xf32>
    %cst_129 = arith.constant dense<0.000000e+00> : vector<8xf32>
    %429 = vector.multi_reduction <add>, %428, %cst_129 [1] : vector<8x10xf32> to vector<8xf32>
    %430 = vector.shape_cast %429 : vector<8xf32> to vector<8x1xf32>
    %cst_130 = arith.constant 0.000000e+00 : f32
    %431 = vector.broadcast %cst_130 : f32 to vector<8x1xf32>
    %432 = arith.subf %431, %430 : vector<8x1xf32>
    %433 = vector.broadcast %418 : vector<8x1xf32> to vector<8x10xf32>
    %434 = arith.cmpf oeq, %416, %433 : vector<8x10xf32>
    %c10_i32_131 = arith.constant 10 : i32
    %435 = vector.broadcast %c10_i32_131 : i32 to vector<8x10xi32>
    %436 = arith.select %434, %3, %435 : vector<8x10xi1>, vector<8x10xi32>
    %cst_132 = arith.constant dense<2147483647> : vector<8xi32>
    %437 = vector.multi_reduction <minsi>, %436, %cst_132 [1] : vector<8x10xi32> to vector<8xi32>
    %438 = vector.shape_cast %437 : vector<8xi32> to vector<8x1xi32>
    %439 = vector.broadcast %438 : vector<8x1xi32> to vector<8x10xi32>
    %440 = arith.cmpi eq, %3, %439 : vector<8x10xi32>
    %cst_133 = arith.constant 0.000000e+00 : f32
    %441 = vector.broadcast %cst_133 : f32 to vector<8x10xf32>
    %442 = arith.select %440, %426, %441 : vector<8x10xi1>, vector<8x10xf32>
    %cst_134 = arith.constant dense<0.000000e+00> : vector<8xf32>
    %443 = vector.multi_reduction <add>, %442, %cst_134 [1] : vector<8x10xf32> to vector<8xf32>
    %444 = vector.shape_cast %443 : vector<8xf32> to vector<8x1xf32>
    %445 = vector.broadcast %c3_i32 : i32 to vector<8x128xi32>
    %446 = arith.cmpi eq, %4, %445 : vector<8x128xi32>
    %447 = arith.sitofp %438 : vector<8x1xi32> to vector<8x1xf32>
    %448 = vector.shape_cast %447 : vector<8x1xf32> to vector<8x1xf32>
    %449 = vector.broadcast %448 : vector<8x1xf32> to vector<8x128xf32>
    %450 = arith.select %446, %449, %357 : vector<8x128xi1>, vector<8x128xf32>
    %c6_i32_135 = arith.constant 6 : i32
    %451 = arith.addi %c6_i32_135, %c3_i32 : i32
    %452 = vector.broadcast %451 : i32 to vector<8x128xi32>
    %453 = arith.cmpi eq, %4, %452 : vector<8x128xi32>
    %454 = vector.shape_cast %444 : vector<8x1xf32> to vector<8x1xf32>
    %455 = vector.broadcast %454 : vector<8x1xf32> to vector<8x128xf32>
    %456 = arith.select %453, %455, %450 : vector<8x128xi1>, vector<8x128xf32>
    %c12_i32_136 = arith.constant 12 : i32
    %457 = arith.addi %c12_i32_136, %c3_i32 : i32
    %458 = vector.broadcast %457 : i32 to vector<8x128xi32>
    %459 = arith.cmpi eq, %4, %458 : vector<8x128xi32>
    %460 = vector.shape_cast %432 : vector<8x1xf32> to vector<8x1xf32>
    %461 = vector.broadcast %460 : vector<8x1xf32> to vector<8x128xf32>
    %462 = arith.select %459, %461, %456 : vector<8x128xi1>, vector<8x128xf32>
    %c6_i32_137 = arith.constant 6 : i32
    %463 = arith.muli %c3_i32, %c6_i32_137 : i32
    %c18_i32_138 = arith.constant 18 : i32
    %464 = arith.addi %c18_i32_138, %463 : i32
    %465 = tpu.concatenate %410, %6 in 1 : vector<8x6xf32>, vector<8x122xf32> -> vector<8x128xf32>
    %466 = tpu.dynamic_rotate %465 by %464 dim 1 : vector<8x128xf32>, i32 -> vector<8x128xf32>
    %467 = vector.broadcast %464 : i32 to vector<8x128xi32>
    %468 = arith.cmpi sge, %4, %467 : vector<8x128xi32>
    %c6_i32_139 = arith.constant 6 : i32
    %469 = arith.addi %464, %c6_i32_139 : i32
    %470 = vector.broadcast %469 : i32 to vector<8x128xi32>
    %471 = arith.cmpi slt, %4, %470 : vector<8x128xi32>
    %472 = arith.andi %468, %471 : vector<8x128xi1>
    %473 = arith.select %472, %466, %462 : vector<8x128xi1>, vector<8x128xf32>
    %c4_i32 = arith.constant 4 : i32
    %474 = vector.broadcast %438 : vector<8x1xi32> to vector<8x16xi32>
    %475 = arith.cmpi eq, %2, %474 : vector<8x16xi32>
    %c13_i32_140 = arith.constant 13 : i32
    %476 = vector.broadcast %c13_i32_140 : i32 to vector<8x16xi32>
    %477 = arith.cmpi eq, %2, %476 : vector<8x16xi32>
    %478 = arith.ori %475, %477 : vector<8x16xi1>
    %479 = arith.extui %478 : vector<8x16xi1> to vector<8x16xi32>
    %480 = arith.sitofp %479 : vector<8x16xi32> to vector<8x16xf32>
    %481 = tpu.concatenate %480, %389, %5 in 1 : vector<8x16xf32>, vector<8x32xf32>, vector<8x80xf32> -> vector<8x128xf32>
    %c0_141 = arith.constant 0 : index
    %c0_142 = arith.constant 0 : index
    %482 = vector.load %arg1[%c0_141, %c0_142] : memref<128x128xf32, #tpu.memory_space<vmem>>, vector<128x128xf32>
    %cst_143 = arith.constant dense<0.000000e+00> : vector<8x128xf32>
    %483 = tpu.matmul %481, %482, %cst_143 {dimension_numbers = #tpu.dot_dimension_numbers<[1], [0], [0], [1], [0, 0, 1, 1], [], []>, precision = #tpu.contract_precision<fp32>} : vector<8x128xf32>, vector<128x128xf32>, vector<8x128xf32> -> vector<8x128xf32>
    %484 = vector.extract_strided_slice %483 {offsets = [0, 0], sizes = [8, 32], strides = [1, 1]} : vector<8x128xf32> to vector<8x32xf32>
    %485 = arith.negf %484 : vector<8x32xf32>
    %486 = math.exp %485 : vector<8x32xf32>
    %cst_144 = arith.constant 1.000000e+00 : f32
    %487 = vector.broadcast %cst_144 : f32 to vector<8x32xf32>
    %488 = arith.addf %487, %486 : vector<8x32xf32>
    %489 = arith.divf %487, %488 : vector<8x32xf32>
    %490 = vector.extract_strided_slice %483 {offsets = [0, 32], sizes = [8, 32], strides = [1, 1]} : vector<8x128xf32> to vector<8x32xf32>
    %491 = arith.negf %490 : vector<8x32xf32>
    %492 = math.exp %491 : vector<8x32xf32>
    %cst_145 = arith.constant 1.000000e+00 : f32
    %493 = vector.broadcast %cst_145 : f32 to vector<8x32xf32>
    %494 = arith.addf %493, %492 : vector<8x32xf32>
    %495 = arith.divf %493, %494 : vector<8x32xf32>
    %496 = vector.extract_strided_slice %483 {offsets = [0, 64], sizes = [8, 32], strides = [1, 1]} : vector<8x128xf32> to vector<8x32xf32>
    %497 = vector.extract_strided_slice %483 {offsets = [0, 96], sizes = [8, 32], strides = [1, 1]} : vector<8x128xf32> to vector<8x32xf32>
    %498 = arith.mulf %489, %497 : vector<8x32xf32>
    %499 = arith.addf %496, %498 : vector<8x32xf32>
    %500 = math.tanh %499 : vector<8x32xf32>
    %cst_146 = arith.constant 1.000000e+00 : f32
    %501 = vector.broadcast %cst_146 : f32 to vector<8x32xf32>
    %502 = arith.subf %501, %495 : vector<8x32xf32>
    %503 = arith.mulf %502, %500 : vector<8x32xf32>
    %504 = arith.mulf %495, %389 : vector<8x32xf32>
    %505 = arith.addf %503, %504 : vector<8x32xf32>
    %c0_147 = arith.constant 0 : index
    %c0_148 = arith.constant 0 : index
    %506 = vector.load %arg4[%c0_147, %c0_148] : memref<32x10xf32, #tpu.memory_space<vmem>>, vector<32x10xf32>
    %cst_149 = arith.constant dense<0.000000e+00> : vector<8x10xf32>
    %507 = tpu.matmul %505, %506, %cst_149 {dimension_numbers = #tpu.dot_dimension_numbers<[1], [0], [0], [1], [0, 0, 1, 1], [], []>, precision = #tpu.contract_precision<fp32>} : vector<8x32xf32>, vector<32x10xf32>, vector<8x10xf32> -> vector<8x10xf32>
    %c0_150 = arith.constant 0 : index
    %c0_151 = arith.constant 0 : index
    %508 = vector.load %arg5[%c0_150, %c0_151] : memref<1x10xf32, #tpu.memory_space<vmem>>, vector<1x10xf32>
    %509 = vector.broadcast %508 : vector<1x10xf32> to vector<8x10xf32>
    %510 = arith.addf %507, %509 : vector<8x10xf32>
    %511 = vector.shape_cast %505 : vector<8x32xf32> to vector<8x1x32xf32>
    %c0_152 = arith.constant 0 : index
    %c0_153 = arith.constant 0 : index
    %c0_154 = arith.constant 0 : index
    %512 = vector.load %arg2[%c0_152, %c0_153, %c0_154] : memref<8x6x32xf32, #tpu.memory_space<vmem>>, vector<8x6x32xf32>
    %513 = vector.broadcast %511 : vector<8x1x32xf32> to vector<8x6x32xf32>
    %514 = arith.mulf %513, %512 : vector<8x6x32xf32>
    %cst_155 = arith.constant dense<0.000000e+00> : vector<8x6xf32>
    %515 = vector.multi_reduction <add>, %514, %cst_155 [2] : vector<8x6x32xf32> to vector<8x6xf32>
    %516 = vector.broadcast %1 : f32 to vector<8x6xf32>
    %517 = arith.mulf %515, %516 : vector<8x6xf32>
    %cst_156 = arith.constant dense<0xFF800000> : vector<8xf32>
    %518 = vector.multi_reduction <maximumf>, %517, %cst_156 [1] : vector<8x6xf32> to vector<8xf32>
    %519 = vector.shape_cast %518 : vector<8xf32> to vector<8x1xf32>
    %520 = vector.broadcast %519 : vector<8x1xf32> to vector<8x6xf32>
    %521 = arith.subf %517, %520 : vector<8x6xf32>
    %522 = math.exp %521 : vector<8x6xf32>
    %cst_157 = arith.constant dense<0.000000e+00> : vector<8xf32>
    %523 = vector.multi_reduction <add>, %522, %cst_157 [1] : vector<8x6xf32> to vector<8xf32>
    %524 = vector.shape_cast %523 : vector<8xf32> to vector<8x1xf32>
    %525 = vector.broadcast %524 : vector<8x1xf32> to vector<8x6xf32>
    %526 = arith.divf %522, %525 : vector<8x6xf32>
    %527 = vector.shape_cast %526 : vector<8x6xf32> to vector<8x6x1xf32>
    %c0_158 = arith.constant 0 : index
    %c0_159 = arith.constant 0 : index
    %c0_160 = arith.constant 0 : index
    %528 = vector.load %arg3[%c0_158, %c0_159, %c0_160] : memref<8x6x10xf32, #tpu.memory_space<vmem>>, vector<8x6x10xf32>
    %529 = vector.broadcast %527 : vector<8x6x1xf32> to vector<8x6x10xf32>
    %530 = arith.mulf %529, %528 : vector<8x6x10xf32>
    %cst_161 = arith.constant dense<0.000000e+00> : vector<8x10xf32>
    %531 = vector.multi_reduction <add>, %530, %cst_161 [1] : vector<8x6x10xf32> to vector<8x10xf32>
    %532 = arith.addf %531, %510 : vector<8x10xf32>
    %cst_162 = arith.constant dense<0xFF800000> : vector<8xf32>
    %533 = vector.multi_reduction <maximumf>, %532, %cst_162 [1] : vector<8x10xf32> to vector<8xf32>
    %534 = vector.shape_cast %533 : vector<8xf32> to vector<8x1xf32>
    %535 = vector.broadcast %534 : vector<8x1xf32> to vector<8x10xf32>
    %536 = arith.subf %532, %535 : vector<8x10xf32>
    %537 = math.exp %536 : vector<8x10xf32>
    %cst_163 = arith.constant dense<0.000000e+00> : vector<8xf32>
    %538 = vector.multi_reduction <add>, %537, %cst_163 [1] : vector<8x10xf32> to vector<8xf32>
    %539 = vector.shape_cast %538 : vector<8xf32> to vector<8x1xf32>
    %540 = math.log %539 : vector<8x1xf32>
    %541 = vector.broadcast %540 : vector<8x1xf32> to vector<8x10xf32>
    %542 = arith.subf %536, %541 : vector<8x10xf32>
    %543 = math.exp %542 : vector<8x10xf32>
    %544 = arith.mulf %543, %542 : vector<8x10xf32>
    %cst_164 = arith.constant dense<0.000000e+00> : vector<8xf32>
    %545 = vector.multi_reduction <add>, %544, %cst_164 [1] : vector<8x10xf32> to vector<8xf32>
    %546 = vector.shape_cast %545 : vector<8xf32> to vector<8x1xf32>
    %cst_165 = arith.constant 0.000000e+00 : f32
    %547 = vector.broadcast %cst_165 : f32 to vector<8x1xf32>
    %548 = arith.subf %547, %546 : vector<8x1xf32>
    %549 = vector.broadcast %534 : vector<8x1xf32> to vector<8x10xf32>
    %550 = arith.cmpf oeq, %532, %549 : vector<8x10xf32>
    %c10_i32_166 = arith.constant 10 : i32
    %551 = vector.broadcast %c10_i32_166 : i32 to vector<8x10xi32>
    %552 = arith.select %550, %3, %551 : vector<8x10xi1>, vector<8x10xi32>
    %cst_167 = arith.constant dense<2147483647> : vector<8xi32>
    %553 = vector.multi_reduction <minsi>, %552, %cst_167 [1] : vector<8x10xi32> to vector<8xi32>
    %554 = vector.shape_cast %553 : vector<8xi32> to vector<8x1xi32>
    %555 = vector.broadcast %554 : vector<8x1xi32> to vector<8x10xi32>
    %556 = arith.cmpi eq, %3, %555 : vector<8x10xi32>
    %cst_168 = arith.constant 0.000000e+00 : f32
    %557 = vector.broadcast %cst_168 : f32 to vector<8x10xf32>
    %558 = arith.select %556, %542, %557 : vector<8x10xi1>, vector<8x10xf32>
    %cst_169 = arith.constant dense<0.000000e+00> : vector<8xf32>
    %559 = vector.multi_reduction <add>, %558, %cst_169 [1] : vector<8x10xf32> to vector<8xf32>
    %560 = vector.shape_cast %559 : vector<8xf32> to vector<8x1xf32>
    %561 = vector.broadcast %c4_i32 : i32 to vector<8x128xi32>
    %562 = arith.cmpi eq, %4, %561 : vector<8x128xi32>
    %563 = arith.sitofp %554 : vector<8x1xi32> to vector<8x1xf32>
    %564 = vector.shape_cast %563 : vector<8x1xf32> to vector<8x1xf32>
    %565 = vector.broadcast %564 : vector<8x1xf32> to vector<8x128xf32>
    %566 = arith.select %562, %565, %473 : vector<8x128xi1>, vector<8x128xf32>
    %c6_i32_170 = arith.constant 6 : i32
    %567 = arith.addi %c6_i32_170, %c4_i32 : i32
    %568 = vector.broadcast %567 : i32 to vector<8x128xi32>
    %569 = arith.cmpi eq, %4, %568 : vector<8x128xi32>
    %570 = vector.shape_cast %560 : vector<8x1xf32> to vector<8x1xf32>
    %571 = vector.broadcast %570 : vector<8x1xf32> to vector<8x128xf32>
    %572 = arith.select %569, %571, %566 : vector<8x128xi1>, vector<8x128xf32>
    %c12_i32_171 = arith.constant 12 : i32
    %573 = arith.addi %c12_i32_171, %c4_i32 : i32
    %574 = vector.broadcast %573 : i32 to vector<8x128xi32>
    %575 = arith.cmpi eq, %4, %574 : vector<8x128xi32>
    %576 = vector.shape_cast %548 : vector<8x1xf32> to vector<8x1xf32>
    %577 = vector.broadcast %576 : vector<8x1xf32> to vector<8x128xf32>
    %578 = arith.select %575, %577, %572 : vector<8x128xi1>, vector<8x128xf32>
    %c6_i32_172 = arith.constant 6 : i32
    %579 = arith.muli %c4_i32, %c6_i32_172 : i32
    %c18_i32_173 = arith.constant 18 : i32
    %580 = arith.addi %c18_i32_173, %579 : i32
    %581 = tpu.concatenate %526, %6 in 1 : vector<8x6xf32>, vector<8x122xf32> -> vector<8x128xf32>
    %582 = tpu.dynamic_rotate %581 by %580 dim 1 : vector<8x128xf32>, i32 -> vector<8x128xf32>
    %583 = vector.broadcast %580 : i32 to vector<8x128xi32>
    %584 = arith.cmpi sge, %4, %583 : vector<8x128xi32>
    %c6_i32_174 = arith.constant 6 : i32
    %585 = arith.addi %580, %c6_i32_174 : i32
    %586 = vector.broadcast %585 : i32 to vector<8x128xi32>
    %587 = arith.cmpi slt, %4, %586 : vector<8x128xi32>
    %588 = arith.andi %584, %587 : vector<8x128xi1>
    %589 = arith.select %588, %582, %578 : vector<8x128xi1>, vector<8x128xf32>
    %c5_i32 = arith.constant 5 : i32
    %590 = vector.broadcast %554 : vector<8x1xi32> to vector<8x16xi32>
    %591 = arith.cmpi eq, %2, %590 : vector<8x16xi32>
    %c13_i32_175 = arith.constant 13 : i32
    %592 = vector.broadcast %c13_i32_175 : i32 to vector<8x16xi32>
    %593 = arith.cmpi eq, %2, %592 : vector<8x16xi32>
    %594 = arith.ori %591, %593 : vector<8x16xi1>
    %595 = arith.extui %594 : vector<8x16xi1> to vector<8x16xi32>
    %596 = arith.sitofp %595 : vector<8x16xi32> to vector<8x16xf32>
    %597 = tpu.concatenate %596, %505, %5 in 1 : vector<8x16xf32>, vector<8x32xf32>, vector<8x80xf32> -> vector<8x128xf32>
    %c0_176 = arith.constant 0 : index
    %c0_177 = arith.constant 0 : index
    %598 = vector.load %arg1[%c0_176, %c0_177] : memref<128x128xf32, #tpu.memory_space<vmem>>, vector<128x128xf32>
    %cst_178 = arith.constant dense<0.000000e+00> : vector<8x128xf32>
    %599 = tpu.matmul %597, %598, %cst_178 {dimension_numbers = #tpu.dot_dimension_numbers<[1], [0], [0], [1], [0, 0, 1, 1], [], []>, precision = #tpu.contract_precision<fp32>} : vector<8x128xf32>, vector<128x128xf32>, vector<8x128xf32> -> vector<8x128xf32>
    %600 = vector.extract_strided_slice %599 {offsets = [0, 0], sizes = [8, 32], strides = [1, 1]} : vector<8x128xf32> to vector<8x32xf32>
    %601 = arith.negf %600 : vector<8x32xf32>
    %602 = math.exp %601 : vector<8x32xf32>
    %cst_179 = arith.constant 1.000000e+00 : f32
    %603 = vector.broadcast %cst_179 : f32 to vector<8x32xf32>
    %604 = arith.addf %603, %602 : vector<8x32xf32>
    %605 = arith.divf %603, %604 : vector<8x32xf32>
    %606 = vector.extract_strided_slice %599 {offsets = [0, 32], sizes = [8, 32], strides = [1, 1]} : vector<8x128xf32> to vector<8x32xf32>
    %607 = arith.negf %606 : vector<8x32xf32>
    %608 = math.exp %607 : vector<8x32xf32>
    %cst_180 = arith.constant 1.000000e+00 : f32
    %609 = vector.broadcast %cst_180 : f32 to vector<8x32xf32>
    %610 = arith.addf %609, %608 : vector<8x32xf32>
    %611 = arith.divf %609, %610 : vector<8x32xf32>
    %612 = vector.extract_strided_slice %599 {offsets = [0, 64], sizes = [8, 32], strides = [1, 1]} : vector<8x128xf32> to vector<8x32xf32>
    %613 = vector.extract_strided_slice %599 {offsets = [0, 96], sizes = [8, 32], strides = [1, 1]} : vector<8x128xf32> to vector<8x32xf32>
    %614 = arith.mulf %605, %613 : vector<8x32xf32>
    %615 = arith.addf %612, %614 : vector<8x32xf32>
    %616 = math.tanh %615 : vector<8x32xf32>
    %cst_181 = arith.constant 1.000000e+00 : f32
    %617 = vector.broadcast %cst_181 : f32 to vector<8x32xf32>
    %618 = arith.subf %617, %611 : vector<8x32xf32>
    %619 = arith.mulf %618, %616 : vector<8x32xf32>
    %620 = arith.mulf %611, %505 : vector<8x32xf32>
    %621 = arith.addf %619, %620 : vector<8x32xf32>
    %c0_182 = arith.constant 0 : index
    %c0_183 = arith.constant 0 : index
    %622 = vector.load %arg4[%c0_182, %c0_183] : memref<32x10xf32, #tpu.memory_space<vmem>>, vector<32x10xf32>
    %cst_184 = arith.constant dense<0.000000e+00> : vector<8x10xf32>
    %623 = tpu.matmul %621, %622, %cst_184 {dimension_numbers = #tpu.dot_dimension_numbers<[1], [0], [0], [1], [0, 0, 1, 1], [], []>, precision = #tpu.contract_precision<fp32>} : vector<8x32xf32>, vector<32x10xf32>, vector<8x10xf32> -> vector<8x10xf32>
    %c0_185 = arith.constant 0 : index
    %c0_186 = arith.constant 0 : index
    %624 = vector.load %arg5[%c0_185, %c0_186] : memref<1x10xf32, #tpu.memory_space<vmem>>, vector<1x10xf32>
    %625 = vector.broadcast %624 : vector<1x10xf32> to vector<8x10xf32>
    %626 = arith.addf %623, %625 : vector<8x10xf32>
    %627 = vector.shape_cast %621 : vector<8x32xf32> to vector<8x1x32xf32>
    %c0_187 = arith.constant 0 : index
    %c0_188 = arith.constant 0 : index
    %c0_189 = arith.constant 0 : index
    %628 = vector.load %arg2[%c0_187, %c0_188, %c0_189] : memref<8x6x32xf32, #tpu.memory_space<vmem>>, vector<8x6x32xf32>
    %629 = vector.broadcast %627 : vector<8x1x32xf32> to vector<8x6x32xf32>
    %630 = arith.mulf %629, %628 : vector<8x6x32xf32>
    %cst_190 = arith.constant dense<0.000000e+00> : vector<8x6xf32>
    %631 = vector.multi_reduction <add>, %630, %cst_190 [2] : vector<8x6x32xf32> to vector<8x6xf32>
    %632 = vector.broadcast %1 : f32 to vector<8x6xf32>
    %633 = arith.mulf %631, %632 : vector<8x6xf32>
    %cst_191 = arith.constant dense<0xFF800000> : vector<8xf32>
    %634 = vector.multi_reduction <maximumf>, %633, %cst_191 [1] : vector<8x6xf32> to vector<8xf32>
    %635 = vector.shape_cast %634 : vector<8xf32> to vector<8x1xf32>
    %636 = vector.broadcast %635 : vector<8x1xf32> to vector<8x6xf32>
    %637 = arith.subf %633, %636 : vector<8x6xf32>
    %638 = math.exp %637 : vector<8x6xf32>
    %cst_192 = arith.constant dense<0.000000e+00> : vector<8xf32>
    %639 = vector.multi_reduction <add>, %638, %cst_192 [1] : vector<8x6xf32> to vector<8xf32>
    %640 = vector.shape_cast %639 : vector<8xf32> to vector<8x1xf32>
    %641 = vector.broadcast %640 : vector<8x1xf32> to vector<8x6xf32>
    %642 = arith.divf %638, %641 : vector<8x6xf32>
    %643 = vector.shape_cast %642 : vector<8x6xf32> to vector<8x6x1xf32>
    %c0_193 = arith.constant 0 : index
    %c0_194 = arith.constant 0 : index
    %c0_195 = arith.constant 0 : index
    %644 = vector.load %arg3[%c0_193, %c0_194, %c0_195] : memref<8x6x10xf32, #tpu.memory_space<vmem>>, vector<8x6x10xf32>
    %645 = vector.broadcast %643 : vector<8x6x1xf32> to vector<8x6x10xf32>
    %646 = arith.mulf %645, %644 : vector<8x6x10xf32>
    %cst_196 = arith.constant dense<0.000000e+00> : vector<8x10xf32>
    %647 = vector.multi_reduction <add>, %646, %cst_196 [1] : vector<8x6x10xf32> to vector<8x10xf32>
    %648 = arith.addf %647, %626 : vector<8x10xf32>
    %cst_197 = arith.constant dense<0xFF800000> : vector<8xf32>
    %649 = vector.multi_reduction <maximumf>, %648, %cst_197 [1] : vector<8x10xf32> to vector<8xf32>
    %650 = vector.shape_cast %649 : vector<8xf32> to vector<8x1xf32>
    %651 = vector.broadcast %650 : vector<8x1xf32> to vector<8x10xf32>
    %652 = arith.subf %648, %651 : vector<8x10xf32>
    %653 = math.exp %652 : vector<8x10xf32>
    %cst_198 = arith.constant dense<0.000000e+00> : vector<8xf32>
    %654 = vector.multi_reduction <add>, %653, %cst_198 [1] : vector<8x10xf32> to vector<8xf32>
    %655 = vector.shape_cast %654 : vector<8xf32> to vector<8x1xf32>
    %656 = math.log %655 : vector<8x1xf32>
    %657 = vector.broadcast %656 : vector<8x1xf32> to vector<8x10xf32>
    %658 = arith.subf %652, %657 : vector<8x10xf32>
    %659 = math.exp %658 : vector<8x10xf32>
    %660 = arith.mulf %659, %658 : vector<8x10xf32>
    %cst_199 = arith.constant dense<0.000000e+00> : vector<8xf32>
    %661 = vector.multi_reduction <add>, %660, %cst_199 [1] : vector<8x10xf32> to vector<8xf32>
    %662 = vector.shape_cast %661 : vector<8xf32> to vector<8x1xf32>
    %cst_200 = arith.constant 0.000000e+00 : f32
    %663 = vector.broadcast %cst_200 : f32 to vector<8x1xf32>
    %664 = arith.subf %663, %662 : vector<8x1xf32>
    %665 = vector.broadcast %650 : vector<8x1xf32> to vector<8x10xf32>
    %666 = arith.cmpf oeq, %648, %665 : vector<8x10xf32>
    %c10_i32_201 = arith.constant 10 : i32
    %667 = vector.broadcast %c10_i32_201 : i32 to vector<8x10xi32>
    %668 = arith.select %666, %3, %667 : vector<8x10xi1>, vector<8x10xi32>
    %cst_202 = arith.constant dense<2147483647> : vector<8xi32>
    %669 = vector.multi_reduction <minsi>, %668, %cst_202 [1] : vector<8x10xi32> to vector<8xi32>
    %670 = vector.shape_cast %669 : vector<8xi32> to vector<8x1xi32>
    %671 = vector.broadcast %670 : vector<8x1xi32> to vector<8x10xi32>
    %672 = arith.cmpi eq, %3, %671 : vector<8x10xi32>
    %cst_203 = arith.constant 0.000000e+00 : f32
    %673 = vector.broadcast %cst_203 : f32 to vector<8x10xf32>
    %674 = arith.select %672, %658, %673 : vector<8x10xi1>, vector<8x10xf32>
    %cst_204 = arith.constant dense<0.000000e+00> : vector<8xf32>
    %675 = vector.multi_reduction <add>, %674, %cst_204 [1] : vector<8x10xf32> to vector<8xf32>
    %676 = vector.shape_cast %675 : vector<8xf32> to vector<8x1xf32>
    %677 = vector.broadcast %c5_i32 : i32 to vector<8x128xi32>
    %678 = arith.cmpi eq, %4, %677 : vector<8x128xi32>
    %679 = arith.sitofp %670 : vector<8x1xi32> to vector<8x1xf32>
    %680 = vector.shape_cast %679 : vector<8x1xf32> to vector<8x1xf32>
    %681 = vector.broadcast %680 : vector<8x1xf32> to vector<8x128xf32>
    %682 = arith.select %678, %681, %589 : vector<8x128xi1>, vector<8x128xf32>
    %c6_i32_205 = arith.constant 6 : i32
    %683 = arith.addi %c6_i32_205, %c5_i32 : i32
    %684 = vector.broadcast %683 : i32 to vector<8x128xi32>
    %685 = arith.cmpi eq, %4, %684 : vector<8x128xi32>
    %686 = vector.shape_cast %676 : vector<8x1xf32> to vector<8x1xf32>
    %687 = vector.broadcast %686 : vector<8x1xf32> to vector<8x128xf32>
    %688 = arith.select %685, %687, %682 : vector<8x128xi1>, vector<8x128xf32>
    %c12_i32_206 = arith.constant 12 : i32
    %689 = arith.addi %c12_i32_206, %c5_i32 : i32
    %690 = vector.broadcast %689 : i32 to vector<8x128xi32>
    %691 = arith.cmpi eq, %4, %690 : vector<8x128xi32>
    %692 = vector.shape_cast %664 : vector<8x1xf32> to vector<8x1xf32>
    %693 = vector.broadcast %692 : vector<8x1xf32> to vector<8x128xf32>
    %694 = arith.select %691, %693, %688 : vector<8x128xi1>, vector<8x128xf32>
    %c6_i32_207 = arith.constant 6 : i32
    %695 = arith.muli %c5_i32, %c6_i32_207 : i32
    %c18_i32_208 = arith.constant 18 : i32
    %696 = arith.addi %c18_i32_208, %695 : i32
    %697 = tpu.concatenate %642, %6 in 1 : vector<8x6xf32>, vector<8x122xf32> -> vector<8x128xf32>
    %698 = tpu.dynamic_rotate %697 by %696 dim 1 : vector<8x128xf32>, i32 -> vector<8x128xf32>
    %699 = vector.broadcast %696 : i32 to vector<8x128xi32>
    %700 = arith.cmpi sge, %4, %699 : vector<8x128xi32>
    %c6_i32_209 = arith.constant 6 : i32
    %701 = arith.addi %696, %c6_i32_209 : i32
    %702 = vector.broadcast %701 : i32 to vector<8x128xi32>
    %703 = arith.cmpi slt, %4, %702 : vector<8x128xi32>
    %704 = arith.andi %700, %703 : vector<8x128xi1>
    %705 = arith.select %704, %698, %694 : vector<8x128xi1>, vector<8x128xf32>
    %c6_i32_210 = arith.constant 6 : i32
    %c0_211 = arith.constant 0 : index
    %c0_212 = arith.constant 0 : index
    %706 = vector.load %arg6[%c0_211, %c0_212] : memref<8x128xf32, #tpu.memory_space<vmem>>, vector<8x128xf32>
    tpu.vector_store %arg6[%c0_211, %c0_212], %705 {strides = array<i32>} : memref<8x128xf32, #tpu.memory_space<vmem>>, vector<8x128xf32>,
    return
  }
  func.func @transform_0(%arg0: i32) -> (i32, i32) {
    %c0_i32 = arith.constant 0 : i32
    %c0_i32_0 = arith.constant 0 : i32
    %c0_i32_1 = arith.constant 0 : i32
    return %c0_i32, %c0_i32_0 : i32, i32
  }
  func.func @transform_1(%arg0: i32) -> (i32, i32, i32) {
    %c0_i32 = arith.constant 0 : i32
    %c0_i32_0 = arith.constant 0 : i32
    %c0_i32_1 = arith.constant 0 : i32
    return %arg0, %c0_i32, %c0_i32_0 : i32, i32, i32
  }
  func.func @transform_2(%arg0: i32) -> (i32, i32, i32) {
    %c0_i32 = arith.constant 0 : i32
    %c0_i32_0 = arith.constant 0 : i32
    %c0_i32_1 = arith.constant 0 : i32
    return %arg0, %c0_i32, %c0_i32_0 : i32, i32, i32
  }
  func.func @transform_3(%arg0: i32) -> (i32, i32) {
    %c0_i32 = arith.constant 0 : i32
    %c0_i32_0 = arith.constant 0 : i32
    %c0_i32_1 = arith.constant 0 : i32
    return %c0_i32, %c0_i32_0 : i32, i32
  }
  func.func @transform_4(%arg0: i32) -> (i32, i32) {
    %c0_i32 = arith.constant 0 : i32
    %c0_i32_0 = arith.constant 0 : i32
    %c0_i32_1 = arith.constant 0 : i32
    return %c0_i32, %c0_i32_0 : i32, i32
  }
  func.func @transform_5(%arg0: i32) -> (i32, i32) {
    %c0_i32 = arith.constant 0 : i32
    %c0_i32_0 = arith.constant 0 : i32
    return %arg0, %c0_i32 : i32, i32
  }
}

</mosaic_0001>

<bundles_post_ra>
// kernel: tpu_custom_call.1
= control target key start
LH: loop header
LB: loop body
LE: loop exit
PB: predicated region body
PF: predicated region fallthrough
CT: control target
= control target key end

     0   :  { %s13213_s0 = inlined_call_operand.vmem [shape: f32[128,128], index: 0, kind: input, shape index: {}]   ;;  %s13214_s1 = inlined_call_operand.vmem [shape: f32[8,6,32], index: 1, kind: input, shape index: {}]   ;;  %s13215_s2 = inlined_call_operand.vmem [shape: f32[8,6,10], index: 2, kind: input, shape index: {}]   ;;  %s13216_s3 = inlined_call_operand.vmem [shape: f32[32,10], index: 3, kind: input, shape index: {}]   ;;  %s13217_s4 = inlined_call_operand.vmem [shape: f32[1,10], index: 4, kind: input, shape index: {}]   ;;  %s13218_s5 = inlined_call_operand.hbm [shape: f32[8,128], index: 5, kind: output, shape index: {}]  }
   0x1   :  { %v47_v0 = vld [vmem:[%s13213_s0 + $0x78] sm:$0xff]  ;;  %v46_v1 = vld [vmem:[%s13213_s0 + $0x70] sm:$0xff]  ;;  %v45_v2 = vld [vmem:[%s13213_s0 + $0x68] sm:$0xff] }
   0x2   :  { %v8678_v3 = vand.u32 4294901760, %v47_v0  ;;  %v8680_v4 = vand.u32 4294901760, %v46_v1  ;;  %v8682_v5 = vand.u32 4294901760, %v45_v2  ;;  %v44_v6 = vld [vmem:[%s13213_s0 + $0x60] sm:$0xff]  ;;  %v43_v7 = vld [vmem:[%s13213_s0 + $0x58] sm:$0xff]  ;;  %v42_v8 = vld [vmem:[%s13213_s0 + $0x50] sm:$0xff] }
   0x3   :  { %v8693_v9 = vand.u32 4294901760, %v44_v6  ;;  %v8695_v10 = vand.u32 4294901760, %v43_v7  ;;  %v8697_v11 = vand.u32 4294901760, %v42_v8  ;;  %v41_v12 = vld [vmem:[%s13213_s0 + $0x48] sm:$0xff]  ;;  %v40_v13 = vld [vmem:[%s13213_s0 + $0x40] sm:$0xff]  ;;  %v39_v21 = vld [vmem:[%s13213_s0 + $0x38] sm:$0xff] }
   0x4   :  { %49 = vmatpush.msra.mxu0 %v8678_v3  ;;  %v8707_v14 = vsub.f32 %v47_v0, %v8678_v3  ;;  %v8710_v15 = vsub.f32 %v46_v1, %v8680_v4  ;;  %v8713_v16 = vsub.f32 %v45_v2, %v8682_v5  ;;  %v8715_v17 = vand.u32 4294901760, %v41_v12  ;;  %245 = vmatpush.msra.mxu3 %v8678_v3  ;;  %v38_v26 = vld [vmem:[%s13213_s0 + $0x30] sm:$0xff] }
   0x5   :  { %v8719_v18 = vsub.f32 %v44_v6, %v8693_v9  ;;  %v8722_v19 = vsub.f32 %v43_v7, %v8695_v10  ;;  %v8725_v20 = vsub.f32 %v42_v8, %v8697_v11  ;;  %v8740_v25 = vand.u32 4294901760, %v40_v13 }
   0x6   :  { %13552 = vst [vmem:[#allocation5_spill] sm:$0xff] %v8707_v14  ;;  %51 = vmatpush.msra.mxu0 %v8680_v4  ;;  %v8732_v22 = vand.u32 4294901760, %v8707_v14  ;;  %v8735_v23 = vand.u32 4294901760, %v8710_v15  ;;  %v8738_v24 = vand.u32 4294901760, %v8713_v16  ;;  %192 = vmatpush.msra.mxu2 %v8707_v14  ;;  %v8753_v29 = vsub.f32 %v41_v12, %v8715_v17 }
   0x7   :  { %13553 = vst [vmem:[#allocation6_spill] sm:$0xff] %v8710_v15  ;;  %v8747_v27 = vand.u32 4294901760, %v8719_v18  ;;  %v8750_v28 = vand.u32 4294901760, %v8722_v19  ;;  %247 = vmatpush.msra.mxu3 %v8680_v4  ;;  %v8763_v33 = vand.u32 4294901760, %v39_v21 }
   0x8   :  { %13554 = vst [vmem:[#allocation7_spill] sm:$0xff] %v8713_v16  ;;  %53 = vmatpush.msra.mxu0 %v8682_v5  ;;  %v92_v30 = vsub.f32 %v8707_v14, %v8732_v22  ;;  %v98_v31 = vsub.f32 %v8710_v15, %v8735_v23  ;;  %v104_v32 = vsub.f32 %v8713_v16, %v8738_v24 }
   0x9   :  { %13555 = vst [vmem:[#allocation8_spill] sm:$0xff] %v8719_v18  ;;  %195 = vmatpush.msra.mxu2 %v8710_v15 }
   0xa   :  { %13556 = vst [vmem:[#allocation9_spill] sm:$0xff] %v8722_v19 }
   0xb   :  { %13557 = vst [vmem:[#allocation10_spill] sm:$0xff] %v8725_v20 }
   0xc   :  { %13558 = vst [vmem:[#allocation11_spill] sm:$0xff] %v8732_v22 }
   0xd   :  { %13559 = vst [vmem:[#allocation12_spill] sm:$0xff] %v8735_v23 }
   0xe   :  { %13560 = vst [vmem:[#allocation13_spill] sm:$0xff] %v8738_v24 }
   0xf   :  { %13561 = vst [vmem:[#allocation14_spill] sm:$0xff] %v8740_v25 }
  0x10   :  { %13562 = vst [vmem:[#allocation15_spill] sm:$0xff] %v8747_v27 }
  0x11   :  { %13563 = vst [vmem:[#allocation16_spill] sm:$0xff] %v8750_v28 }
  0x12   :  { %13564 = vst [vmem:[#allocation17_spill] sm:$0xff] %v8753_v29 }
  0x13   :  { %13565 = vst [vmem:[#allocation18_spill] sm:$0xff] %v8763_v33 }
  0x14   :  { %10 = vsyncpa [#allocation3], 0  ;;  %v8767_v34 = vand.u32 4294901760, %v8725_v20  ;;  %v8769_v35 = vand.u32 4294901760, %v38_v26  ;;  %v37_v36 = vld [vmem:[%s13213_s0 + $0x28] sm:$0xff]  ;;  %249 = vmatpush.msra.mxu3 %v8682_v5  ;;  %v8775_v37 = vand.u32 4294901760, %v92_v30  ;;  %55 = vmatpush.msra.mxu0 %v8693_v9  ;;  %v110_v39 = vsub.f32 %v8719_v18, %v8747_v27 }
  0x15   :  { %v8778_v38 = vand.u32 4294901760, %v98_v31  ;;  %v8783_v40 = vsub.f32 %v40_v13, %v8740_v25  ;;  %v36_v41 = vld [vmem:[%s13213_s0 + $0x20] sm:$0xff]  ;;  %198 = vmatpush.msra.mxu2 %v8713_v16  ;;  %v116_v42 = vsub.f32 %v8722_v19, %v8750_v28  ;;  %v8794_v43 = vand.u32 4294901760, %v104_v32  ;;  %v35_v47 = vld [vmem:[%s13213_s0 + $0x18] sm:$0xff]  ;;  %v34_v55 = vld [vmem:[%s13213_s0 + $0x10] sm:$0xff]  ;;  %s8628_s25 = smov 64  }
  0x16   :  { %13566 = vst [vmem:[#allocation19_spill] sm:$0xff] %v8767_v34  ;;  %251 = vmatpush.msra.mxu3 %v8693_v9  ;;  %94 = vmatpush.msra.mxu1 %v8775_v37  ;;  %v8797_v44 = vand.u32 4294901760, %v8753_v29  ;;  %v8799_v45 = vand.u32 4294901760, %v37_v36  ;;  %v8802_v46 = vsub.f32 %v39_v21, %v8763_v33  ;;  %v8807_v48 = vand.u32 4294901760, %v36_v41  ;;  %v33_v59 = vld [vmem:[%s13213_s0 + $0x8] sm:$0xff]  ;;  %v32_v1 = vld [vmem:[%s13213_s0] sm:$0xff] }
  0x17   :  { %13567 = vst [vmem:[#allocation20_spill] sm:$0xff] %v8769_v35  ;;  %57 = vmatpush.msra.mxu0 %v8695_v10  ;;  %201 = vmatpush.msra.mxu2 %v8719_v18  ;;  %v8813_v49 = vand.u32 4294901760, %v110_v39  ;;  %v122_v50 = vsub.f32 %v8725_v20, %v8767_v34  ;;  %v8818_v51 = vand.u32 4294901760, %v8783_v40  ;;  %v8821_v52 = vsub.f32 %v38_v26, %v8769_v35  ;;  %s8627_s0 = smov 32   ;;  %s8629_s13 = smov 96  }
  0x18   :  { %13568 = vst [vmem:[#allocation21_spill] sm:$0xff] %v8775_v37  ;;  %253 = vmatpush.msra.mxu3 %v8695_v10  ;;  %100 = vmatpush.msra.mxu1 %v8778_v38  ;;  %v8824_v53 = vand.u32 4294901760, %v8802_v46  ;;  %v8826_v54 = vand.u32 4294901760, %v35_v47  ;;  %v8835_v56 = vand.u32 4294901760, %v116_v42  ;;  %v128_v57 = vsub.f32 %v8753_v29, %v8797_v44  ;;  %s8631_s18 = smov 112   ;;  %s8635_s9 = smov 42  }
  0x19   :  { %13569 = vst [vmem:[#allocation22_spill] sm:$0xff] %v8778_v38  ;;  %59 = vmatpush.msra.mxu0 %v8697_v11  ;;  %204 = vmatpush.msra.mxu2 %v8722_v19  ;;  %v8840_v58 = vsub.f32 %v37_v36, %v8799_v45  ;;  %v8846_v60 = vsub.f32 %v36_v41, %v8807_v48  ;;  %v8852_v61 = vand.u32 4294901760, %v122_v50  ;;  %v8857_v63 = vand.u32 4294901760, %v8821_v52  ;;  %s8636_s10 = smov 36   ;;  %s8637_s11 = smov 48  }
  0x1a   :  { %13570 = vst [vmem:[#allocation23_spill] sm:$0xff] %v8783_v40  ;;  %255 = vmatpush.msra.mxu3 %v8697_v11  ;;  %106 = vmatpush.msra.mxu1 %v8794_v43  ;;  %v134_v62 = vsub.f32 %v8783_v40, %v8818_v51  ;;  %v8859_v0 = vand.u32 4294901760, %v34_v55  ;;  %v140_v2 = vsub.f32 %v8802_v46, %v8824_v53  ;;  %v8866_v6 = vand.u32 4294901760, %v33_v59  ;;  %s8638_s12 = smov [#allocation2]   ;;  %s8082_s17 = sshll.u32 %s13218_s5, 4  ;;  %s8083_s17 = int_to_ptr.hbm [resolvable:$true] %s8082_s17 }
  0x1b   :  { %13571 = vst [vmem:[#allocation24_spill] sm:$0xff] %v8794_v43  ;;  %61 = vmatpush.msra.mxu0 %v8715_v17  ;;  %207 = vmatpush.msra.mxu2 %v8725_v20  ;;  %v8869_v7 = vsub.f32 %v35_v47, %v8826_v54  ;;  %v8875_v8 = vand.u32 4294901760, %v128_v57  ;;  %v8878_v12 = vand.u32 4294901760, %v8840_v58  ;;  %v21_v13 = vlaneseq  ;;  %s8080_s14 = sshll.u32 %s8638_s12, 4  ;;  %s8081_s14 = int_to_ptr.vmem [resolvable:$true] %s8080_s14 }
  0x1c   :  { %13572 = vst [vmem:[#allocation25_spill] sm:$0xff] %v8797_v44  ;;  %257 = vmatpush.msra.mxu3 %v8715_v17  ;;  %112 = vmatpush.msra.mxu1 %v8813_v49  ;;  %v8881_v21 = vand.u32 4294901760, %v8846_v60  ;;  %v8883_v26 = vand.u32 4294901760, %v32_v1  ;;  %v8889_v30 = vand.u32 4294901760, %v134_v62  ;;  %v146_v31 = vsub.f32 %v8821_v52, %v8857_v63 }
  0x1d   :  { %13573 = vst [vmem:[#allocation26_spill] sm:$0xff] %v8799_v45  ;;  %63 = vmatpush.msra.mxu0 %v8740_v25  ;;  %210 = vmatpush.msra.mxu2 %v8753_v29  ;;  %v8894_v32 = vsub.f32 %v34_v55, %v8859_v0  ;;  %v8896_v36 = vand.u32 127, %v21_v13  ;;  %v8898_v39 = vand.u32 4294901760, %v140_v2  ;;  %v8901_v41 = vand.u32 4294901760, %v8869_v7 }
  0x1e   :  { %13574 = vst [vmem:[#allocation27_spill] sm:$0xff] %v8802_v46  ;;  %259 = vmatpush.msra.mxu3 %v8740_v25  ;;  %118 = vmatpush.msra.mxu1 %v8835_v56  ;;  %v8904_v42 = vsub.f32 %v33_v59, %v8866_v6  ;;  %v152_v47 = vsub.f32 %v8840_v58, %v8878_v12  ;;  %vm13362_vm2 = vcmask 130048   ;;  %vm13355_vm4 = vcmask 392192  }
  0x1f   :  { %13575 = vst [vmem:[#allocation28_spill] sm:$0xff] %v8807_v48  ;;  %65 = vmatpush.msra.mxu0 %v8763_v33  ;;  %213 = vmatpush.msra.mxu2 %v8783_v40  ;;  %vm13347_vm0 = vcmp.eq.s32.totalorder %v8896_v36, 12  ;;  %vm13363_vm1 = vcmp.eq.s32.totalorder %v8896_v36, 13  ;;  %v158_v50 = vsub.f32 %v8846_v60, %v8881_v21  ;;  %v8924_v55 = vand.u32 4294901760, %v146_v31 }
  0x20   :  { %13576 = vst [vmem:[#allocation29_spill] sm:$0xff] %v8813_v49  ;;  %261 = vmatpush.msra.mxu3 %v8763_v33  ;;  %124 = vmatpush.msra.mxu1 %v8852_v61  ;;  %vm25_vm3 = vmor %vm13347_vm0, %vm13363_vm1  ;;  %v8927_v57 = vand.u32 4294901760, %v8894_v32  ;;  %v8930_v59 = vsub.f32 %v32_v1, %v8883_v26  ;;  %v13221_v62 = vmov 0.0   ;;  %v8940_v31 = vand.u32 4294901760, %v152_v47 }
  0x21   :  { %13577 = vst [vmem:[#allocation30_spill] sm:$0xff] %v8818_v51  ;;  %67 = vmatpush.msra.mxu0 %v8769_v35  ;;  %216 = vmatpush.msra.mxu2 %v8802_v46  ;;  %v8091_v2 = vsel %vm25_vm3, 1.0, %v13221_v62  ;;  %v164_v1 = vsub.f32 %v8869_v7, %v8901_v41  ;;  %v8953_v47 = vand.u32 4294901760, %v158_v50  ;;  %vm13354_vm9 = vcmask 259072  }
  0x22   :  { %13578 = vst [vmem:[#allocation31_spill] sm:$0xff] %v8821_v52  ;;  %263 = vmatpush.msra.mxu3 %v8769_v35  ;;  %130 = vmatpush.msra.mxu1 %v8875_v8  ;;  %v8936_v13 = vsel %vm13362_vm2, %v8091_v2, 0.0  ;;  %vm778_vm10 = vcmask 1041409   ;;  %vm780_vm11 = vcmask 1042434   ;;  %vm782_vm12 = vcmask 1043459  }
  0x23   :  { %13579 = vst [vmem:[#allocation32_spill] sm:$0xff] %v8824_v53  ;;  %69 = vmatpush.msra.mxu0 %v8799_v45  ;;  %219 = vmatpush.msra.mxu2 %v8821_v52  ;;  %v31_v62 = vsel %vm13355_vm4, %v8936_v13, 0.0  ;;  %vm784_vm13 = vcmask 1044484   ;;  %vm786_vm14 = vcmask 1045509   ;;  %vm13416_vm15 = vcmask 1046534  }
  0x24   :  { %13580 = vst [vmem:[#allocation33_spill] sm:$0xff] %v8826_v54  ;;  %265 = vmatpush.msra.mxu3 %v8799_v45  ;;  %136 = vmatpush.msra.mxu1 %v8889_v30  ;;  %v81_v2 = vsub.f32 %v31_v62, %v31_v62  ;;  %v8964_v62 = vand.u32 4294901760, %v164_v1  ;;  %vm13364_vm3 = vcmask 1047559  }
  0x25   :  { %13581 = vst [vmem:[#allocation34_spill] sm:$0xff] %v8835_v56  ;;  %71 = vmatpush.msra.mxu0 %v8807_v48  ;;  %222 = vmatpush.msra.mxu2 %v8840_v58 }
  0x26   :  { %13582 = vst [vmem:[#allocation35_spill] sm:$0xff] %v8840_v58  ;;  %267 = vmatpush.msra.mxu3 %v8807_v48  ;;  %142 = vmatpush.msra.mxu1 %v8898_v39 }
  0x27   :  { %13583 = vst [vmem:[#allocation36_spill] sm:$0xff] %v8846_v60  ;;  %73 = vmatpush.msra.mxu0 %v8826_v54  ;;  %225 = vmatpush.msra.mxu2 %v8846_v60 }
  0x28   :  { %13584 = vst [vmem:[#allocation37_spill] sm:$0xff] %v8852_v61  ;;  %269 = vmatpush.msra.mxu3 %v8826_v54  ;;  %148 = vmatpush.msra.mxu1 %v8924_v55  ;;  %v82_v61 = vand.u32 4294901760, %v81_v2 }
  0x29   :  { %13585 = vst [vmem:[#allocation38_spill] sm:$0xff] %v8857_v63  ;;  %75 = vmatpush.msra.mxu0 %v8859_v0  ;;  %228 = vmatpush.msra.mxu2 %v8869_v7 }
  0x2a   :  { %13586 = vst [vmem:[#allocation39_spill] sm:$0xff] %v8859_v0  ;;  %271 = vmatpush.msra.mxu3 %v8859_v0  ;;  %154 = vmatpush.msra.mxu1 %v8940_v31 }
  0x2b   :  { %13587 = vst [vmem:[#allocation40_spill] sm:$0xff] %v8866_v6  ;;  %77 = vmatpush.msra.mxu0 %v8866_v6  ;;  %231 = vmatpush.msra.mxu2 %v8894_v32 }
  0x2c   :  { %13588 = vst [vmem:[#allocation41_spill] sm:$0xff] %v8869_v7  ;;  %273 = vmatpush.msra.mxu3 %v8866_v6  ;;  %160 = vmatpush.msra.mxu1 %v8953_v47 }
  0x2d   :  { %13589 = vst [vmem:[#allocation42_spill] sm:$0xff] %v8875_v8  ;;  %v8958_v8 = vand.u32 4294901760, %v8930_v59  ;;  %79 = vmatpush.msra.mxu0 %v8883_v26  ;;  %234 = vmatpush.msra.mxu2 %v8904_v42 }
  0x2e   :  { %13590 = vst [vmem:[#allocation43_spill] sm:$0xff] %v8878_v12  ;;  %166 = vmatpush.msra.mxu1 %v8964_v62  ;;  %275 = vmatpush.msra.mxu3 %v8883_v26 }
  0x2f   :  { %13591 = vst [vmem:[#allocation44_spill] sm:$0xff] %v8881_v21  ;;  %286 = vmatpush.msrb.mxu0 %v8732_v22  ;;  %237 = vmatpush.msra.mxu2 %v8930_v59 }
  0x30   :  { %13592 = vst [vmem:[#allocation45_spill] sm:$0xff] %v8883_v26  ;;  %240 = vmatmul.f32.vlgmr.msra.gmra.mxu2 %v81_v2  ;;  %279 = vmatmul.f32.vlgmr.msra.gmra.mxu3 %v82_v61 }
  0x31   :  { %13593 = vst [vmem:[#allocation46_spill] sm:$0xff] %v8889_v30  ;;  %v8945_v30 = vand.u32 4294901760, %v8904_v42  ;;  %290 = vmatpush.msrb.mxu0 %v8735_v23 }
  0x32   :  { %13594 = vst [vmem:[#allocation47_spill] sm:$0xff] %v8894_v32 }
  0x33   :  { %13595 = vst [vmem:[#allocation48_spill] sm:$0xff] %v8898_v39  ;;  %v170_v39 = vsub.f32 %v8894_v32, %v8927_v57  ;;  %v176_v50 = vsub.f32 %v8904_v42, %v8945_v30  ;;  %294 = vmatpush.msrb.mxu0 %v8738_v24 }
  0x34   :  { %13596 = vst [vmem:[#allocation49_spill] sm:$0xff] %v8901_v41 }
  0x35   :  { %13597 = vst [vmem:[#allocation50_spill] sm:$0xff] %v8904_v42  ;;  %v8972_v56 = vand.u32 4294901760, %v170_v39  ;;  %v8979_v1 = vand.u32 4294901760, %v176_v50  ;;  %298 = vmatpush.msrb.mxu0 %v8747_v27 }
  0x36   :  { %13598 = vst [vmem:[#allocation51_spill] sm:$0xff] %v8924_v55  ;;  %v83_v55 = vsub.f32 %v81_v2, %v82_v61 }
  0x37   :  { %13599 = vst [vmem:[#allocation52_spill] sm:$0xff] %v8927_v57  ;;  %172 = vmatpush.msra.mxu1 %v8972_v56  ;;  %302 = vmatpush.msrb.mxu0 %v8750_v28 }
  0x38   :  { %13600 = vst [vmem:[#allocation53_spill] sm:$0xff] %v8930_v59  ;;  %v84_v49 = vand.u32 4294901760, %v83_v55 }
  0x39   :  { %13601 = vst [vmem:[#allocation54_spill] sm:$0xff] %v8940_v31  ;;  %v182_v31 = vsub.f32 %v8930_v59, %v8958_v8  ;;  %178 = vmatpush.msra.mxu1 %v8979_v1  ;;  %306 = vmatpush.msrb.mxu0 %v8767_v34 }
  0x3a   :  { %13602 = vst [vmem:[#allocation55_spill] sm:$0xff] %v8945_v30  ;;  %85 = vmatmul.f32.vlgmr.msra.gmra.mxu0 %v84_v49 }
  0x3b   :  { %13603 = vst [vmem:[#allocation56_spill] sm:$0xff] %v8953_v47  ;;  %v8985_v39 = vand.u32 4294901760, %v182_v31  ;;  %310 = vmatpush.msrb.mxu0 %v8797_v44 }
  0x3c   :  { %13604 = vst [vmem:[#allocation57_spill] sm:$0xff] %v8958_v8 }
  0x3d   :  { %13605 = vst [vmem:[#allocation58_spill] sm:$0xff] %v8964_v62  ;;  %184 = vmatpush.msra.mxu1 %v8985_v39  ;;  %314 = vmatpush.msrb.mxu0 %v8818_v51 }
  0x3e   :  { %13606 = vst [vmem:[#allocation59_spill] sm:$0xff] %v8972_v56  ;;  %8092 = vmatmul.msk.f32.vlgmr.msra.gmra.mxu1 %vm13355_vm4, %v8936_v13 }
  0x3f   :  { %13607 = vst [vmem:[#allocation60_spill] sm:$0xff] %v8979_v1  ;;  %353 = vmatpush.msrb.mxu1 %v8678_v3  ;;  %318 = vmatpush.msrb.mxu0 %v8824_v53 }
  0x40   :  { %13608 = vst [vmem:[#allocation61_spill] sm:$0xff] %v8985_v39 }
  0x41   :  { %355 = vmatpush.msrb.mxu1 %v8680_v4  ;;  %322 = vmatpush.msrb.mxu0 %v8857_v63 }
  0x43   :  { %357 = vmatpush.msrb.mxu1 %v8682_v5  ;;  %326 = vmatpush.msrb.mxu0 %v8878_v12 }
  0x45   :  { %359 = vmatpush.msrb.mxu1 %v8693_v9  ;;  %330 = vmatpush.msrb.mxu0 %v8881_v21 }
  0x47   :  { %361 = vmatpush.msrb.mxu1 %v8695_v10  ;;  %334 = vmatpush.msrb.mxu0 %v8901_v41 }
  0x49   :  { %363 = vmatpush.msrb.mxu1 %v8697_v11  ;;  %338 = vmatpush.msrb.mxu0 %v8927_v57 }
  0x4b   :  { %365 = vmatpush.msrb.mxu1 %v8715_v17  ;;  %342 = vmatpush.msrb.mxu0 %v8945_v30 }
  0x4d   :  { %367 = vmatpush.msrb.mxu1 %v8740_v25  ;;  %346 = vmatpush.msrb.mxu0 %v8958_v8 }
  0x4e   :  { %8093 = vmatmul.msk.f32.vlgmr.msrb.gmra.mxu0 %vm13355_vm4, %v8936_v13 }
  0x4f   :  { %369 = vmatpush.msrb.mxu1 %v8763_v33  ;;  %1587 = vmatpush.msra.mxu0 %v8707_v14 }
  0x51   :  { %371 = vmatpush.msrb.mxu1 %v8769_v35  ;;  %1590 = vmatpush.msra.mxu0 %v8710_v15 }
  0x53   :  { %373 = vmatpush.msrb.mxu1 %v8799_v45  ;;  %1593 = vmatpush.msra.mxu0 %v8713_v16 }
  0x55   :  { %375 = vmatpush.msrb.mxu1 %v8807_v48  ;;  %1596 = vmatpush.msra.mxu0 %v8719_v18 }
  0x57   :  { %377 = vmatpush.msrb.mxu1 %v8826_v54  ;;  %1599 = vmatpush.msra.mxu0 %v8722_v19 }
  0x59   :  { %379 = vmatpush.msrb.mxu1 %v8859_v0  ;;  %1602 = vmatpush.msra.mxu0 %v8725_v20 }
  0x5b   :  { %381 = vmatpush.msrb.mxu1 %v8866_v6  ;;  %1605 = vmatpush.msra.mxu0 %v8753_v29 }
  0x5d   :  { %383 = vmatpush.msrb.mxu1 %v8883_v26  ;;  %1608 = vmatpush.msra.mxu0 %v8783_v40 }
  0x5e   :  { %8094 = vmatmul.msk.f32.vlgmr.msrb.gmra.mxu1 %vm13355_vm4, %v8936_v13 }
  0x5f   :  { %1640 = vmatpush.msra.mxu1 %v8678_v3  ;;  %1611 = vmatpush.msra.mxu0 %v8802_v46 }
  0x61   :  { %1642 = vmatpush.msra.mxu1 %v8680_v4  ;;  %1614 = vmatpush.msra.mxu0 %v8821_v52 }
  0x63   :  { %1644 = vmatpush.msra.mxu1 %v8682_v5  ;;  %1617 = vmatpush.msra.mxu0 %v8840_v58 }
  0x65   :  { %1646 = vmatpush.msra.mxu1 %v8693_v9  ;;  %1620 = vmatpush.msra.mxu0 %v8846_v60 }
  0x67   :  { %1648 = vmatpush.msra.mxu1 %v8695_v10  ;;  %1623 = vmatpush.msra.mxu0 %v8869_v7 }
  0x69   :  { %1650 = vmatpush.msra.mxu1 %v8697_v11  ;;  %1626 = vmatpush.msra.mxu0 %v8894_v32 }
  0x6b   :  { %1652 = vmatpush.msra.mxu1 %v8715_v17  ;;  %1629 = vmatpush.msra.mxu0 %v8904_v42 }
  0x6d   :  { %1654 = vmatpush.msra.mxu1 %v8740_v25  ;;  %1632 = vmatpush.msra.mxu0 %v8930_v59 }
  0x6f   :  { %1656 = vmatpush.msra.mxu1 %v8763_v33 }
  0x71   :  { %1658 = vmatpush.msra.mxu1 %v8769_v35 }
  0x73   :  { %1660 = vmatpush.msra.mxu1 %v8799_v45 }
  0x75   :  { %1662 = vmatpush.msra.mxu1 %v8807_v48 }
  0x77   :  { %1664 = vmatpush.msra.mxu1 %v8826_v54 }
  0x79   :  { %1666 = vmatpush.msra.mxu1 %v8859_v0 }
  0x7b   :  { %1668 = vmatpush.msra.mxu1 %v8866_v6 }
  0x7d   :  { %1670 = vmatpush.msra.mxu1 %v8883_v26 }
  0xb3   :  { %v241_v13 = vpop.f32.mrf.mxu2  ;;  %v280_v2 = vpop.f32.mrf.mxu3 }
  0xb7   :  { %v86_v61 = vpop.f32.mrf.mxu0 }
  0xbb   :  { %v187_v49 = vpop.f32.mrf.mxu1 }
  0xbc   :  { %v188_v55 = vadd.f32 %v187_v49, %v86_v61 }
  0xbe   :  { %v242_v31 = vadd.f32 %v241_v13, %v188_v55 }
  0xc0   :  { %v281_v50 = vadd.f32 %v280_v2, %v242_v31 }
  0xcb   :  { %v349_v42 = vpop.f32.mrf.mxu0 }
  0xcc   :  { %v350_v32 = vadd.f32 %v349_v42, %v281_v50  ;;  %v638_v50 = vld [vmem:[%s13214_s1 + $0x28] sm:$0x3f] }
  0xdb   :  { %v386_v7 = vpop.f32.mrf.mxu1 }
  0xdc   :  { %v387_v60 = vadd.f32 %v386_v7, %v350_v32 }
  0xde   :  { %409 = vrot.lane.b32.xlu0 %v387_v60, %s8627_s0  ;;  %v8095_v59 = vmul.f32 -1.442695, %v387_v60 }
  0xe0   :  { %8123 = vpow2.f32 %v8095_v59 }
  0xe6   :  { %v8124_v58 = vpop.eup %8123 }
  0xe7   :  { %v392_v52 = vadd.f32 1.0, %v8124_v58  ;;  %v635_v58 = vld [vmem:[%s13214_s1 + $0x10] sm:$0x3f] }
  0xe9   :  { %8125 = vrcp.f32 %v392_v52  ;;  %v404_v55 = vand.u32 2147483648, %v392_v52  ;;  %vm398_vm6 = vweird.f32 %v392_v52  ;;  %v402_v13 = vand.u32 2147483647, %v392_v52 }
  0xeb   :  { %v405_v7 = vor.u32 1.1754944e-38, %v404_v55  ;;  %vm403_vm8 = vcmp.eq.f32.partialorder %v402_v13, 8.507059e+37  ;;  %v637_v55 = vld [vmem:[%s13214_s1 + $0x20] sm:$0x3f]  ;;  %v640_v13 = vld [vmem:[%s13214_s1 + $0x38] sm:$0x3f] }
  0xef   :  { %v8126_v46 = vpop.eup %8125 }
  0xf0   :  { %v394_v40 = vmul.f32 %v8126_v46, %v392_v52  ;;  %vm399_vm5 = vweird.f32 %v8126_v46  ;;  %v634_v52 = vld [vmem:[%s13214_s1 + $0x8] sm:$0x3f] }
  0xf1   :  { %vm400_vm7 = vmor %vm398_vm6, %vm399_vm5  ;;  %667 = vrot.lane.b32.xlu2 %v634_v52, %s8627_s0  ;;  %vm13353_vm5 = vcmask 48128   ;;  %vm13352_vm6 = vcmask 261120  }
  0xf2   :  { %v395_v29 = vsub.f32 1.0, %v394_v40  ;;  %v633_v40 = vld [vmem:[%s13214_s1] sm:$0x3f] }
  0xf3   :  { %665 = vrot.lane.b32.xlu1 %v633_v40, %s8627_s0 }
  0xf4   :  { %v396_v49 = vmul.f32 %v8126_v46, %v395_v29  ;;  %v636_v29 = vld [vmem:[%s13214_s1 + $0x18] sm:$0x3f] }
  0xf6   :  { %v397_v61 = vadd.f32 %v8126_v46, %v396_v49 }
  0xf8   :  { %v401_v42 = vsel %vm400_vm7, %v8126_v46, %v397_v61  ;;  %v639_v46 = vld [vmem:[%s13214_s1 + $0x30] sm:$0x3f] }
  0xf9   :  { %v406_v31 = vsel %vm403_vm8, %v405_v7, %v401_v42  ;;  %669 = vrot.lane.b32.xlu2 %v635_v58, %s8627_s0 }
  0xfa   :  { %v419_v7 = vsub.f32 1.0, %v406_v31 }
 0x101   :  { %675 = vrot.lane.b32.xlu2 %v638_v50, %s8627_s0 }
 0x14b   :  { %v9094_v42 = vpop.permute.xlu2 %667 }
 0x14c   :  { %13610 = vst [vmem:[#allocation63_spill] sm:$0xff] %v9094_v42 }
 0x150   :  { %v410_v32 = vpop.permute.xlu0 %409 }
 0x151   :  { %v412_v2 = vmul.f32 %v410_v32, %v406_v31 }
 0x153   :  { %414 = vrot.lane.b32.xlu0 %v412_v2, %s8628_s25  ;;  %v425_v2 = vmul.f32 0.0, %v406_v31 }
 0x15b   :  { %671 = vrot.lane.b32.xlu0 %v636_v29, %s8627_s0 }
 0x163   :  { %677 = vrot.lane.b32.xlu0 %v639_v46, %s8627_s0  ;;  %v9098_v46 = vpop.permute.xlu2 %669 }
 0x164   :  { %13612 = vst [vmem:[#allocation65_spill] sm:$0xff] %v9098_v46 }
 0x1c5   :  { %v415_v59 = vpop.permute.xlu0 %414 }
 0x1c6   :  { %v417_v49 = vadd.f32 %v415_v59, %v387_v60  ;;  %v9092_v60 = vpop.permute.xlu1 %665 }
 0x1c7   :  { %13609 = vst [vmem:[#allocation62_spill] sm:$0xff] %v9092_v60 }
 0x1c8   :  { %8127 = vtanh.f32 %v417_v49 }
 0x1ce   :  { %v8128_v61 = vpop.eup %8127 }
 0x1cf   :  { %421 = vrot.lane.b32.xlu1 %v8128_v61, %s8629_s13 }
 0x1d7   :  { %673 = vrot.lane.b32.xlu1 %v637_v55, %s8627_s0 }
 0x1df   :  { %679 = vrot.lane.b32.xlu1 %v640_v13, %s8627_s0 }
 0x241   :  { %v422_v32 = vpop.permute.xlu1 %421 }
 0x242   :  { %v424_v40 = vmul.f32 %v422_v32, %v419_v7 }
 0x244   :  { %v9096_v29 = vadd.f32 %v425_v2, %v424_v40  ;;  %v9110_v2 = vpop.permute.xlu0 %671 }
 0x245   :  { %13613 = vst [vmem:[#allocation66_spill] sm:$0xff] %v9110_v2 }
 0x246   :  { %13611 = vst [vmem:[#allocation64_spill] sm:$0xff] %v9096_v29  ;;  %v641_v52 = vperm.slane %v9096_v29, 0  ;;  %v627_v58 = vrot.slane %v9096_v29, 2  ;;  %v626_v59 = vrot.slane %v9096_v29, 1  ;;  %v628_v55 = vrot.slane %v9096_v29, 3 }
 0x247   :  { %v630_v7 = vrot.slane %v9096_v29, 5  ;;  %v629_v32 = vrot.slane %v9096_v29, 4 }
 0x248   :  { %v689_v50 = vmul.f32 %v9092_v60, %v641_v52  ;;  %v643_v49 = vperm.slane %v627_v58, 0  ;;  %v642_v61 = vperm.slane %v626_v59, 0  ;;  %v644_v40 = vperm.slane %v628_v55, 0 }
 0x249   :  { %v9114_v52 = vpop.permute.xlu1 %673  ;;  %v646_v58 = vperm.slane %v630_v7, 0  ;;  %v645_v59 = vperm.slane %v629_v32, 0 }
 0x24a   :  { %705 = vrot.lane.b32.xlu2 %v689_v50, %s8629_s13  ;;  %v691_v31 = vmul.f32 %v9098_v46, %v643_v49  ;;  %v690_v13 = vmul.f32 %v9094_v42, %v642_v61  ;;  %13614 = vst [vmem:[#allocation67_spill] sm:$0xff] %v9114_v52  ;;  %v9116_v50 = vpop.permute.xlu2 %675  ;;  %v692_v49 = vmul.f32 %v9110_v2, %v644_v40  ;;  %v631_v61 = vrot.slane %v9096_v29, 6 }
 0x24b   :  { %13615 = vst [vmem:[#allocation68_spill] sm:$0xff] %v9116_v50  ;;  %v694_v42 = vmul.f32 %v9116_v50, %v646_v58  ;;  %v693_v46 = vmul.f32 %v9114_v52, %v645_v59 }
 0x24c   :  { %709 = vrot.lane.b32.xlu1 %v691_v31, %s8629_s13  ;;  %707 = vrot.lane.b32.xlu0 %v690_v13, %s8629_s13  ;;  %v647_v55 = vperm.slane %v631_v61, 0  ;;  %v632_v31 = vrot.slane %v9096_v29, 7  ;;  %v9126_v13 = vpop.permute.xlu0 %677 }
 0x24d   :  { %13616 = vst [vmem:[#allocation69_spill] sm:$0xff] %v9126_v13 }
 0x24e   :  { %v695_v32 = vmul.f32 %v9126_v13, %v647_v55  ;;  %v648_v40 = vperm.slane %v632_v31, 0 }
 0x251   :  { %v9128_v7 = vpop.permute.xlu1 %679 }
 0x252   :  { %711 = vrot.lane.b32.xlu2 %v692_v49, %s8629_s13  ;;  %13617 = vst [vmem:[#allocation70_spill] sm:$0xff] %v9128_v7  ;;  %v696_v58 = vmul.f32 %v9128_v7, %v648_v40 }
 0x254   :  { %715 = vrot.lane.b32.xlu1 %v694_v42, %s8629_s13  ;;  %713 = vrot.lane.b32.xlu0 %v693_v46, %s8629_s13 }
 0x25a   :  { %717 = vrot.lane.b32.xlu2 %v695_v32, %s8629_s13 }
 0x25c   :  { %719 = vrot.lane.b32.xlu0 %v696_v58, %s8629_s13 }
 0x2a4   :  { %v706_v42 = vpop.permute.xlu2 %705 }
 0x2a5   :  { %v730_v46 = vsel %vm13354_vm9, %v706_v42, 0.0 }
 0x2a6   :  { %731 = vadd.xlane.f32.xlu1 %v730_v46 }
 0x2ac   :  { %v712_v59 = vpop.permute.xlu2 %711 }
 0x2ad   :  { %v739_v40 = vsel %vm13354_vm9, %v712_v59, 0.0  ;;  %v429_v59 = vld [vmem:[%s13216_s3 + $0x10] sm:$0xff] }
 0x2b4   :  { %v718_v55 = vpop.permute.xlu2 %717 }
 0x2b5   :  { %v748_v32 = vsel %vm13354_vm9, %v718_v55, 0.0  ;;  %v9155_v55 = vand.u32 4294901760, %v429_v59 }
 0x2be   :  { %v710_v49 = vpop.permute.xlu1 %709  ;;  %v708_v61 = vpop.permute.xlu0 %707 }
 0x2bf   :  { %v736_v2 = vsel %vm13354_vm9, %v710_v49, 0.0  ;;  %v733_v50 = vsel %vm13354_vm9, %v708_v61, 0.0 }
 0x2c0   :  { %737 = vadd.xlane.f32.xlu0 %v736_v2  ;;  %734 = vadd.xlane.f32.xlu2 %v733_v50  ;;  %v430_v2 = vld [vmem:[%s13216_s3 + $0x18] sm:$0xff] }
 0x2c1   :  { %v9147_v50 = vand.u32 4294901760, %v430_v2 }
 0x2c3   :  { %v9153_v61 = vsub.f32 %v430_v2, %v9147_v50  ;;  %454 = vmatpush.msrb.mxu2 %v9147_v50  ;;  %1840 = vmatpush.msrb.mxu0 %v9147_v50 }
 0x2c5   :  { %13618 = vst [vmem:[#allocation71_spill] sm:$0xff] %v9153_v61  ;;  %456 = vmatpush.msrb.mxu2 %v9155_v55  ;;  %1842 = vmatpush.msrb.mxu0 %v9155_v55 }
 0x2c6   :  { %v714_v31 = vpop.permute.xlu0 %713  ;;  %v716_v42 = vpop.permute.xlu1 %715 }
 0x2c7   :  { %v742_v58 = vsel %vm13354_vm9, %v714_v31, 0.0  ;;  %v745_v13 = vsel %vm13354_vm9, %v716_v42, 0.0  ;;  %v9163_v31 = vand.u32 4294901760, %v9153_v61 }
 0x2c8   :  { %749 = vadd.xlane.f32.xlu0 %v748_v32  ;;  %740 = vadd.xlane.f32.xlu2 %v739_v40  ;;  %v9166_v32 = vsub.f32 %v429_v59, %v9155_v55 }
 0x2c9   :  { %743 = vadd.xlane.f32.xlu1 %v742_v58  ;;  %13619 = vst [vmem:[#allocation72_spill] sm:$0xff] %v9163_v31  ;;  %v427_v58 = vld [vmem:[%s13216_s3] sm:$0xff]  ;;  %v485_v42 = vsub.f32 %v9153_v61, %v9163_v31 }
 0x2ca   :  { %13620 = vst [vmem:[#allocation73_spill] sm:$0xff] %v9166_v32  ;;  %v9185_v2 = vand.u32 4294901760, %v427_v58 }
 0x2cb   :  { %v9187_v59 = vand.u32 4294901760, %v485_v42 }
 0x2cc   :  { %v9195_v60 = vsub.f32 %v427_v58, %v9185_v2 }
 0x2cd   :  { %13623 = vst [vmem:[#allocation76_spill] sm:$0xff] %v9187_v59  ;;  %487 = vmatpush.msrb.mxu3 %v9187_v59  ;;  %1873 = vmatpush.msrb.mxu1 %v9187_v59 }
 0x2ce   :  { %v720_v46 = vpop.permute.xlu0 %719  ;;  %13625 = vst [vmem:[#allocation78_spill] sm:$0xff] %v9195_v60  ;;  %v9206_v20 = vand.u32 4294901760, %v9195_v60 }
 0x2cf   :  { %v751_v49 = vsel %vm13354_vm9, %v720_v46, 0.0  ;;  %v9178_v46 = vand.u32 4294901760, %v9166_v32 }
 0x2d0   :  { %746 = vadd.xlane.f32.xlu2 %v745_v13  ;;  %v428_v13 = vld [vmem:[%s13216_s3 + $0x8] sm:$0xff]  ;;  %13627 = vst [vmem:[#allocation80_spill] sm:$0xff] %v9206_v20 }
 0x2d1   :  { %752 = vadd.xlane.f32.xlu1 %v751_v49  ;;  %v9168_v40 = vand.u32 4294901760, %v428_v13  ;;  %13621 = vst [vmem:[#allocation74_spill] sm:$0xff] %v9178_v46  ;;  %v491_v7 = vsub.f32 %v9166_v32, %v9178_v46 }
 0x2d3   :  { %v9181_v49 = vsub.f32 %v428_v13, %v9168_v40  ;;  %458 = vmatpush.msrb.mxu2 %v9168_v40  ;;  %1844 = vmatpush.msrb.mxu0 %v9168_v40  ;;  %v9200_v13 = vand.u32 4294901760, %v491_v7  ;;  %v503_v7 = vsub.f32 %v9195_v60, %v9206_v20 }
 0x2d5   :  { %13622 = vst [vmem:[#allocation75_spill] sm:$0xff] %v9181_v49  ;;  %v9192_v52 = vand.u32 4294901760, %v9181_v49  ;;  %460 = vmatpush.msrb.mxu2 %v9185_v2  ;;  %1846 = vmatpush.msrb.mxu0 %v9185_v2  ;;  %v9218_v19 = vand.u32 4294901760, %v503_v7 }
 0x2d6   :  { %13626 = vst [vmem:[#allocation79_spill] sm:$0xff] %v9200_v13  ;;  %493 = vmatpush.msrb.mxu3 %v9200_v13  ;;  %1879 = vmatpush.msrb.mxu1 %v9200_v13 }
 0x2d7   :  { %13624 = vst [vmem:[#allocation77_spill] sm:$0xff] %v9192_v52  ;;  %v497_v42 = vsub.f32 %v9181_v49, %v9192_v52  ;;  %525 = vmatpush.msra.mxu2 %v9153_v61 }
 0x2d8   :  { %13629 = vst [vmem:[#allocation82_spill] sm:$0xff] %v9218_v19 }
 0x2d9   :  { %v9210_v58 = vand.u32 4294901760, %v497_v42  ;;  %528 = vmatpush.msra.mxu2 %v9166_v32 }
 0x2db   :  { %13628 = vst [vmem:[#allocation81_spill] sm:$0xff] %v9210_v58  ;;  %499 = vmatpush.msrb.mxu3 %v9210_v58  ;;  %531 = vmatpush.msra.mxu2 %v9181_v49 }
 0x2dc   :  { %436 = vrot.lane.b32.xlu0 %v9096_v29, %s8629_s13  ;;  %1885 = vmatpush.msrb.mxu1 %v9210_v58 }
 0x2dd   :  { %534 = vmatpush.msra.mxu2 %v9195_v60  ;;  %505 = vmatpush.msrb.mxu3 %v9218_v19 }
 0x2de   :  { %1891 = vmatpush.msrb.mxu1 %v9218_v19 }
 0x2df   :  { %554 = vmatpush.msra.mxu3 %v9147_v50 }
 0x2e1   :  { %556 = vmatpush.msra.mxu3 %v9155_v55 }
 0x2e3   :  { %558 = vmatpush.msra.mxu3 %v9168_v40 }
 0x2e5   :  { %560 = vmatpush.msra.mxu3 %v9185_v2 }
 0x319   :  { %v732_v42 = vpop.xlane.xlu1 %731 }
 0x31a   :  { %v9229_v7 = vmul.f32 0.17677669, %v732_v42 }
 0x31c   :  { %13631 = vst [vmem:[#allocation84_spill] sm:$0xff] %v9229_v7 }
 0x333   :  { %v735_v59 = vpop.xlane.xlu2 %734  ;;  %v738_v18 = vpop.xlane.xlu0 %737 }
 0x334   :  { %v9226_v13 = vmul.f32 0.17677669, %v735_v59  ;;  %v9232_v58 = vmul.f32 0.17677669, %v738_v18  ;;  %v770_v59 = vperm.slane %v9229_v7, %v8896_v36 }
 0x336   :  { %13630 = vst [vmem:[#allocation83_spill] sm:$0xff] %v9226_v13  ;;  %v771_v19 = vperm.slane %v9226_v13, %v8896_v36  ;;  %v772_v60 = vperm.slane %v9232_v58, %v8896_v36 }
 0x337   :  { %13632 = vst [vmem:[#allocation85_spill] sm:$0xff] %v9232_v58 }
 0x338   :  { %v779_v49 = vsel %vm778_vm10, %v771_v19, %v770_v59 }
 0x33b   :  { %v741_v16 = vpop.xlane.xlu2 %740  ;;  %v750_v32 = vpop.xlane.xlu0 %749 }
 0x33c   :  { %v9236_v15 = vmul.f32 0.17677669, %v741_v16  ;;  %v744_v14 = vpop.xlane.xlu1 %743  ;;  %v781_v16 = vsel %vm780_vm11, %v772_v60, %v779_v49  ;;  %v9250_v29 = vmul.f32 0.17677669, %v750_v32 }
 0x33d   :  { %v9242_v42 = vmul.f32 0.17677669, %v744_v14 }
 0x33e   :  { %13633 = vst [vmem:[#allocation86_spill] sm:$0xff] %v9236_v15  ;;  %v773_v18 = vperm.slane %v9236_v15, %v8896_v36  ;;  %v776_v60 = vperm.slane %v9250_v29, %v8896_v36 }
 0x33f   :  { %13634 = vst [vmem:[#allocation87_spill] sm:$0xff] %v9242_v42  ;;  %v774_v61 = vperm.slane %v9242_v42, %v8896_v36 }
 0x340   :  { %v783_v13 = vsel %vm782_vm12, %v773_v18, %v781_v16 }
 0x341   :  { %v785_v32 = vsel %vm784_vm13, %v774_v61, %v783_v13 }
 0x343   :  { %v747_v7 = vpop.xlane.xlu2 %746 }
 0x344   :  { %v9253_v14 = vmul.f32 0.17677669, %v747_v7  ;;  %v753_v58 = vpop.xlane.xlu1 %752 }
 0x345   :  { %v9255_v19 = vmul.f32 0.17677669, %v753_v58 }
 0x346   :  { %13635 = vst [vmem:[#allocation88_spill] sm:$0xff] %v9253_v14  ;;  %v775_v59 = vperm.slane %v9253_v14, %v8896_v36 }
 0x347   :  { %v777_v49 = vperm.slane %v9255_v19, %v8896_v36 }
 0x348   :  { %v787_v7 = vsel %vm786_vm14, %v775_v59, %v785_v32  ;;  %v13638_v32 = vld [vmem:[#allocation37_spill] sm:$0xff] }
 0x349   :  { %v789_v58 = vsel %vm13416_vm15, %v776_v60, %v787_v7  ;;  %v13640_v7 = vld [vmem:[#allocation46_spill] sm:$0xff] }
 0x34a   :  { %v791_v18 = vsel %vm13364_vm3, %v777_v49, %v789_v58  ;;  %v13639_v49 = vld [vmem:[#allocation42_spill] sm:$0xff]  ;;  %v13641_v58 = vld [vmem:[#allocation48_spill] sm:$0xff] }
 0x34b   :  { %v794_v16 = vsel %vm13353_vm5, %v791_v18, -inf  ;;  %v13642_v18 = vld [vmem:[#allocation51_spill] sm:$0xff] }
 0x34c   :  { %795 = vmax.xlane.f32.xlu2 %v794_v16  ;;  %v13643_v16 = vld [vmem:[#allocation54_spill] sm:$0xff] }
 0x34e   :  { %v437_v14 = vpop.permute.xlu0 %436 }
 0x34f   :  { %v439_v15 = vsel %vm13352_vm6, %v437_v14, 0  ;;  %v13637_v14 = vld [vmem:[#allocation34_spill] sm:$0xff] }
 0x350   :  { %v461_v42 = vand.u32 4294901760, %v439_v15 }
 0x352   :  { %v462_v61 = vsub.f32 %v439_v15, %v461_v42  ;;  %507 = vmatmul.f32.vlgmr.msrb.gmra.mxu3 %v461_v42  ;;  %v13636_v15 = vld [vmem:[#allocation29_spill] sm:$0xff] }
 0x353   :  { %614 = vmatpush.msrb.mxu3 %v9147_v50 }
 0x354   :  { %v463_v13 = vand.u32 4294901760, %v462_v61 }
 0x355   :  { %616 = vmatpush.msrb.mxu3 %v9155_v55 }
 0x356   :  { %v464_v59 = vsub.f32 %v462_v61, %v463_v13 }
 0x357   :  { %618 = vmatpush.msrb.mxu3 %v9168_v40 }
 0x358   :  { %v465_v60 = vand.u32 4294901760, %v464_v59 }
 0x359   :  { %620 = vmatpush.msrb.mxu3 %v9185_v2 }
 0x35a   :  { %466 = vmatmul.f32.vlgmr.msrb.gmra.mxu2 %v465_v60  ;;  %564 = vmatmul.f32.vlgmr.msra.gmra.mxu3 %v463_v13 }
 0x35b   :  { %583 = vmatpush.msrb.mxu2 %v9163_v31  ;;  %1489 = vmatpush.msra.mxu3 %v8775_v37 }
 0x35d   :  { %587 = vmatpush.msrb.mxu2 %v9178_v46  ;;  %1495 = vmatpush.msra.mxu3 %v8778_v38 }
 0x35f   :  { %591 = vmatpush.msrb.mxu2 %v9192_v52  ;;  %1501 = vmatpush.msra.mxu3 %v8794_v43 }
 0x361   :  { %595 = vmatpush.msrb.mxu2 %v9206_v20  ;;  %1507 = vmatpush.msra.mxu3 %v13636_v15 }
 0x362   :  { %537 = vmatmul.f32.vlgmr.msra.gmra.mxu2 %v462_v61  ;;  %622 = vmatmul.f32.vlgmr.msrb.gmra.mxu3 %v461_v42 }
 0x363   :  { %1444 = vmatpush.msra.mxu2 %v8678_v3  ;;  %1513 = vmatpush.msra.mxu3 %v13637_v14 }
 0x365   :  { %1446 = vmatpush.msra.mxu2 %v8680_v4  ;;  %1519 = vmatpush.msra.mxu3 %v13638_v32 }
 0x367   :  { %1448 = vmatpush.msra.mxu2 %v8682_v5  ;;  %1525 = vmatpush.msra.mxu3 %v13639_v49 }
 0x369   :  { %1450 = vmatpush.msra.mxu2 %v8693_v9  ;;  %1531 = vmatpush.msra.mxu3 %v13640_v7 }
 0x36a   :  { %597 = vmatmul.f32.vlgmr.msrb.gmra.mxu2 %v461_v42  ;;  %v8630_v42 = vmov 0  }
 0x36b   :  { %1452 = vmatpush.msra.mxu2 %v8695_v10  ;;  %1537 = vmatpush.msra.mxu3 %v13641_v58 }
 0x36c   :  { %8121 = vset.pattern.permute.xlu0 %v8630_v42  ;;  %8120 = vset.pattern.permute.xlu2 %v8630_v42 }
 0x36d   :  { %1454 = vmatpush.msra.mxu2 %v8697_v11  ;;  %1543 = vmatpush.msra.mxu3 %v13642_v18 }
 0x36e   :  { %8119 = vset.pattern.permute.xlu1 %v8630_v42 }
 0x36f   :  { %1456 = vmatpush.msra.mxu2 %v8715_v17  ;;  %1549 = vmatpush.msra.mxu3 %v13643_v16 }
 0x371   :  { %1458 = vmatpush.msra.mxu2 %v8740_v25  ;;  %1555 = vmatpush.msra.mxu3 %v8953_v47 }
 0x373   :  { %1460 = vmatpush.msra.mxu2 %v8763_v33  ;;  %1561 = vmatpush.msra.mxu3 %v8964_v62 }
 0x375   :  { %1462 = vmatpush.msra.mxu2 %v8769_v35  ;;  %1567 = vmatpush.msra.mxu3 %v8972_v56 }
 0x377   :  { %1464 = vmatpush.msra.mxu2 %v8799_v45  ;;  %1573 = vmatpush.msra.mxu3 %v8979_v1 }
 0x379   :  { %1466 = vmatpush.msra.mxu2 %v8807_v48  ;;  %1579 = vmatpush.msra.mxu3 %v8985_v39 }
 0x37b   :  { %1748 = vmatpush.msrb.mxu3 %v8678_v3  ;;  %1468 = vmatpush.msra.mxu2 %v8826_v54 }
 0x37d   :  { %1750 = vmatpush.msrb.mxu3 %v8680_v4  ;;  %1470 = vmatpush.msra.mxu2 %v8859_v0 }
 0x37f   :  { %1752 = vmatpush.msrb.mxu3 %v8682_v5  ;;  %1472 = vmatpush.msra.mxu2 %v8866_v6 }
 0x381   :  { %1754 = vmatpush.msrb.mxu3 %v8693_v9  ;;  %1474 = vmatpush.msra.mxu2 %v8883_v26 }
 0x383   :  { %1681 = vmatpush.msrb.mxu2 %v8732_v22  ;;  %1756 = vmatpush.msrb.mxu3 %v8695_v10 }
 0x385   :  { %1685 = vmatpush.msrb.mxu2 %v8735_v23  ;;  %1758 = vmatpush.msrb.mxu3 %v8697_v11  ;;  %v13648_v23 = vld [vmem:[#allocation86_spill] sm:$0xff] }
 0x387   :  { %1689 = vmatpush.msrb.mxu2 %v8738_v24  ;;  %1760 = vmatpush.msrb.mxu3 %v8715_v17 }
 0x389   :  { %1693 = vmatpush.msrb.mxu2 %v8747_v27  ;;  %1762 = vmatpush.msrb.mxu3 %v8740_v25 }
 0x38b   :  { %1697 = vmatpush.msrb.mxu2 %v8750_v28  ;;  %1764 = vmatpush.msrb.mxu3 %v8763_v33 }
 0x38d   :  { %1701 = vmatpush.msrb.mxu2 %v8767_v34  ;;  %1766 = vmatpush.msrb.mxu3 %v8769_v35 }
 0x38f   :  { %1705 = vmatpush.msrb.mxu2 %v8797_v44  ;;  %1768 = vmatpush.msrb.mxu3 %v8799_v45 }
 0x391   :  { %1709 = vmatpush.msrb.mxu2 %v8818_v51  ;;  %1770 = vmatpush.msrb.mxu3 %v8807_v48  ;;  %v13646_v51 = vld [vmem:[#allocation84_spill] sm:$0xff] }
 0x393   :  { %1713 = vmatpush.msrb.mxu2 %v8824_v53  ;;  %1772 = vmatpush.msrb.mxu3 %v8826_v54 }
 0x395   :  { %1717 = vmatpush.msrb.mxu2 %v8857_v63  ;;  %1774 = vmatpush.msrb.mxu3 %v8859_v0  ;;  %v13645_v63 = vld [vmem:[#allocation83_spill] sm:$0xff] }
 0x397   :  { %1721 = vmatpush.msrb.mxu2 %v8878_v12  ;;  %1776 = vmatpush.msrb.mxu3 %v8866_v6  ;;  %v13644_v12 = vld [vmem:[#allocation85_spill] sm:$0xff] }
 0x399   :  { %1725 = vmatpush.msrb.mxu2 %v8881_v21  ;;  %1778 = vmatpush.msrb.mxu3 %v8883_v26 }
 0x39b   :  { %1729 = vmatpush.msrb.mxu2 %v8901_v41 }
 0x39d   :  { %1733 = vmatpush.msrb.mxu2 %v8927_v57 }
 0x39f   :  { %1737 = vmatpush.msrb.mxu2 %v8945_v30 }
 0x3a1   :  { %1741 = vmatpush.msrb.mxu2 %v8958_v8  ;;  %v13647_v8 = vld [vmem:[#allocation87_spill] sm:$0xff] }
 0x3bf   :  { %v796_v61 = vpop.xlane.xlu2 %795 }
 0x3c0   :  { %v800_v13 = vperm.slane %v796_v61, 2  ;;  %v799_v59 = vperm.slane %v796_v61, 1  ;;  %v798_v60 = vperm.slane %v796_v61, 0  ;;  %v804_v44 = vperm.slane %v796_v61, 6 }
 0x3c1   :  { %v802_v57 = vperm.slane %v796_v61, 4  ;;  %v801_v34 = vperm.slane %v796_v61, 3 }
 0x3c2   :  { %v816_v21 = vsub.f32 %v13644_v12, %v800_v13  ;;  %v815_v53 = vsub.f32 %v13645_v63, %v799_v59  ;;  %v814_v41 = vsub.f32 %v13646_v51, %v798_v60  ;;  %v820_v42 = vsub.f32 %v9250_v29, %v804_v44 }
 0x3c3   :  { %v818_v24 = vsub.f32 %v13647_v8, %v802_v57  ;;  %v817_v22 = vsub.f32 %v13648_v23, %v801_v34  ;;  %v805_v63 = vperm.slane %v796_v61, 7  ;;  %v803_v60 = vperm.slane %v796_v61, 5 }
 0x3c4   :  { %v826_v30 = vmul.f32 1.442695, %v816_v21  ;;  %v824_v28 = vmul.f32 1.442695, %v815_v53  ;;  %v822_v27 = vmul.f32 1.442695, %v814_v41 }
 0x3c5   :  { %v834_v12 = vmul.f32 1.442695, %v820_v42  ;;  %v830_v13 = vmul.f32 1.442695, %v818_v24  ;;  %v828_v51 = vmul.f32 1.442695, %v817_v22  ;;  %v821_v23 = vsub.f32 %v9255_v19, %v805_v63 }
 0x3c6   :  { %8129 = vpow2.f32 %v826_v30  ;;  %v13649_v24 = vld [vmem:[#allocation88_spill] sm:$0xff] }
 0x3c7   :  { %8131 = vpow2.f32 %v824_v28  ;;  %v836_v28 = vmul.f32 1.442695, %v821_v23 }
 0x3c8   :  { %8133 = vpow2.f32 %v822_v27  ;;  %v819_v27 = vsub.f32 %v13649_v24, %v803_v60 }
 0x3c9   :  { %8135 = vpow2.f32 %v834_v12 }
 0x3ca   :  { %8137 = vpow2.f32 %v830_v13  ;;  %v832_v34 = vmul.f32 1.442695, %v819_v27 }
 0x3cb   :  { %8139 = vpow2.f32 %v828_v51 }
 0x3cc   :  { %v9347_v59 = vpop.eup %8129  ;;  %8141 = vpow2.f32 %v836_v28 }
 0x3cd   :  { %v9349_v39 = vpop.eup %8131  ;;  %853 = vperm.xlu0 %8121, %v9347_v59   ;;  %8143 = vpow2.f32 %v832_v34 }
 0x3ce   :  { %v9352_v53 = vpop.eup %8133  ;;  %850 = vperm.xlu2 %8120, %v9349_v39  }
 0x3cf   :  { %847 = vperm.xlu1 %8119, %v9352_v53   ;;  %v9358_v22 = vpop.eup %8135 }
 0x3d0   :  { %v9360_v44 = vpop.eup %8137 }
 0x3d1   :  { %v9363_v8 = vpop.eup %8139 }
 0x3d2   :  { %v9367_v21 = vpop.eup %8141 }
 0x3d3   :  { %v9369_v30 = vpop.eup %8143 }
 0x3d5   :  { %865 = vperm.xlu0 %8121, %v9358_v22  }
 0x3d6   :  { %859 = vperm.xlu2 %8120, %v9360_v44  }
 0x3d7   :  { %856 = vperm.xlu1 %8119, %v9363_v8  }
 0x3de   :  { %868 = vperm.xlu2 %8120, %v9367_v21  }
 0x3df   :  { %862 = vperm.xlu1 %8119, %v9369_v30  }
 0x428   :  { %v851_v41 = vpop.permute.xlu2 %850 }
 0x429   :  { %v871_v12 = vperm.slane %v851_v41, %v8896_v36 }
 0x430   :  { %v860_v19 = vpop.permute.xlu2 %859 }
 0x431   :  { %v874_v27 = vperm.slane %v860_v19, %v8896_v36 }
 0x438   :  { %v869_v28 = vpop.permute.xlu2 %868 }
 0x43f   :  { %v854_v29 = vpop.permute.xlu0 %853 }
 0x440   :  { %v872_v13 = vperm.slane %v854_v29, %v8896_v36  ;;  %v877_v29 = vperm.slane %v869_v28, %v8896_v36 }
 0x441   :  { %v848_v57 = vpop.permute.xlu1 %847 }
 0x442   :  { %v870_v61 = vperm.slane %v848_v57, %v8896_v36 }
 0x444   :  { %v878_v63 = vsel %vm778_vm10, %v871_v12, %v870_v61 }
 0x445   :  { %v879_v60 = vsel %vm780_vm11, %v872_v13, %v878_v63 }
 0x447   :  { %v866_v24 = vpop.permute.xlu0 %865 }
 0x448   :  { %v876_v1 = vperm.slane %v866_v24, %v8896_v36 }
 0x449   :  { %v857_v42 = vpop.permute.xlu1 %856 }
 0x44a   :  { %v873_v51 = vperm.slane %v857_v42, %v8896_v36 }
 0x44c   :  { %v880_v23 = vsel %vm782_vm12, %v873_v51, %v879_v60 }
 0x44d   :  { %v881_v41 = vsel %vm784_vm13, %v874_v27, %v880_v23 }
 0x451   :  { %v863_v34 = vpop.permute.xlu1 %862 }
 0x452   :  { %v875_v57 = vperm.slane %v863_v34, %v8896_v36 }
 0x454   :  { %v882_v61 = vsel %vm786_vm14, %v875_v57, %v881_v41 }
 0x455   :  { %v883_v42 = vsel %vm13416_vm15, %v876_v1, %v882_v61 }
 0x456   :  { %v884_v12 = vsel %vm13364_vm3, %v877_v29, %v883_v42 }
 0x457   :  { %v886_v13 = vsel %vm13353_vm5, %v884_v12, 0.0 }
 0x458   :  { %887 = vadd.xlane.f32.xlu1 %v886_v13 }
 0x4cb   :  { %v9389_v19 = vpop.xlane.xlu1 %887 }
 0x4cc   :  { %v892_v63 = vperm.slane %v9389_v19, 2  ;;  %v891_v51 = vperm.slane %v9389_v19, 1  ;;  %v9394_v60 = vperm.slane %v9389_v19, 3  ;;  %v9397_v23 = vperm.slane %v9389_v19, 0 }
 0x4cd   :  { %v9400_v1 = vperm.slane %v9389_v19, 5  ;;  %v9404_v24 = vperm.slane %v9389_v19, 4  ;;  %v9409_v41 = vperm.slane %v9389_v19, 7 }
 0x4ce   :  { %8145 = vrcp.f32 %v892_v63  ;;  %v945_v27 = vand.u32 2147483647, %v892_v63  ;;  %v947_v28 = vand.u32 2147483648, %v892_v63  ;;  %v930_v57 = vand.u32 2147483647, %v891_v51 }
 0x4cf   :  { %8147 = vrcp.f32 %v891_v51  ;;  %vm941_vm7 = vweird.f32 %v892_v63  ;;  %vm926_vm8 = vweird.f32 %v891_v51  ;;  %v932_v13 = vand.u32 2147483648, %v891_v51 }
 0x4d0   :  { %8149 = vrcp.f32 %v9394_v60  ;;  %vm9414_vm0 = vcmp.eq.f32.partialorder %v945_v27, 8.507059e+37  ;;  %v948_v47 = vor.u32 1.1754944e-38, %v947_v28  ;;  %vm9420_vm6 = vcmp.eq.f32.partialorder %v930_v57, 8.507059e+37 }
 0x4d1   :  { %8151 = vrcp.f32 %v9397_v23  ;;  %vm956_vm5 = vweird.f32 %v9394_v60  ;;  %v933_v14 = vor.u32 1.1754944e-38, %v932_v13  ;;  %v960_v43 = vand.u32 2147483647, %v9394_v60 }
 0x4d2   :  { %8153 = vrcp.f32 %v9400_v1 }
 0x4d3   :  { %8155 = vrcp.f32 %v9404_v24 }
 0x4d4   :  { %v8146_v34 = vpop.eup %8145  ;;  %8157 = vrcp.f32 %v9409_v41 }
 0x4d5   :  { %v8148_v29 = vpop.eup %8147  ;;  %v937_v61 = vmul.f32 %v8146_v34, %v892_v63  ;;  %vm942_vm9 = vweird.f32 %v8146_v34 }
 0x4d6   :  { %v9412_v42 = vpop.eup %8149  ;;  %v922_v12 = vmul.f32 %v8148_v29, %v891_v51  ;;  %vm927_vm4 = vweird.f32 %v8148_v29  ;;  %vm943_vm2 = vmor %vm941_vm7, %vm942_vm9  ;;  %v917_v51 = vand.u32 2147483648, %v9397_v23  ;;  %vm986_vm7 = vweird.f32 %v9400_v1 }
 0x4d7   :  { %v938_v56 = vsub.f32 1.0, %v937_v61  ;;  %v952_v16 = vmul.f32 %v9412_v42, %v9394_v60  ;;  %v8152_v18 = vpop.eup %8151  ;;  %vm957_vm1 = vweird.f32 %v9412_v42  ;;  %vm928_vm3 = vmor %vm926_vm8, %vm927_vm4 }
 0x4d8   :  { %v923_v58 = vsub.f32 1.0, %v922_v12  ;;  %v9426_v49 = vpop.eup %8153  ;;  %v907_v28 = vmul.f32 %v8152_v18, %v9397_v23  ;;  %vm912_vm9 = vweird.f32 %v8152_v18 }
 0x4d9   :  { %v939_v27 = vmul.f32 %v8146_v34, %v938_v56  ;;  %v953_v61 = vsub.f32 1.0, %v952_v16  ;;  %v982_v57 = vmul.f32 %v9426_v49, %v9400_v1  ;;  %v9431_v12 = vpop.eup %8155 }
 0x4da   :  { %v924_v32 = vmul.f32 %v8148_v29, %v923_v58  ;;  %v908_v52 = vsub.f32 1.0, %v907_v28  ;;  %v962_v58 = vand.u32 2147483648, %v9394_v60  ;;  %v967_v16 = vmul.f32 %v9431_v12, %v9404_v24  ;;  %v9442_v46 = vpop.eup %8157 }
 0x4db   :  { %v940_v15 = vadd.f32 %v8146_v34, %v939_v27  ;;  %v954_v20 = vmul.f32 %v9412_v42, %v953_v61  ;;  %v983_v61 = vsub.f32 1.0, %v982_v57  ;;  %v918_v60 = vor.u32 1.1754944e-38, %v917_v51 }
 0x4dc   :  { %v925_v56 = vadd.f32 %v8148_v29, %v924_v32  ;;  %v909_v38 = vmul.f32 %v8152_v18, %v908_v52  ;;  %v968_v28 = vsub.f32 1.0, %v967_v16  ;;  %v9462_v52 = vperm.slane %v9389_v19, 6 }
 0x4dd   :  { %v944_v13 = vsel %vm943_vm2, %v8146_v34, %v940_v15  ;;  %v955_v27 = vadd.f32 %v9412_v42, %v954_v20  ;;  %vm9455_vm2 = vmor %vm956_vm5, %vm957_vm1  ;;  %vm961_vm1 = vcmp.eq.f32.partialorder %v960_v43, 8.507059e+37  ;;  %vm987_vm5 = vweird.f32 %v9426_v49 }
 0x4de   :  { %v949_v63 = vsel %vm9414_vm0, %v948_v47, %v944_v13  ;;  %v929_v32 = vsel %vm928_vm3, %v8148_v29, %v925_v56  ;;  %v910_v15 = vadd.f32 %v8152_v18, %v909_v38  ;;  %vm911_vm0 = vweird.f32 %v9397_v23  ;;  %vm988_vm8 = vmor %vm986_vm7, %vm987_vm5 }
 0x4df   :  { %v950_v37 = vmul.f32 %v9347_v59, %v949_v63  ;;  %v934_v31 = vsel %vm9420_vm6, %v933_v14, %v929_v32  ;;  %v915_v47 = vand.u32 2147483647, %v9397_v23  ;;  %v959_v38 = vsel %vm9455_vm2, %v9412_v42, %v955_v27  ;;  %vm913_vm4 = vmor %vm911_vm0, %vm912_vm9 }
 0x4e0   :  { %v935_v20 = vmul.f32 %v9349_v39, %v934_v31  ;;  %v984_v39 = vmul.f32 %v9426_v49, %v983_v61  ;;  %v1012_v31 = vmul.f32 %v9442_v46, %v9409_v41  ;;  %v963_v14 = vor.u32 1.1754944e-38, %v962_v58 }
 0x4e1   :  { %1046 = vperm.xlu2 %8120, %v950_v37   ;;  %v914_v7 = vsel %vm913_vm4, %v8152_v18, %v910_v15  ;;  %v969_v59 = vmul.f32 %v9431_v12, %v968_v28  ;;  %vm916_vm3 = vcmp.eq.f32.partialorder %v915_v47, 8.507059e+37  ;;  %8159 = vrcp.f32 %v9462_v52 }
 0x4e2   :  { %1041 = vperm.xlu0 %8121, %v935_v20   ;;  %v964_v19 = vsel %vm961_vm1, %v963_v14, %v959_v38  ;;  %v919_v37 = vsel %vm916_vm3, %v918_v60, %v914_v7  ;;  %v985_v23 = vadd.f32 %v9426_v49, %v984_v39  ;;  %v1013_v34 = vsub.f32 1.0, %v1012_v31 }
 0x4e3   :  { %v992_v29 = vand.u32 2147483648, %v9400_v1  ;;  %v970_v42 = vadd.f32 %v9431_v12, %v969_v59  ;;  %vm972_vm6 = vweird.f32 %v9431_v12  ;;  %v965_v18 = vmul.f32 %v9363_v8, %v964_v19 }
 0x4e4   :  { %v990_v43 = vand.u32 2147483647, %v9400_v1  ;;  %v977_v57 = vand.u32 2147483648, %v9404_v24  ;;  %v920_v56 = vmul.f32 %v9352_v53, %v919_v37  ;;  %vm971_vm9 = vweird.f32 %v9404_v24  ;;  %v1028_v37 = vld [vmem:[%s13215_s2 + $0x10] sm:$0x3f] }
 0x4e5   :  { %v975_v58 = vand.u32 2147483647, %v9404_v24  ;;  %v989_v16 = vsel %vm988_vm8, %v9426_v49, %v985_v23  ;;  %vm973_vm2 = vmor %vm971_vm9, %vm972_vm6  ;;  %v1014_v13 = vmul.f32 %v9442_v46, %v1013_v34  ;;  %v993_v27 = vor.u32 1.1754944e-38, %v992_v29  ;;  %v1027_v23 = vld [vmem:[%s13215_s2 + $0x8] sm:$0x3f] }
 0x4e6   :  { %v974_v1 = vsel %vm973_vm2, %v9431_v12, %v970_v42  ;;  %vm991_vm0 = vcmp.eq.f32.partialorder %v990_v43, 8.507059e+37  ;;  %v978_v61 = vor.u32 1.1754944e-38, %v977_v57  ;;  %vm1017_vm1 = vweird.f32 %v9442_v46  ;;  %v1029_v34 = vld [vmem:[%s13215_s2 + $0x18] sm:$0x3f]  ;;  %v8122_v29 = vld [vmem:[%s13217_s4] ss:$0 sm:$0xff] }
 0x4e7   :  { %v8160_v8 = vpop.eup %8159  ;;  %v994_v63 = vsel %vm991_vm0, %v993_v27, %v989_v16  ;;  %vm976_vm4 = vcmp.eq.f32.partialorder %v975_v58, 8.507059e+37  ;;  %v1015_v24 = vadd.f32 %v9442_v46, %v1014_v13  ;;  %vm1016_vm3 = vweird.f32 %v9409_v41  ;;  %v1031_v58 = vld [vmem:[%s13215_s2 + $0x28] sm:$0x3f]  ;;  %v1033_v27 = vld [vmem:[%s13215_s2 + $0x38] sm:$0x3f] }
 0x4e8   :  { %v997_v53 = vmul.f32 %v8160_v8, %v9462_v52  ;;  %v979_v32 = vsel %vm976_vm4, %v978_v61, %v974_v1  ;;  %v1020_v28 = vand.u32 2147483647, %v9409_v41  ;;  %v1022_v15 = vand.u32 2147483648, %v9409_v41  ;;  %vm1018_vm6 = vmor %vm1016_vm3, %vm1017_vm1 }
 0x4e9   :  { %1051 = vperm.xlu2 %8120, %v965_v18   ;;  %v995_v12 = vmul.f32 %v9369_v30, %v994_v63  ;;  %vm1002_vm5 = vweird.f32 %v8160_v8  ;;  %v1007_v20 = vand.u32 2147483648, %v9462_v52  ;;  %v980_v62 = vmul.f32 %v9360_v44, %v979_v32  ;;  %v1026_v32 = vld [vmem:[%s13215_s2] sm:$0x3f] }
 0x4ea   :  { %1036 = vperm.xlu0 %8121, %v920_v56   ;;  %v998_v49 = vsub.f32 1.0, %v997_v53  ;;  %v1005_v47 = vand.u32 2147483647, %v9462_v52  ;;  %v1019_v38 = vsel %vm1018_vm6, %v9442_v46, %v1015_v24  ;;  %vm1001_vm7 = vweird.f32 %v9462_v52  ;;  %v467_v52 = vpop.f32.mrf.mxu2 }
 0x4eb   :  { %v1023_v31 = vor.u32 1.1754944e-38, %v1022_v15  ;;  %vm1003_vm8 = vmor %vm1001_vm7, %vm1002_vm5  ;;  %vm1021_vm9 = vcmp.eq.f32.partialorder %v1020_v28, 8.507059e+37  ;;  %v1008_v41 = vor.u32 1.1754944e-38, %v1007_v20  ;;  %vm1082_vm0 = vcmask 78848  }
 0x4ec   :  { %v999_v51 = vmul.f32 %v8160_v8, %v998_v49  ;;  %vm1006_vm2 = vcmp.eq.f32.partialorder %v1005_v47, 8.507059e+37  ;;  %v468_v13 = vadd.f32 %v8122_v29, %v467_v52  ;;  %vm13415_vm4 = vcmask 80896  }
 0x4ed   :  { %v1024_v14 = vsel %vm1021_vm9, %v1023_v31, %v1019_v38  ;;  %vm13672_vm1 = vcmask 1047559  }
 0x4ee   :  { %v1000_v39 = vadd.f32 %v8160_v8, %v999_v51  ;;  %v1025_v44 = vmul.f32 %v9367_v21, %v1024_v14  ;;  %v508_v21 = vpop.f32.mrf.mxu3 }
 0x4ef   :  { %v509_v49 = vadd.f32 %v508_v21, %v468_v13 }
 0x4f0   :  { %v1004_v30 = vsel %vm1003_vm8, %v8160_v8, %v1000_v39 }
 0x4f1   :  { %1061 = vperm.xlu2 %8120, %v995_v12   ;;  %v1009_v7 = vsel %vm1006_vm2, %v1008_v41, %v1004_v30 }
 0x4f2   :  { %1056 = vperm.xlu0 %8121, %v980_v62   ;;  %v1010_v59 = vmul.f32 %v9358_v22, %v1009_v7  ;;  %v538_v57 = vpop.f32.mrf.mxu2 }
 0x4f3   :  { %v539_v62 = vadd.f32 %v538_v57, %v509_v49 }
 0x4f6   :  { %v565_v12 = vpop.f32.mrf.mxu3 }
 0x4f9   :  { %1071 = vperm.xlu2 %8120, %v1025_v44  }
 0x4fa   :  { %1066 = vperm.xlu0 %8121, %v1010_v59   ;;  %v598_v14 = vpop.f32.mrf.mxu2  ;;  %v566_v59 = vadd.f32 %v565_v12, %v539_v62 }
 0x4fe   :  { %v623_v13 = vpop.f32.mrf.mxu3 }
 0x53b   :  { %v9501_v60 = vpop.permute.xlu2 %1046 }
 0x53c   :  { %13656 = vst [vmem:[#allocation85_spill] sm:$0xff] %v9501_v60  ;;  %v1076_v22 = vmul.f32 %v9501_v60, %v1028_v37 }
 0x53e   :  { %v1097_v56 = vsel %vm1082_vm0, %v1076_v22, 0.0 }
 0x53f   :  { %v1098_v61 = vrot.slane %v1097_v56, 4 }
 0x541   :  { %v1099_v47 = vadd.f32 %v1098_v61, %v1097_v56 }
 0x543   :  { %v9503_v46 = vpop.permute.xlu2 %1051  ;;  %v1100_v52 = vrot.slane %v1099_v47, 2 }
 0x544   :  { %13657 = vst [vmem:[#allocation83_spill] sm:$0xff] %v9503_v46  ;;  %v1077_v43 = vmul.f32 %v9503_v46, %v1029_v34  ;;  %v599_v34 = vadd.f32 %v598_v14, %v566_v59 }
 0x546   :  { %v1104_v53 = vsel %vm1082_vm0, %v1077_v43, 0.0 }
 0x547   :  { %v1105_v51 = vrot.slane %v1104_v53, 4 }
 0x549   :  { %v1106_v7 = vadd.f32 %v1105_v51, %v1104_v53  ;;  %v624_v53 = vadd.f32 %v623_v13, %v599_v34  ;;  %v1032_v51 = vld [vmem:[%s13215_s2 + $0x30] sm:$0x3f] }
 0x54b   :  { %v9505_v19 = vpop.permute.xlu2 %1061  ;;  %v1107_v43 = vrot.slane %v1106_v7, 2 }
 0x54c   :  { %13658 = vst [vmem:[#allocation84_spill] sm:$0xff] %v9505_v19  ;;  %v1079_v63 = vmul.f32 %v9505_v19, %v1031_v58  ;;  %v1101_v58 = vadd.f32 %v1100_v52, %v1099_v47  ;;  %v1140_v47 = vrot.slane %v624_v53, 1 }
 0x54e   :  { %v1118_v38 = vsel %vm1082_vm0, %v1079_v63, 0.0 }
 0x54f   :  { %v1119_v44 = vrot.slane %v1118_v38, 4 }
 0x551   :  { %v1120_v57 = vadd.f32 %v1119_v44, %v1118_v38 }
 0x553   :  { %v9532_v1 = vpop.permute.xlu2 %1071  ;;  %v1121_v49 = vrot.slane %v1120_v57, 2 }
 0x554   :  { %v9520_v42 = vpop.permute.xlu0 %1041  ;;  %13660 = vst [vmem:[#allocation86_spill] sm:$0xff] %v9532_v1  ;;  %v1081_v28 = vmul.f32 %v9532_v1, %v1033_v27 }
 0x555   :  { %13659 = vst [vmem:[#allocation87_spill] sm:$0xff] %v9520_v42  ;;  %v1075_v18 = vmul.f32 %v9520_v42, %v1027_v23  ;;  %v1030_v23 = vld [vmem:[%s13215_s2 + $0x20] sm:$0x3f] }
 0x556   :  { %v1132_v30 = vsel %vm1082_vm0, %v1081_v28, 0.0  ;;  %v1102_v28 = vrot.slane %v1101_v58, 1 }
 0x557   :  { %v1090_v16 = vsel %vm1082_vm0, %v1075_v18, 0.0  ;;  %v1133_v21 = vrot.slane %v1132_v30, 4 }
 0x558   :  { %v1091_v8 = vrot.slane %v1090_v16, 4 }
 0x55a   :  { %v1092_v24 = vadd.f32 %v1091_v8, %v1090_v16  ;;  %v1134_v8 = vadd.f32 %v1133_v21, %v1132_v30  ;;  %v1122_v30 = vadd.f32 %v1121_v49, %v1120_v57  ;;  %v1143_v57 = vrot.slane %v624_v53, 4 }
 0x55c   :  { %v9540_v15 = vpop.permute.xlu0 %1036  ;;  %v1093_v39 = vrot.slane %v1092_v24, 2 }
 0x55d   :  { %13661 = vst [vmem:[#allocation88_spill] sm:$0xff] %v9540_v15  ;;  %v1074_v20 = vmul.f32 %v9540_v15, %v1026_v32  ;;  %v1108_v32 = vadd.f32 %v1107_v43, %v1106_v7  ;;  %v1103_v7 = vadd.f32 %v1102_v28, %v1101_v58 }
 0x55e   :  { %v1094_v22 = vadd.f32 %v1093_v39, %v1092_v24 }
 0x55f   :  { %v1083_v31 = vsel %vm1082_vm0, %v1074_v20, 0.0  ;;  %v1135_v20 = vrot.slane %v1134_v8, 2 }
 0x560   :  { %v1084_v41 = vrot.slane %v1083_v31, 4  ;;  %v1095_v27 = vrot.slane %v1094_v22, 1 }
 0x561   :  { %v1136_v59 = vadd.f32 %v1135_v20, %v1134_v8 }
 0x562   :  { %v1085_v37 = vadd.f32 %v1084_v41, %v1083_v31  ;;  %v1096_v62 = vadd.f32 %v1095_v27, %v1094_v22  ;;  %v1109_v31 = vrot.slane %v1108_v32, 1  ;;  %v1142_v27 = vrot.slane %v624_v53, 3 }
 0x563   :  { %v1137_v58 = vrot.slane %v1136_v59, 1 }
 0x564   :  { %v1086_v29 = vrot.slane %v1085_v37, 2  ;;  %v9549_v18 = vpop.permute.xlu0 %1056  ;;  %v9559_v52 = vadd.f32 %v1140_v47, %v1096_v62  ;;  %v1110_v22 = vadd.f32 %v1109_v31, %v1108_v32 }
 0x565   :  { %13662 = vst [vmem:[#allocation89_spill] sm:$0xff] %v9549_v18  ;;  %v1078_v56 = vmul.f32 %v9549_v18, %v1030_v23  ;;  %v1141_v23 = vrot.slane %v624_v53, 2  ;;  %v1138_v20 = vadd.f32 %v1137_v58, %v1136_v59 }
 0x566   :  { %v1087_v16 = vadd.f32 %v1086_v29, %v1085_v37  ;;  %13664 = vst [vmem:[#allocation91_spill] sm:$0xff] %v9559_v52  ;;  %v1123_v29 = vrot.slane %v1122_v30, 1  ;;  %v1171_v8 = vrot.slane %v9559_v52, 7  ;;  %v9569_v49 = vadd.f32 %v1142_v27, %v1110_v22 }
 0x567   :  { %v1111_v61 = vsel %vm1082_vm0, %v1078_v56, 0.0  ;;  %v9564_v56 = vadd.f32 %v1141_v23, %v1103_v7  ;;  %v1145_v7 = vrot.slane %v624_v53, 6 }
 0x568   :  { %v1112_v63 = vrot.slane %v1111_v61, 4  ;;  %v1088_v24 = vrot.slane %v1087_v16, 1  ;;  %13668 = vst [vmem:[#allocation95_spill] sm:$0xff] %v9569_v49 }
 0x569   :  { %13666 = vst [vmem:[#allocation93_spill] sm:$0xff] %v9564_v56  ;;  %v1173_v28 = vrot.slane %v9564_v56, 6 }
 0x56a   :  { %v1113_v12 = vadd.f32 %v1112_v63, %v1111_v61  ;;  %v1089_v41 = vadd.f32 %v1088_v24, %v1087_v16  ;;  %v1124_v24 = vadd.f32 %v1123_v29, %v1122_v30 }
 0x56c   :  { %v1114_v38 = vrot.slane %v1113_v12, 2  ;;  %v9556_v39 = vpop.permute.xlu0 %1066  ;;  %v9562_v43 = vadd.f32 %v1089_v41, %v624_v53  ;;  %v1146_v41 = vrot.slane %v624_v53, 7 }
 0x56d   :  { %13663 = vst [vmem:[#allocation90_spill] sm:$0xff] %v9556_v39  ;;  %v1080_v14 = vmul.f32 %v9556_v39, %v1032_v51  ;;  %v1144_v51 = vrot.slane %v624_v53, 5 }
 0x56e   :  { %v1115_v44 = vadd.f32 %v1114_v38, %v1113_v12  ;;  %13665 = vst [vmem:[#allocation92_spill] sm:$0xff] %v9562_v43  ;;  %v1172_v32 = vsel %vm778_vm10, %v1171_v8, %v9562_v43 }
 0x56f   :  { %v1125_v37 = vsel %vm1082_vm0, %v1080_v14, 0.0  ;;  %v1174_v47 = vsel %vm780_vm11, %v1173_v28, %v1172_v32  ;;  %v9576_v31 = vadd.f32 %v1144_v51, %v1124_v24  ;;  %v1175_v14 = vrot.slane %v9569_v49, 5 }
 0x570   :  { %v1116_v21 = vrot.slane %v1115_v44, 1  ;;  %v1126_v34 = vrot.slane %v1125_v37, 4 }
 0x571   :  { %13669 = vst [vmem:[#allocation96_spill] sm:$0xff] %v9576_v31 }
 0x572   :  { %v1117_v16 = vadd.f32 %v1116_v21, %v1115_v44  ;;  %v1127_v13 = vadd.f32 %v1126_v34, %v1125_v37  ;;  %v9579_v44 = vadd.f32 %v1146_v41, %v1138_v20  ;;  %v1176_v37 = vsel %vm782_vm12, %v1175_v14, %v1174_v47 }
 0x573   :  { %v1179_v21 = vrot.slane %v9576_v31, 3 }
 0x574   :  { %v9567_v61 = vadd.f32 %v1143_v57, %v1117_v16  ;;  %v1128_v63 = vrot.slane %v1127_v13, 2  ;;  %13670 = vst [vmem:[#allocation97_spill] sm:$0xff] %v9579_v44  ;;  %v1183_v29 = vrot.slane %v9579_v44, 1 }
 0x576   :  { %13667 = vst [vmem:[#allocation94_spill] sm:$0xff] %v9567_v61  ;;  %v1129_v12 = vadd.f32 %v1128_v63, %v1127_v13  ;;  %v1177_v38 = vrot.slane %v9567_v61, 4 }
 0x578   :  { %v1130_v62 = vrot.slane %v1129_v12, 1  ;;  %v1178_v59 = vsel %vm784_vm13, %v1177_v38, %v1176_v37 }
 0x579   :  { %v1180_v22 = vsel %vm786_vm14, %v1179_v21, %v1178_v59 }
 0x57a   :  { %v1131_v30 = vadd.f32 %v1130_v62, %v1129_v12 }
 0x57c   :  { %v9582_v23 = vadd.f32 %v1145_v7, %v1131_v30 }
 0x57e   :  { %13671 = vst [vmem:[#allocation98_spill] sm:$0xff] %v9582_v23  ;;  %v1181_v34 = vrot.slane %v9582_v23, 2 }
 0x580   :  { %v1182_v53 = vsel %vm13416_vm15, %v1181_v34, %v1180_v22 }
 0x581   :  { %v1184_v57 = vsel %vm13672_vm1, %v1183_v29, %v1182_v53 }
 0x582   :  { %v1187_v16 = vsel %vm13415_vm4, %v1184_v57, -inf }
 0x583   :  { %1188 = vmax.xlane.f32.xlu0 %v1187_v16 }
 0x5f6   :  { %v9592_v13 = vpop.xlane.xlu0 %1188 }
 0x5f7   :  { %13673 = vst [vmem:[#allocation99_spill] sm:$0xff] %v9592_v13  ;;  %v13379_v27 = vrot.slane %v9592_v13, 1  ;;  %v13378_v58 = vrot.slane %v9592_v13, 2  ;;  %v13377_v8 = vrot.slane %v9592_v13, 3  ;;  %v13376_v63 = vrot.slane %v9592_v13, 4 }
 0x5f8   :  { %v13375_v24 = vrot.slane %v9592_v13, 5  ;;  %v13374_v32 = vrot.slane %v9592_v13, 6  ;;  %v13373_v28 = vrot.slane %v9592_v13, 7  ;;  %vm1333_vm8 = vcmp.eq.f32.partialorder %v9562_v43, %v9592_v13 }
 0x5f9   :  { %vm1334_vm3 = vcmp.eq.f32.partialorder %v9559_v52, %v13379_v27  ;;  %vm1335_vm5 = vcmp.eq.f32.partialorder %v9564_v56, %v13378_v58  ;;  %vm9610_vm6 = vcmp.eq.f32.partialorder %v9569_v49, %v13377_v8  ;;  %vm9617_vm7 = vcmp.eq.f32.partialorder %v9567_v61, %v13376_v63  ;;  %v13710_v63 = vld [vmem:[#allocation79_spill] sm:$0xff]  ;;  %v13711_v8 = vld [vmem:[#allocation50_spill] sm:$0xff]  ;;  %v13712_v58 = vld [vmem:[#allocation81_spill] sm:$0xff] }
 0x5fa   :  { %vm9626_vm9 = vcmp.eq.f32.partialorder %v9576_v31, %v13375_v24  ;;  %v1342_v62 = vsel %vm1334_vm3, %v8896_v36, 10  ;;  %v1343_v47 = vsel %vm1335_vm5, %v8896_v36, 10  ;;  %vm9635_vm2 = vcmp.eq.f32.partialorder %v9582_v23, %v13374_v32  ;;  %v13708_v32 = vld [vmem:[#allocation76_spill] sm:$0xff]  ;;  %v13709_v24 = vld [vmem:[#allocation47_spill] sm:$0xff]  ;;  %v13713_v27 = vld [vmem:[#allocation53_spill] sm:$0xff] }
 0x5fb   :  { %v1344_v41 = vsel %vm9610_vm6, %v8896_v36, 10  ;;  %vm9645_vm1 = vcmp.eq.f32.partialorder %v9579_v44, %v13373_v28  ;;  %v1345_v7 = vsel %vm9617_vm7, %v8896_v36, 10  ;;  %v1349_v30 = vrot.slane %v1342_v62, 7 }
 0x5fc   :  { %v1351_v37 = vrot.slane %v1343_v47, 6  ;;  %v1341_v59 = vsel %vm1333_vm8, %v8896_v36, 10  ;;  %v1346_v21 = vsel %vm9626_vm9, %v8896_v36, 10  ;;  %v1347_v34 = vsel %vm9635_vm2, %v8896_v36, 10 }
 0x5fd   :  { %v1350_v22 = vsel %vm778_vm10, %v1349_v30, %v1341_v59  ;;  %v1353_v29 = vrot.slane %v1344_v41, 5  ;;  %v1348_v53 = vsel %vm9645_vm1, %v8896_v36, 10  ;;  %v1355_v16 = vrot.slane %v1345_v7, 4 }
 0x5fe   :  { %v1352_v57 = vsel %vm780_vm11, %v1351_v37, %v1350_v22  ;;  %v1357_v51 = vrot.slane %v1346_v21, 3  ;;  %v1359_v62 = vrot.slane %v1347_v34, 2  ;;  %v1361_v38 = vrot.slane %v1348_v53, 1  ;;  %v13685_v34 = vld [vmem:[#allocation64_spill] sm:$0xff] }
 0x5ff   :  { %v1354_v12 = vsel %vm782_vm12, %v1353_v29, %v1352_v57  ;;  %vm13684_vm3 = vcmask 1047559   ;;  %vm13687_vm7 = vcmp.eq.s32.totalorder %v8896_v36, 13  ;;  %vm13689_vm9 = vcmask 130048  }
 0x600   :  { %v1356_v20 = vsel %vm784_vm13, %v1355_v16, %v1354_v12  ;;  %v13688_v12 = vmov 0.0   ;;  %vm13690_vm2 = vcmask 392192  }
 0x601   :  { %v1358_v47 = vsel %vm786_vm14, %v1357_v51, %v1356_v20 }
 0x602   :  { %v1360_v28 = vsel %vm13416_vm15, %v1359_v62, %v1358_v47 }
 0x603   :  { %v1362_v41 = vsel %vm13684_vm3, %v1361_v38, %v1360_v28 }
 0x604   :  { %v1363_v30 = vsel %vm13415_vm4, %v1362_v41, 2147483647 }
 0x605   :  { %v1365_v14 = vshra.s32 %v1363_v30, 16  ;;  %v1364_v37 = vand.u32 65535, %v1363_v30 }
 0x607   :  { %v1367_v59 = vcvt.s32.f32 %v1365_v14  ;;  %v1366_v22 = vcvt.s32.f32 %v1364_v37  ;;  %v13691_v14 = vld [vmem:[#allocation71_spill] sm:$0xff]  ;;  %v13692_v37 = vld [vmem:[#allocation73_spill] sm:$0xff] }
 0x609   :  { %1368 = vmin.xlane.f32.xlu2 %v1367_v59 }
 0x67c   :  { %v1369_v7 = vpop.xlane.xlu2 %1368 }
 0x67d   :  { %vm1370_vm5 = vcmp.eq.f32.partialorder %v1367_v59, %v1369_v7  ;;  %v1375_v53 = vcvt.f32.s32 %v1369_v7 }
 0x67e   :  { %v1371_v21 = vsel %vm1370_vm5, %v1366_v22, inf  ;;  %v13693_v22 = vld [vmem:[#allocation75_spill] sm:$0xff] }
 0x67f   :  { %1372 = vmin.xlane.f32.xlu1 %v1371_v21  ;;  %v1376_v16 = vshll.u32 %v1375_v53, 16  ;;  %v13694_v21 = vld [vmem:[#allocation78_spill] sm:$0xff] }
 0x680   :  { %v13696_v53 = vld [vmem:[#allocation6_spill] sm:$0xff] }
 0x698   :  { %1438 = vrot.lane.b32.xlu1 %v13685_v34, %s8631_s18 }
 0x6f2   :  { %v1373_v29 = vpop.xlane.xlu1 %1372 }
 0x6f3   :  { %v1374_v57 = vcvt.f32.s32 %v1373_v29  ;;  %v13695_v29 = vld [vmem:[#allocation5_spill] sm:$0xff] }
 0x6f5   :  { %v9672_v28 = vadd.s32 %v1376_v16, %v1374_v57  ;;  %v13697_v57 = vld [vmem:[#allocation7_spill] sm:$0xff]  ;;  %v13698_v16 = vld [vmem:[#allocation8_spill] sm:$0xff] }
 0x6f7   :  { %13686 = vst [vmem:[#allocation64_spill] sm:$0xff] %v9672_v28  ;;  %vm13414_vm6 = vcmp.eq.s32.totalorder %v8896_v36, %v9672_v28  ;;  %v13714_v28 = vld [vmem:[#allocation82_spill] sm:$0xff] }
 0x6f8   :  { %vm1435_vm8 = vmor %vm13414_vm6, %vm13687_vm7 }
 0x6f9   :  { %v8096_v51 = vsel %vm1435_vm8, 1.0, %v13688_v12  ;;  %vm13723_vm8 = vcmask 259072  }
 0x70a   :  { %v1439_v20 = vpop.permute.xlu1 %1438 }
 0x70b   :  { %v1441_v62 = vsel %vm13689_vm9, %v8096_v51, %v1439_v20  ;;  %v13699_v51 = vld [vmem:[#allocation9_spill] sm:$0xff]  ;;  %v13700_v20 = vld [vmem:[#allocation10_spill] sm:$0xff]  ;;  %vm13724_vm9 = vmmov %vm13723_vm8 }
 0x70c   :  { %v1442_v47 = vsel %vm13690_vm2, %v1441_v62, 0.0  ;;  %v13701_v62 = vld [vmem:[#allocation17_spill] sm:$0xff]  ;;  %vm13725_vm2 = vmmov %vm13723_vm8 }
 0x70d   :  { %v1475_v38 = vand.u32 4294901760, %v1442_v47 }
 0x70f   :  { %v1476_v41 = vsub.f32 %v1442_v47, %v1475_v38  ;;  %1581 = vmatmul.f32.vlgmr.msra.gmra.mxu3 %v1475_v38  ;;  %v13702_v47 = vld [vmem:[#allocation23_spill] sm:$0xff] }
 0x710   :  { %2967 = vmatpush.msra.mxu3 %v8678_v3 }
 0x711   :  { %1635 = vmatmul.f32.vlgmr.msra.gmra.mxu0 %v1476_v41  ;;  %v1477_v30 = vand.u32 4294901760, %v1476_v41 }
 0x712   :  { %1911 = vmatpush.msra.mxu0 %v13691_v14  ;;  %2969 = vmatpush.msra.mxu3 %v8680_v4 }
 0x713   :  { %1674 = vmatmul.f32.vlgmr.msra.gmra.mxu1 %v1477_v30  ;;  %v1478_v59 = vsub.f32 %v1476_v41, %v1477_v30  ;;  %v13704_v41 = vld [vmem:[#allocation31_spill] sm:$0xff] }
 0x714   :  { %1940 = vmatpush.msra.mxu1 %v9147_v50  ;;  %1914 = vmatpush.msra.mxu0 %v13692_v37  ;;  %v13705_v30 = vld [vmem:[#allocation35_spill] sm:$0xff] }
 0x715   :  { %v1479_v7 = vand.u32 4294901760, %v1478_v59  ;;  %2971 = vmatpush.msra.mxu3 %v8682_v5  ;;  %v13706_v59 = vld [vmem:[#allocation36_spill] sm:$0xff] }
 0x716   :  { %1942 = vmatpush.msra.mxu1 %v9155_v55  ;;  %1917 = vmatpush.msra.mxu0 %v13693_v22 }
 0x717   :  { %1480 = vmatmul.f32.vlgmr.msra.gmra.mxu2 %v1479_v7  ;;  %1780 = vmatmul.f32.vlgmr.msrb.gmra.mxu3 %v1475_v38  ;;  %v13707_v7 = vld [vmem:[#allocation41_spill] sm:$0xff] }
 0x718   :  { %1944 = vmatpush.msra.mxu1 %v9168_v40  ;;  %1920 = vmatpush.msra.mxu0 %v13694_v21 }
 0x719   :  { %2914 = vmatpush.msra.mxu2 %v13695_v29  ;;  %2973 = vmatpush.msra.mxu3 %v8693_v9 }
 0x71a   :  { %1946 = vmatpush.msra.mxu1 %v9185_v2 }
 0x71b   :  { %2917 = vmatpush.msra.mxu2 %v13696_v53  ;;  %2975 = vmatpush.msra.mxu3 %v8695_v10 }
 0x71d   :  { %2920 = vmatpush.msra.mxu2 %v13697_v57  ;;  %2977 = vmatpush.msra.mxu3 %v8697_v11 }
 0x71f   :  { %1743 = vmatmul.f32.vlgmr.msrb.gmra.mxu2 %v1475_v38  ;;  %2979 = vmatpush.msra.mxu3 %v8715_v17  ;;  %v13703_v38 = vld [vmem:[#allocation27_spill] sm:$0xff] }
 0x720   :  { %2923 = vmatpush.msra.mxu2 %v13698_v16 }
 0x721   :  { %2981 = vmatpush.msra.mxu3 %v8740_v25 }
 0x722   :  { %2926 = vmatpush.msra.mxu2 %v13699_v51 }
 0x723   :  { %2983 = vmatpush.msra.mxu3 %v8763_v33 }
 0x724   :  { %2929 = vmatpush.msra.mxu2 %v13700_v20 }
 0x725   :  { %2985 = vmatpush.msra.mxu3 %v8769_v35 }
 0x726   :  { %2932 = vmatpush.msra.mxu2 %v13701_v62 }
 0x727   :  { %2987 = vmatpush.msra.mxu3 %v8799_v45 }
 0x728   :  { %2935 = vmatpush.msra.mxu2 %v13702_v47 }
 0x729   :  { %2989 = vmatpush.msra.mxu3 %v8807_v48 }
 0x72a   :  { %2938 = vmatpush.msra.mxu2 %v13703_v38 }
 0x72b   :  { %2991 = vmatpush.msra.mxu3 %v8826_v54 }
 0x72c   :  { %2941 = vmatpush.msra.mxu2 %v13704_v41 }
 0x72d   :  { %2993 = vmatpush.msra.mxu3 %v8859_v0 }
 0x72e   :  { %2944 = vmatpush.msra.mxu2 %v13705_v30 }
 0x72f   :  { %2995 = vmatpush.msra.mxu3 %v8866_v6 }
 0x730   :  { %2947 = vmatpush.msra.mxu2 %v13706_v59 }
 0x731   :  { %2997 = vmatpush.msra.mxu3 %v8883_v26 }
 0x732   :  { %2950 = vmatpush.msra.mxu2 %v13707_v7 }
 0x733   :  { %3200 = vmatpush.msrb.mxu3 %v13708_v32 }
 0x734   :  { %2953 = vmatpush.msra.mxu2 %v13709_v24 }
 0x735   :  { %3206 = vmatpush.msrb.mxu3 %v13710_v63 }
 0x736   :  { %2956 = vmatpush.msra.mxu2 %v13711_v8 }
 0x737   :  { %3212 = vmatpush.msrb.mxu3 %v13712_v58 }
 0x738   :  { %2959 = vmatpush.msra.mxu2 %v13713_v27 }
 0x739   :  { %3218 = vmatpush.msrb.mxu3 %v13714_v28 }
 0x73a   :  { %3167 = vmatpush.msrb.mxu2 %v9147_v50 }
 0x73c   :  { %3169 = vmatpush.msrb.mxu2 %v9155_v55 }
 0x73e   :  { %3171 = vmatpush.msrb.mxu2 %v9168_v40 }
 0x740   :  { %3173 = vmatpush.msrb.mxu2 %v9185_v2 }
 0x78e   :  { %v1636_v46 = vpop.f32.mrf.mxu0 }
 0x790   :  { %v1675_v60 = vpop.f32.mrf.mxu1 }
 0x792   :  { %v1582_v1 = vpop.f32.mrf.mxu3 }
 0x79a   :  { %v1481_v19 = vpop.f32.mrf.mxu2  ;;  %v1781_v23 = vpop.f32.mrf.mxu3 }
 0x79b   :  { %v1583_v39 = vadd.f32 %v1582_v1, %v1481_v19 }
 0x79d   :  { %v1637_v18 = vadd.f32 %v1636_v46, %v1583_v39 }
 0x79f   :  { %v1676_v42 = vadd.f32 %v1675_v60, %v1637_v18 }
 0x7a2   :  { %v1744_v15 = vpop.f32.mrf.mxu2 }
 0x7a3   :  { %v1745_v44 = vadd.f32 %v1744_v15, %v1676_v42 }
 0x7a5   :  { %v1782_v31 = vadd.f32 %v1781_v23, %v1745_v44 }
 0x7a7   :  { %1804 = vrot.lane.b32.xlu1 %v1782_v31, %s8627_s0  ;;  %v8097_v61 = vmul.f32 -1.442695, %v1782_v31 }
 0x7a9   :  { %8161 = vpow2.f32 %v8097_v61 }
 0x7af   :  { %v8162_v49 = vpop.eup %8161 }
 0x7b0   :  { %v1787_v43 = vadd.f32 1.0, %v8162_v49 }
 0x7b2   :  { %8163 = vrcp.f32 %v1787_v43  ;;  %v1799_v46 = vand.u32 2147483648, %v1787_v43  ;;  %vm1793_vm3 = vweird.f32 %v1787_v43  ;;  %v1797_v60 = vand.u32 2147483647, %v1787_v43 }
 0x7b4   :  { %v1800_v1 = vor.u32 1.1754944e-38, %v1799_v46  ;;  %vm1798_vm7 = vcmp.eq.f32.partialorder %v1797_v60, 8.507059e+37  ;;  %v13715_v60 = vld [vmem:[#allocation62_spill] sm:$0xff] }
 0x7b8   :  { %v8164_v56 = vpop.eup %8163 }
 0x7b9   :  { %v1789_v52 = vmul.f32 %v8164_v56, %v1787_v43  ;;  %vm1794_vm1 = vweird.f32 %v8164_v56 }
 0x7ba   :  { %vm1795_vm5 = vmor %vm1793_vm3, %vm1794_vm1 }
 0x7bb   :  { %v1790_v13 = vsub.f32 1.0, %v1789_v52  ;;  %vm13726_vm1 = vmmov %vm13725_vm2 }
 0x7bc   :  { %vm13727_vm3 = vmmov %vm13726_vm1 }
 0x7bd   :  { %v1791_v28 = vmul.f32 %v8164_v56, %v1790_v13 }
 0x7bf   :  { %v1792_v19 = vadd.f32 %v8164_v56, %v1791_v28 }
 0x7c1   :  { %v1796_v42 = vsel %vm1795_vm5, %v8164_v56, %v1792_v19  ;;  %vm13728_vm5 = vmmov %vm13726_vm1 }
 0x7c2   :  { %v1801_v18 = vsel %vm1798_vm7, %v1800_v1, %v1796_v42  ;;  %vm13729_vm7 = vmmov %vm13726_vm1 }
 0x7c3   :  { %v1814_v52 = vsub.f32 1.0, %v1801_v18  ;;  %v1820_v13 = vmul.f32 %v1801_v18, %v13685_v34  ;;  %v13717_v34 = vld [vmem:[#allocation65_spill] sm:$0xff] }
 0x819   :  { %v1805_v15 = vpop.permute.xlu1 %1804 }
 0x81a   :  { %v1807_v39 = vmul.f32 %v1805_v15, %v1801_v18 }
 0x81c   :  { %1809 = vrot.lane.b32.xlu0 %v1807_v39, %s8628_s25  ;;  %v13716_v39 = vld [vmem:[#allocation67_spill] sm:$0xff] }
 0x88e   :  { %v1810_v61 = vpop.permute.xlu0 %1809 }
 0x88f   :  { %v1812_v49 = vadd.f32 %v1810_v61, %v1782_v31 }
 0x891   :  { %8165 = vtanh.f32 %v1812_v49 }
 0x897   :  { %v8166_v44 = vpop.eup %8165 }
 0x898   :  { %1816 = vrot.lane.b32.xlu2 %v8166_v44, %s8629_s13 }
 0x8f2   :  { %v1817_v23 = vpop.permute.xlu2 %1816 }
 0x8f3   :  { %v1819_v43 = vmul.f32 %v1817_v23, %v1814_v52 }
 0x8f5   :  { %v9736_v28 = vadd.f32 %v1820_v13, %v1819_v43  ;;  %v13718_v43 = vld [vmem:[#allocation63_spill] sm:$0xff] }
 0x8f7   :  { %v2019_v56 = vperm.slane %v9736_v28, 0  ;;  %v2015_v19 = vrot.slane %v9736_v28, 4  ;;  %v2013_v46 = vrot.slane %v9736_v28, 2  ;;  %v2012_v15 = vrot.slane %v9736_v28, 1 }
 0x8f8   :  { %v2018_v49 = vrot.slane %v9736_v28, 7  ;;  %v2016_v44 = vrot.slane %v9736_v28, 5 }
 0x8f9   :  { %v2035_v42 = vmul.f32 %v2019_v56, %v13715_v60  ;;  %v2023_v31 = vperm.slane %v2015_v19, 0  ;;  %v2021_v1 = vperm.slane %v2013_v46, 0  ;;  %v2020_v52 = vperm.slane %v2012_v15, 0  ;;  %v13719_v46 = vld [vmem:[#allocation70_spill] sm:$0xff] }
 0x8fa   :  { %v2026_v23 = vperm.slane %v2018_v49, 0  ;;  %v2024_v13 = vperm.slane %v2016_v44, 0  ;;  %v2014_v19 = vrot.slane %v9736_v28, 3  ;;  %v2017_v15 = vrot.slane %v9736_v28, 6  ;;  %v13722_v44 = vld [vmem:[#allocation69_spill] sm:$0xff] }
 0x8fb   :  { %2051 = vrot.lane.b32.xlu1 %v2035_v42, %s8629_s13  ;;  %v2039_v61 = vmul.f32 %v2023_v31, %v13716_v39  ;;  %v2037_v18 = vmul.f32 %v2021_v1, %v13717_v34  ;;  %v2036_v56 = vmul.f32 %v2020_v52, %v13718_v43  ;;  %v13720_v31 = vld [vmem:[#allocation68_spill] sm:$0xff]  ;;  %v13721_v34 = vld [vmem:[#allocation66_spill] sm:$0xff] }
 0x8fc   :  { %v2042_v42 = vmul.f32 %v2026_v23, %v13719_v46  ;;  %v2040_v1 = vmul.f32 %v2024_v13, %v13720_v31  ;;  %v2025_v49 = vperm.slane %v2017_v15, 0 }
 0x8fd   :  { %2059 = vrot.lane.b32.xlu2 %v2039_v61, %s8629_s13  ;;  %2055 = vrot.lane.b32.xlu0 %v2037_v18, %s8629_s13  ;;  %v2022_v61 = vperm.slane %v2014_v19, 0 }
 0x8fe   :  { %v2041_v52 = vmul.f32 %v2025_v49, %v13722_v44 }
 0x8ff   :  { %v2038_v18 = vmul.f32 %v2022_v61, %v13721_v34 }
 0x903   :  { %2053 = vrot.lane.b32.xlu1 %v2036_v56, %s8629_s13 }
 0x905   :  { %2065 = vrot.lane.b32.xlu2 %v2042_v42, %s8629_s13  ;;  %2061 = vrot.lane.b32.xlu0 %v2040_v1, %s8629_s13 }
 0x90b   :  { %2057 = vrot.lane.b32.xlu1 %v2038_v18, %s8629_s13 }
 0x913   :  { %2063 = vrot.lane.b32.xlu1 %v2041_v52, %s8629_s13 }
 0x957   :  { %v2060_v15 = vpop.permute.xlu2 %2059 }
 0x958   :  { %v2087_v52 = vsel %vm13727_vm3, %v2060_v15, 0.0 }
 0x96d   :  { %v2052_v56 = vpop.permute.xlu1 %2051 }
 0x96e   :  { %v2075_v23 = vsel %vm13723_vm8, %v2052_v56, 0.0  ;;  %v2066_v56 = vpop.permute.xlu2 %2065  ;;  %vm13730_vm8 = vmmov %vm13726_vm1 }
 0x96f   :  { %2076 = vadd.xlane.f32.xlu0 %v2075_v23  ;;  %v2056_v13 = vpop.permute.xlu0 %2055 }
 0x970   :  { %v2081_v42 = vsel %vm13724_vm9, %v2056_v13, 0.0  ;;  %v2096_v13 = vsel %vm13729_vm7, %v2066_v56, 0.0  ;;  %vm13731_vm9 = vcmask 1047559  }
 0x971   :  { %2082 = vadd.xlane.f32.xlu2 %v2081_v42  ;;  %vm13770_vm3 = vmmov %vm13731_vm9 }
 0x975   :  { %v2054_v19 = vpop.permute.xlu1 %2053 }
 0x976   :  { %v2078_v1 = vsel %vm13725_vm2, %v2054_v19, 0.0  ;;  %vm13732_vm2 = vcmask 48128  }
 0x977   :  { %v2062_v61 = vpop.permute.xlu0 %2061  ;;  %2079 = vadd.xlane.f32.xlu1 %v2078_v1 }
 0x978   :  { %v2090_v18 = vsel %vm13726_vm1, %v2062_v61, 0.0  ;;  %vm13733_vm1 = vcmask 261120  }
 0x979   :  { %2091 = vadd.xlane.f32.xlu2 %v2090_v18 }
 0x97d   :  { %v2058_v49 = vpop.permute.xlu1 %2057 }
 0x97e   :  { %v2084_v31 = vsel %vm13728_vm5, %v2058_v49, 0.0  ;;  %vm13771_vm5 = vmmov %vm13732_vm2 }
 0x97f   :  { %2088 = vadd.xlane.f32.xlu1 %v2087_v52  ;;  %2085 = vadd.xlane.f32.xlu0 %v2084_v31 }
 0x985   :  { %v2064_v23 = vpop.permute.xlu1 %2063 }
 0x986   :  { %v2093_v42 = vsel %vm13730_vm8, %v2064_v23, 0.0 }
 0x987   :  { %2097 = vadd.xlane.f32.xlu1 %v2096_v13  ;;  %2094 = vadd.xlane.f32.xlu0 %v2093_v42 }
 0x99b   :  { %1823 = vrot.lane.b32.xlu0 %v9736_v28, %s8629_s13 }
 0x9e2   :  { %v2077_v19 = vpop.xlane.xlu0 %2076 }
 0x9e3   :  { %v9774_v15 = vmul.f32 0.17677669, %v2077_v19 }
 0x9e4   :  { %v2083_v61 = vpop.xlane.xlu2 %2082 }
 0x9e5   :  { %v9778_v49 = vmul.f32 0.17677669, %v2083_v61  ;;  %v2115_v52 = vperm.slane %v9774_v15, %v8896_v36 }
 0x9e7   :  { %v2117_v19 = vperm.slane %v9778_v49, %v8896_v36 }
 0x9ea   :  { %v2080_v1 = vpop.xlane.xlu1 %2079 }
 0x9eb   :  { %v9772_v18 = vmul.f32 0.17677669, %v2080_v1 }
 0x9ec   :  { %v2092_v1 = vpop.xlane.xlu2 %2091 }
 0x9ed   :  { %v2116_v31 = vperm.slane %v9772_v18, %v8896_v36  ;;  %v9794_v34 = vmul.f32 0.17677669, %v2092_v1 }
 0x9ef   :  { %v2123_v44 = vsel %vm778_vm10, %v2116_v31, %v2115_v52  ;;  %v2120_v27 = vperm.slane %v9794_v34, %v8896_v36 }
 0x9f0   :  { %v2124_v61 = vsel %vm780_vm11, %v2117_v19, %v2123_v44 }
 0x9f2   :  { %v2086_v56 = vpop.xlane.xlu0 %2085  ;;  %v2089_v23 = vpop.xlane.xlu1 %2088 }
 0x9f3   :  { %v9782_v13 = vmul.f32 0.17677669, %v2086_v56  ;;  %v9784_v42 = vmul.f32 0.17677669, %v2089_v23 }
 0x9f5   :  { %v2118_v46 = vperm.slane %v9782_v13, %v8896_v36  ;;  %v2119_v43 = vperm.slane %v9784_v42, %v8896_v36 }
 0x9f7   :  { %v2125_v56 = vsel %vm782_vm12, %v2118_v46, %v2124_v61 }
 0x9f8   :  { %v2126_v52 = vsel %vm784_vm13, %v2119_v43, %v2125_v56 }
 0x9f9   :  { %v2127_v1 = vsel %vm786_vm14, %v2120_v27, %v2126_v52  ;;  %v13734_v52 = vld [vmem:[#allocation72_spill] sm:$0xff] }
 0x9fa   :  { %v2095_v23 = vpop.xlane.xlu0 %2094  ;;  %v2098_v39 = vpop.xlane.xlu1 %2097 }
 0x9fb   :  { %v9797_v60 = vmul.f32 0.17677669, %v2095_v23  ;;  %v9799_v31 = vmul.f32 0.17677669, %v2098_v39 }
 0x9fd   :  { %v2121_v44 = vperm.slane %v9797_v60, %v8896_v36  ;;  %v2122_v19 = vperm.slane %v9799_v31, %v8896_v36 }
 0x9ff   :  { %v2128_v46 = vsel %vm13416_vm15, %v2121_v44, %v2127_v1  ;;  %v13735_v44 = vld [vmem:[#allocation21_spill] sm:$0xff]  ;;  %v13737_v1 = vld [vmem:[#allocation22_spill] sm:$0xff] }
 0xa00   :  { %v2129_v61 = vsel %vm13731_vm9, %v2122_v19, %v2128_v46  ;;  %v13736_v19 = vld [vmem:[#allocation74_spill] sm:$0xff]  ;;  %v13738_v46 = vld [vmem:[#allocation77_spill] sm:$0xff] }
 0xa01   :  { %v2131_v39 = vsel %vm13732_vm2, %v2129_v61, -inf  ;;  %v13739_v61 = vld [vmem:[#allocation24_spill] sm:$0xff] }
 0xa02   :  { %2132 = vmax.xlane.f32.xlu2 %v2131_v39  ;;  %v13740_v39 = vld [vmem:[#allocation80_spill] sm:$0xff] }
 0xa0d   :  { %v1824_v23 = vpop.permute.xlu0 %1823 }
 0xa0e   :  { %v1825_v43 = vsel %vm13733_vm1, %v1824_v23, 0  ;;  %v13741_v23 = vld [vmem:[#allocation29_spill] sm:$0xff] }
 0xa0f   :  { %v1847_v56 = vand.u32 4294901760, %v1825_v43 }
 0xa11   :  { %v1848_v58 = vsub.f32 %v1825_v43, %v1847_v56  ;;  %1893 = vmatmul.f32.vlgmr.msrb.gmra.mxu1 %v1847_v56  ;;  %v13744_v43 = vld [vmem:[#allocation42_spill] sm:$0xff] }
 0xa12   :  { %2000 = vmatpush.msrb.mxu1 %v9147_v50 }
 0xa13   :  { %v1849_v8 = vand.u32 4294901760, %v1848_v58 }
 0xa14   :  { %2002 = vmatpush.msrb.mxu1 %v9155_v55 }
 0xa15   :  { %v1850_v63 = vsub.f32 %v1848_v58, %v1849_v8 }
 0xa16   :  { %2004 = vmatpush.msrb.mxu1 %v9168_v40 }
 0xa17   :  { %v1851_v27 = vand.u32 4294901760, %v1850_v63  ;;  %v13743_v63 = vld [vmem:[#allocation37_spill] sm:$0xff] }
 0xa18   :  { %2006 = vmatpush.msrb.mxu1 %v9185_v2 }
 0xa19   :  { %1852 = vmatmul.f32.vlgmr.msrb.gmra.mxu0 %v1851_v27  ;;  %1950 = vmatmul.f32.vlgmr.msra.gmra.mxu1 %v1849_v8  ;;  %v13742_v8 = vld [vmem:[#allocation34_spill] sm:$0xff] }
 0xa1a   :  { %1969 = vmatpush.msrb.mxu0 %v13734_v52  ;;  %2816 = vmatpush.msra.mxu1 %v13735_v44  ;;  %v13745_v27 = vld [vmem:[#allocation46_spill] sm:$0xff] }
 0xa1c   :  { %1973 = vmatpush.msrb.mxu0 %v13736_v19  ;;  %2822 = vmatpush.msra.mxu1 %v13737_v1 }
 0xa1e   :  { %1977 = vmatpush.msrb.mxu0 %v13738_v46  ;;  %2828 = vmatpush.msra.mxu1 %v13739_v61 }
 0xa20   :  { %1981 = vmatpush.msrb.mxu0 %v13740_v39  ;;  %2834 = vmatpush.msra.mxu1 %v13741_v23  ;;  %v13768_v23 = vld [vmem:[#allocation55_spill] sm:$0xff] }
 0xa21   :  { %1923 = vmatmul.f32.vlgmr.msra.gmra.mxu0 %v1848_v58  ;;  %2008 = vmatmul.f32.vlgmr.msrb.gmra.mxu1 %v1847_v56  ;;  %v13746_v58 = vld [vmem:[#allocation48_spill] sm:$0xff] }
 0xa22   :  { %2771 = vmatpush.msra.mxu0 %v8678_v3  ;;  %2840 = vmatpush.msra.mxu1 %v13742_v8  ;;  %v13747_v8 = vld [vmem:[#allocation51_spill] sm:$0xff] }
 0xa24   :  { %2773 = vmatpush.msra.mxu0 %v8680_v4  ;;  %2846 = vmatpush.msra.mxu1 %v13743_v63  ;;  %v13748_v63 = vld [vmem:[#allocation54_spill] sm:$0xff] }
 0xa26   :  { %2775 = vmatpush.msra.mxu0 %v8682_v5  ;;  %2852 = vmatpush.msra.mxu1 %v13744_v43  ;;  %v13749_v43 = vld [vmem:[#allocation56_spill] sm:$0xff] }
 0xa28   :  { %2777 = vmatpush.msra.mxu0 %v8693_v9  ;;  %2858 = vmatpush.msra.mxu1 %v13745_v27  ;;  %v13750_v27 = vld [vmem:[#allocation58_spill] sm:$0xff] }
 0xa29   :  { %1983 = vmatmul.f32.vlgmr.msrb.gmra.mxu0 %v1847_v56  ;;  %v13751_v56 = vld [vmem:[#allocation59_spill] sm:$0xff] }
 0xa2a   :  { %2779 = vmatpush.msra.mxu0 %v8695_v10  ;;  %2864 = vmatpush.msra.mxu1 %v13746_v58  ;;  %v13752_v58 = vld [vmem:[#allocation60_spill] sm:$0xff] }
 0xa2c   :  { %2781 = vmatpush.msra.mxu0 %v8697_v11  ;;  %2870 = vmatpush.msra.mxu1 %v13747_v8  ;;  %v13753_v8 = vld [vmem:[#allocation61_spill] sm:$0xff] }
 0xa2e   :  { %2783 = vmatpush.msra.mxu0 %v8715_v17  ;;  %2876 = vmatpush.msra.mxu1 %v13748_v63  ;;  %v13759_v63 = vld [vmem:[#allocation19_spill] sm:$0xff] }
 0xa30   :  { %2785 = vmatpush.msra.mxu0 %v8740_v25  ;;  %2882 = vmatpush.msra.mxu1 %v13749_v43  ;;  %v13758_v43 = vld [vmem:[#allocation16_spill] sm:$0xff] }
 0xa32   :  { %2787 = vmatpush.msra.mxu0 %v8763_v33  ;;  %2888 = vmatpush.msra.mxu1 %v13750_v27  ;;  %v13757_v27 = vld [vmem:[#allocation15_spill] sm:$0xff] }
 0xa34   :  { %2789 = vmatpush.msra.mxu0 %v8769_v35  ;;  %2894 = vmatpush.msra.mxu1 %v13751_v56  ;;  %v13756_v56 = vld [vmem:[#allocation13_spill] sm:$0xff] }
 0xa36   :  { %2791 = vmatpush.msra.mxu0 %v8799_v45  ;;  %2900 = vmatpush.msra.mxu1 %v13752_v58  ;;  %v13754_v58 = vld [vmem:[#allocation11_spill] sm:$0xff] }
 0xa38   :  { %2793 = vmatpush.msra.mxu0 %v8807_v48  ;;  %2906 = vmatpush.msra.mxu1 %v13753_v8  ;;  %v13755_v8 = vld [vmem:[#allocation12_spill] sm:$0xff] }
 0xa3a   :  { %3075 = vmatpush.msrb.mxu1 %v8678_v3  ;;  %2795 = vmatpush.msra.mxu0 %v8826_v54 }
 0xa3c   :  { %3077 = vmatpush.msrb.mxu1 %v8680_v4  ;;  %2797 = vmatpush.msra.mxu0 %v8859_v0 }
 0xa3e   :  { %3079 = vmatpush.msrb.mxu1 %v8682_v5  ;;  %2799 = vmatpush.msra.mxu0 %v8866_v6 }
 0xa40   :  { %3081 = vmatpush.msrb.mxu1 %v8693_v9  ;;  %2801 = vmatpush.msra.mxu0 %v8883_v26 }
 0xa42   :  { %3008 = vmatpush.msrb.mxu0 %v13754_v58  ;;  %3083 = vmatpush.msrb.mxu1 %v8695_v10  ;;  %v13760_v58 = vld [vmem:[#allocation25_spill] sm:$0xff] }
 0xa44   :  { %3012 = vmatpush.msrb.mxu0 %v13755_v8  ;;  %3085 = vmatpush.msrb.mxu1 %v8697_v11  ;;  %v13761_v8 = vld [vmem:[#allocation30_spill] sm:$0xff] }
 0xa46   :  { %3016 = vmatpush.msrb.mxu0 %v13756_v56  ;;  %3087 = vmatpush.msrb.mxu1 %v8715_v17  ;;  %v13762_v56 = vld [vmem:[#allocation32_spill] sm:$0xff] }
 0xa48   :  { %3020 = vmatpush.msrb.mxu0 %v13757_v27  ;;  %3089 = vmatpush.msrb.mxu1 %v8740_v25  ;;  %v13763_v27 = vld [vmem:[#allocation38_spill] sm:$0xff] }
 0xa4a   :  { %3024 = vmatpush.msrb.mxu0 %v13758_v43  ;;  %3091 = vmatpush.msrb.mxu1 %v8763_v33  ;;  %v13764_v43 = vld [vmem:[#allocation43_spill] sm:$0xff] }
 0xa4c   :  { %3028 = vmatpush.msrb.mxu0 %v13759_v63  ;;  %3093 = vmatpush.msrb.mxu1 %v8769_v35  ;;  %v13765_v63 = vld [vmem:[#allocation44_spill] sm:$0xff] }
 0xa4e   :  { %3032 = vmatpush.msrb.mxu0 %v13760_v58  ;;  %3095 = vmatpush.msrb.mxu1 %v8799_v45  ;;  %v13766_v58 = vld [vmem:[#allocation49_spill] sm:$0xff] }
 0xa50   :  { %3036 = vmatpush.msrb.mxu0 %v13761_v8  ;;  %3097 = vmatpush.msrb.mxu1 %v8807_v48  ;;  %v13767_v8 = vld [vmem:[#allocation52_spill] sm:$0xff] }
 0xa52   :  { %3040 = vmatpush.msrb.mxu0 %v13762_v56  ;;  %3099 = vmatpush.msrb.mxu1 %v8826_v54  ;;  %v13769_v56 = vld [vmem:[#allocation57_spill] sm:$0xff] }
 0xa54   :  { %3044 = vmatpush.msrb.mxu0 %v13763_v27  ;;  %3101 = vmatpush.msrb.mxu1 %v8859_v0 }
 0xa56   :  { %3048 = vmatpush.msrb.mxu0 %v13764_v43  ;;  %3103 = vmatpush.msrb.mxu1 %v8866_v6 }
 0xa58   :  { %3052 = vmatpush.msrb.mxu0 %v13765_v63  ;;  %3105 = vmatpush.msrb.mxu1 %v8883_v26 }
 0xa5a   :  { %3056 = vmatpush.msrb.mxu0 %v13766_v58 }
 0xa5c   :  { %3060 = vmatpush.msrb.mxu0 %v13767_v8 }
 0xa5e   :  { %3064 = vmatpush.msrb.mxu0 %v13768_v23 }
 0xa60   :  { %3068 = vmatpush.msrb.mxu0 %v13769_v56 }
 0xa75   :  { %v2133_v39 = vpop.xlane.xlu2 %2132 }
 0xa76   :  { %v2137_v27 = vperm.slane %v2133_v39, 2  ;;  %v2136_v61 = vperm.slane %v2133_v39, 1  ;;  %v2135_v46 = vperm.slane %v2133_v39, 0  ;;  %v2139_v19 = vperm.slane %v2133_v39, 4 }
 0xa77   :  { %v2140_v44 = vperm.slane %v2133_v39, 5  ;;  %v2138_v52 = vperm.slane %v2133_v39, 3 }
 0xa78   :  { %v2153_v43 = vsub.f32 %v9778_v49, %v2137_v27  ;;  %v2152_v1 = vsub.f32 %v9772_v18, %v2136_v61  ;;  %v2151_v63 = vsub.f32 %v9774_v15, %v2135_v46  ;;  %v2155_v23 = vsub.f32 %v9784_v42, %v2139_v19 }
 0xa79   :  { %v2156_v56 = vsub.f32 %v9794_v34, %v2140_v44  ;;  %v2154_v32 = vsub.f32 %v9782_v13, %v2138_v52  ;;  %v2142_v27 = vperm.slane %v2133_v39, 7  ;;  %v2141_v46 = vperm.slane %v2133_v39, 6 }
 0xa7a   :  { %v2163_v58 = vmul.f32 1.442695, %v2153_v43  ;;  %v2161_v24 = vmul.f32 1.442695, %v2152_v1  ;;  %v2159_v8 = vmul.f32 1.442695, %v2151_v63 }
 0xa7b   :  { %v2167_v49 = vmul.f32 1.442695, %v2155_v23  ;;  %v2169_v18 = vmul.f32 1.442695, %v2156_v56  ;;  %v2165_v15 = vmul.f32 1.442695, %v2154_v32  ;;  %v2157_v34 = vsub.f32 %v9797_v60, %v2141_v46 }
 0xa7c   :  { %8167 = vpow2.f32 %v2163_v58 }
 0xa7d   :  { %8169 = vpow2.f32 %v2161_v24  ;;  %v2158_v24 = vsub.f32 %v9799_v31, %v2142_v27  ;;  %v2171_v42 = vmul.f32 1.442695, %v2157_v34 }
 0xa7e   :  { %8171 = vpow2.f32 %v2159_v8 }
 0xa7f   :  { %8173 = vpow2.f32 %v2167_v49  ;;  %v2173_v13 = vmul.f32 1.442695, %v2158_v24 }
 0xa80   :  { %8175 = vpow2.f32 %v2169_v18 }
 0xa81   :  { %8177 = vpow2.f32 %v2165_v15 }
 0xa82   :  { %v9891_v61 = vpop.eup %8167  ;;  %8179 = vpow2.f32 %v2173_v13 }
 0xa83   :  { %v9893_v7 = vpop.eup %8169  ;;  %2190 = vperm.xlu0 %8121, %v9891_v61   ;;  %8181 = vpow2.f32 %v2171_v42 }
 0xa84   :  { %v9896_v1 = vpop.eup %8171  ;;  %2187 = vperm.xlu2 %8120, %v9893_v7  }
 0xa85   :  { %2184 = vperm.xlu1 %8119, %v9896_v1   ;;  %v9902_v32 = vpop.eup %8173 }
 0xa86   :  { %v9904_v52 = vpop.eup %8175 }
 0xa87   :  { %v9907_v44 = vpop.eup %8177 }
 0xa88   :  { %v9911_v31 = vpop.eup %8179 }
 0xa89   :  { %v9914_v60 = vpop.eup %8181 }
 0xa8b   :  { %2196 = vperm.xlu0 %8121, %v9902_v32  }
 0xa8c   :  { %2199 = vperm.xlu2 %8120, %v9904_v52  }
 0xa8d   :  { %2193 = vperm.xlu1 %8119, %v9907_v44  }
 0xa93   :  { %2205 = vperm.xlu0 %8121, %v9911_v31  }
 0xa95   :  { %2202 = vperm.xlu1 %8119, %v9914_v60  }
 0xade   :  { %v2188_v23 = vpop.permute.xlu2 %2187 }
 0xadf   :  { %v2208_v63 = vperm.slane %v2188_v23, %v8896_v36 }
 0xae6   :  { %v2200_v24 = vpop.permute.xlu2 %2199 }
 0xae7   :  { %v2212_v42 = vperm.slane %v2200_v24, %v8896_v36 }
 0xaf5   :  { %v2191_v19 = vpop.permute.xlu0 %2190 }
 0xaf6   :  { %v2209_v58 = vperm.slane %v2191_v19, %v8896_v36 }
 0xaf7   :  { %v2185_v39 = vpop.permute.xlu1 %2184 }
 0xaf8   :  { %v2207_v8 = vperm.slane %v2185_v39, %v8896_v36 }
 0xafa   :  { %v2215_v56 = vsel %vm778_vm10, %v2208_v63, %v2207_v8 }
 0xafb   :  { %v2216_v15 = vsel %vm780_vm11, %v2209_v58, %v2215_v56 }
 0xafd   :  { %v2197_v43 = vpop.permute.xlu0 %2196 }
 0xafe   :  { %v2211_v18 = vperm.slane %v2197_v43, %v8896_v36 }
 0xaff   :  { %v2194_v49 = vpop.permute.xlu1 %2193 }
 0xb00   :  { %v2210_v27 = vperm.slane %v2194_v49, %v8896_v36 }
 0xb02   :  { %v2217_v46 = vsel %vm782_vm12, %v2210_v27, %v2216_v15 }
 0xb03   :  { %v2218_v13 = vsel %vm784_vm13, %v2211_v18, %v2217_v46 }
 0xb04   :  { %v2219_v8 = vsel %vm786_vm14, %v2212_v42, %v2218_v13 }
 0xb05   :  { %v2206_v34 = vpop.permute.xlu0 %2205 }
 0xb06   :  { %v2214_v39 = vperm.slane %v2206_v34, %v8896_v36 }
 0xb07   :  { %v2203_v19 = vpop.permute.xlu1 %2202 }
 0xb08   :  { %v2213_v23 = vperm.slane %v2203_v19, %v8896_v36 }
 0xb0a   :  { %v2220_v63 = vsel %vm13416_vm15, %v2213_v23, %v2219_v8 }
 0xb0b   :  { %v2221_v43 = vsel %vm13770_vm3, %v2214_v39, %v2220_v63 }
 0xb0c   :  { %v2223_v58 = vsel %vm13771_vm5, %v2221_v43, 0.0 }
 0xb0d   :  { %2224 = vadd.xlane.f32.xlu2 %v2223_v58 }
 0xb80   :  { %v9933_v56 = vpop.xlane.xlu2 %2224 }
 0xb81   :  { %v2229_v49 = vperm.slane %v9933_v56, 2  ;;  %v2228_v27 = vperm.slane %v9933_v56, 1  ;;  %v9938_v18 = vperm.slane %v9933_v56, 3  ;;  %v9941_v15 = vperm.slane %v9933_v56, 0 }
 0xb82   :  { %v9944_v46 = vperm.slane %v9933_v56, 5  ;;  %v9948_v24 = vperm.slane %v9933_v56, 4  ;;  %v9953_v19 = vperm.slane %v9933_v56, 7  ;;  %v10006_v54 = vperm.slane %v9933_v56, 6 }
 0xb83   :  { %8183 = vrcp.f32 %v2229_v49  ;;  %v2282_v34 = vand.u32 2147483647, %v2229_v49  ;;  %v2284_v13 = vand.u32 2147483648, %v2229_v49  ;;  %v2267_v39 = vand.u32 2147483647, %v2228_v27 }
 0xb84   :  { %8185 = vrcp.f32 %v2228_v27  ;;  %vm2278_vm7 = vweird.f32 %v2229_v49  ;;  %vm2263_vm8 = vweird.f32 %v2228_v27  ;;  %v2269_v58 = vand.u32 2147483648, %v2228_v27 }
 0xb85   :  { %8187 = vrcp.f32 %v9938_v18  ;;  %vm9958_vm9 = vcmp.eq.f32.partialorder %v2282_v34, 8.507059e+37  ;;  %v2285_v6 = vor.u32 1.1754944e-38, %v2284_v13  ;;  %vm9964_vm2 = vcmp.eq.f32.partialorder %v2267_v39, 8.507059e+37 }
 0xb86   :  { %8189 = vrcp.f32 %v9941_v15  ;;  %vm2293_vm1 = vweird.f32 %v9938_v18  ;;  %v2270_v47 = vor.u32 1.1754944e-38, %v2269_v58  ;;  %v2297_v35 = vand.u32 2147483647, %v9938_v18 }
 0xb87   :  { %8191 = vrcp.f32 %v9944_v46 }
 0xb88   :  { %8193 = vrcp.f32 %v9948_v24 }
 0xb89   :  { %v8184_v42 = vpop.eup %8183  ;;  %8195 = vrcp.f32 %v9953_v19 }
 0xb8a   :  { %v8186_v23 = vpop.eup %8185  ;;  %v2274_v8 = vmul.f32 %v8184_v42, %v2229_v49  ;;  %vm2279_vm3 = vweird.f32 %v8184_v42  ;;  %8197 = vrcp.f32 %v10006_v54 }
 0xb8b   :  { %v9956_v63 = vpop.eup %8187  ;;  %v2259_v43 = vmul.f32 %v8186_v23, %v2228_v27  ;;  %vm2264_vm5 = vweird.f32 %v8186_v23  ;;  %vm2280_vm6 = vmor %vm2278_vm7, %vm2279_vm3  ;;  %v2254_v27 = vand.u32 2147483648, %v9941_v15  ;;  %vm2323_vm3 = vweird.f32 %v9944_v46 }
 0xb8c   :  { %v2275_v26 = vsub.f32 1.0, %v2274_v8  ;;  %v2289_v30 = vmul.f32 %v9956_v63, %v9938_v18  ;;  %v8190_v0 = vpop.eup %8189  ;;  %vm2294_vm4 = vweird.f32 %v9956_v63  ;;  %vm2265_vm15 = vmor %vm2263_vm8, %vm2264_vm5 }
 0xb8d   :  { %v2260_v41 = vsub.f32 1.0, %v2259_v43  ;;  %v9970_v38 = vpop.eup %8191  ;;  %v2244_v13 = vmul.f32 %v8190_v0, %v9941_v15  ;;  %vm2249_vm7 = vweird.f32 %v8190_v0 }
 0xb8e   :  { %v2276_v34 = vmul.f32 %v8184_v42, %v2275_v26  ;;  %v2290_v8 = vsub.f32 1.0, %v2289_v30  ;;  %v2319_v39 = vmul.f32 %v9970_v38, %v9944_v46  ;;  %v9975_v43 = vpop.eup %8193 }
 0xb8f   :  { %v2261_v48 = vmul.f32 %v8186_v23, %v2260_v41  ;;  %v2245_v20 = vsub.f32 1.0, %v2244_v13  ;;  %v2299_v41 = vand.u32 2147483648, %v9938_v18  ;;  %v2304_v30 = vmul.f32 %v9975_v43, %v9948_v24  ;;  %v9986_v51 = vpop.eup %8195 }
 0xb90   :  { %v2277_v45 = vadd.f32 %v8184_v42, %v2276_v34  ;;  %v2291_v62 = vmul.f32 %v9956_v63, %v2290_v8  ;;  %v2320_v8 = vsub.f32 1.0, %v2319_v39  ;;  %v2255_v18 = vor.u32 1.1754944e-38, %v2254_v27 }
 0xb91   :  { %v2262_v26 = vadd.f32 %v8186_v23, %v2261_v48  ;;  %v2246_v33 = vmul.f32 %v8190_v0, %v2245_v20  ;;  %v2305_v13 = vsub.f32 1.0, %v2304_v30  ;;  %v2300_v59 = vor.u32 1.1754944e-38, %v2299_v41 }
 0xb92   :  { %v2281_v58 = vsel %vm2280_vm6, %v8184_v42, %v2277_v45  ;;  %v2292_v34 = vadd.f32 %v9956_v63, %v2291_v62  ;;  %vm9999_vm6 = vmor %vm2293_vm1, %vm2294_vm4  ;;  %vm2298_vm4 = vcmp.eq.f32.partialorder %v2297_v35, 8.507059e+37  ;;  %vm2309_vm1 = vweird.f32 %v9975_v43 }
 0xb93   :  { %v2286_v49 = vsel %vm9958_vm9, %v2285_v6, %v2281_v58  ;;  %v2266_v48 = vsel %vm2265_vm15, %v8186_v23, %v2262_v26  ;;  %v2247_v45 = vadd.f32 %v8190_v0, %v2246_v33  ;;  %vm2248_vm15 = vweird.f32 %v9941_v15 }
 0xb94   :  { %v2287_v25 = vmul.f32 %v9891_v61, %v2286_v49  ;;  %v2271_v16 = vsel %vm9964_vm2, %v2270_v47, %v2266_v48  ;;  %v2252_v6 = vand.u32 2147483647, %v9941_v15  ;;  %v2296_v33 = vsel %vm9999_vm6, %v9956_v63, %v2292_v34  ;;  %vm2250_vm8 = vmor %vm2248_vm15, %vm2249_vm7 }
 0xb95   :  { %v2272_v62 = vmul.f32 %v9893_v7, %v2271_v16  ;;  %v2321_v16 = vmul.f32 %v9970_v38, %v2320_v8  ;;  %v2349_v47 = vmul.f32 %v9986_v51, %v9953_v19  ;;  %v2251_v7 = vsel %vm2250_vm8, %v8190_v0, %v2247_v45 }
 0xb96   :  { %2375 = vperm.xlu0 %8121, %v2287_v25   ;;  %v2306_v61 = vmul.f32 %v9975_v43, %v2305_v13  ;;  %v2301_v56 = vsel %vm2298_vm4, %v2300_v59, %v2296_v33  ;;  %vm2253_vm9 = vcmp.eq.f32.partialorder %v2252_v6, 8.507059e+37  ;;  %vm2324_vm2 = vweird.f32 %v9970_v38 }
 0xb97   :  { %2370 = vperm.xlu1 %8119, %v2272_v62   ;;  %v2256_v25 = vsel %vm2253_vm9, %v2255_v18, %v2251_v7  ;;  %v2322_v15 = vadd.f32 %v9970_v38, %v2321_v16  ;;  %v2350_v42 = vsub.f32 1.0, %v2349_v47  ;;  %v2329_v23 = vand.u32 2147483648, %v9944_v46  ;;  %vm2325_vm5 = vmor %vm2323_vm3, %vm2324_vm2  ;;  %v1853_v18 = vpop.f32.mrf.mxu0 }
 0xb98   :  { %v2307_v63 = vadd.f32 %v9975_v43, %v2306_v61  ;;  %v2302_v0 = vmul.f32 %v9907_v44, %v2301_v56  ;;  %v2327_v35 = vand.u32 2147483647, %v9944_v46  ;;  %v2314_v39 = vand.u32 2147483648, %v9948_v24  ;;  %v8198_v44 = vpop.eup %8197 }
 0xb99   :  { %v2257_v26 = vmul.f32 %v9896_v1, %v2256_v25  ;;  %vm2308_vm7 = vweird.f32 %v9948_v24  ;;  %v2312_v41 = vand.u32 2147483647, %v9948_v24  ;;  %v2326_v30 = vsel %vm2325_vm5, %v9970_v38, %v2322_v15 }
 0xb9a   :  { %vm2310_vm6 = vmor %vm2308_vm7, %vm2309_vm1  ;;  %v2351_v58 = vmul.f32 %v9986_v51, %v2350_v42  ;;  %v2330_v34 = vor.u32 1.1754944e-38, %v2329_v23  ;;  %vm2328_vm15 = vcmp.eq.f32.partialorder %v2327_v35, 8.507059e+37  ;;  %v2315_v8 = vor.u32 1.1754944e-38, %v2314_v39 }
 0xb9b   :  { %v2311_v46 = vsel %vm2310_vm6, %v9975_v43, %v2307_v63  ;;  %v2334_v1 = vmul.f32 %v8198_v44, %v10006_v54  ;;  %vm2313_vm8 = vcmp.eq.f32.partialorder %v2312_v41, 8.507059e+37  ;;  %vm2354_vm4 = vweird.f32 %v9986_v51 }
 0xb9c   :  { %v2331_v49 = vsel %vm2328_vm15, %v2330_v34, %v2326_v30  ;;  %v2316_v48 = vsel %vm2313_vm8, %v2315_v8, %v2311_v46  ;;  %v2352_v24 = vadd.f32 %v9986_v51, %v2351_v58  ;;  %vm2353_vm9 = vweird.f32 %v9953_v19 }
 0xb9d   :  { %v2335_v38 = vsub.f32 1.0, %v2334_v1  ;;  %v2357_v13 = vand.u32 2147483647, %v9953_v19  ;;  %v2359_v45 = vand.u32 2147483648, %v9953_v19  ;;  %v2332_v43 = vmul.f32 %v9904_v52, %v2331_v49  ;;  %vm2355_vm1 = vmor %vm2353_vm9, %vm2354_vm4  ;;  %v8559_v1 = vld [vmem:[%s13215_s2] sm:$0x3f] }
 0xb9e   :  { %2380 = vperm.xlu0 %8121, %v2302_v0   ;;  %vm2339_vm2 = vweird.f32 %v8198_v44  ;;  %v2344_v62 = vand.u32 2147483648, %v10006_v54  ;;  %v2317_v20 = vmul.f32 %v9902_v32, %v2316_v48  ;;  %v2342_v6 = vand.u32 2147483647, %v10006_v54  ;;  %v8557_v0 = vld [vmem:[%s13217_s4] ss:$0 sm:$0xff] }
 0xb9f   :  { %2365 = vperm.xlu1 %8119, %v2257_v26   ;;  %v2336_v27 = vmul.f32 %v8198_v44, %v2335_v38  ;;  %v2356_v33 = vsel %vm2355_vm1, %v9986_v51, %v2352_v24  ;;  %vm2338_vm3 = vweird.f32 %v10006_v54  ;;  %v2360_v47 = vor.u32 1.1754944e-38, %v2359_v45  ;;  %v1894_v51 = vpop.f32.mrf.mxu1  ;;  %v8555_v54 = vld [vmem:[%s13215_s2 + $0x10] sm:$0x3f]  ;;  %v1924_v42 = vpop.f32.mrf.mxu0 }
 0xba0   :  { %vm2340_vm5 = vmor %vm2338_vm3, %vm2339_vm2  ;;  %vm2358_vm7 = vcmp.eq.f32.partialorder %v2357_v13, 8.507059e+37  ;;  %v2345_v19 = vor.u32 1.1754944e-38, %v2344_v62  ;;  %vm2343_vm6 = vcmp.eq.f32.partialorder %v2342_v6, 8.507059e+37  ;;  %v1854_v35 = vadd.f32 %v8557_v0, %v1853_v18 }
 0xba1   :  { %v2337_v16 = vadd.f32 %v8198_v44, %v2336_v27  ;;  %v2361_v59 = vsel %vm2358_vm7, %v2360_v47, %v2356_v33  ;;  %vm13794_vm15 = vcmask 1046534   ;;  %vm13795_vm8 = vcmask 1047559  }
 0xba2   :  { %v2362_v32 = vmul.f32 %v9911_v31, %v2361_v59  ;;  %v8556_v31 = vld [vmem:[%s13215_s2 + $0x8] sm:$0x3f]  ;;  %v1895_v58 = vadd.f32 %v1894_v51, %v1854_v35  ;;  %v8561_v51 = vld [vmem:[%s13215_s2 + $0x20] sm:$0x3f]  ;;  %vm13796_vm4 = vcmask 80896  }
 0xba3   :  { %v2341_v52 = vsel %vm2340_vm5, %v8198_v44, %v2337_v16  ;;  %v8558_v44 = vld [vmem:[%s13215_s2 + $0x18] sm:$0x3f] }
 0xba4   :  { %v2346_v7 = vsel %vm2343_vm6, %v2345_v19, %v2341_v52  ;;  %v1925_v48 = vadd.f32 %v1924_v42, %v1895_v58 }
 0xba5   :  { %v2347_v61 = vmul.f32 %v9914_v60, %v2346_v7 }
 0xba6   :  { %2390 = vperm.xlu0 %8121, %v2332_v43  }
 0xba7   :  { %2385 = vperm.xlu1 %8119, %v2317_v20   ;;  %v1951_v8 = vpop.f32.mrf.mxu1  ;;  %v1984_v62 = vpop.f32.mrf.mxu0 }
 0xba8   :  { %v1952_v6 = vadd.f32 %v1951_v8, %v1925_v48 }
 0xbaa   :  { %v1985_v59 = vadd.f32 %v1984_v62, %v1952_v6 }
 0xbae   :  { %2400 = vperm.xlu0 %8121, %v2362_v32   ;;  %v8560_v32 = vld [vmem:[%s13215_s2 + $0x28] sm:$0x3f] }
 0xbaf   :  { %2395 = vperm.xlu1 %8119, %v2347_v61  }
 0xc08   :  { %v10045_v56 = vpop.permute.xlu0 %2375 }
 0xc09   :  { %13778 = vst [vmem:[#allocation71_spill] sm:$0xff] %v10045_v56  ;;  %v2405_v25 = vmul.f32 %v8555_v54, %v10045_v56  ;;  %v10051_v15 = vpop.permute.xlu1 %2370 }
 0xc0a   :  { %13779 = vst [vmem:[#allocation73_spill] sm:$0xff] %v10051_v15  ;;  %v2404_v60 = vmul.f32 %v8556_v31, %v10051_v15 }
 0xc0b   :  { %v2425_v23 = vsel %vm1082_vm0, %v2405_v25, 0.0 }
 0xc0c   :  { %v2418_v63 = vsel %vm1082_vm0, %v2404_v60, 0.0  ;;  %v2426_v26 = vrot.slane %v2425_v23, 4 }
 0xc0d   :  { %v2419_v39 = vrot.slane %v2418_v63, 4 }
 0xc0e   :  { %v2427_v24 = vadd.f32 %v2426_v26, %v2425_v23  ;;  %v2009_v23 = vpop.f32.mrf.mxu1 }
 0xc0f   :  { %v2420_v41 = vadd.f32 %v2419_v39, %v2418_v63  ;;  %v2010_v39 = vadd.f32 %v2009_v23, %v1985_v59 }
 0xc10   :  { %v10062_v30 = vpop.permute.xlu0 %2380  ;;  %v2428_v33 = vrot.slane %v2427_v24, 2 }
 0xc11   :  { %13780 = vst [vmem:[#allocation75_spill] sm:$0xff] %v10062_v30  ;;  %v2406_v34 = vmul.f32 %v8558_v44, %v10062_v30  ;;  %v10068_v46 = vpop.permute.xlu1 %2365  ;;  %v2421_v38 = vrot.slane %v2420_v41, 2 }
 0xc12   :  { %13781 = vst [vmem:[#allocation78_spill] sm:$0xff] %v10068_v46  ;;  %v2403_v49 = vmul.f32 %v8559_v1, %v10068_v46  ;;  %v2429_v25 = vadd.f32 %v2428_v33, %v2427_v24  ;;  %v2468_v24 = vrot.slane %v2010_v39, 1 }
 0xc13   :  { %v2432_v13 = vsel %vm1082_vm0, %v2406_v34, 0.0  ;;  %v2422_v16 = vadd.f32 %v2421_v38, %v2420_v41 }
 0xc14   :  { %v2433_v45 = vrot.slane %v2432_v13, 4  ;;  %v2411_v43 = vsel %vm1082_vm0, %v2403_v49, 0.0  ;;  %v2430_v44 = vrot.slane %v2429_v25, 1 }
 0xc15   :  { %v2412_v27 = vrot.slane %v2411_v43, 4  ;;  %v2423_v31 = vrot.slane %v2422_v16, 1 }
 0xc16   :  { %v2434_v20 = vadd.f32 %v2433_v45, %v2432_v13  ;;  %v8562_v13 = vld [vmem:[%s13215_s2 + $0x38] sm:$0x3f]  ;;  %v2431_v33 = vadd.f32 %v2430_v44, %v2429_v25  ;;  %v2471_v25 = vrot.slane %v2010_v39, 4 }
 0xc17   :  { %v2413_v47 = vadd.f32 %v2412_v27, %v2411_v43  ;;  %v2424_v34 = vadd.f32 %v2423_v31, %v2422_v16 }
 0xc18   :  { %v2435_v52 = vrot.slane %v2434_v20, 2  ;;  %v10076_v19 = vpop.permute.xlu0 %2390 }
 0xc19   :  { %13782 = vst [vmem:[#allocation5_spill] sm:$0xff] %v10076_v19  ;;  %v2414_v7 = vrot.slane %v2413_v47, 2  ;;  %v2408_v61 = vmul.f32 %v8560_v32, %v10076_v19  ;;  %v10082_v18 = vpop.permute.xlu1 %2385  ;;  %v10102_v16 = vadd.f32 %v2468_v24, %v2424_v34 }
 0xc1a   :  { %13783 = vst [vmem:[#allocation6_spill] sm:$0xff] %v10082_v18  ;;  %v2407_v54 = vmul.f32 %v8561_v51, %v10082_v18  ;;  %v2436_v63 = vadd.f32 %v2435_v52, %v2434_v20  ;;  %v8563_v20 = vld [vmem:[%s13215_s2 + $0x30] sm:$0x3f]  ;;  %v2469_v51 = vrot.slane %v2010_v39, 2 }
 0xc1b   :  { %v2415_v60 = vadd.f32 %v2414_v7, %v2413_v47  ;;  %v2446_v42 = vsel %vm1082_vm0, %v2408_v61, 0.0  ;;  %13786 = vst [vmem:[#allocation101_spill] sm:$0xff] %v10102_v16 }
 0xc1c   :  { %v2447_v0 = vrot.slane %v2446_v42, 4  ;;  %v2439_v35 = vsel %vm1082_vm0, %v2407_v54, 0.0  ;;  %v2437_v1 = vrot.slane %v2436_v63, 1 }
 0xc1d   :  { %v2440_v26 = vrot.slane %v2439_v35, 4  ;;  %v2416_v41 = vrot.slane %v2415_v60, 1 }
 0xc1e   :  { %v2448_v58 = vadd.f32 %v2447_v0, %v2446_v42  ;;  %v2438_v59 = vadd.f32 %v2437_v1, %v2436_v63  ;;  %v10108_v0 = vadd.f32 %v2469_v51, %v2431_v33  ;;  %v2472_v1 = vrot.slane %v2010_v39, 5 }
 0xc1f   :  { %v2441_v8 = vadd.f32 %v2440_v26, %v2439_v35  ;;  %v2417_v27 = vadd.f32 %v2416_v41, %v2415_v60  ;;  %v2470_v60 = vrot.slane %v2010_v39, 3  ;;  %v2499_v41 = vrot.slane %v10102_v16, 7 }
 0xc20   :  { %v2449_v49 = vrot.slane %v2448_v58, 2  ;;  %v10090_v48 = vpop.permute.xlu0 %2400  ;;  %13788 = vst [vmem:[#allocation103_spill] sm:$0xff] %v10108_v0 }
 0xc21   :  { %13784 = vst [vmem:[#allocation7_spill] sm:$0xff] %v10090_v48  ;;  %v2442_v38 = vrot.slane %v2441_v8, 2  ;;  %v2410_v45 = vmul.f32 %v8562_v13, %v10090_v48  ;;  %v10096_v43 = vpop.permute.xlu1 %2395  ;;  %v10106_v42 = vadd.f32 %v2417_v27, %v2010_v39  ;;  %v13840_v48 = vld [vmem:[#allocation82_spill] sm:$0xff] }
 0xc22   :  { %13785 = vst [vmem:[#allocation100_spill] sm:$0xff] %v10096_v43  ;;  %v2450_v62 = vadd.f32 %v2449_v49, %v2448_v58  ;;  %v2409_v6 = vmul.f32 %v8563_v20, %v10096_v43  ;;  %v10111_v58 = vadd.f32 %v2470_v60, %v2438_v59  ;;  %v2473_v59 = vrot.slane %v2010_v39, 6 }
 0xc23   :  { %v2443_v47 = vadd.f32 %v2442_v38, %v2441_v8  ;;  %v2460_v52 = vsel %vm1082_vm0, %v2410_v45, 0.0  ;;  %13787 = vst [vmem:[#allocation102_spill] sm:$0xff] %v10106_v42  ;;  %v2500_v24 = vsel %vm778_vm10, %v2499_v41, %v10106_v42  ;;  %v2501_v38 = vrot.slane %v10108_v0, 6 }
 0xc24   :  { %v2451_v7 = vrot.slane %v2450_v62, 1  ;;  %v2461_v32 = vrot.slane %v2460_v52, 4  ;;  %v2453_v61 = vsel %vm1082_vm0, %v2409_v6, 0.0  ;;  %13789 = vst [vmem:[#allocation104_spill] sm:$0xff] %v10111_v58  ;;  %v2503_v20 = vrot.slane %v10111_v58, 5 }
 0xc25   :  { %v2444_v54 = vrot.slane %v2443_v47, 1  ;;  %v2454_v31 = vrot.slane %v2453_v61, 4 }
 0xc26   :  { %v2462_v23 = vadd.f32 %v2461_v32, %v2460_v52  ;;  %v2452_v63 = vadd.f32 %v2451_v7, %v2450_v62  ;;  %v2502_v62 = vsel %vm780_vm11, %v2501_v38, %v2500_v24  ;;  %v2474_v52 = vrot.slane %v2010_v39, 7 }
 0xc27   :  { %v2445_v35 = vadd.f32 %v2444_v54, %v2443_v47  ;;  %v2455_v26 = vadd.f32 %v2454_v31, %v2453_v61  ;;  %v2504_v61 = vsel %vm782_vm12, %v2503_v20, %v2502_v62 }
 0xc28   :  { %v2463_v44 = vrot.slane %v2462_v23, 2  ;;  %v10118_v45 = vadd.f32 %v2472_v1, %v2452_v63 }
 0xc29   :  { %v10113_v34 = vadd.f32 %v2471_v25, %v2445_v35  ;;  %v2456_v8 = vrot.slane %v2455_v26, 2 }
 0xc2a   :  { %v2464_v49 = vadd.f32 %v2463_v44, %v2462_v23  ;;  %13791 = vst [vmem:[#allocation106_spill] sm:$0xff] %v10118_v45  ;;  %v2507_v51 = vrot.slane %v10118_v45, 3 }
 0xc2b   :  { %13790 = vst [vmem:[#allocation105_spill] sm:$0xff] %v10113_v34  ;;  %v2457_v13 = vadd.f32 %v2456_v8, %v2455_v26  ;;  %v2505_v33 = vrot.slane %v10113_v34, 4 }
 0xc2c   :  { %v2465_v27 = vrot.slane %v2464_v49, 1 }
 0xc2d   :  { %v2458_v6 = vrot.slane %v2457_v13, 1  ;;  %v2506_v31 = vsel %vm784_vm13, %v2505_v33, %v2504_v61 }
 0xc2e   :  { %v2466_v47 = vadd.f32 %v2465_v27, %v2464_v49  ;;  %v2508_v25 = vsel %vm786_vm14, %v2507_v51, %v2506_v31 }
 0xc2f   :  { %v2459_v7 = vadd.f32 %v2458_v6, %v2457_v13 }
 0xc30   :  { %v10123_v32 = vadd.f32 %v2474_v52, %v2466_v47 }
 0xc31   :  { %v10127_v54 = vadd.f32 %v2473_v59, %v2459_v7 }
 0xc32   :  { %13792 = vst [vmem:[#allocation107_spill] sm:$0xff] %v10123_v32  ;;  %v2511_v60 = vrot.slane %v10123_v32, 1 }
 0xc33   :  { %13793 = vst [vmem:[#allocation108_spill] sm:$0xff] %v10127_v54  ;;  %v2509_v23 = vrot.slane %v10127_v54, 2 }
 0xc35   :  { %v2510_v35 = vsel %vm13794_vm15, %v2509_v23, %v2508_v25 }
 0xc36   :  { %v2512_v39 = vsel %vm13795_vm8, %v2511_v60, %v2510_v35  ;;  %vm13808_vm8 = vcmask 1046534  }
 0xc37   :  { %v2514_v26 = vsel %vm13796_vm4, %v2512_v39, -inf  ;;  %vm13809_vm4 = vcmask 1047559  }
 0xc38   :  { %2515 = vmax.xlane.f32.xlu1 %v2514_v26 }
 0xcab   :  { %v10136_v41 = vpop.xlane.xlu1 %2515 }
 0xcac   :  { %13797 = vst [vmem:[#allocation109_spill] sm:$0xff] %v10136_v41  ;;  %v13427_v63 = vrot.slane %v10136_v41, 1  ;;  %v13426_v44 = vrot.slane %v10136_v41, 2  ;;  %v13425_v8 = vrot.slane %v10136_v41, 3  ;;  %v13424_v1 = vrot.slane %v10136_v41, 4 }
 0xcad   :  { %v13423_v49 = vrot.slane %v10136_v41, 5  ;;  %v13422_v24 = vrot.slane %v10136_v41, 6  ;;  %v13421_v38 = vrot.slane %v10136_v41, 7  ;;  %vm2660_vm5 = vcmp.eq.f32.partialorder %v10106_v42, %v10136_v41 }
 0xcae   :  { %vm2661_vm9 = vcmp.eq.f32.partialorder %v10102_v16, %v13427_v63  ;;  %vm2662_vm2 = vcmp.eq.f32.partialorder %v10108_v0, %v13426_v44  ;;  %vm10154_vm1 = vcmp.eq.f32.partialorder %v10111_v58, %v13425_v8  ;;  %vm10161_vm3 = vcmp.eq.f32.partialorder %v10113_v34, %v13424_v1  ;;  %v13836_v1 = vld [vmem:[#allocation79_spill] sm:$0xff]  ;;  %v13837_v8 = vld [vmem:[#allocation50_spill] sm:$0xff]  ;;  %v13838_v44 = vld [vmem:[#allocation81_spill] sm:$0xff] }
 0xcaf   :  { %vm10170_vm7 = vcmp.eq.f32.partialorder %v10118_v45, %v13423_v49  ;;  %v2669_v6 = vsel %vm2661_vm9, %v8896_v36, 10  ;;  %v2670_v62 = vsel %vm2662_vm2, %v8896_v36, 10  ;;  %vm10179_vm6 = vcmp.eq.f32.partialorder %v10127_v54, %v13422_v24  ;;  %v13834_v24 = vld [vmem:[#allocation76_spill] sm:$0xff]  ;;  %v13835_v49 = vld [vmem:[#allocation47_spill] sm:$0xff]  ;;  %v13839_v63 = vld [vmem:[#allocation53_spill] sm:$0xff] }
 0xcb0   :  { %v2671_v47 = vsel %vm10154_vm1, %v8896_v36, 10  ;;  %vm10189_vm15 = vcmp.eq.f32.partialorder %v10123_v32, %v13421_v38  ;;  %v2672_v59 = vsel %vm10161_vm3, %v8896_v36, 10  ;;  %v2676_v7 = vrot.slane %v2669_v6, 7 }
 0xcb1   :  { %v2678_v61 = vrot.slane %v2670_v62, 6  ;;  %v2668_v51 = vsel %vm2660_vm5, %v8896_v36, 10  ;;  %v2673_v31 = vsel %vm10170_vm7, %v8896_v36, 10  ;;  %v2674_v60 = vsel %vm10179_vm6, %v8896_v36, 10 }
 0xcb2   :  { %v2677_v23 = vsel %vm778_vm10, %v2676_v7, %v2668_v51  ;;  %v2680_v25 = vrot.slane %v2671_v47, 5  ;;  %v2675_v35 = vsel %vm10189_vm15, %v8896_v36, 10  ;;  %v2682_v26 = vrot.slane %v2672_v59, 4 }
 0xcb3   :  { %v2679_v39 = vsel %vm780_vm11, %v2678_v61, %v2677_v23  ;;  %v2684_v27 = vrot.slane %v2673_v31, 3  ;;  %v2686_v6 = vrot.slane %v2674_v60, 2  ;;  %v2688_v33 = vrot.slane %v2675_v35, 1 }
 0xcb4   :  { %v2681_v13 = vsel %vm782_vm12, %v2680_v25, %v2679_v39  ;;  %vm13810_vm9 = vcmask 80896   ;;  %vm13812_vm3 = vcmp.eq.s32.totalorder %v8896_v36, 13  ;;  %vm13813_vm7 = vcmask 130048  }
 0xcb5   :  { %v2683_v20 = vsel %vm784_vm13, %v2682_v26, %v2681_v13  ;;  %vm13814_vm6 = vcmask 392192  }
 0xcb6   :  { %v2685_v62 = vsel %vm786_vm14, %v2684_v27, %v2683_v20 }
 0xcb7   :  { %v2687_v38 = vsel %vm13808_vm8, %v2686_v6, %v2685_v62 }
 0xcb8   :  { %v2689_v47 = vsel %vm13809_vm4, %v2688_v33, %v2687_v38 }
 0xcb9   :  { %v2690_v7 = vsel %vm13810_vm9, %v2689_v47, 2147483647 }
 0xcba   :  { %v2692_v52 = vshra.s32 %v2690_v7, 16  ;;  %v2691_v61 = vand.u32 65535, %v2690_v7 }
 0xcbc   :  { %v2694_v51 = vcvt.s32.f32 %v2692_v52  ;;  %v2693_v23 = vcvt.s32.f32 %v2691_v61  ;;  %v13815_v52 = vld [vmem:[#allocation8_spill] sm:$0xff]  ;;  %v13817_v61 = vld [vmem:[#allocation9_spill] sm:$0xff] }
 0xcbe   :  { %2695 = vmin.xlane.f32.xlu0 %v2694_v51 }
 0xd31   :  { %v2696_v59 = vpop.xlane.xlu0 %2695 }
 0xd32   :  { %vm2697_vm2 = vcmp.eq.f32.partialorder %v2694_v51, %v2696_v59  ;;  %v2702_v60 = vcvt.f32.s32 %v2696_v59  ;;  %v13816_v51 = vld [vmem:[#allocation14_spill] sm:$0xff] }
 0xd33   :  { %v2698_v31 = vsel %vm2697_vm2, %v2693_v23, inf  ;;  %v13818_v59 = vld [vmem:[#allocation18_spill] sm:$0xff]  ;;  %vm13849_vm2 = vcmask 259072  }
 0xd34   :  { %2699 = vmin.xlane.f32.xlu2 %v2698_v31  ;;  %v2703_v35 = vshll.u32 %v2702_v60, 16  ;;  %v13819_v23 = vld [vmem:[#allocation10_spill] sm:$0xff]  ;;  %v13820_v31 = vld [vmem:[#allocation20_spill] sm:$0xff]  ;;  %v13821_v60 = vld [vmem:[#allocation17_spill] sm:$0xff] }
 0xd4c   :  { %2765 = vrot.lane.b32.xlu2 %v9736_v28, %s8631_s18 }
 0xda7   :  { %v2700_v25 = vpop.xlane.xlu2 %2699 }
 0xda8   :  { %v2701_v39 = vcvt.f32.s32 %v2700_v25  ;;  %v13822_v25 = vld [vmem:[#allocation26_spill] sm:$0xff] }
 0xdaa   :  { %v10216_v26 = vadd.s32 %v2703_v35, %v2701_v39  ;;  %v13823_v35 = vld [vmem:[#allocation23_spill] sm:$0xff]  ;;  %v13824_v39 = vld [vmem:[#allocation28_spill] sm:$0xff] }
 0xdac   :  { %13811 = vst [vmem:[#allocation110_spill] sm:$0xff] %v10216_v26  ;;  %vm13456_vm1 = vcmp.eq.s32.totalorder %v8896_v36, %v10216_v26 }
 0xdad   :  { %vm2762_vm5 = vmor %vm13456_vm1, %vm13812_vm3 }
 0xdae   :  { %v8098_v38 = vsel %vm2762_vm5, 1.0, %v13688_v12  ;;  %vm13850_vm3 = vmmov %vm13849_vm2 }
 0xdaf   :  { %v2766_v13 = vpop.permute.xlu2 %2765  ;;  %vm13851_vm5 = vmmov %vm13849_vm2 }
 0xdb0   :  { %v2768_v27 = vsel %vm13813_vm7, %v8098_v38, %v2766_v13  ;;  %v13825_v38 = vld [vmem:[#allocation27_spill] sm:$0xff]  ;;  %v13826_v13 = vld [vmem:[#allocation33_spill] sm:$0xff]  ;;  %vm13852_vm7 = vmmov %vm13849_vm2 }
 0xdb1   :  { %v2769_v20 = vsel %vm13814_vm6, %v2768_v27, 0.0  ;;  %v13827_v27 = vld [vmem:[#allocation31_spill] sm:$0xff]  ;;  %vm13853_vm6 = vmmov %vm13849_vm2 }
 0xdb2   :  { %v2802_v6 = vand.u32 4294901760, %v2769_v20 }
 0xdb4   :  { %v2803_v62 = vsub.f32 %v2769_v20, %v2802_v6  ;;  %2908 = vmatmul.f32.vlgmr.msra.gmra.mxu1 %v2802_v6  ;;  %v13828_v20 = vld [vmem:[#allocation39_spill] sm:$0xff] }
 0xdb5   :  { %4295 = vmatpush.msra.mxu1 %v8678_v3 }
 0xdb6   :  { %2962 = vmatmul.f32.vlgmr.msra.gmra.mxu2 %v2803_v62  ;;  %v2804_v33 = vand.u32 4294901760, %v2803_v62 }
 0xdb7   :  { %3238 = vmatpush.msra.mxu2 %v13691_v14  ;;  %4297 = vmatpush.msra.mxu1 %v8680_v4 }
 0xdb8   :  { %3001 = vmatmul.f32.vlgmr.msra.gmra.mxu3 %v2804_v33  ;;  %v2805_v47 = vsub.f32 %v2803_v62, %v2804_v33  ;;  %v13830_v62 = vld [vmem:[#allocation40_spill] sm:$0xff] }
 0xdb9   :  { %3267 = vmatpush.msra.mxu3 %v9147_v50  ;;  %3241 = vmatpush.msra.mxu2 %v13692_v37  ;;  %v13831_v33 = vld [vmem:[#allocation36_spill] sm:$0xff] }
 0xdba   :  { %v2806_v7 = vand.u32 4294901760, %v2805_v47  ;;  %4299 = vmatpush.msra.mxu1 %v8682_v5  ;;  %v13832_v47 = vld [vmem:[#allocation45_spill] sm:$0xff] }
 0xdbb   :  { %3269 = vmatpush.msra.mxu3 %v9155_v55  ;;  %3244 = vmatpush.msra.mxu2 %v13693_v22 }
 0xdbc   :  { %2807 = vmatmul.f32.vlgmr.msra.gmra.mxu0 %v2806_v7  ;;  %3107 = vmatmul.f32.vlgmr.msrb.gmra.mxu1 %v2802_v6  ;;  %v13833_v7 = vld [vmem:[#allocation41_spill] sm:$0xff] }
 0xdbd   :  { %3271 = vmatpush.msra.mxu3 %v9168_v40  ;;  %3247 = vmatpush.msra.mxu2 %v13694_v21 }
 0xdbe   :  { %4242 = vmatpush.msra.mxu0 %v13695_v29  ;;  %4301 = vmatpush.msra.mxu1 %v8693_v9 }
 0xdbf   :  { %3273 = vmatpush.msra.mxu3 %v9185_v2 }
 0xdc0   :  { %4245 = vmatpush.msra.mxu0 %v13696_v53  ;;  %4303 = vmatpush.msra.mxu1 %v8695_v10 }
 0xdc2   :  { %4248 = vmatpush.msra.mxu0 %v13697_v57  ;;  %4305 = vmatpush.msra.mxu1 %v8697_v11 }
 0xdc4   :  { %3070 = vmatmul.f32.vlgmr.msrb.gmra.mxu0 %v2802_v6  ;;  %4307 = vmatpush.msra.mxu1 %v8715_v17  ;;  %v13829_v6 = vld [vmem:[#allocation35_spill] sm:$0xff] }
 0xdc5   :  { %4251 = vmatpush.msra.mxu0 %v13815_v52 }
 0xdc6   :  { %4309 = vmatpush.msra.mxu1 %v13816_v51 }
 0xdc7   :  { %4254 = vmatpush.msra.mxu0 %v13817_v61 }
 0xdc8   :  { %4311 = vmatpush.msra.mxu1 %v13818_v59 }
 0xdc9   :  { %4257 = vmatpush.msra.mxu0 %v13819_v23 }
 0xdca   :  { %4313 = vmatpush.msra.mxu1 %v13820_v31 }
 0xdcb   :  { %4260 = vmatpush.msra.mxu0 %v13821_v60 }
 0xdcc   :  { %4315 = vmatpush.msra.mxu1 %v13822_v25 }
 0xdcd   :  { %4263 = vmatpush.msra.mxu0 %v13823_v35 }
 0xdce   :  { %4317 = vmatpush.msra.mxu1 %v13824_v39 }
 0xdcf   :  { %4266 = vmatpush.msra.mxu0 %v13825_v38 }
 0xdd0   :  { %4319 = vmatpush.msra.mxu1 %v13826_v13 }
 0xdd1   :  { %4269 = vmatpush.msra.mxu0 %v13827_v27 }
 0xdd2   :  { %4321 = vmatpush.msra.mxu1 %v13828_v20 }
 0xdd3   :  { %4272 = vmatpush.msra.mxu0 %v13829_v6 }
 0xdd4   :  { %4323 = vmatpush.msra.mxu1 %v13830_v62 }
 0xdd5   :  { %4275 = vmatpush.msra.mxu0 %v13831_v33 }
 0xdd6   :  { %4325 = vmatpush.msra.mxu1 %v13832_v47 }
 0xdd7   :  { %4278 = vmatpush.msra.mxu0 %v13833_v7 }
 0xdd8   :  { %4528 = vmatpush.msrb.mxu1 %v13834_v24 }
 0xdd9   :  { %4281 = vmatpush.msra.mxu0 %v13835_v49 }
 0xdda   :  { %4534 = vmatpush.msrb.mxu1 %v13836_v1 }
 0xddb   :  { %4284 = vmatpush.msra.mxu0 %v13837_v8 }
 0xddc   :  { %4540 = vmatpush.msrb.mxu1 %v13838_v44 }
 0xddd   :  { %4287 = vmatpush.msra.mxu0 %v13839_v63 }
 0xdde   :  { %4546 = vmatpush.msrb.mxu1 %v13840_v48 }
 0xddf   :  { %4495 = vmatpush.msrb.mxu0 %v9147_v50 }
 0xde1   :  { %4497 = vmatpush.msrb.mxu0 %v9155_v55 }
 0xde3   :  { %4499 = vmatpush.msrb.mxu0 %v9168_v40 }
 0xde5   :  { %4501 = vmatpush.msrb.mxu0 %v9185_v2 }
 0xe31   :  { %v2909_v43 = vpop.f32.mrf.mxu1 }
 0xe39   :  { %v2808_v19 = vpop.f32.mrf.mxu0  ;;  %v2963_v30 = vpop.f32.mrf.mxu2 }
 0xe3a   :  { %v2910_v18 = vadd.f32 %v2909_v43, %v2808_v19  ;;  %v3108_v54 = vpop.f32.mrf.mxu1 }
 0xe3b   :  { %v3002_v15 = vpop.f32.mrf.mxu3 }
 0xe3c   :  { %v2964_v56 = vadd.f32 %v2963_v30, %v2910_v18 }
 0xe3e   :  { %v3003_v46 = vadd.f32 %v3002_v15, %v2964_v56 }
 0xe41   :  { %v3071_v26 = vpop.f32.mrf.mxu0 }
 0xe42   :  { %v3072_v32 = vadd.f32 %v3071_v26, %v3003_v46 }
 0xe44   :  { %v3109_v45 = vadd.f32 %v3108_v54, %v3072_v32 }
 0xe46   :  { %3131 = vrot.lane.b32.xlu2 %v3109_v45, %s8627_s0  ;;  %v8099_v34 = vmul.f32 -1.442695, %v3109_v45 }
 0xe48   :  { %8199 = vpow2.f32 %v8099_v34 }
 0xe4e   :  { %v8200_v58 = vpop.eup %8199 }
 0xe4f   :  { %v3114_v42 = vadd.f32 1.0, %v8200_v58 }
 0xe51   :  { %8201 = vrcp.f32 %v3114_v42  ;;  %v3126_v30 = vand.u32 2147483648, %v3114_v42  ;;  %vm3120_vm8 = vweird.f32 %v3114_v42  ;;  %v3124_v56 = vand.u32 2147483647, %v3114_v42 }
 0xe53   :  { %v3127_v46 = vor.u32 1.1754944e-38, %v3126_v30  ;;  %vm3125_vm9 = vcmp.eq.f32.partialorder %v3124_v56, 8.507059e+37  ;;  %v13841_v56 = vld [vmem:[#allocation62_spill] sm:$0xff] }
 0xe57   :  { %v8202_v0 = vpop.eup %8201 }
 0xe58   :  { %v3116_v16 = vmul.f32 %v8202_v0, %v3114_v42  ;;  %vm3121_vm15 = vweird.f32 %v8202_v0 }
 0xe59   :  { %vm3122_vm4 = vmor %vm3120_vm8, %vm3121_vm15 }
 0xe5a   :  { %v3117_v41 = vsub.f32 1.0, %v3116_v16  ;;  %vm13854_vm15 = vmmov %vm13849_vm2 }
 0xe5b   :  { %vm13855_vm8 = vmmov %vm13849_vm2 }
 0xe5c   :  { %v3118_v48 = vmul.f32 %v8202_v0, %v3117_v41 }
 0xe5e   :  { %v3119_v19 = vadd.f32 %v8202_v0, %v3118_v48 }
 0xe60   :  { %v3123_v15 = vsel %vm3122_vm4, %v8202_v0, %v3119_v19  ;;  %vm13856_vm4 = vmmov %vm13849_vm2 }
 0xe61   :  { %v3128_v43 = vsel %vm3125_vm9, %v3127_v46, %v3123_v15  ;;  %vm13857_vm9 = vcmask 1046534  }
 0xe62   :  { %v3141_v48 = vsub.f32 1.0, %v3128_v43  ;;  %v3147_v41 = vmul.f32 %v3128_v43, %v9736_v28  ;;  %v13843_v28 = vld [vmem:[#allocation66_spill] sm:$0xff] }
 0xea0   :  { %v3132_v18 = vpop.permute.xlu2 %3131 }
 0xea1   :  { %v3134_v32 = vmul.f32 %v3132_v18, %v3128_v43 }
 0xea3   :  { %3136 = vrot.lane.b32.xlu1 %v3134_v32, %s8628_s25  ;;  %v13842_v32 = vld [vmem:[#allocation67_spill] sm:$0xff] }
 0xf15   :  { %v3137_v58 = vpop.permute.xlu1 %3136 }
 0xf16   :  { %v3139_v34 = vadd.f32 %v3137_v58, %v3109_v45 }
 0xf18   :  { %8203 = vtanh.f32 %v3139_v34 }
 0xf1e   :  { %v8204_v54 = vpop.eup %8203 }
 0xf1f   :  { %3143 = vrot.lane.b32.xlu0 %v8204_v54, %s8629_s13 }
 0xf91   :  { %v3144_v16 = vpop.permute.xlu0 %3143 }
 0xf92   :  { %v3146_v42 = vmul.f32 %v3144_v16, %v3141_v48 }
 0xf94   :  { %v10280_v26 = vadd.f32 %v3147_v41, %v3146_v42  ;;  %v13844_v42 = vld [vmem:[#allocation63_spill] sm:$0xff] }
 0xf96   :  { %v3346_v0 = vperm.slane %v10280_v26, 0  ;;  %v3342_v19 = vrot.slane %v10280_v26, 4  ;;  %v3341_v30 = vrot.slane %v10280_v26, 3  ;;  %v3339_v18 = vrot.slane %v10280_v26, 1 }
 0xf97   :  { %v3345_v34 = vrot.slane %v10280_v26, 7  ;;  %v3344_v54 = vrot.slane %v10280_v26, 6 }
 0xf98   :  { %v3362_v15 = vmul.f32 %v3346_v0, %v13841_v56  ;;  %v3350_v45 = vperm.slane %v3342_v19, 0  ;;  %v3349_v46 = vperm.slane %v3341_v30, 0  ;;  %v3347_v48 = vperm.slane %v3339_v18, 0  ;;  %v13845_v30 = vld [vmem:[#allocation70_spill] sm:$0xff] }
 0xf99   :  { %v3353_v16 = vperm.slane %v3345_v34, 0  ;;  %v3352_v41 = vperm.slane %v3344_v54, 0  ;;  %v3340_v19 = vrot.slane %v10280_v26, 2  ;;  %v3343_v18 = vrot.slane %v10280_v26, 5  ;;  %v13848_v54 = vld [vmem:[#allocation68_spill] sm:$0xff] }
 0xf9a   :  { %3378 = vrot.lane.b32.xlu2 %v3362_v15, %s8629_s13  ;;  %v3366_v58 = vmul.f32 %v3350_v45, %v13842_v32  ;;  %v3365_v43 = vmul.f32 %v3349_v46, %v13843_v28  ;;  %v3363_v0 = vmul.f32 %v3347_v48, %v13844_v42  ;;  %v13846_v45 = vld [vmem:[#allocation69_spill] sm:$0xff] }
 0xf9b   :  { %v3369_v15 = vmul.f32 %v3353_v16, %v13845_v30  ;;  %v3368_v46 = vmul.f32 %v3352_v41, %v13846_v45  ;;  %v13847_v32 = vld [vmem:[#allocation65_spill] sm:$0xff]  ;;  %v3351_v34 = vperm.slane %v3343_v18, 0 }
 0xf9c   :  { %3386 = vrot.lane.b32.xlu1 %v3366_v58, %s8629_s13  ;;  %3384 = vrot.lane.b32.xlu0 %v3365_v43, %s8629_s13  ;;  %v3348_v58 = vperm.slane %v3340_v19, 0 }
 0xf9d   :  { %v3367_v48 = vmul.f32 %v3351_v34, %v13848_v54 }
 0xf9e   :  { %v3364_v43 = vmul.f32 %v3348_v58, %v13847_v32 }
 0xfa2   :  { %3380 = vrot.lane.b32.xlu2 %v3363_v0, %s8629_s13 }
 0xfa4   :  { %3392 = vrot.lane.b32.xlu1 %v3369_v15, %s8629_s13  ;;  %3390 = vrot.lane.b32.xlu0 %v3368_v46, %s8629_s13 }
 0xfaa   :  { %3382 = vrot.lane.b32.xlu2 %v3364_v43, %s8629_s13 }
 0xfb2   :  { %3388 = vrot.lane.b32.xlu2 %v3367_v48, %s8629_s13 }
 0xff4   :  { %v3379_v0 = vpop.permute.xlu2 %3378 }
 0xff5   :  { %v3402_v16 = vsel %vm13849_vm2, %v3379_v0, 0.0  ;;  %vm13858_vm2 = vcmask 1047559  }
 0xff6   :  { %3403 = vadd.xlane.f32.xlu2 %v3402_v16 }
 0xffc   :  { %v3381_v41 = vpop.permute.xlu2 %3380 }
 0xffd   :  { %v3405_v15 = vsel %vm13850_vm3, %v3381_v41, 0.0  ;;  %vm13859_vm3 = vcmask 48128  }
 0xffe   :  { %3406 = vadd.xlane.f32.xlu0 %v3405_v15 }
0x1004   :  { %v3383_v19 = vpop.permute.xlu2 %3382 }
0x1005   :  { %v3408_v46 = vsel %vm13851_vm5, %v3383_v19, 0.0  ;;  %vm13860_vm5 = vcmask 261120  }
0x1006   :  { %3409 = vadd.xlane.f32.xlu1 %v3408_v46 }
0x100c   :  { %v3389_v34 = vpop.permute.xlu2 %3388 }
0x100d   :  { %v3417_v15 = vsel %vm13856_vm4, %v3389_v34, 0.0 }
0x100e   :  { %v3387_v58 = vpop.permute.xlu1 %3386  ;;  %v3385_v30 = vpop.permute.xlu0 %3384 }
0x100f   :  { %v3411_v43 = vsel %vm13852_vm7, %v3385_v30, 0.0  ;;  %v3414_v18 = vsel %vm13853_vm6, %v3387_v58, 0.0  ;;  %vm13897_vm7 = vmmov %vm13857_vm9 }
0x1010   :  { %3412 = vadd.xlane.f32.xlu2 %v3411_v43  ;;  %3415 = vadd.xlane.f32.xlu0 %v3414_v18  ;;  %vm13898_vm6 = vmmov %vm13858_vm2 }
0x1016   :  { %v3393_v48 = vpop.permute.xlu1 %3392  ;;  %v3391_v0 = vpop.permute.xlu0 %3390 }
0x1017   :  { %v3423_v16 = vsel %vm13854_vm15, %v3393_v48, 0.0  ;;  %v3420_v41 = vsel %vm13855_vm8, %v3391_v0, 0.0  ;;  %vm13899_vm15 = vmmov %vm13859_vm3 }
0x1018   :  { %3424 = vadd.xlane.f32.xlu0 %v3423_v16  ;;  %3421 = vadd.xlane.f32.xlu1 %v3420_v41 }
0x1019   :  { %3418 = vadd.xlane.f32.xlu2 %v3417_v15 }
0x1031   :  { %3150 = vrot.lane.b32.xlu1 %v10280_v26, %s8629_s13 }
0x1069   :  { %v3404_v30 = vpop.xlane.xlu2 %3403 }
0x106a   :  { %v10320_v48 = vmul.f32 0.17677669, %v3404_v30 }
0x106c   :  { %v3442_v15 = vperm.slane %v10320_v48, %v8896_v36 }
0x1071   :  { %v3407_v19 = vpop.xlane.xlu0 %3406 }
0x1072   :  { %v10316_v58 = vmul.f32 0.17677669, %v3407_v19 }
0x1074   :  { %v3443_v34 = vperm.slane %v10316_v58, %v8896_v36 }
0x1079   :  { %v3410_v46 = vpop.xlane.xlu1 %3409 }
0x107a   :  { %v10318_v32 = vmul.f32 0.17677669, %v3410_v46  ;;  %v3450_v46 = vsel %vm778_vm10, %v3443_v34, %v3442_v15 }
0x107c   :  { %v3444_v16 = vperm.slane %v10318_v32, %v8896_v36 }
0x1083   :  { %v3416_v43 = vpop.xlane.xlu0 %3415  ;;  %v3413_v18 = vpop.xlane.xlu2 %3412 }
0x1084   :  { %v10322_v0 = vmul.f32 0.17677669, %v3413_v18  ;;  %v10328_v41 = vmul.f32 0.17677669, %v3416_v43  ;;  %v3451_v18 = vsel %vm780_vm11, %v3444_v16, %v3450_v46 }
0x1086   :  { %v3445_v19 = vperm.slane %v10322_v0, %v8896_v36  ;;  %v3446_v54 = vperm.slane %v10328_v41, %v8896_v36 }
0x1088   :  { %v3452_v43 = vsel %vm782_vm12, %v3445_v19, %v3451_v18 }
0x1089   :  { %v3453_v16 = vsel %vm784_vm13, %v3446_v54, %v3452_v43 }
0x108b   :  { %v3425_v30 = vpop.xlane.xlu0 %3424  ;;  %v3422_v45 = vpop.xlane.xlu1 %3421 }
0x108c   :  { %v10338_v42 = vmul.f32 0.17677669, %v3422_v45  ;;  %v3419_v28 = vpop.xlane.xlu2 %3418  ;;  %v10341_v56 = vmul.f32 0.17677669, %v3425_v30 }
0x108d   :  { %v10343_v63 = vmul.f32 0.17677669, %v3419_v28 }
0x108e   :  { %v3448_v44 = vperm.slane %v10338_v42, %v8896_v36  ;;  %v3449_v15 = vperm.slane %v10341_v56, %v8896_v36 }
0x108f   :  { %v3447_v34 = vperm.slane %v10343_v63, %v8896_v36 }
0x1091   :  { %v3454_v45 = vsel %vm786_vm14, %v3447_v34, %v3453_v16  ;;  %v13861_v34 = vld [vmem:[#allocation72_spill] sm:$0xff]  ;;  %v13862_v16 = vld [vmem:[#allocation21_spill] sm:$0xff] }
0x1092   :  { %v3455_v46 = vsel %vm13857_vm9, %v3448_v44, %v3454_v45  ;;  %v13864_v45 = vld [vmem:[#allocation22_spill] sm:$0xff] }
0x1093   :  { %v3456_v19 = vsel %vm13858_vm2, %v3449_v15, %v3455_v46  ;;  %v13863_v15 = vld [vmem:[#allocation74_spill] sm:$0xff]  ;;  %v13865_v46 = vld [vmem:[#allocation77_spill] sm:$0xff] }
0x1094   :  { %v3458_v28 = vsel %vm13859_vm3, %v3456_v19, -inf  ;;  %v13866_v19 = vld [vmem:[#allocation24_spill] sm:$0xff] }
0x1095   :  { %3459 = vmax.xlane.f32.xlu2 %v3458_v28  ;;  %v13867_v28 = vld [vmem:[#allocation80_spill] sm:$0xff] }
0x10a3   :  { %v3151_v30 = vpop.permute.xlu1 %3150 }
0x10a4   :  { %v3152_v18 = vsel %vm13860_vm5, %v3151_v30, 0  ;;  %v13868_v30 = vld [vmem:[#allocation29_spill] sm:$0xff] }
0x10a5   :  { %v3174_v8 = vand.u32 4294901760, %v3152_v18 }
0x10a7   :  { %v3175_v1 = vsub.f32 %v3152_v18, %v3174_v8  ;;  %3220 = vmatmul.f32.vlgmr.msrb.gmra.mxu3 %v3174_v8  ;;  %v13869_v18 = vld [vmem:[#allocation34_spill] sm:$0xff] }
0x10a8   :  { %3327 = vmatpush.msrb.mxu3 %v9147_v50 }
0x10a9   :  { %v3176_v54 = vand.u32 4294901760, %v3175_v1 }
0x10aa   :  { %3329 = vmatpush.msrb.mxu3 %v9155_v55 }
0x10ab   :  { %v3177_v43 = vsub.f32 %v3175_v1, %v3176_v54 }
0x10ac   :  { %3331 = vmatpush.msrb.mxu3 %v9168_v40 }
0x10ad   :  { %v3178_v44 = vand.u32 4294901760, %v3177_v43  ;;  %v13871_v43 = vld [vmem:[#allocation42_spill] sm:$0xff] }
0x10ae   :  { %3333 = vmatpush.msrb.mxu3 %v9185_v2 }
0x10af   :  { %3179 = vmatmul.f32.vlgmr.msrb.gmra.mxu2 %v3178_v44  ;;  %3277 = vmatmul.f32.vlgmr.msra.gmra.mxu3 %v3176_v54  ;;  %v13870_v54 = vld [vmem:[#allocation37_spill] sm:$0xff]  ;;  %v13872_v44 = vld [vmem:[#allocation46_spill] sm:$0xff] }
0x10b0   :  { %3296 = vmatpush.msrb.mxu2 %v13861_v34  ;;  %4144 = vmatpush.msra.mxu3 %v13862_v16 }
0x10b2   :  { %3300 = vmatpush.msrb.mxu2 %v13863_v15  ;;  %4150 = vmatpush.msra.mxu3 %v13864_v45 }
0x10b4   :  { %3304 = vmatpush.msrb.mxu2 %v13865_v46  ;;  %4156 = vmatpush.msra.mxu3 %v13866_v19 }
0x10b6   :  { %3308 = vmatpush.msrb.mxu2 %v13867_v28  ;;  %4162 = vmatpush.msra.mxu3 %v13868_v30  ;;  %v13895_v30 = vld [vmem:[#allocation55_spill] sm:$0xff] }
0x10b7   :  { %3250 = vmatmul.f32.vlgmr.msra.gmra.mxu2 %v3175_v1  ;;  %3335 = vmatmul.f32.vlgmr.msrb.gmra.mxu3 %v3174_v8  ;;  %v13873_v1 = vld [vmem:[#allocation48_spill] sm:$0xff] }
0x10b8   :  { %4099 = vmatpush.msra.mxu2 %v8678_v3  ;;  %4168 = vmatpush.msra.mxu3 %v13869_v18  ;;  %v13874_v18 = vld [vmem:[#allocation51_spill] sm:$0xff] }
0x10ba   :  { %4101 = vmatpush.msra.mxu2 %v8680_v4  ;;  %4174 = vmatpush.msra.mxu3 %v13870_v54  ;;  %v13875_v54 = vld [vmem:[#allocation54_spill] sm:$0xff] }
0x10bc   :  { %4103 = vmatpush.msra.mxu2 %v8682_v5  ;;  %4180 = vmatpush.msra.mxu3 %v13871_v43  ;;  %v13876_v43 = vld [vmem:[#allocation56_spill] sm:$0xff] }
0x10be   :  { %4105 = vmatpush.msra.mxu2 %v8693_v9  ;;  %4186 = vmatpush.msra.mxu3 %v13872_v44  ;;  %v13877_v44 = vld [vmem:[#allocation58_spill] sm:$0xff] }
0x10bf   :  { %3310 = vmatmul.f32.vlgmr.msrb.gmra.mxu2 %v3174_v8  ;;  %v13878_v8 = vld [vmem:[#allocation59_spill] sm:$0xff] }
0x10c0   :  { %4107 = vmatpush.msra.mxu2 %v8695_v10  ;;  %4192 = vmatpush.msra.mxu3 %v13873_v1  ;;  %v13879_v1 = vld [vmem:[#allocation60_spill] sm:$0xff] }
0x10c2   :  { %4109 = vmatpush.msra.mxu2 %v8697_v11  ;;  %4198 = vmatpush.msra.mxu3 %v13874_v18  ;;  %v13880_v18 = vld [vmem:[#allocation61_spill] sm:$0xff] }
0x10c4   :  { %4111 = vmatpush.msra.mxu2 %v8715_v17  ;;  %4204 = vmatpush.msra.mxu3 %v13875_v54  ;;  %v13886_v54 = vld [vmem:[#allocation19_spill] sm:$0xff] }
0x10c6   :  { %4113 = vmatpush.msra.mxu2 %v13816_v51  ;;  %4210 = vmatpush.msra.mxu3 %v13876_v43  ;;  %v13885_v43 = vld [vmem:[#allocation16_spill] sm:$0xff] }
0x10c8   :  { %4115 = vmatpush.msra.mxu2 %v13818_v59  ;;  %4216 = vmatpush.msra.mxu3 %v13877_v44  ;;  %v13884_v44 = vld [vmem:[#allocation15_spill] sm:$0xff] }
0x10ca   :  { %4117 = vmatpush.msra.mxu2 %v13820_v31  ;;  %4222 = vmatpush.msra.mxu3 %v13878_v8  ;;  %v13883_v8 = vld [vmem:[#allocation13_spill] sm:$0xff] }
0x10cc   :  { %4119 = vmatpush.msra.mxu2 %v13822_v25  ;;  %4228 = vmatpush.msra.mxu3 %v13879_v1  ;;  %v13881_v1 = vld [vmem:[#allocation11_spill] sm:$0xff] }
0x10ce   :  { %4121 = vmatpush.msra.mxu2 %v13824_v39  ;;  %4234 = vmatpush.msra.mxu3 %v13880_v18  ;;  %v13882_v18 = vld [vmem:[#allocation12_spill] sm:$0xff] }
0x10d0   :  { %4403 = vmatpush.msrb.mxu3 %v8678_v3  ;;  %4123 = vmatpush.msra.mxu2 %v13826_v13 }
0x10d2   :  { %4405 = vmatpush.msrb.mxu3 %v8680_v4  ;;  %4125 = vmatpush.msra.mxu2 %v13828_v20 }
0x10d4   :  { %4407 = vmatpush.msrb.mxu3 %v8682_v5  ;;  %4127 = vmatpush.msra.mxu2 %v13830_v62 }
0x10d6   :  { %4409 = vmatpush.msrb.mxu3 %v8693_v9  ;;  %4129 = vmatpush.msra.mxu2 %v13832_v47 }
0x10d8   :  { %4336 = vmatpush.msrb.mxu2 %v13881_v1  ;;  %4411 = vmatpush.msrb.mxu3 %v8695_v10  ;;  %v13887_v1 = vld [vmem:[#allocation25_spill] sm:$0xff] }
0x10da   :  { %4340 = vmatpush.msrb.mxu2 %v13882_v18  ;;  %4413 = vmatpush.msrb.mxu3 %v8697_v11  ;;  %v13888_v18 = vld [vmem:[#allocation30_spill] sm:$0xff] }
0x10dc   :  { %4344 = vmatpush.msrb.mxu2 %v13883_v8  ;;  %4415 = vmatpush.msrb.mxu3 %v8715_v17  ;;  %v13889_v8 = vld [vmem:[#allocation32_spill] sm:$0xff] }
0x10de   :  { %4348 = vmatpush.msrb.mxu2 %v13884_v44  ;;  %4417 = vmatpush.msrb.mxu3 %v13816_v51  ;;  %v13890_v44 = vld [vmem:[#allocation38_spill] sm:$0xff] }
0x10e0   :  { %4352 = vmatpush.msrb.mxu2 %v13885_v43  ;;  %4419 = vmatpush.msrb.mxu3 %v13818_v59  ;;  %v13891_v43 = vld [vmem:[#allocation43_spill] sm:$0xff] }
0x10e2   :  { %4356 = vmatpush.msrb.mxu2 %v13886_v54  ;;  %4421 = vmatpush.msrb.mxu3 %v13820_v31  ;;  %v13892_v54 = vld [vmem:[#allocation44_spill] sm:$0xff] }
0x10e4   :  { %4360 = vmatpush.msrb.mxu2 %v13887_v1  ;;  %4423 = vmatpush.msrb.mxu3 %v13822_v25  ;;  %v13893_v1 = vld [vmem:[#allocation49_spill] sm:$0xff] }
0x10e6   :  { %4364 = vmatpush.msrb.mxu2 %v13888_v18  ;;  %4425 = vmatpush.msrb.mxu3 %v13824_v39  ;;  %v13894_v18 = vld [vmem:[#allocation52_spill] sm:$0xff] }
0x10e8   :  { %4368 = vmatpush.msrb.mxu2 %v13889_v8  ;;  %4427 = vmatpush.msrb.mxu3 %v13826_v13  ;;  %v13896_v8 = vld [vmem:[#allocation57_spill] sm:$0xff] }
0x10ea   :  { %4372 = vmatpush.msrb.mxu2 %v13890_v44  ;;  %4429 = vmatpush.msrb.mxu3 %v13828_v20 }
0x10ec   :  { %4376 = vmatpush.msrb.mxu2 %v13891_v43  ;;  %4431 = vmatpush.msrb.mxu3 %v13830_v62 }
0x10ee   :  { %4380 = vmatpush.msrb.mxu2 %v13892_v54  ;;  %4433 = vmatpush.msrb.mxu3 %v13832_v47 }
0x10f0   :  { %4384 = vmatpush.msrb.mxu2 %v13893_v1 }
0x10f2   :  { %4388 = vmatpush.msrb.mxu2 %v13894_v18 }
0x10f4   :  { %4392 = vmatpush.msrb.mxu2 %v13895_v30 }
0x10f6   :  { %4396 = vmatpush.msrb.mxu2 %v13896_v8 }
0x1108   :  { %v3460_v28 = vpop.xlane.xlu2 %3459 }
0x1109   :  { %v3465_v44 = vperm.slane %v3460_v28, 3  ;;  %v3463_v19 = vperm.slane %v3460_v28, 1  ;;  %v3462_v46 = vperm.slane %v3460_v28, 0  ;;  %v3468_v15 = vperm.slane %v3460_v28, 6 }
0x110a   :  { %v3466_v16 = vperm.slane %v3460_v28, 4  ;;  %v3464_v34 = vperm.slane %v3460_v28, 2 }
0x110b   :  { %v3481_v43 = vsub.f32 %v10322_v0, %v3465_v44  ;;  %v3479_v45 = vsub.f32 %v10316_v58, %v3463_v19  ;;  %v3478_v54 = vsub.f32 %v10320_v48, %v3462_v46  ;;  %v3484_v30 = vsub.f32 %v10338_v42, %v3468_v15 }
0x110c   :  { %v3482_v8 = vsub.f32 %v10328_v41, %v3466_v16  ;;  %v3480_v24 = vsub.f32 %v10318_v32, %v3464_v34  ;;  %v3469_v58 = vperm.slane %v3460_v28, 7  ;;  %v3467_v46 = vperm.slane %v3460_v28, 5 }
0x110d   :  { %v3492_v1 = vmul.f32 1.442695, %v3481_v43  ;;  %v3488_v49 = vmul.f32 1.442695, %v3479_v45  ;;  %v3486_v18 = vmul.f32 1.442695, %v3478_v54 }
0x110e   :  { %v3498_v0 = vmul.f32 1.442695, %v3484_v30  ;;  %v3494_v44 = vmul.f32 1.442695, %v3482_v8  ;;  %v3490_v48 = vmul.f32 1.442695, %v3480_v24  ;;  %v3483_v32 = vsub.f32 %v10343_v63, %v3467_v46 }
0x110f   :  { %8205 = vpow2.f32 %v3492_v1 }
0x1110   :  { %8207 = vpow2.f32 %v3488_v49  ;;  %v3485_v49 = vsub.f32 %v10341_v56, %v3469_v58  ;;  %v3496_v41 = vmul.f32 1.442695, %v3483_v32 }
0x1111   :  { %8209 = vpow2.f32 %v3486_v18 }
0x1112   :  { %8211 = vpow2.f32 %v3498_v0  ;;  %v3500_v42 = vmul.f32 1.442695, %v3485_v49 }
0x1113   :  { %8213 = vpow2.f32 %v3494_v44 }
0x1114   :  { %8215 = vpow2.f32 %v3490_v48 }
0x1115   :  { %v10435_v19 = vpop.eup %8205  ;;  %8217 = vpow2.f32 %v3500_v42 }
0x1116   :  { %v10437_v7 = vpop.eup %8207  ;;  %3520 = vperm.xlu1 %8119, %v10435_v19   ;;  %8219 = vpow2.f32 %v3496_v41 }
0x1117   :  { %v10440_v45 = vpop.eup %8209  ;;  %3514 = vperm.xlu2 %8120, %v10437_v7  }
0x1118   :  { %3511 = vperm.xlu0 %8121, %v10440_v45   ;;  %v10446_v24 = vpop.eup %8211 }
0x1119   :  { %v10448_v34 = vpop.eup %8213 }
0x111a   :  { %v10451_v16 = vpop.eup %8215 }
0x111b   :  { %v10455_v56 = vpop.eup %8217 }
0x111c   :  { %v10457_v15 = vpop.eup %8219 }
0x111e   :  { %3529 = vperm.xlu1 %8119, %v10446_v24  }
0x111f   :  { %3523 = vperm.xlu2 %8120, %v10448_v34  }
0x1120   :  { %3517 = vperm.xlu0 %8121, %v10451_v16  }
0x1127   :  { %3532 = vperm.xlu2 %8120, %v10455_v56  }
0x1128   :  { %3526 = vperm.xlu0 %8121, %v10457_v15  }
0x1171   :  { %v3515_v63 = vpop.permute.xlu2 %3514 }
0x1172   :  { %v3535_v1 = vperm.slane %v3515_v63, %v8896_v36 }
0x1179   :  { %v3524_v18 = vpop.permute.xlu2 %3523 }
0x117a   :  { %v3538_v49 = vperm.slane %v3524_v18, %v8896_v36 }
0x1181   :  { %v3533_v32 = vpop.permute.xlu2 %3532 }
0x1188   :  { %v3521_v30 = vpop.permute.xlu1 %3520 }
0x1189   :  { %v3537_v58 = vperm.slane %v3521_v30, %v8896_v36 }
0x118a   :  { %v3512_v28 = vpop.permute.xlu0 %3511 }
0x118b   :  { %v3534_v54 = vperm.slane %v3512_v28, %v8896_v36 }
0x118d   :  { %v3542_v0 = vsel %vm778_vm10, %v3535_v1, %v3534_v54 }
0x1190   :  { %v3530_v48 = vpop.permute.xlu1 %3529 }
0x1191   :  { %v3540_v28 = vperm.slane %v3530_v48, %v8896_v36 }
0x1192   :  { %v3518_v43 = vpop.permute.xlu0 %3517 }
0x1193   :  { %v3536_v8 = vperm.slane %v3518_v43, %v8896_v36  ;;  %v3541_v43 = vperm.slane %v3533_v32, %v8896_v36 }
0x1195   :  { %v3543_v44 = vsel %vm780_vm11, %v3536_v8, %v3542_v0 }
0x1196   :  { %v3544_v46 = vsel %vm782_vm12, %v3537_v58, %v3543_v44 }
0x1197   :  { %v3545_v63 = vsel %vm784_vm13, %v3538_v49, %v3544_v46 }
0x119a   :  { %v3527_v42 = vpop.permute.xlu0 %3526 }
0x119b   :  { %v3539_v41 = vperm.slane %v3527_v42, %v8896_v36 }
0x119d   :  { %v3546_v54 = vsel %vm786_vm14, %v3539_v41, %v3545_v63 }
0x119e   :  { %v3547_v1 = vsel %vm13897_vm7, %v3540_v28, %v3546_v54 }
0x119f   :  { %v3548_v30 = vsel %vm13898_vm6, %v3541_v43, %v3547_v1 }
0x11a0   :  { %v3550_v8 = vsel %vm13899_vm15, %v3548_v30, 0.0 }
0x11a1   :  { %3551 = vadd.xlane.f32.xlu0 %v3550_v8 }
0x1214   :  { %v10477_v18 = vpop.xlane.xlu0 %3551 }
0x1215   :  { %v3556_v0 = vperm.slane %v10477_v18, 2  ;;  %v3555_v44 = vperm.slane %v10477_v18, 1  ;;  %v10482_v58 = vperm.slane %v10477_v18, 3  ;;  %v10485_v48 = vperm.slane %v10477_v18, 0 }
0x1216   :  { %v10488_v46 = vperm.slane %v10477_v18, 5  ;;  %v10492_v49 = vperm.slane %v10477_v18, 4  ;;  %v10497_v63 = vperm.slane %v10477_v18, 7  ;;  %v10550_v13 = vperm.slane %v10477_v18, 6 }
0x1217   :  { %8221 = vrcp.f32 %v3556_v0  ;;  %v3609_v32 = vand.u32 2147483647, %v3556_v0  ;;  %v3611_v42 = vand.u32 2147483648, %v3556_v0  ;;  %v3594_v28 = vand.u32 2147483647, %v3555_v44 }
0x1218   :  { %8223 = vrcp.f32 %v3555_v44  ;;  %vm3605_vm8 = vweird.f32 %v3556_v0  ;;  %vm3590_vm4 = vweird.f32 %v3555_v44  ;;  %v3596_v8 = vand.u32 2147483648, %v3555_v44 }
0x1219   :  { %8225 = vrcp.f32 %v10482_v58  ;;  %vm10502_vm9 = vcmp.eq.f32.partialorder %v3609_v32, 8.507059e+37  ;;  %v3612_v62 = vor.u32 1.1754944e-38, %v3611_v42  ;;  %vm10508_vm2 = vcmp.eq.f32.partialorder %v3594_v28, 8.507059e+37 }
0x121a   :  { %8227 = vrcp.f32 %v10485_v48  ;;  %vm3620_vm3 = vweird.f32 %v10482_v58  ;;  %v3597_v35 = vor.u32 1.1754944e-38, %v3596_v8  ;;  %v3624_v31 = vand.u32 2147483647, %v10482_v58 }
0x121b   :  { %8229 = vrcp.f32 %v10488_v46 }
0x121c   :  { %8231 = vrcp.f32 %v10492_v49 }
0x121d   :  { %v8222_v41 = vpop.eup %8221  ;;  %8233 = vrcp.f32 %v10497_v63 }
0x121e   :  { %v8224_v43 = vpop.eup %8223  ;;  %v3601_v54 = vmul.f32 %v8222_v41, %v3556_v0  ;;  %vm3606_vm5 = vweird.f32 %v8222_v41  ;;  %8235 = vrcp.f32 %v10550_v13 }
0x121f   :  { %v10500_v1 = vpop.eup %8225  ;;  %v3586_v30 = vmul.f32 %v8224_v43, %v3555_v44  ;;  %vm3591_vm7 = vweird.f32 %v8224_v43  ;;  %vm3607_vm6 = vmor %vm3605_vm8, %vm3606_vm5  ;;  %v3581_v44 = vand.u32 2147483648, %v10485_v48 }
0x1220   :  { %v3602_v47 = vsub.f32 1.0, %v3601_v54  ;;  %v3616_v6 = vmul.f32 %v10500_v1, %v10482_v58  ;;  %v8228_v20 = vpop.eup %8227  ;;  %vm3621_vm15 = vweird.f32 %v10500_v1  ;;  %vm3592_vm1 = vmor %vm3590_vm4, %vm3591_vm7 }
0x1221   :  { %v3587_v27 = vsub.f32 1.0, %v3586_v30  ;;  %v10514_v38 = vpop.eup %8229  ;;  %v3571_v42 = vmul.f32 %v8228_v20, %v10485_v48  ;;  %vm3576_vm8 = vweird.f32 %v8228_v20  ;;  %vm10543_vm4 = vmor %vm3620_vm3, %vm3621_vm15 }
0x1222   :  { %v3603_v32 = vmul.f32 %v8222_v41, %v3602_v47  ;;  %v3617_v54 = vsub.f32 1.0, %v3616_v6  ;;  %v3646_v28 = vmul.f32 %v10514_v38, %v10488_v46  ;;  %v10519_v30 = vpop.eup %8231  ;;  %vm3651_vm5 = vweird.f32 %v10514_v38 }
0x1223   :  { %v3588_v39 = vmul.f32 %v8224_v43, %v3587_v27  ;;  %v3572_v23 = vsub.f32 1.0, %v3571_v42  ;;  %v3626_v27 = vand.u32 2147483648, %v10482_v58  ;;  %v3631_v6 = vmul.f32 %v10519_v30, %v10492_v49  ;;  %v10530_v61 = vpop.eup %8233 }
0x1224   :  { %v3604_v25 = vadd.f32 %v8222_v41, %v3603_v32  ;;  %v3618_v60 = vmul.f32 %v10500_v1, %v3617_v54  ;;  %v3647_v54 = vsub.f32 1.0, %v3646_v28  ;;  %v3582_v58 = vor.u32 1.1754944e-38, %v3581_v44 }
0x1225   :  { %v3589_v47 = vadd.f32 %v8224_v43, %v3588_v39  ;;  %v3573_v59 = vmul.f32 %v8228_v20, %v3572_v23  ;;  %v3632_v42 = vsub.f32 1.0, %v3631_v6  ;;  %v3627_v33 = vor.u32 1.1754944e-38, %v3626_v27 }
0x1226   :  { %v3608_v8 = vsel %vm3607_vm6, %v8222_v41, %v3604_v25  ;;  %v3619_v32 = vadd.f32 %v10500_v1, %v3618_v60  ;;  %vm3636_vm7 = vweird.f32 %v10519_v30  ;;  %vm3650_vm6 = vweird.f32 %v10488_v46 }
0x1227   :  { %v3613_v0 = vsel %vm10502_vm9, %v3612_v62, %v3608_v8  ;;  %v3593_v39 = vsel %vm3592_vm1, %v8224_v43, %v3589_v47  ;;  %v3574_v25 = vadd.f32 %v8228_v20, %v3573_v59  ;;  %vm3575_vm1 = vweird.f32 %v10485_v48  ;;  %vm3652_vm15 = vmor %vm3650_vm6, %vm3651_vm5 }
0x1228   :  { %v3614_v51 = vmul.f32 %v10451_v16, %v3613_v0  ;;  %v3598_v52 = vsel %vm10508_vm2, %v3597_v35, %v3593_v39  ;;  %v3579_v62 = vand.u32 2147483647, %v10485_v48  ;;  %vm3577_vm9 = vmor %vm3575_vm1, %vm3576_vm8  ;;  %v3648_v59 = vmul.f32 %v10514_v38, %v3647_v54 }
0x1229   :  { %v3599_v60 = vmul.f32 %v10437_v7, %v3598_v52  ;;  %v3623_v52 = vsel %vm10543_vm4, %v10500_v1, %v3619_v32  ;;  %v3676_v35 = vmul.f32 %v10530_v61, %v10497_v63  ;;  %v3578_v7 = vsel %vm3577_vm9, %v8228_v20, %v3574_v25 }
0x122a   :  { %3702 = vperm.xlu2 %8120, %v3614_v51   ;;  %v3633_v16 = vmul.f32 %v10519_v30, %v3632_v42  ;;  %vm3625_vm2 = vcmp.eq.f32.partialorder %v3624_v31, 8.507059e+37  ;;  %vm3580_vm3 = vcmp.eq.f32.partialorder %v3579_v62, 8.507059e+37  ;;  %v3649_v48 = vadd.f32 %v10514_v38, %v3648_v59 }
0x122b   :  { %3697 = vperm.xlu1 %8119, %v3599_v60   ;;  %v3628_v18 = vsel %vm3625_vm2, %v3627_v33, %v3623_v52  ;;  %v3583_v51 = vsel %vm3580_vm3, %v3582_v58, %v3578_v7  ;;  %v3677_v41 = vsub.f32 1.0, %v3676_v35  ;;  %v3656_v43 = vand.u32 2147483648, %v10488_v46 }
0x122c   :  { %v3634_v1 = vadd.f32 %v10519_v30, %v3633_v16  ;;  %v3629_v20 = vmul.f32 %v10435_v19, %v3628_v18  ;;  %v3654_v31 = vand.u32 2147483647, %v10488_v46  ;;  %v3641_v28 = vand.u32 2147483648, %v10492_v49  ;;  %v8236_v19 = vpop.eup %8235 }
0x122d   :  { %v3584_v47 = vmul.f32 %v10440_v45, %v3583_v51  ;;  %vm3635_vm8 = vweird.f32 %v10492_v49  ;;  %v3639_v27 = vand.u32 2147483647, %v10492_v49  ;;  %v3653_v6 = vsel %vm3652_vm15, %v10514_v38, %v3649_v48  ;;  %v3221_v51 = vpop.f32.mrf.mxu3  ;;  %v8564_v48 = vld [vmem:[%s13215_s2 + $0x10] sm:$0x3f] }
0x122e   :  { %vm3637_vm4 = vmor %vm3635_vm8, %vm3636_vm7  ;;  %v3678_v8 = vmul.f32 %v10530_v61, %v3677_v41  ;;  %v3657_v32 = vor.u32 1.1754944e-38, %v3656_v43  ;;  %vm3655_vm1 = vcmp.eq.f32.partialorder %v3654_v31, 8.507059e+37  ;;  %v3642_v54 = vor.u32 1.1754944e-38, %v3641_v28 }
0x122f   :  { %v3638_v46 = vsel %vm3637_vm4, %v10519_v30, %v3634_v1  ;;  %v3661_v45 = vmul.f32 %v8236_v19, %v10550_v13  ;;  %vm3640_vm9 = vcmp.eq.f32.partialorder %v3639_v27, 8.507059e+37  ;;  %vm3681_vm2 = vweird.f32 %v10530_v61  ;;  %v8566_v1 = vld [vmem:[%s13215_s2 + $0x18] sm:$0x3f]  ;;  %v8567_v27 = vld [vmem:[%s13217_s4] ss:$0 sm:$0xff] }
0x1230   :  { %v3658_v0 = vsel %vm3655_vm1, %v3657_v32, %v3653_v6  ;;  %v3643_v39 = vsel %vm3640_vm9, %v3642_v54, %v3638_v46  ;;  %v3679_v49 = vadd.f32 %v10530_v61, %v3678_v8  ;;  %vm3680_vm3 = vweird.f32 %v10497_v63  ;;  %v8568_v54 = vld [vmem:[%s13215_s2 + $0x28] sm:$0x3f] }
0x1231   :  { %v3662_v38 = vsub.f32 1.0, %v3661_v45  ;;  %v3684_v42 = vand.u32 2147483647, %v10497_v63  ;;  %v3686_v25 = vand.u32 2147483648, %v10497_v63  ;;  %v3659_v30 = vmul.f32 %v10457_v15, %v3658_v0  ;;  %vm3682_vm7 = vmor %vm3680_vm3, %vm3681_vm2 }
0x1232   :  { %3707 = vperm.xlu2 %8120, %v3629_v20   ;;  %vm3666_vm5 = vweird.f32 %v8236_v19  ;;  %v3671_v60 = vand.u32 2147483648, %v10550_v13  ;;  %v3644_v23 = vmul.f32 %v10448_v34, %v3643_v39  ;;  %v3669_v62 = vand.u32 2147483647, %v10550_v13 }
0x1233   :  { %3692 = vperm.xlu1 %8119, %v3584_v47   ;;  %v3663_v44 = vmul.f32 %v8236_v19, %v3662_v38  ;;  %v3683_v52 = vsel %vm3682_vm7, %v10530_v61, %v3679_v49  ;;  %vm3665_vm6 = vweird.f32 %v10550_v13  ;;  %v3687_v35 = vor.u32 1.1754944e-38, %v3686_v25  ;;  %v3180_v13 = vpop.f32.mrf.mxu2  ;;  %v8569_v49 = vld [vmem:[%s13215_s2 + $0x38] sm:$0x3f] }
0x1234   :  { %vm3667_vm15 = vmor %vm3665_vm6, %vm3666_vm5  ;;  %vm3685_vm8 = vcmp.eq.f32.partialorder %v3684_v42, 8.507059e+37  ;;  %v3672_v63 = vor.u32 1.1754944e-38, %v3671_v60  ;;  %vm3670_vm4 = vcmp.eq.f32.partialorder %v3669_v62, 8.507059e+37  ;;  %v3181_v6 = vadd.f32 %v8567_v27, %v3180_v13 }
0x1235   :  { %v3664_v59 = vadd.f32 %v8236_v19, %v3663_v44  ;;  %v3688_v33 = vsel %vm3685_vm8, %v3687_v35, %v3683_v52  ;;  %v3278_v25 = vpop.f32.mrf.mxu3  ;;  %v8570_v44 = vld [vmem:[%s13215_s2] sm:$0x3f]  ;;  %vm13922_vm1 = vcmask 1046534   ;;  %vm13923_vm9 = vcmask 1047559  }
0x1236   :  { %v3689_v34 = vmul.f32 %v10455_v56, %v3688_v33  ;;  %v3222_v39 = vadd.f32 %v3221_v51, %v3181_v6  ;;  %vm13924_vm2 = vcmask 80896  }
0x1237   :  { %v3668_v15 = vsel %vm3667_vm15, %v8236_v19, %v3664_v59 }
0x1238   :  { %v3673_v7 = vsel %vm3670_vm4, %v3672_v63, %v3668_v15 }
0x1239   :  { %v3674_v16 = vmul.f32 %v10446_v24, %v3673_v7  ;;  %v8565_v24 = vld [vmem:[%s13215_s2 + $0x8] sm:$0x3f] }
0x123a   :  { %3717 = vperm.xlu2 %8120, %v3659_v30  }
0x123b   :  { %3712 = vperm.xlu1 %8119, %v3644_v23   ;;  %v3251_v31 = vpop.f32.mrf.mxu2 }
0x123c   :  { %v3252_v23 = vadd.f32 %v3251_v31, %v3222_v39 }
0x1242   :  { %3727 = vperm.xlu2 %8120, %v3689_v34  }
0x1243   :  { %3722 = vperm.xlu1 %8119, %v3674_v16   ;;  %v3311_v33 = vpop.f32.mrf.mxu2  ;;  %v3279_v16 = vadd.f32 %v3278_v25, %v3252_v23 }
0x1284   :  { %v10589_v58 = vpop.permute.xlu2 %3702 }
0x1285   :  { %13906 = vst [vmem:[#allocation111_spill] sm:$0xff] %v10589_v58  ;;  %v3732_v41 = vmul.f32 %v8564_v48, %v10589_v58 }
0x1287   :  { %v3752_v28 = vsel %vm1082_vm0, %v3732_v41, 0.0 }
0x1288   :  { %v3753_v32 = vrot.slane %v3752_v28, 4 }
0x128a   :  { %v3754_v62 = vadd.f32 %v3753_v32, %v3752_v28  ;;  %v8571_v28 = vld [vmem:[%s13215_s2 + $0x20] sm:$0x3f] }
0x128c   :  { %v10591_v61 = vpop.permute.xlu2 %3707  ;;  %v3755_v13 = vrot.slane %v3754_v62, 2 }
0x128d   :  { %13907 = vst [vmem:[#allocation112_spill] sm:$0xff] %v10591_v61  ;;  %v3733_v20 = vmul.f32 %v8566_v1, %v10591_v61 }
0x128e   :  { %v3756_v27 = vadd.f32 %v3755_v13, %v3754_v62 }
0x128f   :  { %v3759_v46 = vsel %vm1082_vm0, %v3733_v20, 0.0 }
0x1290   :  { %v3760_v30 = vrot.slane %v3759_v46, 4  ;;  %v3757_v25 = vrot.slane %v3756_v27, 1 }
0x1292   :  { %v3761_v7 = vadd.f32 %v3760_v30, %v3759_v46 }
0x1294   :  { %v10593_v18 = vpop.permute.xlu2 %3717  ;;  %v3762_v20 = vrot.slane %v3761_v7, 2 }
0x1295   :  { %13908 = vst [vmem:[#allocation113_spill] sm:$0xff] %v10593_v18  ;;  %v3735_v45 = vmul.f32 %v8568_v54, %v10593_v18 }
0x1296   :  { %v3763_v39 = vadd.f32 %v3762_v20, %v3761_v7  ;;  %v3758_v7 = vadd.f32 %v3757_v25, %v3756_v27 }
0x1297   :  { %v3773_v52 = vsel %vm1082_vm0, %v3735_v45, 0.0 }
0x1298   :  { %v3774_v34 = vrot.slane %v3773_v52, 4  ;;  %v3764_v62 = vrot.slane %v3763_v39, 1 }
0x129a   :  { %v3775_v31 = vadd.f32 %v3774_v34, %v3773_v52 }
0x129c   :  { %v10614_v19 = vpop.permute.xlu2 %3727 }
0x129d   :  { %v10599_v43 = vpop.permute.xlu1 %3697  ;;  %13910 = vst [vmem:[#allocation115_spill] sm:$0xff] %v10614_v19  ;;  %v3737_v38 = vmul.f32 %v8569_v49, %v10614_v19  ;;  %v3776_v49 = vrot.slane %v3775_v31, 2 }
0x129e   :  { %13909 = vst [vmem:[#allocation114_spill] sm:$0xff] %v10599_v43  ;;  %v3731_v56 = vmul.f32 %v8565_v24, %v10599_v43  ;;  %v3312_v24 = vadd.f32 %v3311_v33, %v3279_v16 }
0x129f   :  { %v3787_v15 = vsel %vm1082_vm0, %v3737_v38, 0.0 }
0x12a0   :  { %v3745_v47 = vsel %vm1082_vm0, %v3731_v56, 0.0  ;;  %v3788_v48 = vrot.slane %v3787_v15, 4 }
0x12a1   :  { %v3746_v8 = vrot.slane %v3745_v47, 4 }
0x12a2   :  { %v3789_v32 = vadd.f32 %v3788_v48, %v3787_v15  ;;  %v8572_v15 = vld [vmem:[%s13215_s2 + $0x30] sm:$0x3f] }
0x12a3   :  { %v3747_v0 = vadd.f32 %v3746_v8, %v3745_v47  ;;  %v3336_v8 = vpop.f32.mrf.mxu3 }
0x12a4   :  { %v3337_v45 = vadd.f32 %v3336_v8, %v3312_v24 }
0x12a5   :  { %v10625_v42 = vpop.permute.xlu1 %3692  ;;  %v3748_v59 = vrot.slane %v3747_v0, 2 }
0x12a6   :  { %13911 = vst [vmem:[#allocation116_spill] sm:$0xff] %v10625_v42  ;;  %v3730_v60 = vmul.f32 %v8570_v44, %v10625_v42  ;;  %v3790_v44 = vrot.slane %v3789_v32, 2  ;;  %v3795_v23 = vrot.slane %v3337_v45, 1  ;;  %v3796_v48 = vrot.slane %v3337_v45, 2 }
0x12a7   :  { %v3749_v41 = vadd.f32 %v3748_v59, %v3747_v0 }
0x12a8   :  { %v3738_v35 = vsel %vm1082_vm0, %v3730_v60, 0.0  ;;  %v3791_v16 = vadd.f32 %v3790_v44, %v3789_v32  ;;  %v3799_v44 = vrot.slane %v3337_v45, 5 }
0x12a9   :  { %v3739_v63 = vrot.slane %v3738_v35, 4  ;;  %v3750_v46 = vrot.slane %v3749_v41, 1 }
0x12aa   :  { %v3792_v27 = vrot.slane %v3791_v16, 1 }
0x12ab   :  { %v3740_v51 = vadd.f32 %v3739_v63, %v3738_v35  ;;  %v3751_v60 = vadd.f32 %v3750_v46, %v3749_v41  ;;  %v3777_v35 = vadd.f32 %v3776_v49, %v3775_v31  ;;  %v3797_v46 = vrot.slane %v3337_v45, 3 }
0x12ad   :  { %v3741_v56 = vrot.slane %v3740_v51, 2  ;;  %v10634_v1 = vpop.permute.xlu1 %3712  ;;  %v10647_v13 = vadd.f32 %v3795_v23, %v3751_v60  ;;  %v3778_v20 = vrot.slane %v3777_v35, 1  ;;  %v3793_v60 = vadd.f32 %v3792_v27, %v3791_v16 }
0x12ae   :  { %13912 = vst [vmem:[#allocation117_spill] sm:$0xff] %v10634_v1  ;;  %v3734_v47 = vmul.f32 %v8571_v28, %v10634_v1  ;;  %v10652_v28 = vadd.f32 %v3796_v48, %v3758_v7  ;;  %v3800_v7 = vrot.slane %v3337_v45, 6 }
0x12af   :  { %v3742_v6 = vadd.f32 %v3741_v56, %v3740_v51  ;;  %13914 = vst [vmem:[#allocation119_spill] sm:$0xff] %v10647_v13  ;;  %v3765_v56 = vadd.f32 %v3764_v62, %v3763_v39  ;;  %v3826_v32 = vrot.slane %v10647_v13, 7 }
0x12b0   :  { %v3766_v54 = vsel %vm1082_vm0, %v3734_v47, 0.0  ;;  %13916 = vst [vmem:[#allocation121_spill] sm:$0xff] %v10652_v28  ;;  %v3798_v47 = vrot.slane %v3337_v45, 4  ;;  %v3828_v25 = vrot.slane %v10652_v28, 6 }
0x12b1   :  { %v3767_v0 = vrot.slane %v3766_v54, 4  ;;  %v3743_v38 = vrot.slane %v3742_v6, 1  ;;  %v10657_v49 = vadd.f32 %v3797_v46, %v3765_v56 }
0x12b3   :  { %v3768_v30 = vadd.f32 %v3767_v0, %v3766_v54  ;;  %v3744_v63 = vadd.f32 %v3743_v38, %v3742_v6  ;;  %13918 = vst [vmem:[#allocation123_spill] sm:$0xff] %v10657_v49  ;;  %v3779_v38 = vadd.f32 %v3778_v20, %v3777_v35 }
0x12b5   :  { %v3769_v52 = vrot.slane %v3768_v30, 2  ;;  %v10641_v59 = vpop.permute.xlu1 %3722  ;;  %v10650_v31 = vadd.f32 %v3744_v63, %v3337_v45  ;;  %v10664_v63 = vadd.f32 %v3799_v44, %v3779_v38 }
0x12b6   :  { %13913 = vst [vmem:[#allocation118_spill] sm:$0xff] %v10641_v59  ;;  %v3736_v33 = vmul.f32 %v8572_v15, %v10641_v59  ;;  %v3801_v15 = vrot.slane %v3337_v45, 7 }
0x12b7   :  { %v3770_v34 = vadd.f32 %v3769_v52, %v3768_v30  ;;  %13915 = vst [vmem:[#allocation120_spill] sm:$0xff] %v10650_v31  ;;  %v3827_v39 = vsel %vm778_vm10, %v3826_v32, %v10650_v31 }
0x12b8   :  { %v3780_v51 = vsel %vm1082_vm0, %v3736_v33, 0.0  ;;  %v3829_v52 = vsel %vm780_vm11, %v3828_v25, %v3827_v39  ;;  %13919 = vst [vmem:[#allocation124_spill] sm:$0xff] %v10664_v63  ;;  %v3830_v33 = vrot.slane %v10657_v49, 5 }
0x12b9   :  { %v3771_v41 = vrot.slane %v3770_v34, 1  ;;  %v3781_v24 = vrot.slane %v3780_v51, 4 }
0x12bb   :  { %v3772_v6 = vadd.f32 %v3771_v41, %v3770_v34  ;;  %v3782_v8 = vadd.f32 %v3781_v24, %v3780_v51  ;;  %v10667_v34 = vadd.f32 %v3801_v15, %v3793_v60  ;;  %v3831_v51 = vsel %vm782_vm12, %v3830_v33, %v3829_v52 }
0x12bc   :  { %v3834_v41 = vrot.slane %v10664_v63, 3 }
0x12bd   :  { %v10655_v54 = vadd.f32 %v3798_v47, %v3772_v6  ;;  %v3783_v0 = vrot.slane %v3782_v8, 2  ;;  %13920 = vst [vmem:[#allocation125_spill] sm:$0xff] %v10667_v34  ;;  %v3838_v20 = vrot.slane %v10667_v34, 1 }
0x12bf   :  { %13917 = vst [vmem:[#allocation122_spill] sm:$0xff] %v10655_v54  ;;  %v3784_v30 = vadd.f32 %v3783_v0, %v3782_v8  ;;  %v3832_v62 = vrot.slane %v10655_v54, 4 }
0x12c1   :  { %v3785_v23 = vrot.slane %v3784_v30, 1  ;;  %v3833_v16 = vsel %vm784_vm13, %v3832_v62, %v3831_v51 }
0x12c2   :  { %v3835_v56 = vsel %vm786_vm14, %v3834_v41, %v3833_v16 }
0x12c3   :  { %v3786_v35 = vadd.f32 %v3785_v23, %v3784_v30 }
0x12c5   :  { %v10670_v48 = vadd.f32 %v3800_v7, %v3786_v35 }
0x12c7   :  { %13921 = vst [vmem:[#allocation126_spill] sm:$0xff] %v10670_v48  ;;  %v3836_v24 = vrot.slane %v10670_v48, 2 }
0x12c9   :  { %v3837_v47 = vsel %vm13922_vm1, %v3836_v24, %v3835_v56 }
0x12ca   :  { %v3839_v45 = vsel %vm13923_vm9, %v3838_v20, %v3837_v47  ;;  %vm13936_vm9 = vcmask 1046534  }
0x12cb   :  { %v3841_v6 = vsel %vm13924_vm2, %v3839_v45, -inf  ;;  %vm13937_vm2 = vcmask 1047559  }
0x12cc   :  { %3842 = vmax.xlane.f32.xlu1 %v3841_v6 }
0x133f   :  { %v10680_v8 = vpop.xlane.xlu1 %3842 }
0x1340   :  { %13925 = vst [vmem:[#allocation127_spill] sm:$0xff] %v10680_v8  ;;  %v13465_v46 = vrot.slane %v10680_v8, 1  ;;  %v13464_v27 = vrot.slane %v10680_v8, 2  ;;  %v13463_v32 = vrot.slane %v10680_v8, 3  ;;  %v13462_v0 = vrot.slane %v10680_v8, 4 }
0x1341   :  { %v13461_v38 = vrot.slane %v10680_v8, 5  ;;  %v13460_v39 = vrot.slane %v10680_v8, 6  ;;  %v13459_v25 = vrot.slane %v10680_v8, 7  ;;  %vm3987_vm15 = vcmp.eq.f32.partialorder %v10650_v31, %v10680_v8 }
0x1342   :  { %vm3988_vm3 = vcmp.eq.f32.partialorder %v10647_v13, %v13465_v46  ;;  %vm3989_vm5 = vcmp.eq.f32.partialorder %v10652_v28, %v13464_v27  ;;  %vm10698_vm7 = vcmp.eq.f32.partialorder %v10657_v49, %v13463_v32  ;;  %vm10705_vm6 = vcmp.eq.f32.partialorder %v10655_v54, %v13462_v0  ;;  %v13964_v0 = vld [vmem:[#allocation79_spill] sm:$0xff]  ;;  %v13965_v32 = vld [vmem:[#allocation50_spill] sm:$0xff]  ;;  %v13966_v27 = vld [vmem:[#allocation81_spill] sm:$0xff] }
0x1343   :  { %vm10714_vm8 = vcmp.eq.f32.partialorder %v10664_v63, %v13461_v38  ;;  %v3996_v23 = vsel %vm3988_vm3, %v8896_v36, 10  ;;  %vm10722_vm4 = vcmp.eq.f32.partialorder %v10670_v48, %v13460_v39  ;;  %v3997_v62 = vsel %vm3989_vm5, %v8896_v36, 10  ;;  %v13962_v39 = vld [vmem:[#allocation76_spill] sm:$0xff]  ;;  %v13963_v38 = vld [vmem:[#allocation47_spill] sm:$0xff]  ;;  %v13967_v46 = vld [vmem:[#allocation53_spill] sm:$0xff] }
0x1344   :  { %v3998_v15 = vsel %vm10698_vm7, %v8896_v36, 10  ;;  %vm10733_vm1 = vcmp.eq.f32.partialorder %v10667_v34, %v13459_v25  ;;  %v3999_v7 = vsel %vm10705_vm6, %v8896_v36, 10  ;;  %v4003_v35 = vrot.slane %v3996_v23, 7 }
0x1345   :  { %v4005_v51 = vrot.slane %v3997_v62, 6  ;;  %v3995_v16 = vsel %vm3987_vm15, %v8896_v36, 10  ;;  %v4000_v41 = vsel %vm10714_vm8, %v8896_v36, 10  ;;  %v4001_v24 = vsel %vm10722_vm4, %v8896_v36, 10 }
0x1346   :  { %v4004_v56 = vsel %vm778_vm10, %v4003_v35, %v3995_v16  ;;  %v4007_v20 = vrot.slane %v3998_v15, 5  ;;  %v4002_v47 = vsel %vm10733_vm1, %v8896_v36, 10  ;;  %v4009_v6 = vrot.slane %v3999_v7, 4 }
0x1347   :  { %v4006_v45 = vsel %vm780_vm11, %v4005_v51, %v4004_v56  ;;  %v4011_v44 = vrot.slane %v4000_v41, 3  ;;  %v4013_v23 = vrot.slane %v4001_v24, 2  ;;  %v4015_v52 = vrot.slane %v4002_v47, 1 }
0x1348   :  { %v4008_v30 = vsel %vm782_vm12, %v4007_v20, %v4006_v45  ;;  %vm13938_vm3 = vcmask 80896   ;;  %vm13940_vm6 = vcmp.eq.s32.totalorder %v8896_v36, 13  ;;  %vm13941_vm8 = vcmask 130048  }
0x1349   :  { %v4010_v60 = vsel %vm784_vm13, %v4009_v6, %v4008_v30  ;;  %vm13942_vm4 = vcmask 392192  }
0x134a   :  { %v4012_v62 = vsel %vm786_vm14, %v4011_v44, %v4010_v60 }
0x134b   :  { %v4014_v25 = vsel %vm13936_vm9, %v4013_v23, %v4012_v62 }
0x134c   :  { %v4016_v15 = vsel %vm13937_vm2, %v4015_v52, %v4014_v25 }
0x134d   :  { %v4017_v35 = vsel %vm13938_vm3, %v4016_v15, 2147483647 }
0x134e   :  { %v4019_v33 = vshra.s32 %v4017_v35, 16  ;;  %v4018_v51 = vand.u32 65535, %v4017_v35 }
0x1350   :  { %v4021_v16 = vcvt.s32.f32 %v4019_v33  ;;  %v4020_v56 = vcvt.s32.f32 %v4018_v51  ;;  %v13943_v33 = vld [vmem:[#allocation8_spill] sm:$0xff]  ;;  %v13945_v51 = vld [vmem:[#allocation9_spill] sm:$0xff] }
0x1352   :  { %4022 = vmin.xlane.f32.xlu2 %v4021_v16 }
0x13c5   :  { %v4023_v7 = vpop.xlane.xlu2 %4022 }
0x13c6   :  { %vm4024_vm5 = vcmp.eq.f32.partialorder %v4021_v16, %v4023_v7  ;;  %v4029_v20 = vcvt.f32.s32 %v4023_v7  ;;  %v13944_v16 = vld [vmem:[#allocation14_spill] sm:$0xff] }
0x13c7   :  { %v4025_v41 = vsel %vm4024_vm5, %v4020_v56, inf  ;;  %v13946_v7 = vld [vmem:[#allocation18_spill] sm:$0xff]  ;;  %vm13977_vm5 = vcmask 259072  }
0x13c8   :  { %4026 = vmin.xlane.f32.xlu0 %v4025_v41  ;;  %v4030_v45 = vshll.u32 %v4029_v20, 16  ;;  %v13947_v56 = vld [vmem:[#allocation10_spill] sm:$0xff]  ;;  %v13948_v41 = vld [vmem:[#allocation20_spill] sm:$0xff] }
0x13c9   :  { %v13950_v20 = vld [vmem:[#allocation26_spill] sm:$0xff] }
0x13dc   :  { %4093 = vrot.lane.b32.xlu0 %v10280_v26, %s8631_s18 }
0x143b   :  { %v4027_v24 = vpop.xlane.xlu0 %4026 }
0x143c   :  { %v4028_v47 = vcvt.f32.s32 %v4027_v24  ;;  %v13949_v24 = vld [vmem:[#allocation17_spill] sm:$0xff] }
0x143e   :  { %v10760_v6 = vadd.s32 %v4030_v45, %v4028_v47  ;;  %v13951_v47 = vld [vmem:[#allocation23_spill] sm:$0xff]  ;;  %v13952_v45 = vld [vmem:[#allocation28_spill] sm:$0xff] }
0x1440   :  { %13939 = vst [vmem:[#allocation128_spill] sm:$0xff] %v10760_v6  ;;  %vm13493_vm7 = vcmp.eq.s32.totalorder %v8896_v36, %v10760_v6  ;;  %v13968_v6 = vld [vmem:[#allocation82_spill] sm:$0xff] }
0x1441   :  { %vm4090_vm15 = vmor %vm13493_vm7, %vm13940_vm6 }
0x1442   :  { %v8100_v25 = vsel %vm4090_vm15, 1.0, %v13688_v12  ;;  %vm13978_vm6 = vmmov %vm13977_vm5 }
0x1443   :  { %vm13979_vm15 = vmmov %vm13977_vm5 }
0x144e   :  { %v4094_v30 = vpop.permute.xlu0 %4093 }
0x144f   :  { %v4096_v44 = vsel %vm13941_vm8, %v8100_v25, %v4094_v30  ;;  %v13953_v25 = vld [vmem:[#allocation27_spill] sm:$0xff]  ;;  %v13954_v30 = vld [vmem:[#allocation33_spill] sm:$0xff]  ;;  %vm13980_vm8 = vmmov %vm13977_vm5 }
0x1450   :  { %v4097_v60 = vsel %vm13942_vm4, %v4096_v44, 0.0  ;;  %v13955_v44 = vld [vmem:[#allocation31_spill] sm:$0xff]  ;;  %vm13981_vm4 = vmmov %vm13977_vm5 }
0x1451   :  { %v4130_v23 = vand.u32 4294901760, %v4097_v60 }
0x1453   :  { %v4131_v62 = vsub.f32 %v4097_v60, %v4130_v23  ;;  %4236 = vmatmul.f32.vlgmr.msra.gmra.mxu3 %v4130_v23  ;;  %v13956_v60 = vld [vmem:[#allocation39_spill] sm:$0xff] }
0x1454   :  { %5623 = vmatpush.msra.mxu3 %v8678_v3 }
0x1455   :  { %4290 = vmatmul.f32.vlgmr.msra.gmra.mxu0 %v4131_v62  ;;  %v4132_v52 = vand.u32 4294901760, %v4131_v62 }
0x1456   :  { %4566 = vmatpush.msra.mxu0 %v13691_v14  ;;  %5625 = vmatpush.msra.mxu3 %v8680_v4 }
0x1457   :  { %4329 = vmatmul.f32.vlgmr.msra.gmra.mxu1 %v4132_v52  ;;  %v4133_v15 = vsub.f32 %v4131_v62, %v4132_v52  ;;  %v13958_v62 = vld [vmem:[#allocation40_spill] sm:$0xff] }
0x1458   :  { %4595 = vmatpush.msra.mxu1 %v9147_v50  ;;  %4569 = vmatpush.msra.mxu0 %v13692_v37  ;;  %v13959_v52 = vld [vmem:[#allocation36_spill] sm:$0xff] }
0x1459   :  { %v4134_v35 = vand.u32 4294901760, %v4133_v15  ;;  %5627 = vmatpush.msra.mxu3 %v8682_v5  ;;  %v13960_v15 = vld [vmem:[#allocation45_spill] sm:$0xff] }
0x145a   :  { %4597 = vmatpush.msra.mxu1 %v9155_v55  ;;  %4572 = vmatpush.msra.mxu0 %v13693_v22 }
0x145b   :  { %4135 = vmatmul.f32.vlgmr.msra.gmra.mxu2 %v4134_v35  ;;  %4435 = vmatmul.f32.vlgmr.msrb.gmra.mxu3 %v4130_v23  ;;  %v13961_v35 = vld [vmem:[#allocation41_spill] sm:$0xff] }
0x145c   :  { %4599 = vmatpush.msra.mxu1 %v9168_v40  ;;  %4575 = vmatpush.msra.mxu0 %v13694_v21 }
0x145d   :  { %5570 = vmatpush.msra.mxu2 %v13695_v29  ;;  %5629 = vmatpush.msra.mxu3 %v8693_v9 }
0x145e   :  { %4601 = vmatpush.msra.mxu1 %v9185_v2 }
0x145f   :  { %5573 = vmatpush.msra.mxu2 %v13696_v53  ;;  %5631 = vmatpush.msra.mxu3 %v8695_v10 }
0x1461   :  { %5576 = vmatpush.msra.mxu2 %v13697_v57  ;;  %5633 = vmatpush.msra.mxu3 %v8697_v11 }
0x1463   :  { %4398 = vmatmul.f32.vlgmr.msrb.gmra.mxu2 %v4130_v23  ;;  %5635 = vmatpush.msra.mxu3 %v8715_v17  ;;  %v13957_v23 = vld [vmem:[#allocation35_spill] sm:$0xff] }
0x1464   :  { %5579 = vmatpush.msra.mxu2 %v13943_v33 }
0x1465   :  { %5637 = vmatpush.msra.mxu3 %v13944_v16 }
0x1466   :  { %5582 = vmatpush.msra.mxu2 %v13945_v51 }
0x1467   :  { %5639 = vmatpush.msra.mxu3 %v13946_v7 }
0x1468   :  { %5585 = vmatpush.msra.mxu2 %v13947_v56 }
0x1469   :  { %5641 = vmatpush.msra.mxu3 %v13948_v41 }
0x146a   :  { %5588 = vmatpush.msra.mxu2 %v13949_v24 }
0x146b   :  { %5643 = vmatpush.msra.mxu3 %v13950_v20 }
0x146c   :  { %5591 = vmatpush.msra.mxu2 %v13951_v47 }
0x146d   :  { %5645 = vmatpush.msra.mxu3 %v13952_v45 }
0x146e   :  { %5594 = vmatpush.msra.mxu2 %v13953_v25 }
0x146f   :  { %5647 = vmatpush.msra.mxu3 %v13954_v30 }
0x1470   :  { %5597 = vmatpush.msra.mxu2 %v13955_v44 }
0x1471   :  { %5649 = vmatpush.msra.mxu3 %v13956_v60 }
0x1472   :  { %5600 = vmatpush.msra.mxu2 %v13957_v23 }
0x1473   :  { %5651 = vmatpush.msra.mxu3 %v13958_v62 }
0x1474   :  { %5603 = vmatpush.msra.mxu2 %v13959_v52 }
0x1475   :  { %5653 = vmatpush.msra.mxu3 %v13960_v15 }
0x1476   :  { %5606 = vmatpush.msra.mxu2 %v13961_v35 }
0x1477   :  { %5856 = vmatpush.msrb.mxu3 %v13962_v39  ;;  %v13994_v39 = vld [vmem:[#allocation24_spill] sm:$0xff] }
0x1478   :  { %5609 = vmatpush.msra.mxu2 %v13963_v38  ;;  %v13993_v38 = vld [vmem:[#allocation77_spill] sm:$0xff] }
0x1479   :  { %5862 = vmatpush.msrb.mxu3 %v13964_v0  ;;  %v13991_v0 = vld [vmem:[#allocation74_spill] sm:$0xff] }
0x147a   :  { %5612 = vmatpush.msra.mxu2 %v13965_v32 }
0x147b   :  { %5868 = vmatpush.msrb.mxu3 %v13966_v27 }
0x147c   :  { %5615 = vmatpush.msra.mxu2 %v13967_v46 }
0x147d   :  { %5874 = vmatpush.msrb.mxu3 %v13968_v6 }
0x147e   :  { %5823 = vmatpush.msrb.mxu2 %v9147_v50 }
0x1480   :  { %5825 = vmatpush.msrb.mxu2 %v9155_v55 }
0x1482   :  { %5827 = vmatpush.msrb.mxu2 %v9168_v40 }
0x1484   :  { %5829 = vmatpush.msrb.mxu2 %v9185_v2 }
0x14d2   :  { %v4291_v61 = vpop.f32.mrf.mxu0 }
0x14d4   :  { %v4330_v58 = vpop.f32.mrf.mxu1 }
0x14d6   :  { %v4237_v19 = vpop.f32.mrf.mxu3 }
0x14de   :  { %v4136_v18 = vpop.f32.mrf.mxu2  ;;  %v4436_v48 = vpop.f32.mrf.mxu3 }
0x14df   :  { %v4238_v59 = vadd.f32 %v4237_v19, %v4136_v18 }
0x14e1   :  { %v4292_v1 = vadd.f32 %v4291_v61, %v4238_v59 }
0x14e3   :  { %v4331_v43 = vadd.f32 %v4330_v58, %v4292_v1 }
0x14e6   :  { %v4399_v42 = vpop.f32.mrf.mxu2 }
0x14e7   :  { %v4400_v34 = vadd.f32 %v4399_v42, %v4331_v43 }
0x14e9   :  { %v4437_v63 = vadd.f32 %v4436_v48, %v4400_v34 }
0x14eb   :  { %4459 = vrot.lane.b32.xlu0 %v4437_v63, %s8627_s0  ;;  %v8101_v54 = vmul.f32 -1.442695, %v4437_v63 }
0x14ed   :  { %8237 = vpow2.f32 %v8101_v54 }
0x14f3   :  { %v8238_v49 = vpop.eup %8237 }
0x14f4   :  { %v4442_v31 = vadd.f32 1.0, %v8238_v49 }
0x14f6   :  { %8239 = vrcp.f32 %v4442_v31  ;;  %v4454_v61 = vand.u32 2147483648, %v4442_v31  ;;  %vm4448_vm9 = vweird.f32 %v4442_v31  ;;  %v4452_v58 = vand.u32 2147483647, %v4442_v31 }
0x14f8   :  { %v4455_v19 = vor.u32 1.1754944e-38, %v4454_v61  ;;  %vm4453_vm3 = vcmp.eq.f32.partialorder %v4452_v58, 8.507059e+37  ;;  %v13969_v58 = vld [vmem:[#allocation62_spill] sm:$0xff] }
0x14fc   :  { %v8240_v28 = vpop.eup %8239 }
0x14fd   :  { %v4444_v13 = vmul.f32 %v8240_v28, %v4442_v31  ;;  %vm4449_vm1 = vweird.f32 %v8240_v28 }
0x14fe   :  { %vm4450_vm2 = vmor %vm4448_vm9, %vm4449_vm1 }
0x14ff   :  { %v4445_v8 = vsub.f32 1.0, %v4444_v13  ;;  %vm13982_vm1 = vmmov %vm13981_vm4 }
0x1500   :  { %vm13983_vm9 = vmmov %vm13982_vm1 }
0x1501   :  { %v4446_v6 = vmul.f32 %v8240_v28, %v4445_v8 }
0x1503   :  { %v4447_v18 = vadd.f32 %v8240_v28, %v4446_v6 }
0x1505   :  { %v4451_v43 = vsel %vm4450_vm2, %v8240_v28, %v4447_v18  ;;  %vm13984_vm2 = vmmov %vm13982_vm1 }
0x1506   :  { %v4456_v1 = vsel %vm4453_vm3, %v4455_v19, %v4451_v43  ;;  %vm13985_vm3 = vcmask 261120  }
0x1507   :  { %v4469_v13 = vsub.f32 1.0, %v4456_v1  ;;  %v4475_v8 = vmul.f32 %v4456_v1, %v10280_v26  ;;  %v13971_v26 = vld [vmem:[#allocation63_spill] sm:$0xff] }
0x155d   :  { %v4460_v42 = vpop.permute.xlu0 %4459 }
0x155e   :  { %v4462_v59 = vmul.f32 %v4460_v42, %v4456_v1 }
0x1560   :  { %4464 = vrot.lane.b32.xlu1 %v4462_v59, %s8628_s25  ;;  %v13970_v59 = vld [vmem:[#allocation66_spill] sm:$0xff] }
0x15d2   :  { %v4465_v54 = vpop.permute.xlu1 %4464 }
0x15d3   :  { %v4467_v49 = vadd.f32 %v4465_v54, %v4437_v63 }
0x15d5   :  { %8241 = vtanh.f32 %v4467_v49 }
0x15db   :  { %v8242_v34 = vpop.eup %8241 }
0x15dc   :  { %4471 = vrot.lane.b32.xlu0 %v8242_v34, %s8629_s13 }
0x164e   :  { %v4472_v48 = vpop.permute.xlu0 %4471 }
0x164f   :  { %v4474_v31 = vmul.f32 %v4472_v48, %v4469_v13 }
0x1651   :  { %v10824_v6 = vadd.f32 %v4475_v8, %v4474_v31  ;;  %v13972_v31 = vld [vmem:[#allocation68_spill] sm:$0xff] }
0x1653   :  { %v4674_v28 = vperm.slane %v10824_v6, 0  ;;  %v4669_v18 = vrot.slane %v10824_v6, 3  ;;  %v4667_v61 = vrot.slane %v10824_v6, 1  ;;  %v4671_v42 = vrot.slane %v10824_v6, 5 }
0x1654   :  { %v4672_v49 = vrot.slane %v10824_v6, 6  ;;  %v4668_v34 = vrot.slane %v10824_v6, 2 }
0x1655   :  { %v4690_v43 = vmul.f32 %v4674_v28, %v13969_v58  ;;  %v4677_v63 = vperm.slane %v4669_v18, 0  ;;  %v4675_v19 = vperm.slane %v4667_v61, 0  ;;  %v4679_v13 = vperm.slane %v4671_v42, 0  ;;  %v13973_v18 = vld [vmem:[#allocation69_spill] sm:$0xff] }
0x1656   :  { %v4680_v48 = vperm.slane %v4672_v49, 0  ;;  %v4676_v8 = vperm.slane %v4668_v34, 0  ;;  %v4673_v42 = vrot.slane %v10824_v6, 7  ;;  %v13976_v34 = vld [vmem:[#allocation70_spill] sm:$0xff] }
0x1657   :  { %4706 = vrot.lane.b32.xlu2 %v4690_v43, %s8629_s13  ;;  %v4693_v54 = vmul.f32 %v4677_v63, %v13970_v59  ;;  %v4691_v1 = vmul.f32 %v4675_v19, %v13971_v26  ;;  %v4695_v28 = vmul.f32 %v4679_v13, %v13972_v31  ;;  %v13974_v43 = vld [vmem:[#allocation65_spill] sm:$0xff]  ;;  %v4670_v19 = vrot.slane %v10824_v6, 4  ;;  %v13975_v59 = vld [vmem:[#allocation67_spill] sm:$0xff] }
0x1658   :  { %v4696_v61 = vmul.f32 %v4680_v48, %v13973_v18  ;;  %v4692_v63 = vmul.f32 %v4676_v8, %v13974_v43  ;;  %v4681_v49 = vperm.slane %v4673_v42, 0 }
0x1659   :  { %4712 = vrot.lane.b32.xlu1 %v4693_v54, %s8629_s13  ;;  %4708 = vrot.lane.b32.xlu0 %v4691_v1, %s8629_s13  ;;  %v4678_v54 = vperm.slane %v4670_v19, 0 }
0x165a   :  { %v4697_v13 = vmul.f32 %v4681_v49, %v13976_v34 }
0x165b   :  { %v4694_v1 = vmul.f32 %v4678_v54, %v13975_v59 }
0x165f   :  { %4716 = vrot.lane.b32.xlu2 %v4695_v28, %s8629_s13 }
0x1661   :  { %4718 = vrot.lane.b32.xlu1 %v4696_v61, %s8629_s13  ;;  %4710 = vrot.lane.b32.xlu0 %v4692_v63, %s8629_s13 }
0x1669   :  { %4714 = vrot.lane.b32.xlu0 %v4694_v1, %s8629_s13 }
0x1671   :  { %4720 = vrot.lane.b32.xlu0 %v4697_v13, %s8629_s13 }
0x16b1   :  { %v4707_v48 = vpop.permute.xlu2 %4706 }
0x16b2   :  { %v4730_v8 = vsel %vm13977_vm5, %v4707_v48, 0.0  ;;  %vm13986_vm5 = vcmask 1046534  }
0x16b3   :  { %4731 = vadd.xlane.f32.xlu2 %v4730_v8 }
0x16b9   :  { %v4717_v49 = vpop.permute.xlu2 %4716 }
0x16ba   :  { %v4745_v48 = vsel %vm13982_vm1, %v4717_v49, 0.0 }
0x16cb   :  { %v4713_v28 = vpop.permute.xlu1 %4712  ;;  %v4709_v61 = vpop.permute.xlu0 %4708 }
0x16cc   :  { %v4739_v63 = vsel %vm13978_vm6, %v4713_v28, 0.0  ;;  %v4733_v19 = vsel %vm13979_vm15, %v4709_v61, 0.0  ;;  %vm13987_vm6 = vcmask 1047559   ;;  %vm13990_vm15 = vcmask 48128  }
0x16cd   :  { %4740 = vadd.xlane.f32.xlu2 %v4739_v63  ;;  %4734 = vadd.xlane.f32.xlu1 %v4733_v19  ;;  %vm14027_vm1 = vmmov %vm13990_vm15 }
0x16d3   :  { %v4719_v54 = vpop.permute.xlu1 %4718  ;;  %v4711_v18 = vpop.permute.xlu0 %4710 }
0x16d4   :  { %v4748_v1 = vsel %vm13980_vm8, %v4719_v54, 0.0  ;;  %v4736_v42 = vsel %vm13981_vm4, %v4711_v18, 0.0  ;;  %vm14025_vm8 = vmmov %vm13986_vm5 }
0x16d5   :  { %4749 = vadd.xlane.f32.xlu2 %v4748_v1  ;;  %4737 = vadd.xlane.f32.xlu0 %v4736_v42  ;;  %vm14026_vm4 = vmmov %vm13987_vm6 }
0x16db   :  { %v4715_v13 = vpop.permute.xlu0 %4714 }
0x16dc   :  { %v4742_v8 = vsel %vm13983_vm9, %v4715_v13, 0.0 }
0x16dd   :  { %4746 = vadd.xlane.f32.xlu0 %v4745_v48  ;;  %4743 = vadd.xlane.f32.xlu1 %v4742_v8 }
0x16e3   :  { %v4721_v28 = vpop.permute.xlu0 %4720 }
0x16e4   :  { %v4751_v61 = vsel %vm13984_vm2, %v4721_v28, 0.0 }
0x16e5   :  { %4752 = vadd.xlane.f32.xlu1 %v4751_v61 }
0x16ed   :  { %4478 = vrot.lane.b32.xlu2 %v10824_v6, %s8629_s13 }
0x1726   :  { %v4732_v63 = vpop.xlane.xlu2 %4731 }
0x1727   :  { %v10864_v49 = vmul.f32 0.17677669, %v4732_v63 }
0x1729   :  { %v4770_v8 = vperm.slane %v10864_v49, %v8896_v36 }
0x1740   :  { %v4741_v19 = vpop.xlane.xlu2 %4740  ;;  %v4735_v18 = vpop.xlane.xlu1 %4734 }
0x1741   :  { %v10860_v42 = vmul.f32 0.17677669, %v4735_v18  ;;  %v10872_v28 = vmul.f32 0.17677669, %v4741_v19 }
0x1743   :  { %v4771_v13 = vperm.slane %v10860_v42, %v8896_v36  ;;  %v4773_v46 = vperm.slane %v10872_v28, %v8896_v36 }
0x1745   :  { %v4778_v18 = vsel %vm778_vm10, %v4771_v13, %v4770_v8 }
0x1748   :  { %v4750_v54 = vpop.xlane.xlu2 %4749  ;;  %v4738_v1 = vpop.xlane.xlu0 %4737 }
0x1749   :  { %v10862_v34 = vmul.f32 0.17677669, %v4738_v1  ;;  %v10889_v8 = vmul.f32 0.17677669, %v4750_v54 }
0x174b   :  { %v4772_v48 = vperm.slane %v10862_v34, %v8896_v36 }
0x174d   :  { %v4779_v43 = vsel %vm780_vm11, %v4772_v48, %v4778_v18 }
0x174e   :  { %v4780_v13 = vsel %vm782_vm12, %v4773_v46, %v4779_v43  ;;  %v4776_v46 = vperm.slane %v10889_v8, %v8896_v36 }
0x1750   :  { %v4479_v61 = vpop.permute.xlu2 %4478  ;;  %v4744_v59 = vpop.xlane.xlu1 %4743 }
0x1751   :  { %v4480_v1 = vsel %vm13985_vm3, %v4479_v61, 0  ;;  %v10876_v26 = vmul.f32 0.17677669, %v4744_v59  ;;  %v4747_v63 = vpop.xlane.xlu0 %4746 }
0x1752   :  { %v4502_v31 = vand.u32 4294901760, %v4480_v1  ;;  %v10879_v58 = vmul.f32 0.17677669, %v4747_v63 }
0x1753   :  { %v4774_v19 = vperm.slane %v10876_v26, %v8896_v36 }
0x1754   :  { %v4503_v27 = vsub.f32 %v4480_v1, %v4502_v31  ;;  %4548 = vmatmul.f32.vlgmr.msrb.gmra.mxu1 %v4502_v31  ;;  %v4775_v59 = vperm.slane %v10879_v58, %v8896_v36 }
0x1755   :  { %4655 = vmatpush.msrb.mxu1 %v9147_v50  ;;  %v4781_v61 = vsel %vm784_vm13, %v4774_v19, %v4780_v13 }
0x1756   :  { %v4504_v48 = vand.u32 4294901760, %v4503_v27  ;;  %v4782_v32 = vsel %vm786_vm14, %v4775_v59, %v4781_v61  ;;  %v13988_v59 = vld [vmem:[#allocation72_spill] sm:$0xff]  ;;  %v13989_v61 = vld [vmem:[#allocation21_spill] sm:$0xff] }
0x1757   :  { %4657 = vmatpush.msrb.mxu1 %v9155_v55  ;;  %v4783_v19 = vsel %vm13986_vm5, %v4776_v46, %v4782_v32  ;;  %v13996_v32 = vld [vmem:[#allocation29_spill] sm:$0xff]  ;;  %v13997_v46 = vld [vmem:[#allocation34_spill] sm:$0xff] }
0x1758   :  { %v4505_v18 = vsub.f32 %v4503_v27, %v4504_v48  ;;  %v4753_v63 = vpop.xlane.xlu1 %4752 }
0x1759   :  { %v10894_v1 = vmul.f32 0.17677669, %v4753_v63  ;;  %4659 = vmatpush.msrb.mxu1 %v9168_v40 }
0x175a   :  { %v4506_v43 = vand.u32 4294901760, %v4505_v18  ;;  %v13992_v18 = vld [vmem:[#allocation22_spill] sm:$0xff] }
0x175b   :  { %v4777_v54 = vperm.slane %v10894_v1, %v8896_v36  ;;  %4661 = vmatpush.msrb.mxu1 %v9185_v2 }
0x175c   :  { %4507 = vmatmul.f32.vlgmr.msrb.gmra.mxu0 %v4506_v43  ;;  %4605 = vmatmul.f32.vlgmr.msra.gmra.mxu1 %v4504_v48  ;;  %v13995_v48 = vld [vmem:[#allocation80_spill] sm:$0xff]  ;;  %v13998_v43 = vld [vmem:[#allocation37_spill] sm:$0xff] }
0x175d   :  { %v4784_v13 = vsel %vm13987_vm6, %v4777_v54, %v4783_v19  ;;  %4624 = vmatpush.msrb.mxu0 %v13988_v59  ;;  %5472 = vmatpush.msra.mxu1 %v13989_v61  ;;  %v13999_v54 = vld [vmem:[#allocation42_spill] sm:$0xff] }
0x175e   :  { %v4786_v63 = vsel %vm13990_vm15, %v4784_v13, -inf  ;;  %v14000_v19 = vld [vmem:[#allocation46_spill] sm:$0xff]  ;;  %v14002_v13 = vld [vmem:[#allocation51_spill] sm:$0xff] }
0x175f   :  { %4787 = vmax.xlane.f32.xlu0 %v4786_v63  ;;  %4628 = vmatpush.msrb.mxu0 %v13991_v0  ;;  %v14003_v63 = vld [vmem:[#allocation54_spill] sm:$0xff] }
0x1760   :  { %5478 = vmatpush.msra.mxu1 %v13992_v18 }
0x1761   :  { %4632 = vmatpush.msrb.mxu0 %v13993_v38 }
0x1762   :  { %5484 = vmatpush.msra.mxu1 %v13994_v39 }
0x1763   :  { %4636 = vmatpush.msrb.mxu0 %v13995_v48 }
0x1764   :  { %4578 = vmatmul.f32.vlgmr.msra.gmra.mxu0 %v4503_v27  ;;  %4663 = vmatmul.f32.vlgmr.msrb.gmra.mxu1 %v4502_v31  ;;  %v14001_v27 = vld [vmem:[#allocation48_spill] sm:$0xff] }
0x1765   :  { %5490 = vmatpush.msra.mxu1 %v13996_v32  ;;  %5427 = vmatpush.msra.mxu0 %v8678_v3 }
0x1767   :  { %5496 = vmatpush.msra.mxu1 %v13997_v46  ;;  %5429 = vmatpush.msra.mxu0 %v8680_v4 }
0x1769   :  { %5502 = vmatpush.msra.mxu1 %v13998_v43  ;;  %5431 = vmatpush.msra.mxu0 %v8682_v5  ;;  %v14023_v43 = vld [vmem:[#allocation55_spill] sm:$0xff] }
0x176b   :  { %5508 = vmatpush.msra.mxu1 %v13999_v54  ;;  %5433 = vmatpush.msra.mxu0 %v8693_v9  ;;  %v14004_v54 = vld [vmem:[#allocation56_spill] sm:$0xff] }
0x176c   :  { %4638 = vmatmul.f32.vlgmr.msrb.gmra.mxu0 %v4502_v31  ;;  %v14005_v31 = vld [vmem:[#allocation58_spill] sm:$0xff] }
0x176d   :  { %5514 = vmatpush.msra.mxu1 %v14000_v19  ;;  %5435 = vmatpush.msra.mxu0 %v8695_v10  ;;  %v14006_v19 = vld [vmem:[#allocation59_spill] sm:$0xff] }
0x176f   :  { %5520 = vmatpush.msra.mxu1 %v14001_v27  ;;  %5437 = vmatpush.msra.mxu0 %v8697_v11  ;;  %v14007_v27 = vld [vmem:[#allocation60_spill] sm:$0xff] }
0x1771   :  { %5526 = vmatpush.msra.mxu1 %v14002_v13  ;;  %5439 = vmatpush.msra.mxu0 %v8715_v17  ;;  %v14008_v13 = vld [vmem:[#allocation61_spill] sm:$0xff] }
0x1773   :  { %5532 = vmatpush.msra.mxu1 %v14003_v63  ;;  %5441 = vmatpush.msra.mxu0 %v13944_v16  ;;  %v14014_v63 = vld [vmem:[#allocation19_spill] sm:$0xff] }
0x1775   :  { %5538 = vmatpush.msra.mxu1 %v14004_v54  ;;  %5443 = vmatpush.msra.mxu0 %v13946_v7  ;;  %v14013_v54 = vld [vmem:[#allocation16_spill] sm:$0xff] }
0x1777   :  { %5544 = vmatpush.msra.mxu1 %v14005_v31  ;;  %5445 = vmatpush.msra.mxu0 %v13948_v41  ;;  %v14012_v31 = vld [vmem:[#allocation15_spill] sm:$0xff] }
0x1779   :  { %5550 = vmatpush.msra.mxu1 %v14006_v19  ;;  %5447 = vmatpush.msra.mxu0 %v13950_v20  ;;  %v14011_v19 = vld [vmem:[#allocation13_spill] sm:$0xff] }
0x177b   :  { %5556 = vmatpush.msra.mxu1 %v14007_v27  ;;  %5449 = vmatpush.msra.mxu0 %v13952_v45  ;;  %v14009_v27 = vld [vmem:[#allocation11_spill] sm:$0xff] }
0x177d   :  { %5562 = vmatpush.msra.mxu1 %v14008_v13  ;;  %5451 = vmatpush.msra.mxu0 %v13954_v30  ;;  %v14010_v13 = vld [vmem:[#allocation12_spill] sm:$0xff] }
0x177f   :  { %5731 = vmatpush.msrb.mxu1 %v8678_v3  ;;  %5453 = vmatpush.msra.mxu0 %v13956_v60 }
0x1781   :  { %5733 = vmatpush.msrb.mxu1 %v8680_v4  ;;  %5455 = vmatpush.msra.mxu0 %v13958_v62 }
0x1783   :  { %5735 = vmatpush.msrb.mxu1 %v8682_v5  ;;  %5457 = vmatpush.msra.mxu0 %v13960_v15 }
0x1785   :  { %5737 = vmatpush.msrb.mxu1 %v8693_v9  ;;  %5664 = vmatpush.msrb.mxu0 %v14009_v27  ;;  %v14015_v27 = vld [vmem:[#allocation25_spill] sm:$0xff] }
0x1787   :  { %5739 = vmatpush.msrb.mxu1 %v8695_v10  ;;  %5668 = vmatpush.msrb.mxu0 %v14010_v13  ;;  %v14016_v13 = vld [vmem:[#allocation30_spill] sm:$0xff] }
0x1789   :  { %5741 = vmatpush.msrb.mxu1 %v8697_v11  ;;  %5672 = vmatpush.msrb.mxu0 %v14011_v19  ;;  %v14017_v19 = vld [vmem:[#allocation32_spill] sm:$0xff] }
0x178b   :  { %5743 = vmatpush.msrb.mxu1 %v8715_v17  ;;  %5676 = vmatpush.msrb.mxu0 %v14012_v31  ;;  %v14018_v31 = vld [vmem:[#allocation38_spill] sm:$0xff] }
0x178d   :  { %5745 = vmatpush.msrb.mxu1 %v13944_v16  ;;  %5680 = vmatpush.msrb.mxu0 %v14013_v54  ;;  %v14019_v54 = vld [vmem:[#allocation43_spill] sm:$0xff] }
0x178f   :  { %5747 = vmatpush.msrb.mxu1 %v13946_v7  ;;  %5684 = vmatpush.msrb.mxu0 %v14014_v63  ;;  %v14020_v63 = vld [vmem:[#allocation44_spill] sm:$0xff] }
0x1791   :  { %5749 = vmatpush.msrb.mxu1 %v13948_v41  ;;  %5688 = vmatpush.msrb.mxu0 %v14015_v27  ;;  %v14021_v27 = vld [vmem:[#allocation49_spill] sm:$0xff] }
0x1793   :  { %5751 = vmatpush.msrb.mxu1 %v13950_v20  ;;  %5692 = vmatpush.msrb.mxu0 %v14016_v13  ;;  %v14022_v13 = vld [vmem:[#allocation52_spill] sm:$0xff] }
0x1795   :  { %5753 = vmatpush.msrb.mxu1 %v13952_v45  ;;  %5696 = vmatpush.msrb.mxu0 %v14017_v19  ;;  %v14024_v19 = vld [vmem:[#allocation57_spill] sm:$0xff] }
0x1797   :  { %5755 = vmatpush.msrb.mxu1 %v13954_v30  ;;  %5700 = vmatpush.msrb.mxu0 %v14018_v31 }
0x1799   :  { %5757 = vmatpush.msrb.mxu1 %v13956_v60  ;;  %5704 = vmatpush.msrb.mxu0 %v14019_v54 }
0x179b   :  { %5759 = vmatpush.msrb.mxu1 %v13958_v62  ;;  %5708 = vmatpush.msrb.mxu0 %v14020_v63 }
0x179d   :  { %5761 = vmatpush.msrb.mxu1 %v13960_v15  ;;  %5712 = vmatpush.msrb.mxu0 %v14021_v27 }
0x179f   :  { %5716 = vmatpush.msrb.mxu0 %v14022_v13 }
0x17a1   :  { %5720 = vmatpush.msrb.mxu0 %v14023_v43 }
0x17a3   :  { %5724 = vmatpush.msrb.mxu0 %v14024_v19 }
0x17d2   :  { %v4788_v46 = vpop.xlane.xlu0 %4787 }
0x17d3   :  { %v4790_v31 = vperm.slane %v4788_v46, 0  ;;  %v4791_v32 = vperm.slane %v4788_v46, 1  ;;  %v4792_v48 = vperm.slane %v4788_v46, 2  ;;  %v4794_v39 = vperm.slane %v4788_v46, 4 }
0x17d4   :  { %v4793_v18 = vperm.slane %v4788_v46, 3  ;;  %v4795_v0 = vperm.slane %v4788_v46, 5  ;;  %v4797_v35 = vperm.slane %v4788_v46, 7 }
0x17d5   :  { %v4806_v54 = vsub.f32 %v10864_v49, %v4790_v31  ;;  %v4807_v38 = vsub.f32 %v10860_v42, %v4791_v32  ;;  %v4808_v63 = vsub.f32 %v10862_v34, %v4792_v48  ;;  %v4810_v43 = vsub.f32 %v10876_v26, %v4794_v39 }
0x17d6   :  { %v4809_v19 = vsub.f32 %v10872_v28, %v4793_v18  ;;  %v4811_v59 = vsub.f32 %v10879_v58, %v4795_v0  ;;  %v4796_v31 = vperm.slane %v4788_v46, 6  ;;  %v4813_v39 = vsub.f32 %v10894_v1, %v4797_v35 }
0x17d7   :  { %v4814_v27 = vmul.f32 1.442695, %v4806_v54  ;;  %v4816_v61 = vmul.f32 1.442695, %v4807_v38  ;;  %v4818_v13 = vmul.f32 1.442695, %v4808_v63 }
0x17d8   :  { %v4822_v49 = vmul.f32 1.442695, %v4810_v43  ;;  %v4820_v42 = vmul.f32 1.442695, %v4809_v19  ;;  %v4824_v34 = vmul.f32 1.442695, %v4811_v59  ;;  %v4812_v0 = vsub.f32 %v10889_v8, %v4796_v31 }
0x17d9   :  { %8243 = vpow2.f32 %v4814_v27  ;;  %v4828_v58 = vmul.f32 1.442695, %v4813_v39 }
0x17da   :  { %8245 = vpow2.f32 %v4816_v61  ;;  %v4826_v26 = vmul.f32 1.442695, %v4812_v0 }
0x17db   :  { %8247 = vpow2.f32 %v4818_v13 }
0x17dc   :  { %8249 = vpow2.f32 %v4822_v49 }
0x17dd   :  { %8251 = vpow2.f32 %v4820_v42 }
0x17de   :  { %8253 = vpow2.f32 %v4824_v34 }
0x17df   :  { %v10979_v32 = vpop.eup %8243  ;;  %8255 = vpow2.f32 %v4828_v58 }
0x17e0   :  { %v10981_v48 = vpop.eup %8245  ;;  %4839 = vperm.xlu1 %8119, %v10979_v32   ;;  %8257 = vpow2.f32 %v4826_v26 }
0x17e1   :  { %v10984_v38 = vpop.eup %8247  ;;  %4842 = vperm.xlu0 %8121, %v10981_v48  }
0x17e2   :  { %4845 = vperm.xlu2 %8120, %v10984_v38   ;;  %v10990_v28 = vpop.eup %8249 }
0x17e3   :  { %v10992_v59 = vpop.eup %8251 }
0x17e4   :  { %v10995_v61 = vpop.eup %8253 }
0x17e5   :  { %v10999_v35 = vpop.eup %8255 }
0x17e6   :  { %v11001_v8 = vpop.eup %8257 }
0x17e8   :  { %4851 = vperm.xlu1 %8119, %v10990_v28  }
0x17e9   :  { %4848 = vperm.xlu0 %8121, %v10992_v59  }
0x17ea   :  { %4854 = vperm.xlu2 %8120, %v10995_v61  }
0x17f0   :  { %4860 = vperm.xlu1 %8119, %v10999_v35  }
0x17f1   :  { %4857 = vperm.xlu0 %8121, %v11001_v8  }
0x183c   :  { %v4846_v46 = vpop.permute.xlu2 %4845 }
0x183d   :  { %v4864_v63 = vperm.slane %v4846_v46, %v8896_v36 }
0x1844   :  { %v4855_v39 = vpop.permute.xlu2 %4854 }
0x1845   :  { %v4867_v26 = vperm.slane %v4855_v39, %v8896_v36 }
0x1852   :  { %v4840_v1 = vpop.permute.xlu1 %4839 }
0x1853   :  { %v4843_v18 = vpop.permute.xlu0 %4842  ;;  %v4862_v54 = vperm.slane %v4840_v1, %v8896_v36 }
0x1854   :  { %v4863_v43 = vperm.slane %v4843_v18, %v8896_v36 }
0x1856   :  { %v4870_v27 = vsel %vm778_vm10, %v4863_v43, %v4862_v54 }
0x1857   :  { %v4871_v31 = vsel %vm780_vm11, %v4864_v63, %v4870_v27 }
0x185a   :  { %v4852_v19 = vpop.permute.xlu1 %4851 }
0x185b   :  { %v4849_v13 = vpop.permute.xlu0 %4848  ;;  %v4866_v42 = vperm.slane %v4852_v19, %v8896_v36 }
0x185c   :  { %v4865_v49 = vperm.slane %v4849_v13, %v8896_v36 }
0x185e   :  { %v4872_v34 = vsel %vm782_vm12, %v4865_v49, %v4871_v31 }
0x185f   :  { %v4873_v0 = vsel %vm784_vm13, %v4866_v42, %v4872_v34 }
0x1860   :  { %v4874_v46 = vsel %vm786_vm14, %v4867_v26, %v4873_v0 }
0x1862   :  { %v4861_v58 = vpop.permute.xlu1 %4860 }
0x1863   :  { %v4858_v1 = vpop.permute.xlu0 %4857  ;;  %v4869_v18 = vperm.slane %v4861_v58, %v8896_v36 }
0x1864   :  { %v4868_v43 = vperm.slane %v4858_v1, %v8896_v36 }
0x1866   :  { %v4875_v54 = vsel %vm14025_vm8, %v4868_v43, %v4874_v46 }
0x1867   :  { %v4876_v27 = vsel %vm14026_vm4, %v4869_v18, %v4875_v54 }
0x1868   :  { %v4878_v19 = vsel %vm14027_vm1, %v4876_v27, 0.0 }
0x1869   :  { %4879 = vadd.xlane.f32.xlu2 %v4878_v19 }
0x18dc   :  { %v4880_v13 = vpop.xlane.xlu2 %4879 }
0x18dd   :  { %v11021_v63 = vperm.slane %v4880_v13, 0  ;;  %v4883_v49 = vperm.slane %v4880_v13, 1  ;;  %v4884_v31 = vperm.slane %v4880_v13, 2  ;;  %v11023_v42 = vperm.slane %v4880_v13, 3 }
0x18de   :  { %v11025_v34 = vperm.slane %v4880_v13, 4  ;;  %v11028_v39 = vperm.slane %v4880_v13, 5  ;;  %v11035_v1 = vperm.slane %v4880_v13, 7  ;;  %v11039_v54 = vperm.slane %v4880_v13, 6 }
0x18df   :  { %8259 = vrcp.f32 %v11021_v63  ;;  %v4937_v58 = vand.u32 2147483647, %v4884_v31  ;;  %v4939_v18 = vand.u32 2147483648, %v4884_v31  ;;  %vm4933_vm9 = vweird.f32 %v4884_v31 }
0x18e0   :  { %8261 = vrcp.f32 %v4883_v49  ;;  %vm4918_vm2 = vweird.f32 %v4883_v49  ;;  %v4922_v52 = vand.u32 2147483647, %v4883_v49  ;;  %v4924_v30 = vand.u32 2147483648, %v4883_v49 }
0x18e1   :  { %8263 = vrcp.f32 %v4884_v31  ;;  %vm11045_vm3 = vcmp.eq.f32.partialorder %v4937_v58, 8.507059e+37  ;;  %v4940_v47 = vor.u32 1.1754944e-38, %v4939_v18 }
0x18e2   :  { %8265 = vrcp.f32 %v11023_v42  ;;  %vm11057_vm15 = vcmp.eq.f32.partialorder %v4922_v52, 8.507059e+37  ;;  %v4925_v18 = vor.u32 1.1754944e-38, %v4924_v30 }
0x18e3   :  { %8267 = vrcp.f32 %v11025_v34 }
0x18e4   :  { %8269 = vrcp.f32 %v11028_v39 }
0x18e5   :  { %v11033_v0 = vpop.eup %8259  ;;  %8271 = vrcp.f32 %v11035_v1 }
0x18e6   :  { %v8262_v26 = vpop.eup %8261  ;;  %v4899_v43 = vmul.f32 %v11033_v0, %v11021_v63  ;;  %8273 = vrcp.f32 %v11039_v54  ;;  %vm4904_vm4 = vweird.f32 %v11033_v0 }
0x18e7   :  { %v8264_v46 = vpop.eup %8263  ;;  %v4914_v27 = vmul.f32 %v8262_v26, %v4883_v49  ;;  %vm4919_vm5 = vweird.f32 %v8262_v26 }
0x18e8   :  { %v11041_v19 = vpop.eup %8265  ;;  %v4929_v15 = vmul.f32 %v8264_v46, %v4884_v31  ;;  %v4900_v62 = vsub.f32 1.0, %v4899_v43  ;;  %vm4934_vm6 = vweird.f32 %v8264_v46  ;;  %vm4920_vm8 = vmor %vm4918_vm2, %vm4919_vm5  ;;  %vm4948_vm2 = vweird.f32 %v11023_v42 }
0x18e9   :  { %v11043_v23 = vpop.eup %8267  ;;  %v4915_v44 = vsub.f32 1.0, %v4914_v27  ;;  %v4944_v13 = vmul.f32 %v11041_v19, %v11023_v42  ;;  %vm4935_vm1 = vmor %vm4933_vm9, %vm4934_vm6  ;;  %vm4949_vm7 = vweird.f32 %v11041_v19  ;;  %vm4903_vm9 = vweird.f32 %v11021_v63 }
0x18ea   :  { %v11051_v25 = vpop.eup %8269  ;;  %v4930_v45 = vsub.f32 1.0, %v4929_v15  ;;  %v4901_v24 = vmul.f32 %v11033_v0, %v4900_v62  ;;  %v4959_v58 = vmul.f32 %v11043_v23, %v11025_v34  ;;  %v4954_v62 = vand.u32 2147483648, %v11023_v42  ;;  %vm4905_vm5 = vmor %vm4903_vm9, %vm4904_vm4 }
0x18eb   :  { %v4916_v20 = vmul.f32 %v8262_v26, %v4915_v44  ;;  %v4945_v43 = vsub.f32 1.0, %v4944_v13  ;;  %v4974_v56 = vmul.f32 %v11051_v25, %v11028_v39  ;;  %v11072_v30 = vpop.eup %8271  ;;  %vm4963_vm4 = vweird.f32 %v11025_v34 }
0x18ec   :  { %v4931_v41 = vmul.f32 %v8264_v46, %v4930_v45  ;;  %v4909_v45 = vand.u32 2147483648, %v11021_v63  ;;  %v4902_v7 = vadd.f32 %v11033_v0, %v4901_v24 }
0x18ed   :  { %v4917_v15 = vadd.f32 %v8262_v26, %v4916_v20  ;;  %v4946_v44 = vmul.f32 %v11041_v19, %v4945_v43  ;;  %v4960_v20 = vsub.f32 1.0, %v4959_v58  ;;  %v4975_v51 = vsub.f32 1.0, %v4974_v56  ;;  %v11087_v58 = vpop.eup %8273 }
0x18ee   :  { %v4932_v13 = vadd.f32 %v8264_v46, %v4931_v41  ;;  %v4906_v56 = vsel %vm4905_vm5, %v11033_v0, %v4902_v7  ;;  %v4910_v60 = vor.u32 1.1754944e-38, %v4909_v45  ;;  %v4989_v27 = vmul.f32 %v11087_v58, %v11039_v54 }
0x18ef   :  { %v4921_v52 = vsel %vm4920_vm8, %v8262_v26, %v4917_v15  ;;  %v4947_v49 = vadd.f32 %v11041_v19, %v4946_v44  ;;  %v4907_v26 = vand.u32 2147483647, %v11021_v63  ;;  %v4955_v63 = vor.u32 1.1754944e-38, %v4954_v62 }
0x18f0   :  { %v4936_v43 = vsel %vm4935_vm1, %v8264_v46, %v4932_v13  ;;  %v4926_v41 = vsel %vm11057_vm15, %v4925_v18, %v4921_v52  ;;  %v4952_v46 = vand.u32 2147483647, %v11023_v42  ;;  %vm4964_vm8 = vweird.f32 %v11043_v23 }
0x18f1   :  { %v4941_v16 = vsel %vm11045_vm3, %v4940_v47, %v4936_v43  ;;  %v4927_v31 = vmul.f32 %v10981_v48, %v4926_v41  ;;  %vm4950_vm3 = vmor %vm4948_vm2, %vm4949_vm7  ;;  %v4961_v47 = vmul.f32 %v11043_v23, %v4960_v20  ;;  %v4976_v48 = vmul.f32 %v11051_v25, %v4975_v51 }
0x18f2   :  { %v4942_v24 = vmul.f32 %v10984_v38, %v4941_v16  ;;  %v4951_v16 = vsel %vm4950_vm3, %v11041_v19, %v4947_v49  ;;  %v5004_v38 = vmul.f32 %v11072_v30, %v11035_v1  ;;  %vm4908_vm6 = vcmp.eq.f32.partialorder %v4907_v26, 8.507059e+37  ;;  %vm4965_vm9 = vmor %vm4963_vm4, %vm4964_vm8 }
0x18f3   :  { %5025 = vperm.xlu0 %8121, %v4927_v31   ;;  %vm4953_vm15 = vcmp.eq.f32.partialorder %v4952_v46, 8.507059e+37  ;;  %v4911_v42 = vsel %vm4908_vm6, %v4910_v60, %v4906_v56  ;;  %vm4979_vm7 = vweird.f32 %v11051_v25  ;;  %v4962_v7 = vadd.f32 %v11043_v23, %v4961_v47 }
0x18f4   :  { %5030 = vperm.xlu1 %8119, %v4942_v24   ;;  %v4956_v15 = vsel %vm4953_vm15, %v4955_v63, %v4951_v16  ;;  %v4977_v0 = vadd.f32 %v11051_v25, %v4976_v48  ;;  %v4969_v51 = vand.u32 2147483648, %v11025_v34  ;;  %v5005_v19 = vsub.f32 1.0, %v5004_v38 }
0x18f5   :  { %v4990_v18 = vsub.f32 1.0, %v4989_v27  ;;  %v4912_v44 = vmul.f32 %v10979_v32, %v4911_v42  ;;  %v4984_v13 = vand.u32 2147483648, %v11028_v39  ;;  %v4967_v62 = vand.u32 2147483647, %v11025_v34  ;;  %v4549_v42 = vpop.f32.mrf.mxu1 }
0x18f6   :  { %v4957_v45 = vmul.f32 %v10992_v59, %v4956_v15  ;;  %vm4978_vm1 = vweird.f32 %v11028_v39  ;;  %v4982_v52 = vand.u32 2147483647, %v11028_v39  ;;  %v4966_v20 = vsel %vm4965_vm9, %v11043_v23, %v4962_v7  ;;  %v8574_v7 = vld [vmem:[%s13215_s2 + $0x10] sm:$0x3f] }
0x18f7   :  { %vm4980_vm2 = vmor %vm4978_vm1, %vm4979_vm7  ;;  %v4991_v32 = vmul.f32 %v11087_v58, %v4990_v18  ;;  %v4970_v41 = vor.u32 1.1754944e-38, %v4969_v51  ;;  %v5006_v34 = vmul.f32 %v11072_v30, %v5005_v19  ;;  %v4985_v59 = vor.u32 1.1754944e-38, %v4984_v13 }
0x18f8   :  { %v4981_v43 = vsel %vm4980_vm2, %v11051_v25, %v4977_v0  ;;  %vm4968_vm5 = vcmp.eq.f32.partialorder %v4967_v62, 8.507059e+37  ;;  %vm4983_vm3 = vcmp.eq.f32.partialorder %v4982_v52, 8.507059e+37  ;;  %vm4994_vm6 = vweird.f32 %v11087_v58 }
0x18f9   :  { %v4971_v49 = vsel %vm4968_vm5, %v4970_v41, %v4966_v20  ;;  %v4986_v39 = vsel %vm4983_vm3, %v4985_v59, %v4981_v43  ;;  %v4992_v31 = vadd.f32 %v11087_v58, %v4991_v32  ;;  %v5007_v26 = vadd.f32 %v11072_v30, %v5006_v34  ;;  %v8576_v43 = vld [vmem:[%s13215_s2] sm:$0x3f] }
0x18fa   :  { %vm5009_vm15 = vweird.f32 %v11072_v30  ;;  %v4999_v23 = vand.u32 2147483648, %v11039_v54  ;;  %v4972_v25 = vmul.f32 %v10990_v28, %v4971_v49  ;;  %v5014_v24 = vand.u32 2147483648, %v11035_v1 }
0x18fb   :  { %5020 = vperm.xlu0 %8121, %v4912_v44   ;;  %vm4993_vm7 = vweird.f32 %v11039_v54  ;;  %v4997_v46 = vand.u32 2147483647, %v11039_v54  ;;  %v4987_v56 = vmul.f32 %v10995_v61, %v4986_v39  ;;  %vm5008_vm8 = vweird.f32 %v11035_v1 }
0x18fc   :  { %5035 = vperm.xlu1 %8119, %v4957_v45   ;;  %v5012_v47 = vand.u32 2147483647, %v11035_v1  ;;  %vm4995_vm4 = vmor %vm4993_vm7, %vm4994_vm6  ;;  %v5000_v60 = vor.u32 1.1754944e-38, %v4999_v23  ;;  %v5015_v48 = vor.u32 1.1754944e-38, %v5014_v24  ;;  %v4508_v1 = vpop.f32.mrf.mxu0  ;;  %vm14043_vm5 = vcmask 1046534  }
0x18fd   :  { %vm5010_vm1 = vmor %vm5008_vm8, %vm5009_vm15  ;;  %v4996_v16 = vsel %vm4995_vm4, %v11087_v58, %v4992_v31  ;;  %vm4998_vm9 = vcmp.eq.f32.partialorder %v4997_v46, 8.507059e+37  ;;  %v4606_v59 = vpop.f32.mrf.mxu1  ;;  %vm14044_vm3 = vcmask 1047559   ;;  %vm14045_vm6 = vcmask 80896  }
0x18fe   :  { %v5011_v28 = vsel %vm5010_vm1, %v11072_v30, %v5007_v26  ;;  %vm5013_vm2 = vcmp.eq.f32.partialorder %v5012_v47, 8.507059e+37  ;;  %v5001_v38 = vsel %vm4998_vm9, %v5000_v60, %v4996_v16  ;;  %v8573_v30 = vld [vmem:[%s13215_s2 + $0x8] sm:$0x3f]  ;;  %v8577_v26 = vld [vmem:[%s13215_s2 + $0x18] sm:$0x3f] }
0x18ff   :  { %v5016_v54 = vsel %vm5013_vm2, %v5015_v48, %v5011_v28  ;;  %v5002_v61 = vmul.f32 %v11001_v8, %v5001_v38 }
0x1900   :  { %v5017_v63 = vmul.f32 %v10999_v35, %v5016_v54  ;;  %v8575_v35 = vld [vmem:[%s13217_s4] ss:$0 sm:$0xff] }
0x1901   :  { %v4509_v51 = vadd.f32 %v8575_v35, %v4508_v1 }
0x1903   :  { %5040 = vperm.xlu0 %8121, %v4972_v25   ;;  %v4550_v45 = vadd.f32 %v4549_v42, %v4509_v51 }
0x1904   :  { %5045 = vperm.xlu1 %8119, %v4987_v56   ;;  %v4579_v19 = vpop.f32.mrf.mxu0 }
0x1905   :  { %v4580_v49 = vadd.f32 %v4579_v19, %v4550_v45 }
0x190b   :  { %5050 = vperm.xlu0 %8121, %v5002_v61  }
0x190c   :  { %5055 = vperm.xlu1 %8119, %v5017_v63   ;;  %v4639_v38 = vpop.f32.mrf.mxu0  ;;  %v4607_v63 = vadd.f32 %v4606_v59, %v4580_v49 }
0x1965   :  { %v5026_v27 = vpop.permute.xlu0 %5025 }
0x1966   :  { %v5031_v15 = vpop.permute.xlu1 %5030  ;;  %v5059_v58 = vmul.f32 %v8573_v30, %v5026_v27  ;;  %v5396_v20 = vperm.slane %v5026_v27, %v8896_v36  ;;  %v4640_v30 = vadd.f32 %v4639_v38, %v4607_v63  ;;  %v8581_v63 = vld [vmem:[%s13215_s2 + $0x38] sm:$0x3f] }
0x1967   :  { %v5060_v0 = vmul.f32 %v8574_v7, %v5031_v15  ;;  %v5397_v31 = vperm.slane %v5031_v15, %v8896_v36 }
0x1968   :  { %v5073_v8 = vsel %vm1082_vm0, %v5059_v58, 0.0 }
0x1969   :  { %v5080_v18 = vsel %vm1082_vm0, %v5060_v0, 0.0  ;;  %v5074_v44 = vrot.slane %v5073_v8, 4  ;;  %v8578_v0 = vld [vmem:[%s13215_s2 + $0x20] sm:$0x3f] }
0x196a   :  { %v5081_v13 = vrot.slane %v5080_v18, 4 }
0x196b   :  { %v5075_v62 = vadd.f32 %v5074_v44, %v5073_v8 }
0x196c   :  { %v5082_v39 = vadd.f32 %v5081_v13, %v5080_v18  ;;  %v8579_v18 = vld [vmem:[%s13215_s2 + $0x28] sm:$0x3f] }
0x196d   :  { %v5021_v52 = vpop.permute.xlu0 %5020  ;;  %v5076_v25 = vrot.slane %v5075_v62, 2 }
0x196e   :  { %v5036_v32 = vpop.permute.xlu1 %5035  ;;  %v5058_v41 = vmul.f32 %v8576_v43, %v5021_v52  ;;  %v5395_v34 = vperm.slane %v5021_v52, %v8896_v36  ;;  %v5083_v54 = vrot.slane %v5082_v39, 2 }
0x196f   :  { %v5061_v23 = vmul.f32 %v8577_v26, %v5036_v32  ;;  %v5398_v24 = vperm.slane %v5036_v32, %v8896_v36  ;;  %v5077_v1 = vadd.f32 %v5076_v25, %v5075_v62  ;;  %v4664_v32 = vpop.f32.mrf.mxu1 }
0x1970   :  { %v5066_v46 = vsel %vm1082_vm0, %v5058_v41, 0.0  ;;  %v5403_v56 = vsel %vm778_vm10, %v5396_v20, %v5395_v34  ;;  %v5084_v51 = vadd.f32 %v5083_v54, %v5082_v39  ;;  %v11173_v59 = vadd.f32 %v4664_v32, %v4640_v30 }
0x1971   :  { %v5087_v47 = vsel %vm1082_vm0, %v5061_v23, 0.0  ;;  %v5067_v16 = vrot.slane %v5066_v46, 4  ;;  %v5404_v28 = vsel %vm780_vm11, %v5397_v31, %v5403_v56  ;;  %v5078_v62 = vrot.slane %v5077_v1, 1 }
0x1972   :  { %v5088_v60 = vrot.slane %v5087_v47, 4  ;;  %v5405_v48 = vsel %vm782_vm12, %v5398_v24, %v5404_v28  ;;  %v5085_v31 = vrot.slane %v5084_v51, 1 }
0x1973   :  { %v5068_v61 = vadd.f32 %v5067_v16, %v5066_v46  ;;  %v5079_v23 = vadd.f32 %v5078_v62, %v5077_v1 }
0x1974   :  { %v5089_v42 = vadd.f32 %v5088_v60, %v5087_v47  ;;  %v5123_v47 = vrot.slane %v11173_v59, 1  ;;  %v5086_v54 = vadd.f32 %v5085_v31, %v5084_v51  ;;  %v5127_v31 = vrot.slane %v11173_v59, 5 }
0x1975   :  { %v5069_v27 = vrot.slane %v5068_v61, 2  ;;  %v5041_v15 = vpop.permute.xlu0 %5040 }
0x1976   :  { %v5090_v58 = vrot.slane %v5089_v42, 2  ;;  %v5046_v7 = vpop.permute.xlu1 %5045  ;;  %v5062_v8 = vmul.f32 %v8578_v0, %v5041_v15  ;;  %v5399_v35 = vperm.slane %v5041_v15, %v8896_v36 }
0x1977   :  { %v5070_v19 = vadd.f32 %v5069_v27, %v5068_v61  ;;  %v5063_v44 = vmul.f32 %v8579_v18, %v5046_v7  ;;  %v5400_v13 = vperm.slane %v5046_v7, %v8896_v36 }
0x1978   :  { %v5091_v45 = vadd.f32 %v5090_v58, %v5089_v42  ;;  %v5094_v52 = vsel %vm1082_vm0, %v5062_v8, 0.0  ;;  %v5406_v20 = vsel %vm784_vm13, %v5399_v35, %v5405_v48  ;;  %v8580_v48 = vld [vmem:[%s13215_s2 + $0x30] sm:$0x3f]  ;;  %v11188_v42 = vadd.f32 %v5123_v47, %v5079_v23 }
0x1979   :  { %v5101_v43 = vsel %vm1082_vm0, %v5063_v44, 0.0  ;;  %v5095_v41 = vrot.slane %v5094_v52, 4  ;;  %v11171_v34 = vsel %vm786_vm14, %v5400_v13, %v5406_v20  ;;  %v5071_v49 = vrot.slane %v5070_v19, 1 }
0x197a   :  { %14032 = vst [vmem:[#allocation8_spill] sm:$0xff] %v11171_v34  ;;  %v5102_v39 = vrot.slane %v5101_v43, 4  ;;  %v5092_v25 = vrot.slane %v5091_v45, 1  ;;  %v5124_v58 = vrot.slane %v11173_v59, 2  ;;  %v5125_v35 = vrot.slane %v11173_v59, 3 }
0x197b   :  { %v5096_v26 = vadd.f32 %v5095_v41, %v5094_v52  ;;  %v5072_v16 = vadd.f32 %v5071_v49, %v5070_v19  ;;  %14035 = vst [vmem:[#allocation131_spill] sm:$0xff] %v11188_v42  ;;  %v5126_v13 = vrot.slane %v11173_v59, 4  ;;  %v5154_v52 = vrot.slane %v11188_v42, 7 }
0x197c   :  { %v5103_v24 = vadd.f32 %v5102_v39, %v5101_v43  ;;  %v5093_v27 = vadd.f32 %v5092_v25, %v5091_v45  ;;  %v11197_v44 = vadd.f32 %v5124_v58, %v5086_v54  ;;  %v5128_v54 = vrot.slane %v11173_v59, 6 }
0x197d   :  { %v5097_v46 = vrot.slane %v5096_v26, 2  ;;  %v11175_v56 = vpop.permute.xlu0 %5050  ;;  %v11195_v51 = vadd.f32 %v5072_v16, %v11173_v59 }
0x197e   :  { %14033 = vst [vmem:[#allocation129_spill] sm:$0xff] %v11175_v56  ;;  %v5104_v28 = vrot.slane %v5103_v24, 2  ;;  %v11178_v60 = vpop.permute.xlu1 %5055  ;;  %v5064_v38 = vmul.f32 %v8580_v48, %v11175_v56  ;;  %v11201_v20 = vadd.f32 %v5125_v35, %v5093_v27  ;;  %v5156_v23 = vrot.slane %v11197_v44, 6 }
0x197f   :  { %14034 = vst [vmem:[#allocation130_spill] sm:$0xff] %v11178_v60  ;;  %v5098_v61 = vadd.f32 %v5097_v46, %v5096_v26  ;;  %v5065_v1 = vmul.f32 %v8581_v63, %v11178_v60  ;;  %v5155_v39 = vsel %vm778_vm10, %v5154_v52, %v11195_v51  ;;  %v5129_v63 = vrot.slane %v11173_v59, 7 }
0x1980   :  { %v5105_v15 = vadd.f32 %v5104_v28, %v5103_v24  ;;  %v5108_v30 = vsel %vm1082_vm0, %v5064_v38, 0.0  ;;  %14036 = vst [vmem:[#allocation132_spill] sm:$0xff] %v11195_v51  ;;  %v5158_v24 = vrot.slane %v11201_v20, 5  ;;  %v5157_v28 = vsel %vm780_vm11, %v5156_v23, %v5155_v39 }
0x1981   :  { %v5099_v7 = vrot.slane %v5098_v61, 1  ;;  %v5115_v0 = vsel %vm1082_vm0, %v5065_v1, 0.0  ;;  %v5109_v8 = vrot.slane %v5108_v30, 4  ;;  %14037 = vst [vmem:[#allocation133_spill] sm:$0xff] %v11197_v44 }
0x1982   :  { %v5106_v19 = vrot.slane %v5105_v15, 1  ;;  %v5116_v18 = vrot.slane %v5115_v0, 4  ;;  %14038 = vst [vmem:[#allocation134_spill] sm:$0xff] %v11201_v20  ;;  %v5159_v27 = vsel %vm782_vm12, %v5158_v24, %v5157_v28 }
0x1983   :  { %v5100_v62 = vadd.f32 %v5099_v7, %v5098_v61  ;;  %v5110_v45 = vadd.f32 %v5109_v8, %v5108_v30 }
0x1984   :  { %v5107_v32 = vadd.f32 %v5106_v19, %v5105_v15  ;;  %v5117_v43 = vadd.f32 %v5116_v18, %v5115_v0 }
0x1985   :  { %v11203_v41 = vadd.f32 %v5126_v13, %v5100_v62  ;;  %v5111_v49 = vrot.slane %v5110_v45, 2 }
0x1986   :  { %v5118_v26 = vrot.slane %v5117_v43, 2  ;;  %v11210_v46 = vadd.f32 %v5127_v31, %v5107_v32 }
0x1987   :  { %14039 = vst [vmem:[#allocation135_spill] sm:$0xff] %v11203_v41  ;;  %v5112_v25 = vadd.f32 %v5111_v49, %v5110_v45  ;;  %v5160_v48 = vrot.slane %v11203_v41, 4 }
0x1988   :  { %14040 = vst [vmem:[#allocation136_spill] sm:$0xff] %v11210_v46  ;;  %v5119_v47 = vadd.f32 %v5118_v26, %v5117_v43  ;;  %v5162_v15 = vrot.slane %v11210_v46, 3 }
0x1989   :  { %v5113_v16 = vrot.slane %v5112_v25, 1  ;;  %v5161_v58 = vsel %vm784_vm13, %v5160_v48, %v5159_v27 }
0x198a   :  { %v5120_v38 = vrot.slane %v5119_v47, 1  ;;  %v5163_v8 = vsel %vm786_vm14, %v5162_v15, %v5161_v58 }
0x198b   :  { %v5114_v61 = vadd.f32 %v5113_v16, %v5112_v25 }
0x198c   :  { %v5121_v1 = vadd.f32 %v5120_v38, %v5119_v47 }
0x198d   :  { %v11218_v30 = vadd.f32 %v5128_v54, %v5114_v61 }
0x198e   :  { %v11221_v7 = vadd.f32 %v5129_v63, %v5121_v1 }
0x198f   :  { %14041 = vst [vmem:[#allocation137_spill] sm:$0xff] %v11218_v30  ;;  %v5164_v0 = vrot.slane %v11218_v30, 2 }
0x1990   :  { %14042 = vst [vmem:[#allocation138_spill] sm:$0xff] %v11221_v7  ;;  %v5166_v35 = vrot.slane %v11221_v7, 1 }
0x1991   :  { %v5165_v19 = vsel %vm14043_vm5, %v5164_v0, %v5163_v8 }
0x1992   :  { %v5167_v59 = vsel %vm14044_vm3, %v5166_v35, %v5165_v19  ;;  %vm14057_vm3 = vcmask 1046534  }
0x1993   :  { %v5169_v18 = vsel %vm14045_vm6, %v5167_v59, -inf  ;;  %vm14058_vm6 = vcmask 1047559  }
0x1994   :  { %5170 = vmax.xlane.f32.xlu0 %v5169_v18 }
0x1a07   :  { %v11229_v13 = vpop.xlane.xlu0 %5170 }
0x1a08   :  { %14046 = vst [vmem:[#allocation139_spill] sm:$0xff] %v11229_v13  ;;  %v13502_v62 = vrot.slane %v11229_v13, 1  ;;  %v13501_v45 = vrot.slane %v11229_v13, 2  ;;  %v13500_v52 = vrot.slane %v11229_v13, 3  ;;  %v13499_v32 = vrot.slane %v11229_v13, 4 }
0x1a09   :  { %v13498_v43 = vrot.slane %v11229_v13, 5  ;;  %v13497_v49 = vrot.slane %v11229_v13, 6  ;;  %v13496_v39 = vrot.slane %v11229_v13, 7  ;;  %vm5315_vm1 = vcmp.eq.f32.partialorder %v11195_v51, %v11229_v13 }
0x1a0a   :  { %vm5316_vm15 = vcmp.eq.f32.partialorder %v11188_v42, %v13502_v62  ;;  %vm5317_vm7 = vcmp.eq.f32.partialorder %v11197_v44, %v13501_v45  ;;  %vm11247_vm8 = vcmp.eq.f32.partialorder %v11201_v20, %v13500_v52  ;;  %vm11254_vm4 = vcmp.eq.f32.partialorder %v11203_v41, %v13499_v32 }
0x1a0b   :  { %vm11263_vm9 = vcmp.eq.f32.partialorder %v11210_v46, %v13498_v43  ;;  %v5324_v25 = vsel %vm5316_vm15, %v8896_v36, 10  ;;  %vm11271_vm2 = vcmp.eq.f32.partialorder %v11218_v30, %v13497_v49  ;;  %v5325_v47 = vsel %vm5317_vm7, %v8896_v36, 10 }
0x1a0c   :  { %v5326_v16 = vsel %vm11247_vm8, %v8896_v36, 10  ;;  %vm11282_vm5 = vcmp.eq.f32.partialorder %v11221_v7, %v13496_v39  ;;  %v5327_v48 = vsel %vm11254_vm4, %v8896_v36, 10  ;;  %v5331_v38 = vrot.slane %v5324_v25, 7  ;;  %v14116_v7 = vld [vmem:[#allocation29_spill] sm:$0xff] }
0x1a0d   :  { %v5333_v54 = vrot.slane %v5325_v47, 6  ;;  %v5323_v61 = vsel %vm5315_vm1, %v8896_v36, 10  ;;  %v5328_v63 = vsel %vm11263_vm9, %v8896_v36, 10  ;;  %v5329_v1 = vsel %vm11271_vm2, %v8896_v36, 10 }
0x1a0e   :  { %v5332_v27 = vsel %vm778_vm10, %v5331_v38, %v5323_v61  ;;  %v5335_v15 = vrot.slane %v5326_v16, 5  ;;  %v5330_v58 = vsel %vm11282_vm5, %v8896_v36, 10  ;;  %v5337_v8 = vrot.slane %v5327_v48, 4 }
0x1a0f   :  { %v5334_v0 = vsel %vm780_vm11, %v5333_v54, %v5332_v27  ;;  %v5339_v19 = vrot.slane %v5328_v63, 3  ;;  %v5341_v18 = vrot.slane %v5329_v1, 2  ;;  %v5343_v26 = vrot.slane %v5330_v58, 1 }
0x1a10   :  { %v5336_v35 = vsel %vm782_vm12, %v5335_v15, %v5334_v0  ;;  %vm14059_vm15 = vcmask 80896   ;;  %vm14061_vm4 = vcmp.eq.s32.totalorder %v8896_v36, 13  ;;  %vm14062_vm9 = vcmask 130048  }
0x1a11   :  { %v5338_v59 = vsel %vm784_vm13, %v5337_v8, %v5336_v35  ;;  %vm14063_vm2 = vcmask 392192  }
0x1a12   :  { %v5340_v31 = vsel %vm786_vm14, %v5339_v19, %v5338_v59 }
0x1a13   :  { %v5342_v23 = vsel %vm14057_vm3, %v5341_v18, %v5340_v31 }
0x1a14   :  { %v5344_v25 = vsel %vm14058_vm6, %v5343_v26, %v5342_v23  ;;  %v14064_v23 = vld [vmem:[#allocation14_spill] sm:$0xff] }
0x1a15   :  { %v5345_v24 = vsel %vm14059_vm15, %v5344_v25, 2147483647  ;;  %v14066_v25 = vld [vmem:[#allocation18_spill] sm:$0xff] }
0x1a16   :  { %v5347_v47 = vshra.s32 %v5345_v24, 16  ;;  %v5346_v28 = vand.u32 65535, %v5345_v24  ;;  %v14067_v24 = vld [vmem:[#allocation10_spill] sm:$0xff] }
0x1a18   :  { %v5349_v16 = vcvt.s32.f32 %v5347_v47  ;;  %v5348_v38 = vcvt.s32.f32 %v5346_v28  ;;  %v14069_v47 = vld [vmem:[#allocation17_spill] sm:$0xff]  ;;  %v14072_v28 = vld [vmem:[#allocation28_spill] sm:$0xff] }
0x1a1a   :  { %5350 = vmin.xlane.f32.xlu1 %v5349_v16 }
0x1a8d   :  { %v5351_v48 = vpop.xlane.xlu1 %5350 }
0x1a8e   :  { %vm5352_vm7 = vcmp.eq.f32.partialorder %v5349_v16, %v5351_v48  ;;  %v5357_v61 = vcvt.f32.s32 %v5351_v48  ;;  %v14071_v16 = vld [vmem:[#allocation23_spill] sm:$0xff] }
0x1a8f   :  { %v5353_v54 = vsel %vm5352_vm7, %v5348_v38, inf  ;;  %v14073_v48 = vld [vmem:[#allocation27_spill] sm:$0xff]  ;;  %vm14097_vm7 = vcmask 259072  }
0x1a90   :  { %5354 = vmin.xlane.f32.xlu2 %v5353_v54  ;;  %v5358_v1 = vshll.u32 %v5357_v61, 16  ;;  %v14075_v38 = vld [vmem:[#allocation31_spill] sm:$0xff] }
0x1a91   :  { %v14076_v54 = vld [vmem:[#allocation39_spill] sm:$0xff] }
0x1a92   :  { %v14077_v61 = vld [vmem:[#allocation35_spill] sm:$0xff] }
0x1aa8   :  { %5421 = vrot.lane.b32.xlu2 %v10824_v6, %s8631_s18 }
0x1b03   :  { %v5355_v63 = vpop.xlane.xlu2 %5354 }
0x1b04   :  { %v5356_v27 = vcvt.f32.s32 %v5355_v63  ;;  %v14078_v63 = vld [vmem:[#allocation40_spill] sm:$0xff] }
0x1b06   :  { %v11309_v15 = vadd.s32 %v5358_v1, %v5356_v27  ;;  %v14079_v1 = vld [vmem:[#allocation36_spill] sm:$0xff]  ;;  %v14080_v27 = vld [vmem:[#allocation45_spill] sm:$0xff] }
0x1b08   :  { %14060 = vst [vmem:[#allocation140_spill] sm:$0xff] %v11309_v15  ;;  %vm13514_vm8 = vcmp.eq.s32.totalorder %v8896_v36, %v11309_v15 }
0x1b09   :  { %vm5418_vm1 = vmor %vm13514_vm8, %vm14061_vm4 }
0x1b0a   :  { %v8102_v58 = vsel %vm5418_vm1, 1.0, %v13688_v12  ;;  %vm14098_vm4 = vmmov %vm14097_vm7 }
0x1b0b   :  { %v5422_v0 = vpop.permute.xlu2 %5421  ;;  %vm14099_vm1 = vmmov %vm14098_vm4 }
0x1b0c   :  { %v5424_v8 = vsel %vm14062_vm9, %v8102_v58, %v5422_v0  ;;  %v14081_v58 = vld [vmem:[#allocation41_spill] sm:$0xff]  ;;  %v14082_v0 = vld [vmem:[#allocation76_spill] sm:$0xff]  ;;  %vm14100_vm9 = vmmov %vm14099_vm1 }
0x1b0d   :  { %v5425_v35 = vsel %vm14063_vm2, %v5424_v8, 0.0  ;;  %v14083_v8 = vld [vmem:[#allocation47_spill] sm:$0xff]  ;;  %vm14101_vm2 = vmmov %vm14099_vm1 }
0x1b0e   :  { %v5458_v19 = vand.u32 4294901760, %v5425_v35 }
0x1b10   :  { %v5459_v59 = vsub.f32 %v5425_v35, %v5458_v19  ;;  %5564 = vmatmul.f32.vlgmr.msra.gmra.mxu1 %v5458_v19  ;;  %v14084_v35 = vld [vmem:[#allocation79_spill] sm:$0xff] }
0x1b11   :  { %6951 = vmatpush.msra.mxu1 %v8678_v3 }
0x1b12   :  { %5618 = vmatmul.f32.vlgmr.msra.gmra.mxu2 %v5459_v59  ;;  %v5460_v18 = vand.u32 4294901760, %v5459_v59 }
0x1b13   :  { %5894 = vmatpush.msra.mxu2 %v13691_v14  ;;  %6953 = vmatpush.msra.mxu1 %v8680_v4 }
0x1b14   :  { %5657 = vmatmul.f32.vlgmr.msra.gmra.mxu3 %v5460_v18  ;;  %v5461_v31 = vsub.f32 %v5459_v59, %v5460_v18  ;;  %v14086_v59 = vld [vmem:[#allocation81_spill] sm:$0xff] }
0x1b15   :  { %5923 = vmatpush.msra.mxu3 %v9147_v50  ;;  %5897 = vmatpush.msra.mxu2 %v13692_v37  ;;  %v14087_v18 = vld [vmem:[#allocation53_spill] sm:$0xff] }
0x1b16   :  { %v5462_v26 = vand.u32 4294901760, %v5461_v31  ;;  %6955 = vmatpush.msra.mxu1 %v8682_v5  ;;  %v14088_v31 = vld [vmem:[#allocation82_spill] sm:$0xff] }
0x1b17   :  { %5925 = vmatpush.msra.mxu3 %v9155_v55  ;;  %5900 = vmatpush.msra.mxu2 %v13693_v22 }
0x1b18   :  { %5463 = vmatmul.f32.vlgmr.msra.gmra.mxu0 %v5462_v26  ;;  %5763 = vmatmul.f32.vlgmr.msrb.gmra.mxu1 %v5458_v19 }
0x1b19   :  { %5927 = vmatpush.msra.mxu3 %v9168_v40  ;;  %5903 = vmatpush.msra.mxu2 %v13694_v21 }
0x1b1a   :  { %6898 = vmatpush.msra.mxu0 %v13695_v29  ;;  %6957 = vmatpush.msra.mxu1 %v8693_v9  ;;  %v14065_v29 = vld [vmem:[#allocation9_spill] sm:$0xff] }
0x1b1b   :  { %5929 = vmatpush.msra.mxu3 %v9185_v2 }
0x1b1c   :  { %6901 = vmatpush.msra.mxu0 %v13696_v53  ;;  %6959 = vmatpush.msra.mxu1 %v8695_v10  ;;  %v14068_v53 = vld [vmem:[#allocation20_spill] sm:$0xff] }
0x1b1e   :  { %6904 = vmatpush.msra.mxu0 %v13697_v57  ;;  %6961 = vmatpush.msra.mxu1 %v8697_v11  ;;  %v14070_v57 = vld [vmem:[#allocation26_spill] sm:$0xff] }
0x1b20   :  { %5726 = vmatmul.f32.vlgmr.msrb.gmra.mxu0 %v5458_v19  ;;  %6963 = vmatpush.msra.mxu1 %v8715_v17  ;;  %v14085_v19 = vld [vmem:[#allocation50_spill] sm:$0xff] }
0x1b21   :  { %6907 = vmatpush.msra.mxu0 %v13943_v33  ;;  %v14074_v33 = vld [vmem:[#allocation33_spill] sm:$0xff] }
0x1b22   :  { %6965 = vmatpush.msra.mxu1 %v14064_v23 }
0x1b23   :  { %6910 = vmatpush.msra.mxu0 %v14065_v29 }
0x1b24   :  { %6967 = vmatpush.msra.mxu1 %v14066_v25 }
0x1b25   :  { %6913 = vmatpush.msra.mxu0 %v14067_v24 }
0x1b26   :  { %6969 = vmatpush.msra.mxu1 %v14068_v53 }
0x1b27   :  { %6916 = vmatpush.msra.mxu0 %v14069_v47 }
0x1b28   :  { %6971 = vmatpush.msra.mxu1 %v14070_v57 }
0x1b29   :  { %6919 = vmatpush.msra.mxu0 %v14071_v16 }
0x1b2a   :  { %6973 = vmatpush.msra.mxu1 %v14072_v28 }
0x1b2b   :  { %6922 = vmatpush.msra.mxu0 %v14073_v48 }
0x1b2c   :  { %6975 = vmatpush.msra.mxu1 %v14074_v33 }
0x1b2d   :  { %6925 = vmatpush.msra.mxu0 %v14075_v38 }
0x1b2e   :  { %6977 = vmatpush.msra.mxu1 %v14076_v54 }
0x1b2f   :  { %6928 = vmatpush.msra.mxu0 %v14077_v61 }
0x1b30   :  { %6979 = vmatpush.msra.mxu1 %v14078_v63 }
0x1b31   :  { %6931 = vmatpush.msra.mxu0 %v14079_v1 }
0x1b32   :  { %6981 = vmatpush.msra.mxu1 %v14080_v27 }
0x1b33   :  { %6934 = vmatpush.msra.mxu0 %v14081_v58 }
0x1b34   :  { %7184 = vmatpush.msrb.mxu1 %v14082_v0 }
0x1b35   :  { %6937 = vmatpush.msra.mxu0 %v14083_v8 }
0x1b36   :  { %7190 = vmatpush.msrb.mxu1 %v14084_v35 }
0x1b37   :  { %6940 = vmatpush.msra.mxu0 %v14085_v19 }
0x1b38   :  { %7196 = vmatpush.msrb.mxu1 %v14086_v59 }
0x1b39   :  { %6943 = vmatpush.msra.mxu0 %v14087_v18 }
0x1b3a   :  { %7202 = vmatpush.msrb.mxu1 %v14088_v31 }
0x1b3b   :  { %7151 = vmatpush.msrb.mxu0 %v9147_v50 }
0x1b3d   :  { %7153 = vmatpush.msrb.mxu0 %v9155_v55 }
0x1b3f   :  { %7155 = vmatpush.msrb.mxu0 %v9168_v40 }
0x1b41   :  { %7157 = vmatpush.msrb.mxu0 %v9185_v2 }
0x1b8d   :  { %v5565_v26 = vpop.f32.mrf.mxu1 }
0x1b95   :  { %v5464_v29 = vpop.f32.mrf.mxu0  ;;  %v5619_v47 = vpop.f32.mrf.mxu2 }
0x1b96   :  { %v5566_v24 = vadd.f32 %v5565_v26, %v5464_v29  ;;  %v5764_v58 = vpop.f32.mrf.mxu1 }
0x1b97   :  { %v5658_v48 = vpop.f32.mrf.mxu3 }
0x1b98   :  { %v5620_v16 = vadd.f32 %v5619_v47, %v5566_v24 }
0x1b9a   :  { %v5659_v38 = vadd.f32 %v5658_v48, %v5620_v16 }
0x1b9d   :  { %v5727_v61 = vpop.f32.mrf.mxu0 }
0x1b9e   :  { %v5728_v1 = vadd.f32 %v5727_v61, %v5659_v38 }
0x1ba0   :  { %v5765_v0 = vadd.f32 %v5764_v58, %v5728_v1 }
0x1ba2   :  { %5787 = vrot.lane.b32.xlu2 %v5765_v0, %s8627_s0  ;;  %v8103_v8 = vmul.f32 -1.442695, %v5765_v0 }
0x1ba4   :  { %8275 = vpow2.f32 %v8103_v8 }
0x1baa   :  { %v8276_v35 = vpop.eup %8275 }
0x1bab   :  { %v5770_v19 = vadd.f32 1.0, %v8276_v35 }
0x1bad   :  { %8277 = vrcp.f32 %v5770_v19  ;;  %v5782_v29 = vand.u32 2147483648, %v5770_v19  ;;  %vm5776_vm3 = vweird.f32 %v5770_v19  ;;  %v5780_v24 = vand.u32 2147483647, %v5770_v19 }
0x1baf   :  { %v5783_v16 = vor.u32 1.1754944e-38, %v5782_v29  ;;  %vm5781_vm15 = vcmp.eq.f32.partialorder %v5780_v24, 8.507059e+37  ;;  %v14089_v24 = vld [vmem:[#allocation62_spill] sm:$0xff] }
0x1bb3   :  { %v8278_v59 = vpop.eup %8277 }
0x1bb4   :  { %v5772_v18 = vmul.f32 %v8278_v59, %v5770_v19  ;;  %vm5777_vm5 = vweird.f32 %v8278_v59 }
0x1bb5   :  { %vm5778_vm6 = vmor %vm5776_vm3, %vm5777_vm5 }
0x1bb6   :  { %v5773_v31 = vsub.f32 1.0, %v5772_v18  ;;  %vm14102_vm5 = vmmov %vm14099_vm1 }
0x1bb7   :  { %vm14103_vm3 = vmmov %vm14099_vm1 }
0x1bb8   :  { %v5774_v39 = vmul.f32 %v8278_v59, %v5773_v31 }
0x1bba   :  { %v5775_v26 = vadd.f32 %v8278_v59, %v5774_v39 }
0x1bbc   :  { %v5779_v47 = vsel %vm5778_vm6, %v8278_v59, %v5775_v26  ;;  %vm14104_vm6 = vmmov %vm14099_vm1 }
0x1bbd   :  { %v5784_v38 = vsel %vm5781_vm15, %v5783_v16, %v5779_v47  ;;  %vm14105_vm15 = vcmask 1046534  }
0x1bbe   :  { %v5797_v39 = vsub.f32 1.0, %v5784_v38  ;;  %v5803_v18 = vmul.f32 %v5784_v38, %v10824_v6  ;;  %v14091_v6 = vld [vmem:[#allocation65_spill] sm:$0xff] }
0x1bfc   :  { %v5788_v48 = vpop.permute.xlu2 %5787 }
0x1bfd   :  { %v5790_v61 = vmul.f32 %v5788_v48, %v5784_v38 }
0x1bff   :  { %5792 = vrot.lane.b32.xlu0 %v5790_v61, %s8628_s25  ;;  %v14090_v61 = vld [vmem:[#allocation68_spill] sm:$0xff] }
0x1c71   :  { %v5793_v1 = vpop.permute.xlu0 %5792 }
0x1c72   :  { %v5795_v58 = vadd.f32 %v5793_v1, %v5765_v0 }
0x1c74   :  { %8279 = vtanh.f32 %v5795_v58 }
0x1c7a   :  { %v8280_v8 = vpop.eup %8279 }
0x1c7b   :  { %5799 = vrot.lane.b32.xlu1 %v8280_v8, %s8629_s13 }
0x1ced   :  { %v5800_v35 = vpop.permute.xlu1 %5799 }
0x1cee   :  { %v5802_v19 = vmul.f32 %v5800_v35, %v5797_v39  ;;  %v14092_v35 = vld [vmem:[#allocation63_spill] sm:$0xff] }
0x1cf0   :  { %v11373_v31 = vadd.f32 %v5803_v18, %v5802_v19 }
0x1cf2   :  { %v6002_v59 = vperm.slane %v11373_v31, 0  ;;  %v5999_v26 = vrot.slane %v11373_v31, 5  ;;  %v5996_v29 = vrot.slane %v11373_v31, 2  ;;  %v5995_v48 = vrot.slane %v11373_v31, 1 }
0x1cf3   :  { %v5998_v58 = vrot.slane %v11373_v31, 4  ;;  %v5997_v19 = vrot.slane %v11373_v31, 3 }
0x1cf4   :  { %v6018_v47 = vmul.f32 %v6002_v59, %v14089_v24  ;;  %v6007_v0 = vperm.slane %v5999_v26, 0  ;;  %v6004_v16 = vperm.slane %v5996_v29, 0  ;;  %v6003_v8 = vperm.slane %v5995_v48, 0  ;;  %v14093_v59 = vld [vmem:[#allocation67_spill] sm:$0xff]  ;;  %v14095_v48 = vld [vmem:[#allocation70_spill] sm:$0xff] }
0x1cf5   :  { %v6006_v39 = vperm.slane %v5998_v58, 0  ;;  %v6001_v29 = vrot.slane %v11373_v31, 7 }
0x1cf6   :  { %6034 = vrot.lane.b32.xlu2 %v6018_v47, %s8629_s13  ;;  %v6023_v1 = vmul.f32 %v6007_v0, %v14090_v61  ;;  %v6020_v38 = vmul.f32 %v6004_v16, %v14091_v6  ;;  %v6019_v18 = vmul.f32 %v6003_v8, %v14092_v35  ;;  %v6005_v47 = vperm.slane %v5997_v19, 0  ;;  %v14094_v16 = vld [vmem:[#allocation66_spill] sm:$0xff] }
0x1cf7   :  { %v6022_v26 = vmul.f32 %v6006_v39, %v14093_v59  ;;  %v6009_v0 = vperm.slane %v6001_v29, 0 }
0x1cf8   :  { %6044 = vrot.lane.b32.xlu1 %v6023_v1, %s8629_s13  ;;  %6038 = vrot.lane.b32.xlu0 %v6020_v38, %s8629_s13  ;;  %v6021_v1 = vmul.f32 %v6005_v47, %v14094_v16  ;;  %v6000_v38 = vrot.slane %v11373_v31, 6 }
0x1cf9   :  { %v6025_v58 = vmul.f32 %v6009_v0, %v14095_v48 }
0x1cfa   :  { %v6008_v8 = vperm.slane %v6000_v38, 0 }
0x1cfe   :  { %6036 = vrot.lane.b32.xlu2 %v6019_v18, %s8629_s13  ;;  %v14096_v18 = vld [vmem:[#allocation69_spill] sm:$0xff] }
0x1cff   :  { %v6024_v49 = vmul.f32 %v6008_v8, %v14096_v18 }
0x1d00   :  { %6042 = vrot.lane.b32.xlu0 %v6022_v26, %s8629_s13 }
0x1d06   :  { %6040 = vrot.lane.b32.xlu2 %v6021_v1, %s8629_s13 }
0x1d08   :  { %6048 = vrot.lane.b32.xlu0 %v6025_v58, %s8629_s13 }
0x1d0e   :  { %6046 = vrot.lane.b32.xlu2 %v6024_v49, %s8629_s13 }
0x1d50   :  { %v6035_v39 = vpop.permute.xlu2 %6034 }
0x1d51   :  { %v6058_v26 = vsel %vm14097_vm7, %v6035_v39, 0.0  ;;  %vm14106_vm7 = vcmask 1047559  }
0x1d52   :  { %6059 = vadd.xlane.f32.xlu1 %v6058_v26 }
0x1d58   :  { %v6037_v19 = vpop.permute.xlu2 %6036 }
0x1d59   :  { %v6061_v29 = vsel %vm14098_vm4, %v6037_v19, 0.0  ;;  %vm14107_vm4 = vcmask 48128  }
0x1d5a   :  { %6062 = vadd.xlane.f32.xlu2 %v6061_v29 }
0x1d60   :  { %v6041_v47 = vpop.permute.xlu2 %6040 }
0x1d61   :  { %v6067_v1 = vsel %vm14099_vm1, %v6041_v47, 0.0  ;;  %vm14108_vm1 = vcmask 261120  }
0x1d62   :  { %6068 = vadd.xlane.f32.xlu2 %v6067_v1 }
0x1d68   :  { %v6047_v49 = vpop.permute.xlu2 %6046 }
0x1d69   :  { %v6076_v39 = vsel %vm14102_vm5, %v6047_v49, 0.0  ;;  %vm14147_vm5 = vmmov %vm14107_vm4 }
0x1d6a   :  { %v6045_v0 = vpop.permute.xlu1 %6044  ;;  %v6039_v43 = vpop.permute.xlu0 %6038 }
0x1d6b   :  { %v6073_v38 = vsel %vm14100_vm9, %v6045_v0, 0.0  ;;  %v6064_v58 = vsel %vm14101_vm2, %v6039_v43, 0.0  ;;  %vm14145_vm9 = vmmov %vm14105_vm15 }
0x1d6c   :  { %6065 = vadd.xlane.f32.xlu0 %v6064_v58  ;;  %6074 = vadd.xlane.f32.xlu2 %v6073_v38  ;;  %vm14146_vm2 = vmmov %vm14106_vm7 }
0x1d72   :  { %v6043_v8 = vpop.permute.xlu0 %6042 }
0x1d73   :  { %v6070_v26 = vsel %vm14103_vm3, %v6043_v8, 0.0 }
0x1d74   :  { %6071 = vadd.xlane.f32.xlu1 %v6070_v26  ;;  %6077 = vadd.xlane.f32.xlu0 %v6076_v39 }
0x1d7a   :  { %v6049_v19 = vpop.permute.xlu0 %6048 }
0x1d7b   :  { %v6079_v29 = vsel %vm14104_vm6, %v6049_v19, 0.0 }
0x1d7c   :  { %6080 = vadd.xlane.f32.xlu1 %v6079_v29 }
0x1d88   :  { %5806 = vrot.lane.b32.xlu0 %v11373_v31, %s8629_s13 }
0x1dc5   :  { %v6060_v1 = vpop.xlane.xlu1 %6059 }
0x1dc6   :  { %v11413_v49 = vmul.f32 0.17677669, %v6060_v1 }
0x1dc8   :  { %v6098_v26 = vperm.slane %v11413_v49, %v8896_v36 }
0x1dcd   :  { %v6063_v47 = vpop.xlane.xlu2 %6062 }
0x1dce   :  { %v11409_v38 = vmul.f32 0.17677669, %v6063_v47 }
0x1dd0   :  { %v6099_v8 = vperm.slane %v11409_v38, %v8896_v36 }
0x1dd2   :  { %v6106_v47 = vsel %vm778_vm10, %v6099_v8, %v6098_v26 }
0x1dd5   :  { %v6069_v43 = vpop.xlane.xlu2 %6068 }
0x1dd6   :  { %v11421_v19 = vmul.f32 0.17677669, %v6069_v43 }
0x1ddf   :  { %v6066_v0 = vpop.xlane.xlu0 %6065  ;;  %v6075_v29 = vpop.xlane.xlu2 %6074 }
0x1de0   :  { %v11411_v58 = vmul.f32 0.17677669, %v6066_v0  ;;  %v6101_v0 = vperm.slane %v11421_v19, %v8896_v36  ;;  %v11429_v45 = vmul.f32 0.17677669, %v6075_v29 }
0x1de2   :  { %v6100_v39 = vperm.slane %v11411_v58, %v8896_v36 }
0x1de4   :  { %v6107_v1 = vsel %vm780_vm11, %v6100_v39, %v6106_v47 }
0x1de5   :  { %v6108_v43 = vsel %vm782_vm12, %v6101_v0, %v6107_v1 }
0x1de7   :  { %v6072_v32 = vpop.xlane.xlu1 %6071  ;;  %v6078_v34 = vpop.xlane.xlu0 %6077 }
0x1de8   :  { %v11424_v52 = vmul.f32 0.17677669, %v6072_v32  ;;  %v11435_v56 = vmul.f32 0.17677669, %v6078_v34  ;;  %v6103_v32 = vperm.slane %v11429_v45, %v8896_v36 }
0x1dea   :  { %v6102_v62 = vperm.slane %v11424_v52, %v8896_v36  ;;  %v6104_v29 = vperm.slane %v11435_v56, %v8896_v36 }
0x1dec   :  { %v6109_v60 = vsel %vm784_vm13, %v6102_v62, %v6108_v43 }
0x1ded   :  { %v6110_v26 = vsel %vm786_vm14, %v6103_v32, %v6109_v60 }
0x1dee   :  { %v6111_v1 = vsel %vm14105_vm15, %v6104_v29, %v6110_v26  ;;  %v14109_v29 = vld [vmem:[#allocation72_spill] sm:$0xff] }
0x1def   :  { %v6081_v8 = vpop.xlane.xlu1 %6080 }
0x1df0   :  { %v11439_v39 = vmul.f32 0.17677669, %v6081_v8 }
0x1df2   :  { %v6105_v47 = vperm.slane %v11439_v39, %v8896_v36 }
0x1df4   :  { %v6112_v62 = vsel %vm14106_vm7, %v6105_v47, %v6111_v1  ;;  %v14110_v47 = vld [vmem:[#allocation21_spill] sm:$0xff]  ;;  %v14111_v1 = vld [vmem:[#allocation74_spill] sm:$0xff] }
0x1df5   :  { %v6114_v34 = vsel %vm14107_vm4, %v6112_v62, -inf  ;;  %v14112_v62 = vld [vmem:[#allocation22_spill] sm:$0xff] }
0x1df6   :  { %6115 = vmax.xlane.f32.xlu2 %v6114_v34  ;;  %v14113_v34 = vld [vmem:[#allocation77_spill] sm:$0xff] }
0x1dfa   :  { %v5807_v0 = vpop.permute.xlu0 %5806 }
0x1dfb   :  { %v5808_v43 = vsel %vm14108_vm1, %v5807_v0, 0  ;;  %v14114_v0 = vld [vmem:[#allocation24_spill] sm:$0xff] }
0x1dfc   :  { %v5830_v8 = vand.u32 4294901760, %v5808_v43 }
0x1dfe   :  { %v5831_v15 = vsub.f32 %v5808_v43, %v5830_v8  ;;  %5876 = vmatmul.f32.vlgmr.msrb.gmra.mxu3 %v5830_v8  ;;  %v14115_v43 = vld [vmem:[#allocation80_spill] sm:$0xff] }
0x1dff   :  { %5983 = vmatpush.msrb.mxu3 %v9147_v50 }
0x1e00   :  { %v5832_v60 = vand.u32 4294901760, %v5831_v15 }
0x1e01   :  { %5985 = vmatpush.msrb.mxu3 %v9155_v55 }
0x1e02   :  { %v5833_v32 = vsub.f32 %v5831_v15, %v5832_v60 }
0x1e03   :  { %5987 = vmatpush.msrb.mxu3 %v9168_v40 }
0x1e04   :  { %v5834_v26 = vand.u32 4294901760, %v5833_v32  ;;  %v14118_v32 = vld [vmem:[#allocation37_spill] sm:$0xff] }
0x1e05   :  { %5989 = vmatpush.msrb.mxu3 %v9185_v2 }
0x1e06   :  { %5835 = vmatmul.f32.vlgmr.msrb.gmra.mxu2 %v5834_v26  ;;  %5933 = vmatmul.f32.vlgmr.msra.gmra.mxu3 %v5832_v60  ;;  %v14117_v60 = vld [vmem:[#allocation34_spill] sm:$0xff] }
0x1e07   :  { %5952 = vmatpush.msrb.mxu2 %v14109_v29  ;;  %6800 = vmatpush.msra.mxu3 %v14110_v47  ;;  %v14119_v26 = vld [vmem:[#allocation42_spill] sm:$0xff] }
0x1e08   :  { %v14120_v47 = vld [vmem:[#allocation46_spill] sm:$0xff] }
0x1e09   :  { %5956 = vmatpush.msrb.mxu2 %v14111_v1  ;;  %6806 = vmatpush.msra.mxu3 %v14112_v62  ;;  %v14123_v62 = vld [vmem:[#allocation54_spill] sm:$0xff] }
0x1e0b   :  { %5960 = vmatpush.msrb.mxu2 %v14113_v34  ;;  %6812 = vmatpush.msra.mxu3 %v14114_v0  ;;  %v14124_v0 = vld [vmem:[#allocation56_spill] sm:$0xff] }
0x1e0d   :  { %5964 = vmatpush.msrb.mxu2 %v14115_v43  ;;  %6818 = vmatpush.msra.mxu3 %v14116_v7  ;;  %v14121_v7 = vld [vmem:[#allocation48_spill] sm:$0xff] }
0x1e0e   :  { %5906 = vmatmul.f32.vlgmr.msra.gmra.mxu2 %v5831_v15  ;;  %5991 = vmatmul.f32.vlgmr.msrb.gmra.mxu3 %v5830_v8  ;;  %v14122_v15 = vld [vmem:[#allocation51_spill] sm:$0xff] }
0x1e0f   :  { %6755 = vmatpush.msra.mxu2 %v8678_v3  ;;  %6824 = vmatpush.msra.mxu3 %v14117_v60  ;;  %v14125_v60 = vld [vmem:[#allocation58_spill] sm:$0xff] }
0x1e11   :  { %6757 = vmatpush.msra.mxu2 %v8680_v4  ;;  %6830 = vmatpush.msra.mxu3 %v14118_v32  ;;  %v14127_v32 = vld [vmem:[#allocation60_spill] sm:$0xff] }
0x1e13   :  { %6759 = vmatpush.msra.mxu2 %v8682_v5  ;;  %6836 = vmatpush.msra.mxu3 %v14119_v26  ;;  %v14128_v26 = vld [vmem:[#allocation61_spill] sm:$0xff] }
0x1e15   :  { %6761 = vmatpush.msra.mxu2 %v8693_v9  ;;  %6842 = vmatpush.msra.mxu3 %v14120_v47  ;;  %v14129_v47 = vld [vmem:[#allocation11_spill] sm:$0xff] }
0x1e16   :  { %5966 = vmatmul.f32.vlgmr.msrb.gmra.mxu2 %v5830_v8  ;;  %v14126_v8 = vld [vmem:[#allocation59_spill] sm:$0xff] }
0x1e17   :  { %6763 = vmatpush.msra.mxu2 %v8695_v10  ;;  %6848 = vmatpush.msra.mxu3 %v14121_v7  ;;  %v14130_v7 = vld [vmem:[#allocation12_spill] sm:$0xff] }
0x1e19   :  { %6765 = vmatpush.msra.mxu2 %v8697_v11  ;;  %6854 = vmatpush.msra.mxu3 %v14122_v15  ;;  %v14142_v15 = vld [vmem:[#allocation52_spill] sm:$0xff] }
0x1e1b   :  { %6767 = vmatpush.msra.mxu2 %v8715_v17  ;;  %6860 = vmatpush.msra.mxu3 %v14123_v62  ;;  %v14144_v62 = vld [vmem:[#allocation57_spill] sm:$0xff] }
0x1e1d   :  { %6769 = vmatpush.msra.mxu2 %v14064_v23  ;;  %6866 = vmatpush.msra.mxu3 %v14124_v0 }
0x1e1f   :  { %6771 = vmatpush.msra.mxu2 %v14066_v25  ;;  %6872 = vmatpush.msra.mxu3 %v14125_v60 }
0x1e21   :  { %6773 = vmatpush.msra.mxu2 %v14068_v53  ;;  %6878 = vmatpush.msra.mxu3 %v14126_v8 }
0x1e23   :  { %6775 = vmatpush.msra.mxu2 %v14070_v57  ;;  %6884 = vmatpush.msra.mxu3 %v14127_v32 }
0x1e25   :  { %6777 = vmatpush.msra.mxu2 %v14072_v28  ;;  %6890 = vmatpush.msra.mxu3 %v14128_v26 }
0x1e27   :  { %7059 = vmatpush.msrb.mxu3 %v8678_v3  ;;  %6779 = vmatpush.msra.mxu2 %v14074_v33  ;;  %v14131_v3 = vld [vmem:[#allocation13_spill] sm:$0xff] }
0x1e29   :  { %7061 = vmatpush.msrb.mxu3 %v8680_v4  ;;  %6781 = vmatpush.msra.mxu2 %v14076_v54  ;;  %v14132_v4 = vld [vmem:[#allocation15_spill] sm:$0xff] }
0x1e2b   :  { %7063 = vmatpush.msrb.mxu3 %v8682_v5  ;;  %6783 = vmatpush.msra.mxu2 %v14078_v63  ;;  %v14133_v5 = vld [vmem:[#allocation16_spill] sm:$0xff] }
0x1e2d   :  { %7065 = vmatpush.msrb.mxu3 %v8693_v9  ;;  %6785 = vmatpush.msra.mxu2 %v14080_v27  ;;  %v14134_v9 = vld [vmem:[#allocation19_spill] sm:$0xff] }
0x1e2f   :  { %6992 = vmatpush.msrb.mxu2 %v14129_v47  ;;  %7067 = vmatpush.msrb.mxu3 %v8695_v10  ;;  %v14135_v10 = vld [vmem:[#allocation25_spill] sm:$0xff] }
0x1e31   :  { %6996 = vmatpush.msrb.mxu2 %v14130_v7  ;;  %7069 = vmatpush.msrb.mxu3 %v8697_v11  ;;  %v14136_v11 = vld [vmem:[#allocation30_spill] sm:$0xff] }
0x1e33   :  { %7000 = vmatpush.msrb.mxu2 %v14131_v3  ;;  %7071 = vmatpush.msrb.mxu3 %v8715_v17  ;;  %v14137_v17 = vld [vmem:[#allocation32_spill] sm:$0xff] }
0x1e35   :  { %7004 = vmatpush.msrb.mxu2 %v14132_v4  ;;  %7073 = vmatpush.msrb.mxu3 %v14064_v23  ;;  %v14138_v23 = vld [vmem:[#allocation38_spill] sm:$0xff] }
0x1e37   :  { %7008 = vmatpush.msrb.mxu2 %v14133_v5  ;;  %7075 = vmatpush.msrb.mxu3 %v14066_v25  ;;  %v14139_v25 = vld [vmem:[#allocation43_spill] sm:$0xff] }
0x1e39   :  { %7012 = vmatpush.msrb.mxu2 %v14134_v9  ;;  %7077 = vmatpush.msrb.mxu3 %v14068_v53  ;;  %v14140_v53 = vld [vmem:[#allocation44_spill] sm:$0xff] }
0x1e3b   :  { %7016 = vmatpush.msrb.mxu2 %v14135_v10  ;;  %7079 = vmatpush.msrb.mxu3 %v14070_v57  ;;  %v14141_v57 = vld [vmem:[#allocation49_spill] sm:$0xff] }
0x1e3d   :  { %7020 = vmatpush.msrb.mxu2 %v14136_v11  ;;  %7081 = vmatpush.msrb.mxu3 %v14072_v28  ;;  %v14143_v28 = vld [vmem:[#allocation55_spill] sm:$0xff] }
0x1e3f   :  { %7024 = vmatpush.msrb.mxu2 %v14137_v17  ;;  %7083 = vmatpush.msrb.mxu3 %v14074_v33 }
0x1e41   :  { %7028 = vmatpush.msrb.mxu2 %v14138_v23  ;;  %7085 = vmatpush.msrb.mxu3 %v14076_v54 }
0x1e43   :  { %7032 = vmatpush.msrb.mxu2 %v14139_v25  ;;  %7087 = vmatpush.msrb.mxu3 %v14078_v63 }
0x1e45   :  { %7036 = vmatpush.msrb.mxu2 %v14140_v53  ;;  %7089 = vmatpush.msrb.mxu3 %v14080_v27 }
0x1e47   :  { %7040 = vmatpush.msrb.mxu2 %v14141_v57 }
0x1e49   :  { %7044 = vmatpush.msrb.mxu2 %v14142_v15 }
0x1e4b   :  { %7048 = vmatpush.msrb.mxu2 %v14143_v28 }
0x1e4d   :  { %7052 = vmatpush.msrb.mxu2 %v14144_v62 }
0x1e69   :  { %v6116_v33 = vpop.xlane.xlu2 %6115 }
0x1e6a   :  { %v6118_v0 = vperm.slane %v6116_v33, 0  ;;  %v6119_v60 = vperm.slane %v6116_v33, 1  ;;  %v6120_v54 = vperm.slane %v6116_v33, 2  ;;  %v6121_v8 = vperm.slane %v6116_v33, 3 }
0x1e6b   :  { %v6122_v27 = vperm.slane %v6116_v33, 4  ;;  %v6123_v47 = vperm.slane %v6116_v33, 5  ;;  %v6124_v11 = vperm.slane %v6116_v33, 6 }
0x1e6c   :  { %v6134_v32 = vsub.f32 %v11413_v49, %v6118_v0  ;;  %v6135_v63 = vsub.f32 %v11409_v38, %v6119_v60  ;;  %v6136_v26 = vsub.f32 %v11411_v58, %v6120_v54  ;;  %v6137_v5 = vsub.f32 %v11421_v19, %v6121_v8 }
0x1e6d   :  { %v6139_v9 = vsub.f32 %v11429_v45, %v6123_v47  ;;  %v6138_v10 = vsub.f32 %v11424_v52, %v6122_v27  ;;  %v6125_v58 = vperm.slane %v6116_v33, 7  ;;  %v6140_v19 = vsub.f32 %v11435_v56, %v6124_v11 }
0x1e6e   :  { %v6142_v7 = vmul.f32 1.442695, %v6134_v32  ;;  %v6144_v3 = vmul.f32 1.442695, %v6135_v63  ;;  %v6146_v4 = vmul.f32 1.442695, %v6136_v26 }
0x1e6f   :  { %v6148_v49 = vmul.f32 1.442695, %v6137_v5  ;;  %v6152_v17 = vmul.f32 1.442695, %v6139_v9  ;;  %v6150_v23 = vmul.f32 1.442695, %v6138_v10  ;;  %v6141_v45 = vsub.f32 %v11439_v39, %v6125_v58 }
0x1e70   :  { %8281 = vpow2.f32 %v6142_v7  ;;  %v6154_v52 = vmul.f32 1.442695, %v6140_v19 }
0x1e71   :  { %8283 = vpow2.f32 %v6144_v3  ;;  %v6156_v15 = vmul.f32 1.442695, %v6141_v45 }
0x1e72   :  { %8285 = vpow2.f32 %v6146_v4 }
0x1e73   :  { %8287 = vpow2.f32 %v6148_v49 }
0x1e74   :  { %8289 = vpow2.f32 %v6152_v17 }
0x1e75   :  { %8291 = vpow2.f32 %v6150_v23 }
0x1e76   :  { %v11528_v38 = vpop.eup %8281  ;;  %8293 = vpow2.f32 %v6154_v52 }
0x1e77   :  { %v11530_v25 = vpop.eup %8283  ;;  %6167 = vperm.xlu1 %8119, %v11528_v38   ;;  %8295 = vpow2.f32 %v6156_v15 }
0x1e78   :  { %v11533_v53 = vpop.eup %8285  ;;  %6170 = vperm.xlu2 %8120, %v11530_v25  }
0x1e79   :  { %6173 = vperm.xlu0 %8121, %v11533_v53   ;;  %v11539_v57 = vpop.eup %8287 }
0x1e7a   :  { %v11541_v28 = vpop.eup %8289 }
0x1e7b   :  { %v11544_v62 = vpop.eup %8291 }
0x1e7c   :  { %v11548_v56 = vpop.eup %8293 }
0x1e7d   :  { %v11551_v39 = vpop.eup %8295 }
0x1e7f   :  { %6176 = vperm.xlu1 %8119, %v11539_v57  }
0x1e80   :  { %6182 = vperm.xlu2 %8120, %v11541_v28  }
0x1e81   :  { %6179 = vperm.xlu0 %8121, %v11544_v62  }
0x1e87   :  { %6185 = vperm.xlu1 %8119, %v11548_v56  }
0x1e89   :  { %6188 = vperm.xlu0 %8121, %v11551_v39  }
0x1ed2   :  { %v6171_v60 = vpop.permute.xlu2 %6170 }
0x1ed3   :  { %v6191_v8 = vperm.slane %v6171_v60, %v8896_v36 }
0x1eda   :  { %v6183_v5 = vpop.permute.xlu2 %6182 }
0x1edb   :  { %v6195_v10 = vperm.slane %v6183_v5, %v8896_v36 }
0x1ee9   :  { %v6168_v33 = vpop.permute.xlu1 %6167 }
0x1eea   :  { %v6190_v54 = vperm.slane %v6168_v33, %v8896_v36 }
0x1eeb   :  { %v6174_v0 = vpop.permute.xlu0 %6173 }
0x1eec   :  { %v6192_v32 = vperm.slane %v6174_v0, %v8896_v36  ;;  %v6198_v63 = vsel %vm778_vm10, %v6191_v8, %v6190_v54 }
0x1eee   :  { %v6199_v3 = vsel %vm780_vm11, %v6192_v32, %v6198_v63 }
0x1ef1   :  { %v6177_v26 = vpop.permute.xlu1 %6176 }
0x1ef2   :  { %v6193_v27 = vperm.slane %v6177_v26, %v8896_v36 }
0x1ef3   :  { %v6180_v47 = vpop.permute.xlu0 %6179 }
0x1ef4   :  { %v6194_v7 = vperm.slane %v6180_v47, %v8896_v36  ;;  %v6200_v4 = vsel %vm782_vm12, %v6193_v27, %v6199_v3 }
0x1ef6   :  { %v6201_v9 = vsel %vm784_vm13, %v6194_v7, %v6200_v4 }
0x1ef7   :  { %v6202_v58 = vsel %vm786_vm14, %v6195_v10, %v6201_v9 }
0x1ef9   :  { %v6186_v11 = vpop.permute.xlu1 %6185 }
0x1efa   :  { %v6196_v49 = vperm.slane %v6186_v11, %v8896_v36 }
0x1efb   :  { %v6189_v17 = vpop.permute.xlu0 %6188 }
0x1efc   :  { %v6197_v23 = vperm.slane %v6189_v17, %v8896_v36  ;;  %v6203_v19 = vsel %vm14145_vm9, %v6196_v49, %v6202_v58 }
0x1efe   :  { %v6204_v45 = vsel %vm14146_vm2, %v6197_v23, %v6203_v19 }
0x1eff   :  { %v6206_v52 = vsel %vm14147_vm5, %v6204_v45, 0.0 }
0x1f00   :  { %6207 = vadd.xlane.f32.xlu2 %v6206_v52 }
0x1f73   :  { %v6208_v15 = vpop.xlane.xlu2 %6207 }
0x1f74   :  { %v11570_v33 = vperm.slane %v6208_v15, 0  ;;  %v6211_v0 = vperm.slane %v6208_v15, 1  ;;  %v6212_v60 = vperm.slane %v6208_v15, 2  ;;  %v11572_v54 = vperm.slane %v6208_v15, 3 }
0x1f75   :  { %v11574_v8 = vperm.slane %v6208_v15, 4  ;;  %v11577_v32 = vperm.slane %v6208_v15, 5  ;;  %v11584_v47 = vperm.slane %v6208_v15, 7  ;;  %v11588_v5 = vperm.slane %v6208_v15, 6 }
0x1f76   :  { %8297 = vrcp.f32 %v11570_v33  ;;  %v6265_v26 = vand.u32 2147483647, %v6212_v60  ;;  %v6267_v7 = vand.u32 2147483648, %v6212_v60  ;;  %vm6261_vm3 = vweird.f32 %v6212_v60 }
0x1f77   :  { %8299 = vrcp.f32 %v6211_v0  ;;  %vm6246_vm6 = vweird.f32 %v6211_v0  ;;  %v6250_v49 = vand.u32 2147483647, %v6211_v0  ;;  %v6252_v45 = vand.u32 2147483648, %v6211_v0 }
0x1f78   :  { %8301 = vrcp.f32 %v6212_v60  ;;  %vm11594_vm15 = vcmp.eq.f32.partialorder %v6265_v26, 8.507059e+37  ;;  %v6268_v46 = vor.u32 1.1754944e-38, %v6267_v7 }
0x1f79   :  { %8303 = vrcp.f32 %v11572_v54  ;;  %vm11606_vm1 = vcmp.eq.f32.partialorder %v6250_v49, 8.507059e+37 }
0x1f7a   :  { %8305 = vrcp.f32 %v11574_v8 }
0x1f7b   :  { %8307 = vrcp.f32 %v11577_v32 }
0x1f7c   :  { %v11582_v63 = vpop.eup %8297  ;;  %8309 = vrcp.f32 %v11584_v47 }
0x1f7d   :  { %v8300_v27 = vpop.eup %8299  ;;  %v6227_v3 = vmul.f32 %v11582_v63, %v11570_v33  ;;  %8311 = vrcp.f32 %v11588_v5  ;;  %vm6232_vm2 = vweird.f32 %v11582_v63 }
0x1f7e   :  { %v8302_v4 = vpop.eup %8301  ;;  %v6242_v9 = vmul.f32 %v8300_v27, %v6211_v0  ;;  %vm6247_vm7 = vweird.f32 %v8300_v27 }
0x1f7f   :  { %v11590_v10 = vpop.eup %8303  ;;  %v6257_v11 = vmul.f32 %v8302_v4, %v6212_v60  ;;  %v6228_v17 = vsub.f32 1.0, %v6227_v3  ;;  %vm6262_vm4 = vweird.f32 %v8302_v4  ;;  %vm6248_vm9 = vmor %vm6246_vm6, %vm6247_vm7  ;;  %vm6276_vm6 = vweird.f32 %v11572_v54 }
0x1f80   :  { %v11592_v58 = vpop.eup %8305  ;;  %v6243_v19 = vsub.f32 1.0, %v6242_v9  ;;  %v6272_v52 = vmul.f32 %v11590_v10, %v11572_v54  ;;  %vm6263_vm5 = vmor %vm6261_vm3, %vm6262_vm4  ;;  %vm6277_vm8 = vweird.f32 %v11590_v10  ;;  %vm6231_vm3 = vweird.f32 %v11570_v33 }
0x1f81   :  { %v11600_v15 = vpop.eup %8307  ;;  %v6258_v30 = vsub.f32 1.0, %v6257_v11  ;;  %v6229_v20 = vmul.f32 %v11582_v63, %v6228_v17  ;;  %v6287_v26 = vmul.f32 %v11592_v58, %v11574_v8  ;;  %v6253_v11 = vor.u32 1.1754944e-38, %v6252_v45  ;;  %vm6233_vm7 = vmor %vm6231_vm3, %vm6232_vm2 }
0x1f82   :  { %v6244_v41 = vmul.f32 %v8300_v27, %v6243_v19  ;;  %v6273_v3 = vsub.f32 1.0, %v6272_v52  ;;  %v6302_v44 = vmul.f32 %v11600_v15, %v11577_v32  ;;  %v6282_v17 = vand.u32 2147483648, %v11572_v54  ;;  %v11621_v45 = vpop.eup %8309 }
0x1f83   :  { %v6259_v51 = vmul.f32 %v8302_v4, %v6258_v30  ;;  %v6237_v30 = vand.u32 2147483648, %v11570_v33  ;;  %v6230_v42 = vadd.f32 %v11582_v63, %v6229_v20  ;;  %vm6291_vm2 = vweird.f32 %v11574_v8 }
0x1f84   :  { %v6245_v7 = vadd.f32 %v8300_v27, %v6244_v41  ;;  %v6274_v19 = vmul.f32 %v11590_v10, %v6273_v3  ;;  %v6288_v41 = vsub.f32 1.0, %v6287_v26  ;;  %v6303_v13 = vsub.f32 1.0, %v6302_v44  ;;  %v11636_v26 = vpop.eup %8311 }
0x1f85   :  { %v6260_v52 = vadd.f32 %v8302_v4, %v6259_v51  ;;  %v6234_v44 = vsel %vm6233_vm7, %v11582_v63, %v6230_v42  ;;  %v6317_v9 = vmul.f32 %v11636_v26, %v11588_v5 }
0x1f86   :  { %v6249_v49 = vsel %vm6248_vm9, %v8300_v27, %v6245_v7  ;;  %v6275_v0 = vadd.f32 %v11590_v10, %v6274_v19  ;;  %v6235_v27 = vand.u32 2147483647, %v11570_v33  ;;  %v6332_v33 = vmul.f32 %v11621_v45, %v11584_v47 }
0x1f87   :  { %v6264_v3 = vsel %vm6263_vm5, %v8302_v4, %v6260_v52  ;;  %v6254_v51 = vsel %vm11606_vm1, %v6253_v11, %v6249_v49  ;;  %v6280_v4 = vand.u32 2147483647, %v11572_v54  ;;  %v6283_v54 = vor.u32 1.1754944e-38, %v6282_v17 }
0x1f88   :  { %v6269_v43 = vsel %vm11594_vm15, %v6268_v46, %v6264_v3  ;;  %v6255_v60 = vmul.f32 %v11530_v25, %v6254_v51  ;;  %vm6278_vm15 = vmor %vm6276_vm6, %vm6277_vm8  ;;  %v6289_v46 = vmul.f32 %v11592_v58, %v6288_v41  ;;  %v6238_v25 = vor.u32 1.1754944e-38, %v6237_v30 }
0x1f89   :  { %v6270_v20 = vmul.f32 %v11533_v53, %v6269_v43  ;;  %v6279_v43 = vsel %vm6278_vm15, %v11590_v10, %v6275_v0  ;;  %v6304_v53 = vmul.f32 %v11600_v15, %v6303_v13  ;;  %vm6236_vm4 = vcmp.eq.f32.partialorder %v6235_v27, 8.507059e+37 }
0x1f8a   :  { %6353 = vperm.xlu1 %8119, %v6255_v60   ;;  %vm6281_vm1 = vcmp.eq.f32.partialorder %v6280_v4, 8.507059e+37  ;;  %v6239_v23 = vsel %vm6236_vm4, %v6238_v25, %v6234_v44  ;;  %vm6307_vm8 = vweird.f32 %v11600_v15  ;;  %v6290_v42 = vadd.f32 %v11592_v58, %v6289_v46 }
0x1f8b   :  { %6358 = vperm.xlu0 %8121, %v6270_v20   ;;  %v6284_v7 = vsel %vm6281_vm1, %v6283_v54, %v6279_v43  ;;  %vm6292_vm9 = vweird.f32 %v11592_v58  ;;  %v6305_v63 = vadd.f32 %v11600_v15, %v6304_v53  ;;  %v6297_v13 = vand.u32 2147483648, %v11574_v8 }
0x1f8c   :  { %v6333_v10 = vsub.f32 1.0, %v6332_v33  ;;  %v6318_v11 = vsub.f32 1.0, %v6317_v9  ;;  %v6240_v19 = vmul.f32 %v11528_v38, %v6239_v23  ;;  %v6312_v52 = vand.u32 2147483648, %v11577_v32  ;;  %vm6293_vm3 = vmor %vm6291_vm2, %vm6292_vm9  ;;  %v5877_v23 = vpop.f32.mrf.mxu3 }
0x1f8d   :  { %v6295_v17 = vand.u32 2147483647, %v11574_v8  ;;  %v6285_v30 = vmul.f32 %v11539_v57, %v6284_v7  ;;  %vm6306_vm5 = vweird.f32 %v11577_v32  ;;  %v6310_v49 = vand.u32 2147483647, %v11577_v32 }
0x1f8e   :  { %vm6308_vm6 = vmor %vm6306_vm5, %vm6307_vm8  ;;  %v6294_v41 = vsel %vm6293_vm3, %v11592_v58, %v6290_v42  ;;  %v6319_v38 = vmul.f32 %v11636_v26, %v6318_v11  ;;  %v6298_v51 = vor.u32 1.1754944e-38, %v6297_v13  ;;  %v6334_v8 = vmul.f32 %v11621_v45, %v6333_v10  ;;  %v8583_v42 = vld [vmem:[%s13215_s2 + $0x10] sm:$0x3f] }
0x1f8f   :  { %v6309_v3 = vsel %vm6308_vm6, %v11600_v15, %v6305_v63  ;;  %v6313_v57 = vor.u32 1.1754944e-38, %v6312_v52  ;;  %vm6296_vm7 = vcmp.eq.f32.partialorder %v6295_v17, 8.507059e+37  ;;  %vm6311_vm15 = vcmp.eq.f32.partialorder %v6310_v49, 8.507059e+37 }
0x1f90   :  { %v6299_v0 = vsel %vm6296_vm7, %v6298_v51, %v6294_v41  ;;  %v6320_v60 = vadd.f32 %v11636_v26, %v6319_v38  ;;  %vm6322_vm4 = vweird.f32 %v11636_v26  ;;  %v6335_v27 = vadd.f32 %v11621_v45, %v6334_v8 }
0x1f91   :  { %v6314_v32 = vsel %vm6311_vm15, %v6313_v57, %v6309_v3  ;;  %vm6337_vm1 = vweird.f32 %v11621_v45  ;;  %v6327_v58 = vand.u32 2147483648, %v11588_v5  ;;  %v6300_v15 = vmul.f32 %v11544_v62, %v6299_v0  ;;  %v8585_v3 = vld [vmem:[%s13215_s2] sm:$0x3f] }
0x1f92   :  { %6348 = vperm.xlu1 %8119, %v6240_v19   ;;  %v6342_v20 = vand.u32 2147483648, %v11584_v47  ;;  %vm6321_vm8 = vweird.f32 %v11588_v5  ;;  %v6325_v4 = vand.u32 2147483647, %v11588_v5  ;;  %v6315_v44 = vmul.f32 %v11541_v28, %v6314_v32 }
0x1f93   :  { %6363 = vperm.xlu0 %8121, %v6285_v30   ;;  %vm6336_vm9 = vweird.f32 %v11584_v47  ;;  %v6340_v46 = vand.u32 2147483647, %v11584_v47  ;;  %vm6323_vm2 = vmor %vm6321_vm8, %vm6322_vm4  ;;  %v6328_v25 = vor.u32 1.1754944e-38, %v6327_v58  ;;  %v5836_v47 = vpop.f32.mrf.mxu2  ;;  %vm14155_vm7 = vcmask 1046534  }
0x1f94   :  { %vm6338_vm5 = vmor %vm6336_vm9, %vm6337_vm1  ;;  %v6324_v43 = vsel %vm6323_vm2, %v11636_v26, %v6320_v60  ;;  %v6343_v53 = vor.u32 1.1754944e-38, %v6342_v20  ;;  %vm6326_vm3 = vcmp.eq.f32.partialorder %v6325_v4, 8.507059e+37  ;;  %v5934_v57 = vpop.f32.mrf.mxu3  ;;  %vm14156_vm15 = vcmask 1047559  }
0x1f95   :  { %v6339_v62 = vsel %vm6338_vm5, %v11621_v45, %v6335_v27  ;;  %vm6341_vm6 = vcmp.eq.f32.partialorder %v6340_v46, 8.507059e+37  ;;  %v6329_v33 = vsel %vm6326_vm3, %v6328_v25, %v6324_v43  ;;  %v8582_v45 = vld [vmem:[%s13215_s2 + $0x8] sm:$0x3f]  ;;  %v8586_v27 = vld [vmem:[%s13215_s2 + $0x18] sm:$0x3f]  ;;  %vm14157_vm4 = vcmask 80896  }
0x1f96   :  { %v6344_v5 = vsel %vm6341_vm6, %v6343_v53, %v6339_v62  ;;  %v6330_v28 = vmul.f32 %v11548_v56, %v6329_v33 }
0x1f97   :  { %v6345_v54 = vmul.f32 %v11551_v39, %v6344_v5  ;;  %v8584_v39 = vld [vmem:[%s13217_s4] ss:$0 sm:$0xff] }
0x1f98   :  { %v5837_v13 = vadd.f32 %v8584_v39, %v5836_v47 }
0x1f9a   :  { %6368 = vperm.xlu1 %8119, %v6300_v15   ;;  %v5878_v30 = vadd.f32 %v5877_v23, %v5837_v13 }
0x1f9b   :  { %6373 = vperm.xlu0 %8121, %v6315_v44   ;;  %v5907_v10 = vpop.f32.mrf.mxu2 }
0x1f9c   :  { %v5908_v0 = vadd.f32 %v5907_v10, %v5878_v30 }
0x1fa2   :  { %6378 = vperm.xlu1 %8119, %v6330_v28  }
0x1fa3   :  { %6383 = vperm.xlu0 %8121, %v6345_v54   ;;  %v5967_v33 = vpop.f32.mrf.mxu2  ;;  %v5935_v54 = vadd.f32 %v5934_v57, %v5908_v0 }
0x1ffc   :  { %v6354_v9 = vpop.permute.xlu1 %6353 }
0x1ffd   :  { %v6359_v7 = vpop.permute.xlu0 %6358  ;;  %v6387_v26 = vmul.f32 %v8582_v45, %v6354_v9  ;;  %v6724_v41 = vperm.slane %v6354_v9, %v8896_v36  ;;  %v5968_v45 = vadd.f32 %v5967_v33, %v5935_v54  ;;  %v8590_v54 = vld [vmem:[%s13215_s2 + $0x38] sm:$0x3f] }
0x1ffe   :  { %v6388_v63 = vmul.f32 %v8583_v42, %v6359_v7  ;;  %v6725_v60 = vperm.slane %v6359_v7, %v8896_v36 }
0x1fff   :  { %v6401_v56 = vsel %vm1082_vm0, %v6387_v26, 0.0 }
0x2000   :  { %v6408_v11 = vsel %vm1082_vm0, %v6388_v63, 0.0  ;;  %v6402_v19 = vrot.slane %v6401_v56, 4  ;;  %v8587_v63 = vld [vmem:[%s13215_s2 + $0x20] sm:$0x3f] }
0x2001   :  { %v6409_v52 = vrot.slane %v6408_v11, 4 }
0x2002   :  { %v6403_v17 = vadd.f32 %v6402_v19, %v6401_v56 }
0x2003   :  { %v6410_v32 = vadd.f32 %v6409_v52, %v6408_v11  ;;  %v8588_v11 = vld [vmem:[%s13215_s2 + $0x28] sm:$0x3f] }
0x2004   :  { %v6349_v49 = vpop.permute.xlu1 %6348  ;;  %v6404_v15 = vrot.slane %v6403_v17, 2 }
0x2005   :  { %v6364_v38 = vpop.permute.xlu0 %6363  ;;  %v6386_v51 = vmul.f32 %v8585_v3, %v6349_v49  ;;  %v6723_v8 = vperm.slane %v6349_v49, %v8896_v36  ;;  %v6411_v5 = vrot.slane %v6410_v32, 2 }
0x2006   :  { %v6389_v58 = vmul.f32 %v8586_v27, %v6364_v38  ;;  %v6726_v20 = vperm.slane %v6364_v38, %v8896_v36  ;;  %v6405_v47 = vadd.f32 %v6404_v15, %v6403_v17  ;;  %v5992_v38 = vpop.f32.mrf.mxu3 }
0x2007   :  { %v6394_v4 = vsel %vm1082_vm0, %v6386_v51, 0.0  ;;  %v6731_v44 = vsel %vm778_vm10, %v6724_v41, %v6723_v8  ;;  %v6412_v13 = vadd.f32 %v6411_v5, %v6410_v32  ;;  %v11722_v57 = vadd.f32 %v5992_v38, %v5968_v45 }
0x2008   :  { %v6415_v46 = vsel %vm1082_vm0, %v6389_v58, 0.0  ;;  %v6395_v43 = vrot.slane %v6394_v4, 4  ;;  %v6732_v62 = vsel %vm780_vm11, %v6725_v60, %v6731_v44  ;;  %v6406_v17 = vrot.slane %v6405_v47, 1 }
0x2009   :  { %v6416_v25 = vrot.slane %v6415_v46, 4  ;;  %v6733_v53 = vsel %vm782_vm12, %v6726_v20, %v6732_v62  ;;  %v6413_v60 = vrot.slane %v6412_v13, 1 }
0x200a   :  { %v6396_v28 = vadd.f32 %v6395_v43, %v6394_v4  ;;  %v6407_v58 = vadd.f32 %v6406_v17, %v6405_v47 }
0x200b   :  { %v6417_v23 = vadd.f32 %v6416_v25, %v6415_v46  ;;  %v6451_v46 = vrot.slane %v11722_v57, 1  ;;  %v6414_v5 = vadd.f32 %v6413_v60, %v6412_v13  ;;  %v6455_v60 = vrot.slane %v11722_v57, 5 }
0x200c   :  { %v6397_v9 = vrot.slane %v6396_v28, 2  ;;  %v6369_v7 = vpop.permute.xlu1 %6368 }
0x200d   :  { %v6418_v26 = vrot.slane %v6417_v23, 2  ;;  %v6374_v42 = vpop.permute.xlu0 %6373  ;;  %v6390_v56 = vmul.f32 %v8587_v63, %v6369_v7  ;;  %v6727_v39 = vperm.slane %v6369_v7, %v8896_v36 }
0x200e   :  { %v6398_v10 = vadd.f32 %v6397_v9, %v6396_v28  ;;  %v6391_v19 = vmul.f32 %v8588_v11, %v6374_v42  ;;  %v6728_v52 = vperm.slane %v6374_v42, %v8896_v36 }
0x200f   :  { %v6419_v30 = vadd.f32 %v6418_v26, %v6417_v23  ;;  %v6422_v49 = vsel %vm1082_vm0, %v6390_v56, 0.0  ;;  %v6734_v41 = vsel %vm784_vm13, %v6727_v39, %v6733_v53  ;;  %v8589_v53 = vld [vmem:[%s13215_s2 + $0x30] sm:$0x3f]  ;;  %v11737_v23 = vadd.f32 %v6451_v46, %v6407_v58 }
0x2010   :  { %v6429_v3 = vsel %vm1082_vm0, %v6391_v19, 0.0  ;;  %v6423_v51 = vrot.slane %v6422_v49, 4  ;;  %v11720_v8 = vsel %vm786_vm14, %v6728_v52, %v6734_v41  ;;  %v6399_v0 = vrot.slane %v6398_v10, 1 }
0x2011   :  { %14152 = vst [vmem:[#allocation14_spill] sm:$0xff] %v11720_v8  ;;  %v6430_v32 = vrot.slane %v6429_v3, 4  ;;  %v6420_v15 = vrot.slane %v6419_v30, 1  ;;  %v6452_v26 = vrot.slane %v11722_v57, 2  ;;  %v6453_v39 = vrot.slane %v11722_v57, 3 }
0x2012   :  { %v6424_v27 = vadd.f32 %v6423_v51, %v6422_v49  ;;  %v6400_v43 = vadd.f32 %v6399_v0, %v6398_v10  ;;  %v6454_v52 = vrot.slane %v11722_v57, 4  ;;  %v6482_v49 = vrot.slane %v11737_v23, 7 }
0x2013   :  { %v6431_v20 = vadd.f32 %v6430_v32, %v6429_v3  ;;  %v6421_v9 = vadd.f32 %v6420_v15, %v6419_v30  ;;  %v11746_v19 = vadd.f32 %v6452_v26, %v6414_v5  ;;  %v6456_v5 = vrot.slane %v11722_v57, 6 }
0x2014   :  { %v6425_v4 = vrot.slane %v6424_v27, 2  ;;  %v11724_v44 = vpop.permute.xlu1 %6378  ;;  %v11744_v13 = vadd.f32 %v6400_v43, %v11722_v57 }
0x2015   :  { %14153 = vst [vmem:[#allocation9_spill] sm:$0xff] %v11724_v44  ;;  %v6432_v62 = vrot.slane %v6431_v20, 2  ;;  %v11727_v25 = vpop.permute.xlu0 %6383  ;;  %v6392_v33 = vmul.f32 %v8589_v53, %v11724_v44  ;;  %v11750_v41 = vadd.f32 %v6453_v39, %v6421_v9  ;;  %v6484_v58 = vrot.slane %v11746_v19, 6 }
0x2016   :  { %14154 = vst [vmem:[#allocation18_spill] sm:$0xff] %v11727_v25  ;;  %v6426_v28 = vadd.f32 %v6425_v4, %v6424_v27  ;;  %v6393_v47 = vmul.f32 %v8590_v54, %v11727_v25  ;;  %v6483_v32 = vsel %vm778_vm10, %v6482_v49, %v11744_v13  ;;  %v6457_v54 = vrot.slane %v11722_v57, 7 }
0x2017   :  { %v6433_v7 = vadd.f32 %v6432_v62, %v6431_v20  ;;  %v6436_v45 = vsel %vm1082_vm0, %v6392_v33, 0.0  ;;  %v6486_v20 = vrot.slane %v11750_v41, 5  ;;  %v6485_v62 = vsel %vm780_vm11, %v6484_v58, %v6483_v32 }
0x2018   :  { %v6427_v42 = vrot.slane %v6426_v28, 1  ;;  %v6443_v63 = vsel %vm1082_vm0, %v6393_v47, 0.0  ;;  %v6437_v56 = vrot.slane %v6436_v45, 4 }
0x2019   :  { %v6434_v10 = vrot.slane %v6433_v7, 1  ;;  %v6444_v11 = vrot.slane %v6443_v63, 4  ;;  %v6487_v9 = vsel %vm782_vm12, %v6486_v20, %v6485_v62 }
0x201a   :  { %v6428_v17 = vadd.f32 %v6427_v42, %v6426_v28  ;;  %v6438_v30 = vadd.f32 %v6437_v56, %v6436_v45 }
0x201b   :  { %v6435_v38 = vadd.f32 %v6434_v10, %v6433_v7  ;;  %v6445_v3 = vadd.f32 %v6444_v11, %v6443_v63 }
0x201c   :  { %v11752_v51 = vadd.f32 %v6454_v52, %v6428_v17  ;;  %v6439_v0 = vrot.slane %v6438_v30, 2 }
0x201d   :  { %v6446_v27 = vrot.slane %v6445_v3, 2  ;;  %v11759_v4 = vadd.f32 %v6455_v60, %v6435_v38 }
0x201e   :  { %v6440_v15 = vadd.f32 %v6439_v0, %v6438_v30  ;;  %v6488_v53 = vrot.slane %v11752_v51, 4 }
0x201f   :  { %v6447_v46 = vadd.f32 %v6446_v27, %v6445_v3  ;;  %v6490_v7 = vrot.slane %v11759_v4, 3 }
0x2020   :  { %v6441_v43 = vrot.slane %v6440_v15, 1  ;;  %v6489_v26 = vsel %vm784_vm13, %v6488_v53, %v6487_v9 }
0x2021   :  { %v6448_v33 = vrot.slane %v6447_v46, 1  ;;  %v6491_v56 = vsel %vm786_vm14, %v6490_v7, %v6489_v26 }
0x2022   :  { %v6442_v28 = vadd.f32 %v6441_v43, %v6440_v15 }
0x2023   :  { %v6449_v47 = vadd.f32 %v6448_v33, %v6447_v46 }
0x2024   :  { %v11767_v45 = vadd.f32 %v6456_v5, %v6442_v28 }
0x2025   :  { %v11770_v42 = vadd.f32 %v6457_v54, %v6449_v47 }
0x2026   :  { %v6492_v63 = vrot.slane %v11767_v45, 2 }
0x2027   :  { %v6494_v39 = vrot.slane %v11770_v42, 1 }
0x2028   :  { %v6493_v10 = vsel %vm14155_vm7, %v6492_v63, %v6491_v56 }
0x2029   :  { %v6495_v57 = vsel %vm14156_vm15, %v6494_v39, %v6493_v10  ;;  %vm14168_vm15 = vcmask 1046534  }
0x202a   :  { %v6497_v11 = vsel %vm14157_vm4, %v6495_v57, -inf  ;;  %vm14169_vm4 = vcmask 1047559  }
0x202b   :  { %6498 = vmax.xlane.f32.xlu1 %v6497_v11 }
0x209e   :  { %v11778_v52 = vpop.xlane.xlu1 %6498 }
0x209f   :  { %v13524_v17 = vrot.slane %v11778_v52, 1  ;;  %v13523_v30 = vrot.slane %v11778_v52, 2  ;;  %v13522_v49 = vrot.slane %v11778_v52, 3  ;;  %v13521_v38 = vrot.slane %v11778_v52, 4 }
0x20a0   :  { %v13520_v3 = vrot.slane %v11778_v52, 5  ;;  %v13519_v0 = vrot.slane %v11778_v52, 6  ;;  %v13518_v32 = vrot.slane %v11778_v52, 7  ;;  %vm6643_vm5 = vcmp.eq.f32.partialorder %v11744_v13, %v11778_v52 }
0x20a1   :  { %vm6644_vm1 = vcmp.eq.f32.partialorder %v11737_v23, %v13524_v17  ;;  %vm6645_vm8 = vcmp.eq.f32.partialorder %v11746_v19, %v13523_v30  ;;  %vm11796_vm9 = vcmp.eq.f32.partialorder %v11750_v41, %v13522_v49  ;;  %vm11803_vm2 = vcmp.eq.f32.partialorder %v11752_v51, %v13521_v38 }
0x20a2   :  { %vm11812_vm3 = vcmp.eq.f32.partialorder %v11759_v4, %v13520_v3  ;;  %v6652_v15 = vsel %vm6644_vm1, %v8896_v36, 10  ;;  %vm11820_vm6 = vcmp.eq.f32.partialorder %v11767_v45, %v13519_v0  ;;  %v6653_v46 = vsel %vm6645_vm8, %v8896_v36, 10 }
0x20a3   :  { %v6654_v43 = vsel %vm11796_vm9, %v8896_v36, 10  ;;  %vm11831_vm7 = vcmp.eq.f32.partialorder %v11770_v42, %v13518_v32  ;;  %v6655_v53 = vsel %vm11803_vm2, %v8896_v36, 10  ;;  %v6659_v33 = vrot.slane %v6652_v15, 7 }
0x20a4   :  { %v6661_v5 = vrot.slane %v6653_v46, 6  ;;  %v6651_v28 = vsel %vm6643_vm5, %v8896_v36, 10  ;;  %v6656_v54 = vsel %vm11812_vm3, %v8896_v36, 10  ;;  %v6657_v47 = vsel %vm11820_vm6, %v8896_v36, 10 }
0x20a5   :  { %v6660_v9 = vsel %vm778_vm10, %v6659_v33, %v6651_v28  ;;  %v6663_v7 = vrot.slane %v6654_v43, 5  ;;  %v6658_v26 = vsel %vm11831_vm7, %v8896_v36, 10  ;;  %v6665_v56 = vrot.slane %v6655_v53, 4 }
0x20a6   :  { %v6662_v63 = vsel %vm780_vm11, %v6661_v5, %v6660_v9  ;;  %v6667_v10 = vrot.slane %v6656_v54, 3  ;;  %v6669_v11 = vrot.slane %v6657_v47, 2  ;;  %v6671_v27 = vrot.slane %v6658_v26, 1 }
0x20a7   :  { %v6664_v39 = vsel %vm782_vm12, %v6663_v7, %v6662_v63  ;;  %vm14170_vm1 = vcmask 80896   ;;  %vm14172_vm2 = vcmp.eq.s32.totalorder %v8896_v36, 13  ;;  %vm14173_vm3 = vcmask 130048  }
0x20a8   :  { %v6666_v57 = vsel %vm784_vm13, %v6665_v56, %v6664_v39  ;;  %vm14174_vm6 = vcmask 392192  }
0x20a9   :  { %v6668_v60 = vsel %vm786_vm14, %v6667_v10, %v6666_v57 }
0x20aa   :  { %v6670_v58 = vsel %vm14168_vm15, %v6669_v11, %v6668_v60 }
0x20ab   :  { %v6672_v15 = vsel %vm14169_vm4, %v6671_v27, %v6670_v58 }
0x20ac   :  { %v6673_v20 = vsel %vm14170_vm1, %v6672_v15, 2147483647 }
0x20ad   :  { %v6675_v46 = vshra.s32 %v6673_v20, 16  ;;  %v6674_v62 = vand.u32 65535, %v6673_v20 }
0x20af   :  { %v6677_v43 = vcvt.s32.f32 %v6675_v46  ;;  %v6676_v33 = vcvt.s32.f32 %v6674_v62 }
0x20b1   :  { %6678 = vmin.xlane.f32.xlu0 %v6677_v43 }
0x2124   :  { %v6679_v53 = vpop.xlane.xlu0 %6678 }
0x2125   :  { %vm6680_vm8 = vcmp.eq.f32.partialorder %v6677_v43, %v6679_v53  ;;  %v6685_v28 = vcvt.f32.s32 %v6679_v53 }
0x2126   :  { %v6681_v5 = vsel %vm6680_vm8, %v6676_v33, inf  ;;  %vm14175_vm8 = vcmask 259072  }
0x2127   :  { %6682 = vmin.xlane.f32.xlu2 %v6681_v5  ;;  %v6686_v47 = vshll.u32 %v6685_v28, 16 }
0x213f   :  { %6749 = vrot.lane.b32.xlu2 %v11373_v31, %s8631_s18 }
0x219a   :  { %v6683_v54 = vpop.xlane.xlu2 %6682 }
0x219b   :  { %v6684_v9 = vcvt.f32.s32 %v6683_v54 }
0x219d   :  { %v11858_v7 = vadd.s32 %v6686_v47, %v6684_v9 }
0x219f   :  { %14171 = vst [vmem:[#allocation10_spill] sm:$0xff] %v11858_v7  ;;  %vm13537_vm9 = vcmp.eq.s32.totalorder %v8896_v36, %v11858_v7  ;;  %v14233_v7 = vld [vmem:[#allocation134_spill] sm:$0xff] }
0x21a0   :  { %vm6746_vm5 = vmor %vm13537_vm9, %vm14172_vm2 }
0x21a1   :  { %v8104_v26 = vsel %vm6746_vm5, 1.0, %v13688_v12  ;;  %vm14176_vm2 = vmmov %vm14175_vm8 }
0x21a2   :  { %v6750_v63 = vpop.permute.xlu2 %6749  ;;  %vm14177_vm5 = vmmov %vm14176_vm2 }
0x21a3   :  { %v6752_v56 = vsel %vm14173_vm3, %v8104_v26, %v6750_v63  ;;  %vm14178_vm3 = vmmov %vm14176_vm2 }
0x21a4   :  { %v6753_v39 = vsel %vm14174_vm6, %v6752_v56, 0.0  ;;  %vm14179_vm6 = vmmov %vm14176_vm2 }
0x21a5   :  { %v6786_v10 = vand.u32 4294901760, %v6753_v39 }
0x21a7   :  { %v6787_v57 = vsub.f32 %v6753_v39, %v6786_v10  ;;  %6892 = vmatmul.f32.vlgmr.msra.gmra.mxu3 %v6786_v10 }
0x21a9   :  { %6946 = vmatmul.f32.vlgmr.msra.gmra.mxu0 %v6787_v57  ;;  %v6788_v11 = vand.u32 4294901760, %v6787_v57 }
0x21aa   :  { %7222 = vmatpush.msra.mxu0 %v13691_v14 }
0x21ab   :  { %6985 = vmatmul.f32.vlgmr.msra.gmra.mxu1 %v6788_v11  ;;  %v6789_v60 = vsub.f32 %v6787_v57, %v6788_v11 }
0x21ac   :  { %7251 = vmatpush.msra.mxu1 %v9147_v50  ;;  %7225 = vmatpush.msra.mxu0 %v13692_v37 }
0x21ad   :  { %v6790_v27 = vand.u32 4294901760, %v6789_v60 }
0x21ae   :  { %7253 = vmatpush.msra.mxu1 %v9155_v55  ;;  %7228 = vmatpush.msra.mxu0 %v13693_v22 }
0x21af   :  { %6791 = vmatmul.f32.vlgmr.msra.gmra.mxu2 %v6790_v27  ;;  %7091 = vmatmul.f32.vlgmr.msrb.gmra.mxu3 %v6786_v10 }
0x21b0   :  { %7255 = vmatpush.msra.mxu1 %v9168_v40  ;;  %7231 = vmatpush.msra.mxu0 %v13694_v21 }
0x21b2   :  { %7257 = vmatpush.msra.mxu1 %v9185_v2 }
0x21b7   :  { %7054 = vmatmul.f32.vlgmr.msrb.gmra.mxu2 %v6786_v10 }
0x2226   :  { %v6947_v15 = vpop.f32.mrf.mxu0 }
0x2228   :  { %v6986_v37 = vpop.f32.mrf.mxu1 }
0x222a   :  { %v6893_v12 = vpop.f32.mrf.mxu3 }
0x2232   :  { %v6792_v14 = vpop.f32.mrf.mxu2  ;;  %v7092_v53 = vpop.f32.mrf.mxu3 }
0x2233   :  { %v6894_v58 = vadd.f32 %v6893_v12, %v6792_v14 }
0x2235   :  { %v6948_v20 = vadd.f32 %v6947_v15, %v6894_v58 }
0x2237   :  { %v6987_v46 = vadd.f32 %v6986_v37, %v6948_v20 }
0x223a   :  { %v7055_v43 = vpop.f32.mrf.mxu2 }
0x223b   :  { %v7056_v62 = vadd.f32 %v7055_v43, %v6987_v46 }
0x223d   :  { %v7093_v22 = vadd.f32 %v7092_v53, %v7056_v62 }
0x223f   :  { %7115 = vrot.lane.b32.xlu2 %v7093_v22, %s8627_s0  ;;  %v8105_v33 = vmul.f32 -1.442695, %v7093_v22  ;;  %s8632_s0 = smov 18  }
0x2241   :  { %8313 = vpow2.f32 %v8105_v33 }
0x2247   :  { %v8314_v5 = vpop.eup %8313 }
0x2248   :  { %v7098_v21 = vadd.f32 1.0, %v8314_v5 }
0x224a   :  { %8315 = vrcp.f32 %v7098_v21  ;;  %v7110_v63 = vand.u32 2147483648, %v7098_v21  ;;  %vm7104_vm15 = vweird.f32 %v7098_v21  ;;  %v7108_v56 = vand.u32 2147483647, %v7098_v21 }
0x224c   :  { %v7111_v10 = vor.u32 1.1754944e-38, %v7110_v63  ;;  %vm7109_vm1 = vcmp.eq.f32.partialorder %v7108_v56, 8.507059e+37 }
0x2250   :  { %v8316_v28 = vpop.eup %8315 }
0x2251   :  { %v7100_v54 = vmul.f32 %v8316_v28, %v7098_v21  ;;  %vm7105_vm7 = vweird.f32 %v8316_v28 }
0x2252   :  { %vm7106_vm4 = vmor %vm7104_vm15, %vm7105_vm7 }
0x2253   :  { %v7101_v47 = vsub.f32 1.0, %v7100_v54  ;;  %vm14180_vm7 = vmmov %vm14176_vm2 }
0x2254   :  { %vm14181_vm15 = vmmov %vm14176_vm2 }
0x2255   :  { %v7102_v9 = vmul.f32 %v8316_v28, %v7101_v47 }
0x2257   :  { %v7103_v26 = vadd.f32 %v8316_v28, %v7102_v9 }
0x2259   :  { %v7107_v39 = vsel %vm7106_vm4, %v8316_v28, %v7103_v26  ;;  %vm14182_vm4 = vmmov %vm14176_vm2 }
0x225a   :  { %v7112_v11 = vsel %vm7109_vm1, %v7111_v10, %v7107_v39  ;;  %vm14183_vm1 = vcmask 1046534  }
0x225b   :  { %v7125_v58 = vsub.f32 1.0, %v7112_v11  ;;  %v7131_v20 = vmul.f32 %v7112_v11, %v11373_v31 }
0x2299   :  { %v7116_v57 = vpop.permute.xlu2 %7115 }
0x229a   :  { %v7118_v60 = vmul.f32 %v7116_v57, %v7112_v11 }
0x229c   :  { %7120 = vrot.lane.b32.xlu1 %v7118_v60, %s8628_s25  ;;  %s8633_s25 = smov 30  }
0x230e   :  { %v7121_v27 = vpop.permute.xlu1 %7120 }
0x230f   :  { %v7123_v12 = vadd.f32 %v7121_v27, %v7093_v22 }
0x2311   :  { %8317 = vtanh.f32 %v7123_v12 }
0x2317   :  { %v8318_v14 = vpop.eup %8317 }
0x2318   :  { %7127 = vrot.lane.b32.xlu0 %v8318_v14, %s8629_s13 }
0x238a   :  { %v7128_v15 = vpop.permute.xlu0 %7127 }
0x238b   :  { %v7130_v37 = vmul.f32 %v7128_v15, %v7125_v58 }
0x238d   :  { %v7132_v46 = vadd.f32 %v7131_v20, %v7130_v37 }
0x238f   :  { %v7330_v43 = vperm.slane %v7132_v46, 0  ;;  %v7326_v62 = vrot.slane %v7132_v46, 4  ;;  %v7325_v53 = vrot.slane %v7132_v46, 3  ;;  %v7323_v28 = vrot.slane %v7132_v46, 1 }
0x2390   :  { %v7329_v47 = vrot.slane %v7132_v46, 7  ;;  %v7328_v9 = vrot.slane %v7132_v46, 6  ;;  %v7324_v56 = vrot.slane %v7132_v46, 2  ;;  %v7327_v57 = vrot.slane %v7132_v46, 5 }
0x2391   :  { %v7346_v33 = vmul.f32 %v7330_v43, %v14089_v24  ;;  %v7334_v5 = vperm.slane %v7326_v62, 0  ;;  %v7333_v21 = vperm.slane %v7325_v53, 0  ;;  %v7331_v31 = vperm.slane %v7323_v28, 0 }
0x2392   :  { %v7337_v26 = vperm.slane %v7329_v47, 0  ;;  %v7336_v63 = vperm.slane %v7328_v9, 0  ;;  %v7335_v11 = vperm.slane %v7327_v57, 0 }
0x2393   :  { %7362 = vrot.lane.b32.xlu2 %v7346_v33, %s8629_s13  ;;  %v7350_v22 = vmul.f32 %v7334_v5, %v14093_v59  ;;  %v7349_v54 = vmul.f32 %v7333_v21, %v14094_v16  ;;  %v7347_v24 = vmul.f32 %v7331_v31, %v14092_v35  ;;  %v7332_v16 = vperm.slane %v7324_v56, 0 }
0x2394   :  { %v7353_v39 = vmul.f32 %v7337_v26, %v14095_v48  ;;  %v7352_v59 = vmul.f32 %v7336_v63, %v14096_v18  ;;  %v7351_v35 = vmul.f32 %v7335_v11, %v14090_v61 }
0x2395   :  { %7370 = vrot.lane.b32.xlu1 %v7350_v22, %s8629_s13  ;;  %7368 = vrot.lane.b32.xlu0 %v7349_v54, %s8629_s13  ;;  %v7348_v10 = vmul.f32 %v7332_v16, %v14091_v6 }
0x239b   :  { %7364 = vrot.lane.b32.xlu2 %v7347_v24, %s8629_s13 }
0x239d   :  { %7376 = vrot.lane.b32.xlu1 %v7353_v39, %s8629_s13  ;;  %7374 = vrot.lane.b32.xlu0 %v7352_v59, %s8629_s13 }
0x23a3   :  { %7366 = vrot.lane.b32.xlu2 %v7348_v10, %s8629_s13 }
0x23ab   :  { %7372 = vrot.lane.b32.xlu2 %v7351_v35, %s8629_s13 }
0x23ed   :  { %v7363_v60 = vpop.permute.xlu2 %7362 }
0x23ee   :  { %v7386_v48 = vsel %vm14175_vm8, %v7363_v60, 0.0  ;;  %vm14184_vm8 = vcmask 1047559  }
0x23ef   :  { %7387 = vadd.xlane.f32.xlu2 %v7386_v48 }
0x23f5   :  { %v7365_v18 = vpop.permute.xlu2 %7364 }
0x23f6   :  { %v7389_v27 = vsel %vm14176_vm2, %v7365_v18, 0.0  ;;  %vm14185_vm2 = vcmask 48128  }
0x23f7   :  { %7390 = vadd.xlane.f32.xlu0 %v7389_v27 }
0x23fd   :  { %v7367_v12 = vpop.permute.xlu2 %7366 }
0x23fe   :  { %v7392_v14 = vsel %vm14177_vm5, %v7367_v12, 0.0  ;;  %vm14186_vm5 = vcmask 261120  }
0x23ff   :  { %7393 = vadd.xlane.f32.xlu1 %v7392_v14 }
0x2405   :  { %v7373_v6 = vpop.permute.xlu2 %7372 }
0x2406   :  { %v7401_v58 = vsel %vm14178_vm3, %v7373_v6, 0.0  ;;  %vm14243_vm3 = vmmov %vm14183_vm1 }
0x2407   :  { %v7371_v15 = vpop.permute.xlu1 %7370  ;;  %v7369_v20 = vpop.permute.xlu0 %7368  ;;  %7402 = vadd.xlane.f32.xlu1 %v7401_v58 }
0x2408   :  { %v7398_v61 = vsel %vm14179_vm6, %v7371_v15, 0.0  ;;  %v7395_v37 = vsel %vm14180_vm7, %v7369_v20, 0.0  ;;  %vm14245_vm6 = vmmov %vm14184_vm8 }
0x2409   :  { %7396 = vadd.xlane.f32.xlu2 %v7395_v37  ;;  %7399 = vadd.xlane.f32.xlu0 %v7398_v61  ;;  %vm14249_vm7 = vmmov %vm14185_vm2 }
0x240f   :  { %v7377_v43 = vpop.permute.xlu1 %7376  ;;  %v7375_v62 = vpop.permute.xlu0 %7374 }
0x2410   :  { %v7407_v53 = vsel %vm14181_vm15, %v7377_v43, 0.0  ;;  %v7404_v33 = vsel %vm14182_vm4, %v7375_v62, 0.0  ;;  %vm14251_vm15 = vmmov %vm14183_vm1 }
0x2411   :  { %7405 = vadd.xlane.f32.xlu2 %v7404_v33  ;;  %7408 = vadd.xlane.f32.xlu0 %v7407_v53  ;;  %vm14258_vm4 = vmmov %vm14245_vm6 }
0x2429   :  { %7134 = vrot.lane.b32.xlu2 %v7132_v46, %s8629_s13 }
0x2462   :  { %v7388_v5 = vpop.xlane.xlu2 %7387 }
0x2463   :  { %v7410_v47 = vmul.f32 0.17677669, %v7388_v5 }
0x2465   :  { %v7426_v39 = vperm.slane %v7410_v47, %v8896_v36 }
0x246a   :  { %v7391_v21 = vpop.xlane.xlu0 %7390 }
0x246b   :  { %v7411_v22 = vmul.f32 0.17677669, %v7391_v21 }
0x246d   :  { %v7427_v9 = vperm.slane %v7411_v22, %v8896_v36 }
0x246f   :  { %v7434_v16 = vsel %vm778_vm10, %v7427_v9, %v7426_v39  ;;  %v14187_v9 = vld [vmem:[#allocation80_spill] sm:$0xff] }
0x2472   :  { %v7394_v28 = vpop.xlane.xlu1 %7393 }
0x2473   :  { %v11907_v54 = vmul.f32 0.17677669, %v7394_v28 }
0x2475   :  { %v7428_v63 = vperm.slane %v11907_v54, %v8896_v36 }
0x2477   :  { %v7435_v10 = vsel %vm780_vm11, %v7428_v63, %v7434_v16 }
0x247a   :  { %v7403_v59 = vpop.xlane.xlu1 %7402 }
0x247b   :  { %v11917_v11 = vmul.f32 0.17677669, %v7403_v59 }
0x247c   :  { %v7400_v31 = vpop.xlane.xlu0 %7399  ;;  %v7397_v26 = vpop.xlane.xlu2 %7396 }
0x247d   :  { %v7414_v24 = vmul.f32 0.17677669, %v7400_v31  ;;  %v7413_v56 = vmul.f32 0.17677669, %v7397_v26  ;;  %v7431_v14 = vperm.slane %v11917_v11, %v8896_v36 }
0x247f   :  { %v7429_v46 = vperm.slane %v7413_v56, %v8896_v36  ;;  %v7430_v57 = vperm.slane %v7414_v24, %v8896_v36 }
0x2481   :  { %v7436_v35 = vsel %vm782_vm12, %v7429_v46, %v7435_v10 }
0x2482   :  { %v7437_v18 = vsel %vm784_vm13, %v7430_v57, %v7436_v35 }
0x2483   :  { %v7438_v15 = vsel %vm786_vm14, %v7431_v14, %v7437_v18 }
0x2484   :  { %v7409_v60 = vpop.xlane.xlu0 %7408  ;;  %v7406_v48 = vpop.xlane.xlu2 %7405 }
0x2485   :  { %v7417_v27 = vmul.f32 0.17677669, %v7409_v60  ;;  %v7416_v12 = vmul.f32 0.17677669, %v7406_v48 }
0x2487   :  { %v7433_v6 = vperm.slane %v7417_v27, %v8896_v36  ;;  %v7432_v58 = vperm.slane %v7416_v12, %v8896_v36 }
0x2489   :  { %v7439_v20 = vsel %vm14183_vm1, %v7432_v58, %v7438_v15  ;;  %vm14260_vm1 = vcmask 80896  }
0x248a   :  { %v7440_v61 = vsel %vm14184_vm8, %v7433_v6, %v7439_v20  ;;  %vm14261_vm8 = vmmov %vm14243_vm3 }
0x248b   :  { %v7442_v37 = vsel %vm14185_vm2, %v7440_v61, -inf  ;;  %v14188_v61 = vld [vmem:[#allocation109_spill] sm:$0xff]  ;;  %vm14263_vm2 = vmmov %vm14258_vm4 }
0x248c   :  { %7443 = vmax.xlane.f32.xlu1 %v7442_v37  ;;  %v7135_v43 = vpop.permute.xlu2 %7134  ;;  %v14189_v37 = vrot.slane %v14188_v61, 1 }
0x248d   :  { %v7136_v62 = vsel %vm14186_vm5, %v7135_v43, 0  ;;  %v14190_v43 = vld [vmem:[#allocation101_spill] sm:$0xff]  ;;  %vm14264_vm5 = vmmov %vm14260_vm1 }
0x248e   :  { %v7158_v53 = vand.u32 4294901760, %v7136_v62 }
0x2490   :  { %v7159_v33 = vsub.f32 %v7136_v62, %v7158_v53  ;;  %7204 = vmatmul.f32.vlgmr.msrb.gmra.mxu1 %v7158_v53  ;;  %v11967_v62 = vsub.f32 %v14190_v43, %v14189_v37 }
0x2491   :  { %7311 = vmatpush.msrb.mxu1 %v9147_v50 }
0x2492   :  { %v7160_v5 = vand.u32 4294901760, %v7159_v33 }
0x2493   :  { %7313 = vmatpush.msrb.mxu1 %v9155_v55 }
0x2494   :  { %v7161_v21 = vsub.f32 %v7159_v33, %v7160_v5 }
0x2495   :  { %7315 = vmatpush.msrb.mxu1 %v9168_v40 }
0x2496   :  { %v7162_v28 = vand.u32 4294901760, %v7161_v21  ;;  %v2543_v21 = vmul.f32 1.442695, %v11967_v62 }
0x2497   :  { %7317 = vmatpush.msrb.mxu1 %v9185_v2 }
0x2498   :  { %7163 = vmatmul.f32.vlgmr.msrb.gmra.mxu0 %v7162_v28  ;;  %7261 = vmatmul.f32.vlgmr.msra.gmra.mxu1 %v7160_v5  ;;  %v14193_v28 = vld [vmem:[#allocation102_spill] sm:$0xff] }
0x2499   :  { %7280 = vmatpush.msrb.mxu0 %v14109_v29 }
0x249b   :  { %7284 = vmatpush.msrb.mxu0 %v14111_v1 }
0x249d   :  { %7288 = vmatpush.msrb.mxu0 %v14113_v34 }
0x249f   :  { %7292 = vmatpush.msrb.mxu0 %v14187_v9  ;;  %v11977_v9 = vsub.f32 %v14193_v28, %v14188_v61  ;;  %v14207_v28 = vrot.slane %v14188_v61, 7 }
0x24a0   :  { %7234 = vmatmul.f32.vlgmr.msra.gmra.mxu0 %v7159_v33  ;;  %7319 = vmatmul.f32.vlgmr.msrb.gmra.mxu1 %v7158_v53  ;;  %v14192_v33 = vld [vmem:[#allocation103_spill] sm:$0xff] }
0x24a8   :  { %7294 = vmatmul.f32.vlgmr.msrb.gmra.mxu0 %v7158_v53  ;;  %v14191_v53 = vrot.slane %v14188_v61, 2 }
0x24aa   :  { %v11972_v5 = vsub.f32 %v14192_v33, %v14191_v53  ;;  %v14206_v33 = vld [vmem:[#allocation121_spill] sm:$0xff] }
0x24ff   :  { %v7444_v50 = vpop.xlane.xlu1 %7443 }
0x2500   :  { %v7446_v55 = vperm.slane %v7444_v50, 0  ;;  %v7447_v31 = vperm.slane %v7444_v50, 1  ;;  %v7449_v40 = vperm.slane %v7444_v50, 3  ;;  %v7448_v26 = vperm.slane %v7444_v50, 2 }
0x2501   :  { %v7450_v59 = vperm.slane %v7444_v50, 4  ;;  %v7452_v16 = vperm.slane %v7444_v50, 6  ;;  %v7451_v35 = vperm.slane %v7444_v50, 5  ;;  %v7453_v48 = vperm.slane %v7444_v50, 7 }
0x2502   :  { %v7462_v63 = vsub.f32 %v7410_v47, %v7446_v55  ;;  %v7463_v2 = vsub.f32 %v7411_v22, %v7447_v31  ;;  %v7465_v39 = vsub.f32 %v7413_v56, %v7449_v40  ;;  %v7464_v34 = vsub.f32 %v11907_v54, %v7448_v26  ;;  %v14195_v31 = vld [vmem:[#allocation104_spill] sm:$0xff] }
0x2503   :  { %v7466_v10 = vsub.f32 %v7414_v24, %v7450_v59  ;;  %v7468_v57 = vsub.f32 %v7416_v12, %v7452_v16  ;;  %v7467_v56 = vsub.f32 %v11917_v11, %v7451_v35  ;;  %v7469_v24 = vsub.f32 %v7417_v27, %v7453_v48  ;;  %v14199_v16 = vld [vmem:[#allocation106_spill] sm:$0xff] }
0x2504   :  { %v7470_v46 = vmul.f32 1.442695, %v7462_v63  ;;  %v7472_v29 = vmul.f32 1.442695, %v7463_v2  ;;  %v7476_v1 = vmul.f32 1.442695, %v7465_v39 }
0x2505   :  { %v7474_v60 = vmul.f32 1.442695, %v7464_v34  ;;  %v7478_v18 = vmul.f32 1.442695, %v7466_v10  ;;  %v7482_v47 = vmul.f32 1.442695, %v7468_v57 }
0x2506   :  { %8319 = vpow2.f32 %v7470_v46  ;;  %v7480_v12 = vmul.f32 1.442695, %v7467_v56  ;;  %v7484_v6 = vmul.f32 1.442695, %v7469_v24  ;;  %v2545_v50 = vmul.f32 1.442695, %v11972_v5 }
0x2507   :  { %8321 = vpow2.f32 %v7472_v29  ;;  %v14194_v55 = vrot.slane %v14188_v61, 3  ;;  %v2541_v26 = vmul.f32 1.442695, %v11977_v9  ;;  %v14196_v63 = vrot.slane %v14188_v61, 4  ;;  %v14197_v2 = vld [vmem:[#allocation105_spill] sm:$0xff]  ;;  %v14201_v57 = vld [vmem:[#allocation108_spill] sm:$0xff] }
0x2508   :  { %8323 = vpow2.f32 %v7476_v1  ;;  %v14198_v29 = vrot.slane %v14188_v61, 5  ;;  %v14200_v10 = vrot.slane %v14188_v61, 6  ;;  %v14204_v56 = vld [vmem:[#allocation119_spill] sm:$0xff] }
0x2509   :  { %8325 = vpow2.f32 %v7474_v60  ;;  %v11983_v40 = vsub.f32 %v14195_v31, %v14194_v55  ;;  %v11989_v39 = vsub.f32 %v14197_v2, %v14196_v63  ;;  %v14209_v2 = vld [vmem:[#allocation120_spill] sm:$0xff] }
0x250a   :  { %8327 = vpow2.f32 %v7478_v18  ;;  %v11995_v1 = vsub.f32 %v14199_v16, %v14198_v29  ;;  %v12001_v35 = vsub.f32 %v14201_v57, %v14200_v10  ;;  %v14202_v18 = vld [vmem:[#allocation127_spill] sm:$0xff] }
0x250b   :  { %8329 = vpow2.f32 %v7482_v47  ;;  %v2547_v59 = vmul.f32 1.442695, %v11983_v40  ;;  %v2549_v34 = vmul.f32 1.442695, %v11989_v39  ;;  %v14203_v47 = vrot.slane %v14202_v18, 1 }
0x250c   :  { %v11939_v14 = vpop.eup %8319  ;;  %8331 = vpow2.f32 %v7480_v12  ;;  %v2551_v12 = vmul.f32 1.442695, %v11995_v1  ;;  %v2553_v37 = vmul.f32 1.442695, %v12001_v35  ;;  %v14205_v53 = vrot.slane %v14202_v18, 2 }
0x250d   :  { %v11941_v22 = vpop.eup %8321  ;;  %7495 = vperm.xlu0 %8121, %v11939_v14   ;;  %8333 = vpow2.f32 %v7484_v6  ;;  %v12006_v24 = vsub.f32 %v14204_v56, %v14203_v47  ;;  %v14210_v47 = vrot.slane %v14202_v18, 3  ;;  %v14211_v56 = vld [vmem:[#allocation123_spill] sm:$0xff] }
0x250e   :  { %7498 = vperm.xlu1 %8119, %v11941_v22   ;;  %v11946_v54 = vpop.eup %8323  ;;  %8335 = vpow2.f32 %v2543_v21  ;;  %v12013_v21 = vsub.f32 %v14206_v33, %v14205_v53  ;;  %v14214_v53 = vld [vmem:[#allocation131_spill] sm:$0xff] }
0x250f   :  { %7504 = vperm.xlu2 %8120, %v11946_v54   ;;  %v11949_v58 = vpop.eup %8325  ;;  %8337 = vpow2.f32 %v2545_v50  ;;  %v14208_v50 = vld [vmem:[#allocation107_spill] sm:$0xff] }
0x2510   :  { %v11951_v15 = vpop.eup %8327  ;;  %8339 = vpow2.f32 %v2541_v26  ;;  %v12018_v55 = vsub.f32 %v14208_v50, %v14207_v28  ;;  %v3870_v26 = vmul.f32 1.442695, %v12006_v24  ;;  %v3872_v16 = vmul.f32 1.442695, %v12013_v21 }
0x2511   :  { %v11955_v11 = vpop.eup %8329  ;;  %8341 = vpow2.f32 %v2547_v59  ;;  %v12024_v59 = vsub.f32 %v14209_v2, %v14202_v18 }
0x2512   :  { %v11958_v27 = vpop.eup %8331  ;;  %8343 = vpow2.f32 %v2549_v34  ;;  %v2555_v10 = vmul.f32 1.442695, %v12018_v55 }
0x2513   :  { %v11960_v20 = vpop.eup %8333  ;;  %8345 = vpow2.f32 %v2551_v12  ;;  %v12034_v12 = vsub.f32 %v14211_v56, %v14210_v47 }
0x2514   :  { %v8336_v46 = vpop.eup %8335  ;;  %8347 = vpow2.f32 %v2553_v37  ;;  %v14212_v37 = vld [vmem:[#allocation139_spill] sm:$0xff] }
0x2515   :  { %7501 = vperm.xlu0 %8121, %v11949_v58   ;;  %v8338_v60 = vpop.eup %8337  ;;  %v2565_v48 = vrot.slane %v8336_v46, 7  ;;  %8349 = vpow2.f32 %v3870_v26  ;;  %v14217_v26 = vld [vmem:[#allocation122_spill] sm:$0xff]  ;;  %v14232_v38 = vrot.slane %v14212_v37, 3 }
0x2516   :  { %7507 = vperm.xlu1 %8119, %v11951_v15   ;;  %v8340_v6 = vpop.eup %8339  ;;  %v2567_v43 = vrot.slane %v8338_v60, 6  ;;  %v3868_v60 = vmul.f32 1.442695, %v12024_v59  ;;  %8351 = vpow2.f32 %v3872_v16  ;;  %v14218_v16 = vrot.slane %v14202_v18, 5 }
0x2517   :  { %7513 = vperm.xlu2 %8120, %v11955_v11   ;;  %v2566_v31 = vsel %vm778_vm10, %v2565_v48, %v8340_v6  ;;  %v8342_v63 = vpop.eup %8341  ;;  %8353 = vpow2.f32 %v2555_v10  ;;  %v12090_v8 = vsub.f32 %v14233_v7, %v14232_v38  ;;  %v14241_v7 = vld [vmem:[#allocation136_spill] sm:$0xff] }
0x2518   :  { %v2568_v29 = vsel %vm780_vm11, %v2567_v43, %v2566_v31  ;;  %v8344_v61 = vpop.eup %8343  ;;  %v2569_v57 = vrot.slane %v8342_v63, 5  ;;  %v14213_v43 = vrot.slane %v14212_v37, 1  ;;  %v14216_v31 = vrot.slane %v14202_v18, 4 }
0x2519   :  { %v2571_v6 = vrot.slane %v8344_v61, 4  ;;  %v8346_v28 = vpop.eup %8345  ;;  %8355 = vpow2.f32 %v3868_v60  ;;  %v14219_v61 = vld [vmem:[#allocation124_spill] sm:$0xff]  ;;  %14234 = vst [vmem:[#allocation33_spill] sm:$0xff] %v12090_v8 }
0x251a   :  { %v2570_v48 = vsel %vm782_vm12, %v2569_v57, %v2568_v29  ;;  %v12039_v33 = vsub.f32 %v14214_v53, %v14213_v43  ;;  %v12044_v63 = vsub.f32 %v14217_v26, %v14216_v31  ;;  %v12046_v2 = vpop.eup %8347  ;;  %v12052_v57 = vsub.f32 %v14219_v61, %v14218_v16  ;;  %v14222_v31 = vld [vmem:[#allocation133_spill] sm:$0xff] }
0x251b   :  { %v2572_v29 = vsel %vm784_vm13, %v2571_v6, %v2570_v48  ;;  %v8350_v47 = vpop.eup %8349  ;;  %v3874_v43 = vmul.f32 1.442695, %v12034_v12  ;;  %v14221_v53 = vrot.slane %v14212_v37, 2  ;;  %v2573_v32 = vrot.slane %v8346_v28, 3  ;;  %v14225_v6 = vld [vmem:[#allocation126_spill] sm:$0xff] }
0x251c   :  { %14215 = vst [vmem:[#allocation20_spill] sm:$0xff] %v12039_v33  ;;  %v14224_v48 = vrot.slane %v14202_v18, 6  ;;  %v5198_v16 = vmul.f32 1.442695, %v12039_v33  ;;  %v3878_v30 = vmul.f32 1.442695, %v12052_v57 }
0x251d   :  { %7510 = vperm.xlu0 %8121, %v11958_v27   ;;  %14220 = vst [vmem:[#allocation17_spill] sm:$0xff] %v12052_v57  ;;  %v12060_v26 = vsub.f32 %v14222_v31, %v14221_v53  ;;  %v3876_v53 = vmul.f32 1.442695, %v12044_v63  ;;  %v8352_v31 = vpop.eup %8351  ;;  %v12076_v28 = vsel %vm786_vm14, %v2573_v32, %v2572_v29  ;;  %8357 = vpow2.f32 %v3874_v43 }
0x251e   :  { %7516 = vperm.xlu1 %8119, %v11960_v20   ;;  %v12065_v0 = vsub.f32 %v14225_v6, %v14224_v48  ;;  %v14229_v48 = vrot.slane %v14202_v18, 7  ;;  %v14230_v6 = vld [vmem:[#allocation125_spill] sm:$0xff]  ;;  %v12084_v17 = vpop.eup %8353  ;;  %8359 = vpow2.f32 %v5198_v16  ;;  %v3894_v38 = vrot.slane %v8352_v31, 6 }
0x251f   :  { %14223 = vst [vmem:[#allocation26_spill] sm:$0xff] %v12060_v26  ;;  %v5200_v32 = vmul.f32 1.442695, %v12060_v26  ;;  %v8356_v29 = vpop.eup %8355  ;;  %8361 = vpow2.f32 %v3876_v53 }
0x2520   :  { %14226 = vst [vmem:[#allocation23_spill] sm:$0xff] %v12065_v0  ;;  %v12081_v49 = vsub.f32 %v14230_v6, %v14229_v48  ;;  %v3880_v48 = vmul.f32 1.442695, %v12065_v0  ;;  %8363 = vpow2.f32 %v3878_v30 }
0x2521   :  { %8365 = vpow2.f32 %v5200_v32 }
0x2522   :  { %14231 = vst [vmem:[#allocation27_spill] sm:$0xff] %v12081_v49  ;;  %8367 = vpow2.f32 %v3880_v48 }
0x2569   :  { %v7505_v50 = vpop.permute.xlu2 %7504 }
0x2571   :  { %v7514_v25 = vpop.permute.xlu2 %7513 }
0x2572   :  { %v7524_v48 = vperm.slane %v7514_v25, %v8896_v36 }
0x257f   :  { %v7496_v46 = vpop.permute.xlu0 %7495 }
0x2580   :  { %v7499_v34 = vpop.permute.xlu1 %7498  ;;  %v7518_v10 = vperm.slane %v7496_v46, %v8896_v36 }
0x2581   :  { %v7519_v56 = vperm.slane %v7499_v34, %v8896_v36  ;;  %v14227_v34 = vld [vmem:[#allocation132_spill] sm:$0xff] }
0x2582   :  { %v12070_v61 = vsub.f32 %v14227_v34, %v14212_v37  ;;  %v3892_v34 = vrot.slane %v8350_v47, 7  ;;  %v14235_v47 = vrot.slane %v11778_v52, 1 }
0x2584   :  { %14228 = vst [vmem:[#allocation28_spill] sm:$0xff] %v12070_v61  ;;  %v12098_v6 = vsub.f32 %v11737_v23, %v14235_v47  ;;  %v3893_v43 = vsel %vm778_vm10, %v3892_v34, %v8356_v29  ;;  %v5202_v47 = vmul.f32 1.442695, %v12090_v8  ;;  %v3882_v34 = vmul.f32 1.442695, %v12081_v49 }
0x2586   :  { %v6526_v29 = vmul.f32 1.442695, %v12098_v6 }
0x2587   :  { %v7502_v60 = vpop.permute.xlu0 %7501 }
0x2588   :  { %v7508_v46 = vpop.permute.xlu1 %7507  ;;  %v7520_v3 = vperm.slane %v7502_v60, %v8896_v36  ;;  %v7526_v60 = vsel %vm778_vm10, %v7519_v56, %v7518_v10  ;;  %v5196_v56 = vmul.f32 1.442695, %v12070_v61  ;;  %v7521_v10 = vperm.slane %v7505_v50, %v8896_v36 }
0x2589   :  { %v14239_v50 = vrot.slane %v11778_v52, 2  ;;  %v7522_v30 = vperm.slane %v7508_v46, %v8896_v36  ;;  %v12128_v46 = vsub.f32 %v11744_v13, %v11778_v52  ;;  %v14244_v13 = vrot.slane %v11778_v52, 3 }
0x258a   :  { %v7527_v18 = vsel %vm780_vm11, %v7520_v3, %v7526_v60  ;;  %v14236_v3 = vrot.slane %v14212_v37, 4  ;;  %v14237_v60 = vld [vmem:[#allocation135_spill] sm:$0xff]  ;;  %8369 = vpow2.f32 %v5196_v56 }
0x258b   :  { %v7528_v23 = vsel %vm782_vm12, %v7521_v10, %v7527_v18  ;;  %v12114_v53 = vsub.f32 %v11746_v19, %v14239_v50  ;;  %v3895_v18 = vsel %vm780_vm11, %v3894_v38, %v3893_v43  ;;  %v14240_v10 = vrot.slane %v14212_v37, 5 }
0x258c   :  { %v12107_v16 = vsub.f32 %v14237_v60, %v14236_v3  ;;  %v8358_v3 = vpop.eup %8357  ;;  %v7529_v44 = vsel %vm784_vm13, %v7522_v30, %v7528_v23  ;;  %8371 = vpow2.f32 %v5202_v47  ;;  %v12140_v25 = vsub.f32 %v11750_v41, %v14244_v13 }
0x258d   :  { %v12124_v19 = vsub.f32 %v14241_v7, %v14240_v10  ;;  %v8360_v50 = vpop.eup %8359  ;;  %v6528_v7 = vmul.f32 1.442695, %v12114_v53  ;;  %v3896_v26 = vrot.slane %v8358_v3, 5  ;;  %8373 = vpow2.f32 %v6526_v29 }
0x258e   :  { %14238 = vst [vmem:[#allocation31_spill] sm:$0xff] %v12107_v16  ;;  %v5204_v56 = vmul.f32 1.442695, %v12107_v16  ;;  %v8362_v8 = vpop.eup %8361  ;;  %v14247_v16 = vld [vmem:[#allocation137_spill] sm:$0xff]  ;;  %v6524_v3 = vmul.f32 1.442695, %v12128_v46 }
0x258f   :  { %v7511_v31 = vpop.permute.xlu0 %7510  ;;  %14242 = vst [vmem:[#allocation39_spill] sm:$0xff] %v12124_v19  ;;  %v8364_v43 = vpop.eup %8363  ;;  %v5206_v47 = vmul.f32 1.442695, %v12124_v19  ;;  %v3897_v41 = vsel %vm782_vm12, %v3896_v26, %v3895_v18  ;;  %v14253_v13 = vrot.slane %v14212_v37, 7 }
0x2590   :  { %v7517_v60 = vpop.permute.xlu1 %7516  ;;  %v7523_v32 = vperm.slane %v7511_v31, %v8896_v36  ;;  %v8366_v23 = vpop.eup %8365  ;;  %8375 = vpow2.f32 %v5204_v56  ;;  %v6530_v56 = vmul.f32 1.442695, %v12140_v25 }
0x2591   :  { %v7525_v31 = vperm.slane %v7517_v60, %v8896_v36  ;;  %v14246_v60 = vrot.slane %v14212_v37, 6  ;;  %v8368_v33 = vpop.eup %8367  ;;  %8377 = vpow2.f32 %v6528_v7  ;;  %v5222_v18 = vrot.slane %v8366_v23, 6 }
0x2592   :  { %v7530_v38 = vsel %vm786_vm14, %v7523_v32, %v7529_v44  ;;  %v5220_v32 = vrot.slane %v8360_v50, 7  ;;  %v8370_v29 = vpop.eup %8369  ;;  %8379 = vpow2.f32 %v3882_v34  ;;  %v3900_v7 = vrot.slane %v8364_v43, 3 }
0x2593   :  { %v7531_v10 = vsel %vm14243_vm3, %v7524_v48, %v7530_v38  ;;  %v12146_v44 = vsub.f32 %v14247_v16, %v14246_v60  ;;  %v3898_v16 = vrot.slane %v8362_v8, 4  ;;  %v8372_v60 = vpop.eup %8371  ;;  %8381 = vpow2.f32 %v5206_v47 }
0x2594   :  { %v7532_v30 = vsel %vm14245_vm6, %v7525_v31, %v7531_v10  ;;  %v14250_v31 = vrot.slane %v12046_v2, 2  ;;  %v14252_v10 = vrot.slane %v11778_v52, 4  ;;  %8383 = vpow2.f32 %v6524_v3  ;;  %vm14265_vm6 = vmmov %vm14263_vm2 }
0x2595   :  { %14248 = vst [vmem:[#allocation35_spill] sm:$0xff] %v12146_v44  ;;  %v7534_v48 = vsel %vm14249_vm7, %v7532_v30, 0.0  ;;  %v14254_v30 = vld [vmem:[#allocation138_spill] sm:$0xff]  ;;  %v3899_v2 = vsel %vm784_vm13, %v3898_v16, %v3897_v41  ;;  %v5208_v8 = vmul.f32 1.442695, %v12146_v44  ;;  %v14256_v34 = vrot.slane %v11778_v52, 5  ;;  %vm14266_vm7 = vmmov %vm14260_vm1 }
0x2596   :  { %7535 = vadd.xlane.f32.xlu0 %v7534_v48  ;;  %v2576_v38 = vsel %vm14251_vm15, %v14250_v31, %v12076_v28  ;;  %v12159_v50 = vsub.f32 %v11752_v51, %v14252_v10  ;;  %v12164_v26 = vsub.f32 %v14254_v30, %v14253_v13  ;;  %v5221_v28 = vsel %vm778_vm10, %v5220_v32, %v8370_v29  ;;  %v8374_v51 = vpop.eup %8373  ;;  %vm14267_vm15 = vmmov %vm14243_vm3 }
0x2597   :  { %v12173_v37 = vsub.f32 %v11759_v4, %v14256_v34  ;;  %v14257_v23 = vrot.slane %v12084_v17, 1  ;;  %v3902_v31 = vrot.slane %v8368_v33, 2  ;;  %v8376_v47 = vpop.eup %8375  ;;  %v3901_v16 = vsel %vm786_vm14, %v3900_v7, %v3899_v2 }
0x2598   :  { %14255 = vst [vmem:[#allocation40_spill] sm:$0xff] %v12164_v26  ;;  %v6532_v41 = vmul.f32 1.442695, %v12159_v50  ;;  %v5210_v32 = vmul.f32 1.442695, %v12164_v26  ;;  %v5223_v3 = vsel %vm780_vm11, %v5222_v18, %v5221_v28  ;;  %8385 = vpow2.f32 %v6530_v56  ;;  %v8378_v43 = vpop.eup %8377 }
0x2599   :  { %v2578_v48 = vsel %vm14258_vm4, %v14257_v23, %v2576_v38  ;;  %8387 = vpow2.f32 %v5208_v8  ;;  %v5224_v29 = vrot.slane %v8372_v60, 5  ;;  %v14259_v4 = vrot.slane %v11778_v52, 6  ;;  %v8380_v33 = vpop.eup %8379  ;;  %vm14268_vm4 = vmmov %vm14263_vm2 }
0x259a   :  { %v6548_v38 = vrot.slane %v8374_v51, 7  ;;  %v2580_v10 = vsel %vm14260_vm1, %v2578_v48, 0.0  ;;  %v6534_v13 = vmul.f32 1.442695, %v12173_v37  ;;  %v8382_v30 = vpop.eup %8381  ;;  %v3903_v2 = vsel %vm14261_vm8, %v3902_v31, %v3901_v16 }
0x259b   :  { %v12185_v17 = vsub.f32 %v11767_v45, %v14259_v4  ;;  %v5225_v18 = vsel %vm782_vm12, %v5224_v29, %v5223_v3  ;;  %8389 = vpow2.f32 %v6532_v41  ;;  %v8384_v56 = vpop.eup %8383  ;;  %v5226_v60 = vrot.slane %v8376_v47, 4 }
0x259c   :  { %8391 = vpow2.f32 %v5210_v32  ;;  %v14262_v8 = vrot.slane %v11778_v52, 7  ;;  %v6550_v28 = vrot.slane %v8378_v43, 6  ;;  %v3904_v51 = vrot.slane %v8380_v33, 1 }
0x259d   :  { %v6536_v7 = vmul.f32 1.442695, %v12185_v17  ;;  %v6549_v34 = vsel %vm778_vm10, %v6548_v38, %v8384_v56  ;;  %v5227_v48 = vsel %vm784_vm13, %v5226_v60, %v5225_v18  ;;  %8393 = vpow2.f32 %v6534_v13 }
0x259e   :  { %2581 = vadd.xlane.f32.xlu0 %v2580_v10  ;;  %v12194_v45 = vsub.f32 %v11770_v42, %v14262_v8  ;;  %v8386_v23 = vpop.eup %8385  ;;  %v3905_v41 = vsel %vm14263_vm2, %v3904_v51, %v3903_v2  ;;  %v5228_v16 = vrot.slane %v8382_v30, 3  ;;  %v6551_v52 = vsel %vm780_vm11, %v6550_v28, %v6549_v34 }
0x259f   :  { %v8388_v31 = vpop.eup %8387  ;;  %8395 = vpow2.f32 %v6536_v7  ;;  %v6552_v3 = vrot.slane %v8386_v23, 5  ;;  %v3907_v29 = vsel %vm14264_vm5, %v3905_v41, 0.0 }
0x25a0   :  { %v6538_v47 = vmul.f32 1.442695, %v12194_v45  ;;  %v5229_v32 = vsel %vm786_vm14, %v5228_v16, %v5227_v48  ;;  %v5230_v4 = vrot.slane %v8388_v31, 2 }
0x25a1   :  { %v8390_v42 = vpop.eup %8389  ;;  %v6553_v38 = vsel %vm782_vm12, %v6552_v3, %v6551_v52 }
0x25a2   :  { %v8392_v43 = vpop.eup %8391  ;;  %v5231_v10 = vsel %vm14243_vm3, %v5230_v4, %v5229_v32  ;;  %8397 = vpow2.f32 %v6538_v47  ;;  %v6554_v13 = vrot.slane %v8390_v42, 4 }
0x25a3   :  { %v8394_v33 = vpop.eup %8393  ;;  %v5232_v30 = vrot.slane %v8392_v43, 1 }
0x25a4   :  { %v6555_v2 = vsel %vm784_vm13, %v6554_v13, %v6553_v38  ;;  %v6556_v60 = vrot.slane %v8394_v33, 3 }
0x25a5   :  { %v8396_v18 = vpop.eup %8395  ;;  %v5233_v56 = vsel %vm14265_vm6, %v5232_v30, %v5231_v10 }
0x25a6   :  { %3908 = vadd.xlane.f32.xlu0 %v3907_v29  ;;  %v6557_v8 = vsel %vm786_vm14, %v6556_v60, %v6555_v2  ;;  %v5235_v51 = vsel %vm14266_vm7, %v5233_v56, 0.0  ;;  %v6558_v7 = vrot.slane %v8396_v18, 2 }
0x25a8   :  { %v8398_v28 = vpop.eup %8397  ;;  %v6559_v34 = vsel %vm14267_vm15, %v6558_v7, %v6557_v8 }
0x25a9   :  { %v6560_v23 = vrot.slane %v8398_v28, 1 }
0x25ab   :  { %v6561_v48 = vsel %vm14268_vm4, %v6560_v23, %v6559_v34 }
0x25ac   :  { %v6563_v31 = vsel %vm14260_vm1, %v6561_v48, 0.0 }
0x25ae   :  { %5236 = vadd.xlane.f32.xlu0 %v5235_v51 }
0x25b6   :  { %6564 = vadd.xlane.f32.xlu0 %v6563_v31 }
0x2609   :  { %v7536_v41 = vpop.xlane.xlu0 %7535 }
0x260a   :  { %v12213_v16 = vperm.slane %v7536_v41, 0  ;;  %v7539_v47 = vperm.slane %v7536_v41, 1  ;;  %v7540_v52 = vperm.slane %v7536_v41, 2  ;;  %v12215_v42 = vperm.slane %v7536_v41, 3 }
0x260b   :  { %v12217_v32 = vperm.slane %v7536_v41, 4  ;;  %v12220_v3 = vperm.slane %v7536_v41, 5  ;;  %v12227_v38 = vperm.slane %v7536_v41, 7  ;;  %v12231_v30 = vperm.slane %v7536_v41, 6 }
0x260c   :  { %8399 = vrcp.f32 %v12213_v16  ;;  %v7593_v29 = vand.u32 2147483647, %v7540_v52  ;;  %v7595_v33 = vand.u32 2147483648, %v7540_v52  ;;  %vm7589_vm8 = vweird.f32 %v7540_v52 }
0x260d   :  { %8401 = vrcp.f32 %v7539_v47  ;;  %vm7574_vm2 = vweird.f32 %v7539_v47  ;;  %v7578_v60 = vand.u32 2147483647, %v7539_v47  ;;  %v7580_v34 = vand.u32 2147483648, %v7539_v47 }
0x260e   :  { %8403 = vrcp.f32 %v7540_v52  ;;  %vm12237_vm5 = vcmp.eq.f32.partialorder %v7593_v29, 8.507059e+37  ;;  %v7596_v41 = vor.u32 1.1754944e-38, %v7595_v33 }
0x260f   :  { %8405 = vrcp.f32 %v12215_v42  ;;  %vm12249_vm7 = vcmp.eq.f32.partialorder %v7578_v60, 8.507059e+37  ;;  %v7565_v60 = vand.u32 2147483648, %v12213_v16 }
0x2610   :  { %8407 = vrcp.f32 %v12217_v32 }
0x2611   :  { %8409 = vrcp.f32 %v12220_v3 }
0x2612   :  { %v12225_v43 = vpop.eup %8399  ;;  %8411 = vrcp.f32 %v12227_v38 }
0x2613   :  { %v8402_v4 = vpop.eup %8401  ;;  %v7555_v10 = vmul.f32 %v12225_v43, %v12213_v16  ;;  %8413 = vrcp.f32 %v12231_v30  ;;  %vm7560_vm4 = vweird.f32 %v12225_v43 }
0x2614   :  { %v8404_v13 = vpop.eup %8403  ;;  %v7570_v2 = vmul.f32 %v8402_v4, %v7539_v47  ;;  %vm7575_vm3 = vweird.f32 %v8402_v4 }
0x2615   :  { %v12233_v18 = vpop.eup %8405  ;;  %v7585_v56 = vmul.f32 %v8404_v13, %v7540_v52  ;;  %v7556_v8 = vsub.f32 1.0, %v7555_v10  ;;  %vm7590_vm6 = vweird.f32 %v8404_v13  ;;  %vm7576_vm15 = vmor %vm7574_vm2, %vm7575_vm3  ;;  %vm7604_vm2 = vweird.f32 %v12215_v42 }
0x2616   :  { %v12235_v28 = vpop.eup %8407  ;;  %v7571_v7 = vsub.f32 1.0, %v7570_v2  ;;  %v7600_v23 = vmul.f32 %v12233_v18, %v12215_v42  ;;  %vm7591_vm1 = vmor %vm7589_vm8, %vm7590_vm6  ;;  %vm7605_vm9 = vweird.f32 %v12233_v18  ;;  %vm7559_vm8 = vweird.f32 %v12213_v16 }
0x2617   :  { %v12243_v48 = vpop.eup %8409  ;;  %v7586_v31 = vsub.f32 1.0, %v7585_v56  ;;  %v7557_v44 = vmul.f32 %v12225_v43, %v7556_v8  ;;  %v7615_v29 = vmul.f32 %v12235_v28, %v12217_v32  ;;  %v7581_v56 = vor.u32 1.1754944e-38, %v7580_v34  ;;  %vm7561_vm3 = vmor %vm7559_vm8, %vm7560_vm4 }
0x2618   :  { %v7572_v26 = vmul.f32 %v8402_v4, %v7571_v7  ;;  %v7601_v10 = vsub.f32 1.0, %v7600_v23  ;;  %v7630_v61 = vmul.f32 %v12243_v48, %v12220_v3  ;;  %v7610_v8 = vand.u32 2147483648, %v12215_v42  ;;  %v12264_v34 = vpop.eup %8411 }
0x2619   :  { %v7587_v19 = vmul.f32 %v8404_v13, %v7586_v31  ;;  %v7558_v49 = vadd.f32 %v12225_v43, %v7557_v44  ;;  %vm7619_vm4 = vweird.f32 %v12217_v32 }
0x261a   :  { %v7573_v33 = vadd.f32 %v8402_v4, %v7572_v26  ;;  %v7602_v7 = vmul.f32 %v12233_v18, %v7601_v10  ;;  %v7616_v26 = vsub.f32 1.0, %v7615_v29  ;;  %v7631_v0 = vsub.f32 1.0, %v7630_v61  ;;  %v12279_v29 = vpop.eup %8413 }
0x261b   :  { %v7588_v23 = vadd.f32 %v8404_v13, %v7587_v19  ;;  %v7611_v51 = vor.u32 1.1754944e-38, %v7610_v8  ;;  %v7645_v2 = vmul.f32 %v12279_v29, %v12231_v30  ;;  %v7623_v8 = vand.u32 2147483647, %v12217_v32 }
0x261c   :  { %v7577_v31 = vsel %vm7576_vm15, %v8402_v4, %v7573_v33  ;;  %v7603_v47 = vadd.f32 %v12233_v18, %v7602_v7  ;;  %v7563_v4 = vand.u32 2147483647, %v12213_v16  ;;  %v7617_v61 = vmul.f32 %v12235_v28, %v7616_v26 }
0x261d   :  { %v7592_v10 = vsel %vm7591_vm1, %v8404_v13, %v7588_v23  ;;  %v7582_v19 = vsel %vm12249_vm7, %v7581_v56, %v7577_v31  ;;  %v7608_v13 = vand.u32 2147483647, %v12215_v42  ;;  %v7632_v16 = vmul.f32 %v12243_v48, %v7631_v0 }
0x261e   :  { %v7597_v57 = vsel %vm12237_vm5, %v7596_v41, %v7592_v10  ;;  %v7583_v52 = vmul.f32 %v11941_v22, %v7582_v19  ;;  %vm7606_vm5 = vmor %vm7604_vm2, %vm7605_vm9  ;;  %v7562_v22 = vsel %vm7561_vm3, %v12225_v43, %v7558_v49  ;;  %v7660_v42 = vmul.f32 %v12264_v34, %v12227_v38 }
0x261f   :  { %v7598_v44 = vmul.f32 %v11949_v58, %v7597_v57  ;;  %v7607_v58 = vsel %vm7606_vm5, %v12233_v18, %v7603_v47  ;;  %v7566_v57 = vor.u32 1.1754944e-38, %v7565_v60  ;;  %vm7564_vm6 = vcmp.eq.f32.partialorder %v7563_v4, 8.507059e+37 }
0x2620   :  { %7681 = vperm.xlu2 %8120, %v7583_v52   ;;  %vm7609_vm7 = vcmp.eq.f32.partialorder %v7608_v13, 8.507059e+37  ;;  %vm7635_vm9 = vweird.f32 %v12243_v48  ;;  %v7618_v49 = vadd.f32 %v12235_v28, %v7617_v61  ;;  %vm7620_vm15 = vweird.f32 %v12235_v28 }
0x2621   :  { %7686 = vperm.xlu1 %8119, %v7598_v44   ;;  %v7567_v41 = vsel %vm7564_vm6, %v7566_v57, %v7562_v22  ;;  %v7612_v33 = vsel %vm7609_vm7, %v7611_v51, %v7607_v58  ;;  %v7633_v43 = vadd.f32 %v12243_v48, %v7632_v16  ;;  %v7625_v0 = vand.u32 2147483648, %v12217_v32  ;;  %vm7621_vm8 = vmor %vm7619_vm4, %vm7620_vm15 }
0x2622   :  { %v7661_v18 = vsub.f32 1.0, %v7660_v42  ;;  %v7646_v56 = vsub.f32 1.0, %v7645_v2  ;;  %v7568_v7 = vmul.f32 %v11939_v14, %v7567_v41  ;;  %v7640_v23 = vand.u32 2147483648, %v12220_v3  ;;  %v12323_v42 = vpop.xlane.xlu0 %2581  ;;  %v14273_v41 = vld [vmem:[#allocation99_spill] sm:$0xff] }
0x2623   :  { %v7613_v60 = vmul.f32 %v11946_v54, %v7612_v33  ;;  %vm7634_vm1 = vweird.f32 %v12220_v3  ;;  %v7638_v31 = vand.u32 2147483647, %v12220_v3  ;;  %v7622_v26 = vsel %vm7621_vm8, %v12235_v28, %v7618_v49  ;;  %v14275_v33 = vld [vmem:[#allocation91_spill] sm:$0xff]  ;;  %v14277_v49 = vld [vmem:[#allocation93_spill] sm:$0xff] }
0x2624   :  { %vm7636_vm2 = vmor %vm7634_vm1, %vm7635_vm9  ;;  %v7647_v14 = vmul.f32 %v12279_v29, %v7646_v56  ;;  %v7626_v19 = vor.u32 1.1754944e-38, %v7625_v0  ;;  %v7662_v32 = vmul.f32 %v12264_v34, %v7661_v18  ;;  %v7641_v54 = vor.u32 1.1754944e-38, %v7640_v23  ;;  %v14280_v23 = vld [vmem:[#allocation95_spill] sm:$0xff] }
0x2625   :  { %v7637_v10 = vsel %vm7636_vm2, %v12243_v48, %v7633_v43  ;;  %vm7624_vm3 = vcmp.eq.f32.partialorder %v7623_v8, 8.507059e+37  ;;  %vm7639_vm5 = vcmp.eq.f32.partialorder %v7638_v31, 8.507059e+37  ;;  %vm7650_vm6 = vweird.f32 %v12279_v29 }
0x2626   :  { %v7627_v47 = vsel %vm7624_vm3, %v7626_v19, %v7622_v26  ;;  %v7642_v3 = vsel %vm7639_vm5, %v7641_v54, %v7637_v10  ;;  %v7648_v52 = vadd.f32 %v12279_v29, %v7647_v14  ;;  %v7663_v4 = vadd.f32 %v12264_v34, %v7662_v32  ;;  %v14282_v26 = vld [vmem:[#allocation94_spill] sm:$0xff]  ;;  %v14284_v54 = vld [vmem:[#allocation96_spill] sm:$0xff] }
0x2627   :  { %vm7665_vm7 = vweird.f32 %v12264_v34  ;;  %v7655_v28 = vand.u32 2147483648, %v12231_v30  ;;  %v7628_v48 = vmul.f32 %v11951_v15, %v7627_v47  ;;  %v7670_v44 = vand.u32 2147483648, %v12227_v38 }
0x2628   :  { %7676 = vperm.xlu2 %8120, %v7568_v7   ;;  %vm7649_vm9 = vweird.f32 %v12231_v30  ;;  %v7653_v13 = vand.u32 2147483647, %v12231_v30  ;;  %v7643_v22 = vmul.f32 %v11958_v27, %v7642_v3  ;;  %vm7664_vm15 = vweird.f32 %v12227_v38 }
0x2629   :  { %7691 = vperm.xlu1 %8119, %v7613_v60   ;;  %v7668_v61 = vand.u32 2147483647, %v12227_v38  ;;  %vm7651_vm4 = vmor %vm7649_vm9, %vm7650_vm6  ;;  %v7656_v57 = vor.u32 1.1754944e-38, %v7655_v28  ;;  %v7671_v16 = vor.u32 1.1754944e-38, %v7670_v44  ;;  %v14274_v2 = vrot.slane %v14273_v41, 1 }
0x262a   :  { %vm7666_vm1 = vmor %vm7664_vm15, %vm7665_vm7  ;;  %v7652_v58 = vsel %vm7651_vm4, %v12279_v29, %v7648_v52  ;;  %vm7654_vm8 = vcmp.eq.f32.partialorder %v7653_v13, 8.507059e+37  ;;  %v12338_v18 = vpop.xlane.xlu0 %3908  ;;  %v14279_v7 = vrot.slane %v14273_v41, 3  ;;  %v14281_v31 = vrot.slane %v14273_v41, 4 }
0x262b   :  { %v7667_v15 = vsel %vm7666_vm1, %v12264_v34, %v7663_v4  ;;  %vm7669_vm2 = vcmp.eq.f32.partialorder %v7668_v61, 8.507059e+37  ;;  %v7657_v30 = vsel %vm7654_vm8, %v7656_v57, %v7652_v58  ;;  %v12330_v29 = vsub.f32 %v14275_v33, %v14274_v2  ;;  %v14288_v58 = vld [vmem:[#allocation97_spill] sm:$0xff] }
0x262c   :  { %v7672_v27 = vsel %vm7669_vm2, %v7671_v16, %v7667_v15  ;;  %v7658_v51 = vmul.f32 %v11955_v11, %v7657_v30  ;;  %v14276_v34 = vrot.slane %v14273_v41, 2  ;;  %v14278_v11 = vld [vmem:[#allocation92_spill] sm:$0xff]  ;;  %v12348_v8 = vsub.f32 %v14280_v23, %v14279_v7 }
0x262d   :  { %v7673_v38 = vmul.f32 %v11960_v20, %v7672_v27  ;;  %v1216_v0 = vmul.f32 1.442695, %v12330_v29  ;;  %v12342_v56 = vsub.f32 %v14278_v11, %v14273_v41  ;;  %v12354_v14 = vsub.f32 %v14282_v26, %v14281_v31 }
0x262e   :  { %v12335_v43 = vsub.f32 %v14277_v49, %v14276_v34  ;;  %v1220_v10 = vmul.f32 1.442695, %v12348_v8  ;;  %v14283_v32 = vrot.slane %v14273_v41, 5  ;;  %v14285_v28 = vrot.slane %v14273_v41, 6 }
0x262f   :  { %8415 = vpow2.f32 %v1216_v0  ;;  %v1214_v60 = vmul.f32 1.442695, %v12342_v56  ;;  %v1222_v52 = vmul.f32 1.442695, %v12354_v14  ;;  %v14287_v61 = vrot.slane %v14273_v41, 7 }
0x2630   :  { %7696 = vperm.xlu2 %8120, %v7628_v48   ;;  %v1218_v20 = vmul.f32 1.442695, %v12335_v43  ;;  %v12360_v47 = vsub.f32 %v14284_v54, %v14283_v32  ;;  %v14286_v48 = vld [vmem:[#allocation98_spill] sm:$0xff]  ;;  %vm14289_vm3 = vcmask 1046534   ;;  %vm14290_vm5 = vcmask 1047559  }
0x2631   :  { %7701 = vperm.xlu1 %8119, %v7643_v22   ;;  %v12368_v44 = vsub.f32 %v14286_v48, %v14285_v28  ;;  %v12374_v15 = vsub.f32 %v14288_v58, %v14287_v61  ;;  %vm14291_vm6 = vcmask 80896   ;;  %vm14302_vm7 = vmmov %vm14289_vm3  ;;  %vm14315_vm1 = vcmask 48128  }
0x2632   :  { %8417 = vpow2.f32 %v1218_v20  ;;  %v12362_v3 = vpop.xlane.xlu0 %5236  ;;  %v1224_v22 = vmul.f32 1.442695, %v12360_v47  ;;  %vm14304_vm9 = vmmov %vm14290_vm5 }
0x2633   :  { %8419 = vpow2.f32 %v1214_v60  ;;  %v1226_v30 = vmul.f32 1.442695, %v12368_v44  ;;  %vm14309_vm15 = vmmov %vm14289_vm3 }
0x2634   :  { %8421 = vpow2.f32 %v1220_v10  ;;  %vm14312_vm4 = vmmov %vm14290_vm5 }
0x2635   :  { %v8416_v19 = vpop.eup %8415  ;;  %8423 = vpow2.f32 %v1222_v52  ;;  %vm14316_vm8 = vmmov %vm14289_vm3 }
0x2636   :  { %v1238_v13 = vrot.slane %v8416_v19, 7  ;;  %8425 = vpow2.f32 %v1224_v22  ;;  %vm14318_vm2 = vmmov %vm14312_vm4 }
0x2637   :  { %8427 = vpow2.f32 %v1226_v30 }
0x2638   :  { %7706 = vperm.xlu2 %8120, %v7658_v51   ;;  %v8418_v4 = vpop.eup %8417 }
0x2639   :  { %7711 = vperm.xlu1 %8119, %v7673_v38   ;;  %v8420_v57 = vpop.eup %8419  ;;  %v1240_v16 = vrot.slane %v8418_v4, 6  ;;  %v1228_v38 = vmul.f32 1.442695, %v12374_v15 }
0x263a   :  { %v1239_v27 = vsel %vm778_vm10, %v1238_v13, %v8420_v57  ;;  %v8422_v51 = vpop.eup %8421  ;;  %v6565_v34 = vpop.xlane.xlu0 %6564  ;;  %v14292_v57 = vld [vmem:[#allocation88_spill] sm:$0xff] }
0x263b   :  { %v1241_v2 = vsel %vm780_vm11, %v1240_v16, %v1239_v27  ;;  %v8424_v33 = vpop.eup %8423  ;;  %v1242_v41 = vrot.slane %v8422_v51, 5  ;;  %8429 = vpow2.f32 %v1228_v38  ;;  %v1412_v16 = vperm.slane %v14292_v57, %v8896_v36 }
0x263c   :  { %v8426_v0 = vpop.eup %8425  ;;  %8431 = vlog2.f32 %v6565_v34  ;;  %v1244_v11 = vrot.slane %v8424_v33, 4 }
0x263d   :  { %v1243_v49 = vsel %vm782_vm12, %v1242_v41, %v1241_v2  ;;  %v8428_v7 = vpop.eup %8427  ;;  %v1246_v23 = vrot.slane %v8426_v0, 3  ;;  %v14293_v2 = vld [vmem:[#allocation87_spill] sm:$0xff]  ;;  %8433 = vlog2.f32 %v12323_v42 }
0x263e   :  { %v1245_v20 = vsel %vm784_vm13, %v1244_v11, %v1243_v49  ;;  %v1248_v10 = vrot.slane %v8428_v7, 2  ;;  %v1413_v33 = vperm.slane %v14293_v2, %v8896_v36  ;;  %v14296_v11 = vld [vmem:[#allocation85_spill] sm:$0xff]  ;;  %8435 = vlog2.f32 %v12338_v18 }
0x263f   :  { %v1247_v31 = vsel %vm786_vm14, %v1246_v23, %v1245_v20  ;;  %v1414_v20 = vperm.slane %v14296_v11, %v8896_v36 }
0x2640   :  { %v1249_v19 = vsel %vm14289_vm3, %v1248_v10, %v1247_v31  ;;  %vm14319_vm3 = vmmov %vm14315_vm1 }
0x2641   :  { %v8430_v60 = vpop.eup %8429 }
0x2642   :  { %v8432_v26 = vpop.eup %8431  ;;  %v1250_v54 = vrot.slane %v8430_v60, 1  ;;  %v14298_v60 = vld [vmem:[#allocation89_spill] sm:$0xff] }
0x2643   :  { %v6567_v32 = vmul.f32 0.6931472, %v8432_v26  ;;  %v1416_v31 = vperm.slane %v14298_v60, %v8896_v36 }
0x2644   :  { %v1251_v52 = vsel %vm14290_vm5, %v1250_v54, %v1249_v19  ;;  %vm14323_vm5 = vmmov %vm14318_vm2 }
0x2645   :  { %v6569_v4 = vrot.slane %v6567_v32, 1  ;;  %v1253_v28 = vsel %vm14291_vm6, %v1251_v52, 0.0  ;;  %v6570_v48 = vrot.slane %v6567_v32, 2  ;;  %v6571_v13 = vrot.slane %v6567_v32, 3 }
0x2646   :  { %v6572_v22 = vrot.slane %v6567_v32, 4  ;;  %v6573_v61 = vrot.slane %v6567_v32, 5  ;;  %v6574_v30 = vrot.slane %v6567_v32, 6  ;;  %v6575_v51 = vrot.slane %v6567_v32, 7 }
0x2647   :  { %v12387_v58 = vsub.f32 %v12098_v6, %v6569_v4  ;;  %v12392_v27 = vsub.f32 %v12114_v53, %v6570_v48  ;;  %v12395_v38 = vsub.f32 %v12140_v25, %v6571_v13  ;;  %v12403_v6 = vsub.f32 %v12128_v46, %v6567_v32  ;;  %v14300_v32 = vld [vmem:[#allocation116_spill] sm:$0xff] }
0x2648   :  { %v12400_v34 = vsub.f32 %v12159_v50, %v6572_v22  ;;  %v12406_v41 = vsub.f32 %v12173_v37, %v6573_v61  ;;  %v1420_v53 = vsel %vm778_vm10, %v1413_v33, %v1412_v16  ;;  %v12411_v0 = vsub.f32 %v12185_v17, %v6574_v30  ;;  %v14301_v22 = vld [vmem:[#allocation114_spill] sm:$0xff]  ;;  %v14306_v33 = vld [vmem:[#allocation84_spill] sm:$0xff] }
0x2649   :  { %v6697_v49 = vrot.slane %v12387_v58, 7  ;;  %v6699_v25 = vrot.slane %v12392_v27, 6  ;;  %v12417_v50 = vsub.f32 %v12194_v45, %v6575_v51  ;;  %v6701_v37 = vrot.slane %v12395_v38, 5  ;;  %v14299_v45 = vld [vmem:[#allocation83_spill] sm:$0xff]  ;;  %v14303_v30 = vld [vmem:[#allocation90_spill] sm:$0xff] }
0x264a   :  { %14294 = vst [vmem:[#allocation36_spill] sm:$0xff] %v12406_v41  ;;  %v6703_v23 = vrot.slane %v12400_v34, 4  ;;  %v1421_v17 = vsel %vm780_vm11, %v1414_v20, %v1420_v53  ;;  %v6705_v10 = vrot.slane %v12406_v41, 3  ;;  %v1415_v19 = vperm.slane %v14299_v45, %v8896_v36 }
0x264b   :  { %14295 = vst [vmem:[#allocation45_spill] sm:$0xff] %v12411_v0  ;;  %v6698_v46 = vsel %vm778_vm10, %v6697_v49, %v12403_v6  ;;  %v4067_v54 = vperm.slane %v14300_v32, %v8896_v36  ;;  %v6707_v4 = vrot.slane %v12411_v0, 2  ;;  %v6709_v48 = vrot.slane %v12417_v50, 1  ;;  %v14313_v32 = vld [vmem:[#allocation118_spill] sm:$0xff] }
0x264c   :  { %14297 = vst [vmem:[#allocation41_spill] sm:$0xff] %v12417_v50  ;;  %v6700_v7 = vsel %vm780_vm11, %v6699_v25, %v6698_v46  ;;  %v1422_v13 = vsel %vm782_vm12, %v1415_v19, %v1421_v17  ;;  %v4068_v61 = vperm.slane %v14301_v22, %v8896_v36  ;;  %v1418_v51 = vperm.slane %v14303_v30, %v8896_v36  ;;  %v14307_v25 = vld [vmem:[#allocation111_spill] sm:$0xff]  ;;  %v14310_v17 = vld [vmem:[#allocation86_spill] sm:$0xff] }
0x264d   :  { %v6702_v26 = vsel %vm782_vm12, %v6701_v37, %v6700_v7  ;;  %v1423_v16 = vsel %vm784_vm13, %v1416_v31, %v1422_v13  ;;  %v1417_v49 = vperm.slane %v14306_v33, %v8896_v36  ;;  %v4069_v11 = vperm.slane %v14307_v25, %v8896_v36  ;;  %v14308_v37 = vld [vmem:[#allocation117_spill] sm:$0xff]  ;;  %v14311_v31 = vld [vmem:[#allocation112_spill] sm:$0xff]  ;;  %v7164_v25 = vpop.f32.mrf.mxu0 }
0x264e   :  { %v6704_v52 = vsel %vm784_vm13, %v6703_v23, %v6702_v26  ;;  %v4075_v53 = vsel %vm778_vm10, %v4068_v61, %v4067_v54  ;;  %v4071_v7 = vperm.slane %v14308_v37, %v8896_v36  ;;  %v1419_v60 = vperm.slane %v14310_v17, %v8896_v36  ;;  %v14317_v61 = vld [vmem:[#allocation115_spill] sm:$0xff]  ;;  %v8592_v37 = vld [vmem:[%s13215_s2] sm:$0x3f] }
0x264f   :  { %v1424_v20 = vsel %vm786_vm14, %v1417_v49, %v1423_v16  ;;  %v4076_v46 = vsel %vm780_vm11, %v4069_v11, %v4075_v53  ;;  %v4070_v26 = vperm.slane %v14311_v31, %v8896_v36  ;;  %v4073_v54 = vperm.slane %v14313_v32, %v8896_v36  ;;  %v8593_v31 = vld [vmem:[%s13215_s2 + $0x10] sm:$0x3f] }
0x2650   :  { %v1425_v23 = vsel %vm14309_vm15, %v1418_v51, %v1424_v20  ;;  %v8591_v20 = vld [vmem:[%s13215_s2 + $0x8] sm:$0x3f] }
0x2651   :  { %v1426_v45 = vsel %vm14312_vm4, %v1419_v60, %v1425_v23  ;;  %v7205_v23 = vpop.f32.mrf.mxu1  ;;  %vm14329_vm4 = vmmov %vm14318_vm2 }
0x2655   :  { %v7235_v32 = vpop.f32.mrf.mxu0 }
0x2663   :  { %1254 = vadd.xlane.f32.xlu1 %v1253_v28  ;;  %v6706_v28 = vsel %vm786_vm14, %v6705_v10, %v6704_v52  ;;  %v4077_v10 = vsel %vm782_vm12, %v4070_v26, %v4076_v46  ;;  %v14314_v52 = vld [vmem:[#allocation113_spill] sm:$0xff] }
0x2664   :  { %v6708_v57 = vsel %vm14302_vm7, %v6707_v4, %v6706_v28  ;;  %v4078_v19 = vsel %vm784_vm13, %v4071_v7, %v4077_v10  ;;  %v4072_v4 = vperm.slane %v14314_v52, %v8896_v36 }
0x2665   :  { %v12445_v2 = vsel %vm14304_vm9, %v6709_v48, %v6708_v57  ;;  %v1428_v48 = vsel %vm14315_vm1, %v1426_v45, 0.0  ;;  %v4074_v57 = vperm.slane %v14317_v61, %v8896_v36  ;;  %v8594_v45 = vld [vmem:[%s13215_s2 + $0x20] sm:$0x3f]  ;;  %vm14325_vm9 = vmmov %vm14318_vm2 }
0x2666   :  { %14305 = vst [vmem:[#allocation76_spill] sm:$0xff] %v12445_v2  ;;  %v4079_v13 = vsel %vm786_vm14, %v4072_v4, %v4078_v19 }
0x2667   :  { %v4080_v22 = vsel %vm14316_vm8, %v4073_v54, %v4079_v13  ;;  %vm14334_vm8 = vmmov %vm14291_vm6 }
0x2668   :  { %v4081_v16 = vsel %vm14318_vm2, %v4074_v57, %v4080_v22 }
0x2669   :  { %v4083_v49 = vsel %vm14319_vm3, %v4081_v16, 0.0  ;;  %vm14337_vm3 = vmmov %vm14329_vm4 }
0x267a   :  { %v7682_v28 = vpop.permute.xlu2 %7681 }
0x267b   :  { %v8052_v51 = vperm.slane %v7682_v28, %v8896_v36  ;;  %v7715_v46 = vmul.f32 %v8591_v20, %v7682_v28 }
0x267c   :  { %1429 = vrot.lane.b32.xlu1 %v1428_v48, %s8632_s0  ;;  %v8595_v48 = vld [vmem:[%s13217_s4] ss:$0 sm:$0xff] }
0x267d   :  { %v7729_v60 = vsel %vm1082_vm0, %v7715_v46, 0.0  ;;  %v7165_v13 = vadd.f32 %v8595_v48, %v7164_v25  ;;  %v8597_v25 = vld [vmem:[%s13215_s2 + $0x18] sm:$0x3f] }
0x267e   :  { %v7730_v22 = vrot.slane %v7729_v60, 4 }
0x2682   :  { %v7677_v30 = vpop.permute.xlu2 %7676 }
0x2683   :  { %v8051_v33 = vperm.slane %v7677_v30, %v8896_v36  ;;  %v7714_v7 = vmul.f32 %v8592_v37, %v7677_v30  ;;  %v8596_v30 = vld [vmem:[%s13215_s2 + $0x30] sm:$0x3f] }
0x2684   :  { %4084 = vrot.lane.b32.xlu1 %v4083_v49, %s8633_s25  ;;  %v7206_v49 = vadd.f32 %v7205_v23, %v7165_v13 }
0x2685   :  { %v8059_v53 = vsel %vm778_vm10, %v8052_v51, %v8051_v33  ;;  %v7722_v54 = vsel %vm1082_vm0, %v7714_v7, 0.0 }
0x2686   :  { %v7723_v57 = vrot.slane %v7722_v54, 4 }
0x268a   :  { %v7697_v11 = vpop.permute.xlu2 %7696 }
0x268b   :  { %v7718_v19 = vmul.f32 %v8594_v45, %v7697_v11 }
0x268d   :  { %v7750_v16 = vsel %vm1082_vm0, %v7718_v19, 0.0 }
0x268e   :  { %v7751_v46 = vrot.slane %v7750_v16, 4 }
0x2692   :  { %v12495_v28 = vpop.permute.xlu2 %7706 }
0x2693   :  { %v7687_v17 = vpop.permute.xlu1 %7686  ;;  %v7720_v51 = vmul.f32 %v8596_v30, %v12495_v28 }
0x2694   :  { %v7716_v26 = vmul.f32 %v8593_v31, %v7687_v17  ;;  %v8053_v10 = vperm.slane %v7687_v17, %v8896_v36  ;;  %v7262_v17 = vpop.f32.mrf.mxu1  ;;  %v7236_v31 = vadd.f32 %v7235_v32, %v7206_v49 }
0x2695   :  { %v7764_v45 = vsel %vm1082_vm0, %v7720_v51, 0.0 }
0x2696   :  { %v7736_v52 = vsel %vm1082_vm0, %v7716_v26, 0.0  ;;  %v8060_v4 = vsel %vm780_vm11, %v8053_v10, %v8059_v53  ;;  %v7731_v53 = vadd.f32 %v7730_v22, %v7729_v60  ;;  %v7724_v26 = vadd.f32 %v7723_v57, %v7722_v54  ;;  %v7295_v22 = vpop.f32.mrf.mxu0 }
0x2697   :  { %v7737_v61 = vrot.slane %v7736_v52, 4  ;;  %v8055_v10 = vperm.slane %v7697_v11, %v8896_v36  ;;  %v7765_v30 = vrot.slane %v7764_v45, 4 }
0x2699   :  { %v7738_v33 = vadd.f32 %v7737_v61, %v7736_v52  ;;  %v7732_v52 = vrot.slane %v7731_v53, 2  ;;  %v7752_v61 = vadd.f32 %v7751_v46, %v7750_v16  ;;  %v7766_v50 = vadd.f32 %v7765_v30, %v7764_v45 }
0x269b   :  { %v7692_v20 = vpop.permute.xlu1 %7691  ;;  %v7739_v19 = vrot.slane %v7738_v33, 2  ;;  %v7733_v11 = vadd.f32 %v7732_v52, %v7731_v53  ;;  %v7753_v2 = vrot.slane %v7752_v61, 2  ;;  %v7767_v52 = vrot.slane %v7766_v50, 2 }
0x269c   :  { %v7717_v37 = vmul.f32 %v8597_v25, %v7692_v20  ;;  %v8054_v7 = vperm.slane %v7692_v20, %v8896_v36  ;;  %v7263_v20 = vadd.f32 %v7262_v17, %v7236_v31  ;;  %v7725_v25 = vrot.slane %v7724_v26, 2  ;;  %v7320_v53 = vpop.f32.mrf.mxu1 }
0x269d   :  { %v7740_v54 = vadd.f32 %v7739_v19, %v7738_v33  ;;  %v7734_v31 = vrot.slane %v7733_v11, 1 }
0x269e   :  { %v7743_v23 = vsel %vm1082_vm0, %v7717_v37, 0.0  ;;  %v8061_v60 = vsel %vm782_vm12, %v8054_v7, %v8060_v4  ;;  %v7296_v57 = vadd.f32 %v7295_v22, %v7263_v20  ;;  %v8598_v4 = vld [vmem:[%s13215_s2 + $0x28] sm:$0x3f] }
0x269f   :  { %v7744_v48 = vrot.slane %v7743_v23, 4  ;;  %v8062_v13 = vsel %vm784_vm13, %v8055_v10, %v8061_v60  ;;  %v7726_v10 = vadd.f32 %v7725_v25, %v7724_v26  ;;  %v7741_v46 = vrot.slane %v7740_v54, 1 }
0x26a0   :  { %v7321_v45 = vadd.f32 %v7320_v53, %v7296_v57  ;;  %v7754_v60 = vadd.f32 %v7753_v2, %v7752_v61  ;;  %v7735_v26 = vadd.f32 %v7734_v31, %v7733_v11 }
0x26a1   :  { %v7745_v32 = vadd.f32 %v7744_v48, %v7743_v23  ;;  %v7727_v48 = vrot.slane %v7726_v10, 1  ;;  %v7742_v30 = vadd.f32 %v7741_v46, %v7740_v54 }
0x26a2   :  { %v7779_v42 = vrot.slane %v7321_v45, 1  ;;  %v7781_v61 = vrot.slane %v7321_v45, 3 }
0x26a3   :  { %v7746_v49 = vrot.slane %v7745_v32, 2  ;;  %v7702_v51 = vpop.permute.xlu1 %7701  ;;  %v7728_v2 = vadd.f32 %v7727_v48, %v7726_v10 }
0x26a4   :  { %v7719_v37 = vmul.f32 %v8598_v4, %v7702_v51  ;;  %v8056_v7 = vperm.slane %v7702_v51, %v8896_v36  ;;  %v7768_v51 = vadd.f32 %v7767_v52, %v7766_v50  ;;  %v8599_v4 = vld [vmem:[%s13215_s2 + $0x38] sm:$0x3f]  ;;  %s8634_s2 = smov 24  }
0x26a5   :  { %v7747_v16 = vadd.f32 %v7746_v49, %v7745_v32  ;;  %v7755_v49 = vrot.slane %v7754_v60, 1  ;;  %v12538_v52 = vadd.f32 %v7728_v2, %v7321_v45  ;;  %v7784_v2 = vrot.slane %v7321_v45, 6 }
0x26a6   :  { %v7757_v17 = vsel %vm1082_vm0, %v7719_v37, 0.0  ;;  %v12520_v33 = vsel %vm786_vm14, %v8056_v7, %v8062_v13  ;;  %v7780_v13 = vrot.slane %v7321_v45, 2  ;;  %v8434_v7 = vpop.eup %8433  ;;  %v7769_v31 = vrot.slane %v7768_v51, 1 }
0x26a7   :  { %v7748_v19 = vrot.slane %v7747_v16, 1  ;;  %v7758_v23 = vrot.slane %v7757_v17, 4  ;;  %v7756_v53 = vadd.f32 %v7755_v49, %v7754_v60 }
0x26a8   :  { %v12529_v54 = vadd.f32 %v7780_v13, %v7742_v30  ;;  %v7770_v60 = vadd.f32 %v7769_v31, %v7768_v51 }
0x26a9   :  { %v7759_v22 = vadd.f32 %v7758_v23, %v7757_v17  ;;  %v7749_v20 = vadd.f32 %v7748_v19, %v7747_v16  ;;  %v12532_v16 = vadd.f32 %v7779_v42, %v7735_v26  ;;  %v7783_v19 = vrot.slane %v7321_v45, 5 }
0x26aa   :  { %v12536_v23 = vmul.f32 0.6931472, %v8434_v7  ;;  %v7812_v30 = vrot.slane %v12529_v54, 6 }
0x26ab   :  { %v7760_v25 = vrot.slane %v7759_v22, 2  ;;  %v12523_v32 = vpop.permute.xlu1 %7711  ;;  %v12534_v46 = vadd.f32 %v7781_v61, %v7749_v20 }
0x26ac   :  { %v7721_v57 = vmul.f32 %v8599_v4, %v12523_v32  ;;  %v2586_v42 = vrot.slane %v12536_v23, 1  ;;  %v2587_v18 = vrot.slane %v12536_v23, 2 }
0x26ad   :  { %v7761_v37 = vadd.f32 %v7760_v25, %v7759_v22  ;;  %v7782_v22 = vrot.slane %v7321_v45, 4  ;;  %v7810_v25 = vrot.slane %v12532_v16, 7  ;;  %v7814_v26 = vrot.slane %v12534_v46, 5 }
0x26ae   :  { %v7771_v11 = vsel %vm1082_vm0, %v7721_v57, 0.0  ;;  %v12559_v31 = vsub.f32 %v11967_v62, %v2586_v42  ;;  %vm14322_vm0 = vmmov %vm14302_vm7 }
0x26af   :  { %v7762_v50 = vrot.slane %v7761_v37, 1  ;;  %v7772_v17 = vrot.slane %v7771_v11, 4  ;;  %v12545_v4 = vadd.f32 %v7782_v22, %v7756_v53  ;;  %v7811_v49 = vsel %vm778_vm10, %v7810_v25, %v12538_v52  ;;  %vm14324_vm7 = vmmov %vm14322_vm0 }
0x26b0   :  { %v7813_v61 = vsel %vm780_vm11, %v7812_v30, %v7811_v49  ;;  %v12567_v25 = vsub.f32 %v11972_v5, %v2587_v18  ;;  %v2589_v5 = vrot.slane %v12536_v23, 4  ;;  %vm14327_vm15 = vmmov %vm14322_vm0 }
0x26b1   :  { %v7763_v10 = vadd.f32 %v7762_v50, %v7761_v37  ;;  %v7773_v48 = vadd.f32 %v7772_v17, %v7771_v11  ;;  %v7815_v7 = vsel %vm782_vm12, %v7814_v26, %v7813_v61  ;;  %v12554_v50 = vadd.f32 %v7784_v2, %v7770_v60  ;;  %vm14335_vm2 = vmmov %vm14322_vm0 }
0x26b2   :  { %v7816_v51 = vrot.slane %v12545_v4, 4  ;;  %v7785_v17 = vrot.slane %v7321_v45, 7  ;;  %v2588_v45 = vrot.slane %v12536_v23, 3  ;;  %v2716_v2 = vrot.slane %v12567_v25, 6 }
0x26b3   :  { %v12543_v20 = vadd.f32 %v7783_v19, %v7763_v10  ;;  %v7774_v13 = vrot.slane %v7773_v48, 2  ;;  %14320 = vst [vmem:[#allocation47_spill] sm:$0xff] %v12554_v50  ;;  %v8436_v10 = vpop.eup %8435  ;;  %v7820_v30 = vrot.slane %v12554_v50, 2  ;;  %v12592_v18 = vsub.f32 %v11989_v39, %v2589_v5 }
0x26b4   :  { %v7817_v19 = vsel %vm784_vm13, %v7816_v51, %v7815_v7  ;;  %v3911_v62 = vmul.f32 0.6931472, %v8436_v10  ;;  %v12582_v61 = vsub.f32 %v11983_v40, %v2588_v45  ;;  %v8058_v7 = vperm.slane %v12523_v32, %v8896_v36 }
0x26b5   :  { %v7775_v57 = vadd.f32 %v7774_v13, %v7773_v48  ;;  %v7818_v11 = vrot.slane %v12543_v20, 3  ;;  %v2714_v13 = vrot.slane %v12559_v31, 7  ;;  %v2590_v51 = vrot.slane %v12536_v23, 5 }
0x26b6   :  { %v2718_v40 = vrot.slane %v12582_v61, 5  ;;  %v2591_v10 = vrot.slane %v12536_v23, 6  ;;  %v3915_v32 = vrot.slane %v3911_v62, 3  ;;  %v2592_v45 = vrot.slane %v12536_v23, 7 }
0x26b7   :  { %v7776_v37 = vrot.slane %v7775_v57, 1  ;;  %v7819_v22 = vsel %vm786_vm14, %v7818_v11, %v7817_v19  ;;  %v3913_v11 = vrot.slane %v3911_v62, 1  ;;  %v12606_v39 = vsub.f32 %v11995_v1, %v2590_v51 }
0x26b8   :  { %v7821_v60 = vsel %vm14322_vm0, %v7820_v30, %v7819_v22 }
0x26b9   :  { %v7777_v53 = vadd.f32 %v7776_v37, %v7775_v57  ;;  %v12576_v57 = vsub.f32 %v11977_v9, %v12536_v23  ;;  %v8057_v9 = vperm.slane %v12495_v28, %v8896_v36  ;;  %v12600_v22 = vsub.f32 %v12006_v24, %v3913_v11 }
0x26ba   :  { %v2722_v5 = vrot.slane %v12606_v39, 3  ;;  %v3928_v23 = vsub.f32 %v12024_v59, %v3911_v62  ;;  %v3918_v59 = vrot.slane %v3911_v62, 6 }
0x26bb   :  { %v12562_v48 = vadd.f32 %v7785_v17, %v7777_v53  ;;  %v2715_v37 = vsel %vm778_vm10, %v2714_v13, %v12576_v57  ;;  %v3914_v53 = vrot.slane %v3911_v62, 2  ;;  %v8064_v19 = vsel %vm14324_vm7, %v8057_v9, %v12520_v33  ;;  %vm14343_vm7 = vmmov %vm14335_vm2 }
0x26bc   :  { %v2717_v17 = vsel %vm780_vm11, %v2716_v2, %v2715_v37  ;;  %v12603_v28 = vsel %vm14325_vm9, %v8058_v7, %v8064_v19  ;;  %v3916_v13 = vrot.slane %v3911_v62, 4  ;;  %v3938_v1 = vmul.f32 1.442695, %v12600_v22  ;;  %vm14344_vm9 = vmmov %vm14337_vm3 }
0x26bd   :  { %14321 = vst [vmem:[#allocation79_spill] sm:$0xff] %v12562_v48  ;;  %v7822_v26 = vrot.slane %v12562_v48, 1  ;;  %v2719_v30 = vsel %vm782_vm12, %v2718_v40, %v2717_v17  ;;  %v12612_v33 = vsub.f32 %v12013_v21, %v3914_v53  ;;  %v12626_v2 = vsub.f32 %v12018_v55, %v2592_v45  ;;  %v14328_v40 = vld [vmem:[#allocation17_spill] sm:$0xff] }
0x26be   :  { %14326 = vst [vmem:[#allocation50_spill] sm:$0xff] %v12603_v28  ;;  %v3917_v7 = vrot.slane %v3911_v62, 5  ;;  %8437 = vpow2.f32 %v3938_v1  ;;  %v3936_v51 = vmul.f32 1.442695, %v3928_v23  ;;  %v3919_v17 = vrot.slane %v3911_v62, 7  ;;  %v14332_v1 = vld [vmem:[#allocation110_spill] sm:$0xff] }
0x26bf   :  { %v7823_v49 = vsel %vm14323_vm5, %v7822_v26, %v7821_v60  ;;  %v2720_v26 = vrot.slane %v12592_v18, 4  ;;  %v12615_v60 = vsub.f32 %v12001_v35, %v2591_v10  ;;  %v12630_v35 = vsub.f32 %v12044_v63, %v3916_v13  ;;  %v14331_v13 = vld [vmem:[#allocation27_spill] sm:$0xff]  ;;  %vm14340_vm5 = vmmov %vm14291_vm6 }
0x26c0   :  { %v7825_v42 = vsel %vm14291_vm6, %v7823_v49, -inf  ;;  %v12619_v49 = vsub.f32 %v12034_v12, %v3915_v32  ;;  %v3940_v37 = vmul.f32 1.442695, %v12612_v33  ;;  %v2726_v55 = vrot.slane %v12626_v2, 1  ;;  %vm14342_vm6 = vmmov %vm14335_vm2 }
0x26c1   :  { %7826 = vmax.xlane.f32.xlu2 %v7825_v42  ;;  %v2721_v24 = vsel %vm784_vm13, %v2720_v26, %v2719_v30  ;;  %v2609_v42 = vmul.f32 1.442695, %v12576_v57  ;;  %v2724_v12 = vrot.slane %v12615_v60, 2  ;;  %v3944_v63 = vmul.f32 1.442695, %v12630_v35  ;;  %v14330_v30 = vld [vmem:[#allocation23_spill] sm:$0xff] }
0x26c2   :  { %v2723_v21 = vsel %vm786_vm14, %v2722_v5, %v2721_v24  ;;  %v3942_v11 = vmul.f32 1.442695, %v12619_v49  ;;  %v12639_v53 = vsub.f32 %v14328_v40, %v3917_v7  ;;  %v2611_v19 = vmul.f32 1.442695, %v12559_v31 }
0x26c3   :  { %8439 = vpow2.f32 %v2609_v42  ;;  %v2725_v9 = vsel %vm14327_vm15, %v2724_v12, %v2723_v21  ;;  %v12644_v26 = vsub.f32 %v14330_v30, %v3918_v59  ;;  %v12647_v24 = vsub.f32 %v14331_v13, %v3919_v17  ;;  %vm14345_vm15 = vmmov %vm14340_vm5 }
0x26c4   :  { %8441 = vpow2.f32 %v3940_v37  ;;  %v2727_v10 = vsel %vm14329_vm4, %v2726_v55, %v2725_v9  ;;  %v8438_v32 = vpop.eup %8437  ;;  %vm14333_vm1 = vcmp.eq.s32.totalorder %v8896_v36, %v14332_v1  ;;  %v3946_v5 = vmul.f32 1.442695, %v12639_v53  ;;  %vm14346_vm4 = vmmov %vm14337_vm3 }
0x26c5   :  { %8443 = vpow2.f32 %v3942_v11  ;;  %v2729_v42 = vsel %vm14333_vm1, %v2727_v10, 0.0  ;;  %v4041_v21 = vrot.slane %v12600_v22, 7  ;;  %v3953_v12 = vmul.f32 %v8438_v32, %v12600_v22  ;;  %vm14347_vm1 = vmmov %vm14335_vm2 }
0x26c6   :  { %8445 = vpow2.f32 %v3936_v51  ;;  %v2613_v7 = vmul.f32 1.442695, %v12567_v25  ;;  %v3948_v9 = vmul.f32 1.442695, %v12644_v26  ;;  %v12661_v51 = vsel %vm14334_vm8, %v2729_v42, 0.0  ;;  %vm14348_vm8 = vmmov %vm14347_vm1 }
0x26c7   :  { %8447 = vpow2.f32 %v3944_v63  ;;  %v3950_v55 = vmul.f32 1.442695, %v12647_v24  ;;  %v2615_v17 = vmul.f32 1.442695, %v12582_v61  ;;  %v4043_v63 = vrot.slane %v12612_v33, 6 }
0x26c8   :  { %8449 = vpow2.f32 %v2611_v19  ;;  %v2617_v19 = vmul.f32 1.442695, %v12592_v18  ;;  %v4042_v10 = vsel %vm778_vm10, %v4041_v21, %v3928_v23  ;;  %v3968_v30 = vrot.slane %v3953_v12, 7 }
0x26c9   :  { %v8440_v45 = vpop.eup %8439  ;;  %v12675_v42 = vmul.f32 1.442695, %v12626_v2 }
0x26ca   :  { %v8442_v37 = vpop.eup %8441  ;;  %v12658_v59 = vmul.f32 %v8440_v45, %v12576_v57  ;;  %v2619_v45 = vmul.f32 1.442695, %v12606_v39 }
0x26cb   :  { %v8444_v11 = vpop.eup %8443  ;;  %v3954_v22 = vmul.f32 %v8442_v37, %v12612_v33  ;;  %v12679_v37 = vsel %vm780_vm11, %v4043_v63, %v4042_v10 }
0x26cc   :  { %v8446_v40 = vpop.eup %8445  ;;  %v12670_v57 = vmul.f32 %v8444_v11, %v12619_v49 }
0x26cd   :  { %v8448_v32 = vpop.eup %8447  ;;  %v3952_v21 = vmul.f32 %v8446_v40, %v3928_v23 }
0x26ce   :  { %v8450_v13 = vpop.eup %8449  ;;  %v12683_v11 = vmul.f32 %v8448_v32, %v12630_v35  ;;  %v3972_v1 = vrot.slane %v12670_v57, 5 }
0x26cf   :  { %v3969_v28 = vsel %vm778_vm10, %v3968_v30, %v3952_v21  ;;  %v12688_v33 = vmul.f32 %v8450_v13, %v12559_v31 }
0x26d6   :  { %v1255_v62 = vpop.xlane.xlu1 %1254 }
0x26d7   :  { %8451 = vlog2.f32 %v1255_v62  ;;  %v2621_v62 = vmul.f32 1.442695, %v12615_v60 }
0x26d8   :  { %8453 = vpow2.f32 %v3946_v5 }
0x26d9   :  { %8455 = vpow2.f32 %v2613_v7 }
0x26da   :  { %8457 = vpow2.f32 %v3948_v9  ;;  %v3970_v9 = vrot.slane %v3954_v22, 6 }
0x26db   :  { %8459 = vpow2.f32 %v3950_v55 }
0x26dc   :  { %8461 = vpow2.f32 %v2615_v17  ;;  %v3971_v41 = vsel %vm780_vm11, %v3970_v9, %v3969_v28  ;;  %v2641_v28 = vrot.slane %v12688_v33, 7 }
0x26dd   :  { %v8452_v5 = vpop.eup %8451  ;;  %8463 = vpow2.f32 %v2617_v19 }
0x26de   :  { %v1257_v7 = vmul.f32 0.6931472, %v8452_v5  ;;  %v8454_v23 = vpop.eup %8453  ;;  %8465 = vpow2.f32 %v2619_v45 }
0x26df   :  { %v8456_v12 = vpop.eup %8455  ;;  %8467 = vpow2.f32 %v2621_v62 }
0x26e0   :  { %v1259_v55 = vrot.slane %v1257_v7, 1  ;;  %v1260_v63 = vrot.slane %v1257_v7, 2  ;;  %v1261_v40 = vrot.slane %v1257_v7, 3  ;;  %v1262_v10 = vrot.slane %v1257_v7, 4  ;;  %v8458_v17 = vpop.eup %8457 }
0x26e1   :  { %v1263_v5 = vrot.slane %v1257_v7, 5  ;;  %v1264_v0 = vrot.slane %v1257_v7, 6  ;;  %v1265_v32 = vrot.slane %v1257_v7, 7  ;;  %v12691_v22 = vsub.f32 %v12342_v56, %v1257_v7  ;;  %v8460_v57 = vpop.eup %8459 }
0x26e2   :  { %v1275_v30 = vsub.f32 %v12330_v29, %v1259_v55  ;;  %v12695_v19 = vsub.f32 %v12335_v43, %v1260_v63  ;;  %v12698_v31 = vsub.f32 %v12348_v8, %v1261_v40  ;;  %v12701_v13 = vsub.f32 %v12354_v14, %v1262_v10  ;;  %v8462_v56 = vpop.eup %8461 }
0x26e3   :  { %v1282_v21 = vmul.f32 1.442695, %v12691_v22  ;;  %v12706_v7 = vsub.f32 %v12360_v47, %v1263_v5  ;;  %v2627_v8 = vmul.f32 %v8456_v12, %v12567_v25  ;;  %v8464_v55 = vpop.eup %8463  ;;  %v12711_v45 = vsub.f32 %v12368_v44, %v1264_v0 }
0x26e4   :  { %v1387_v29 = vrot.slane %v1275_v30, 7  ;;  %v1389_v43 = vrot.slane %v12695_v19, 6  ;;  %v12714_v14 = vsub.f32 %v12374_v15, %v1265_v32  ;;  %v1391_v63 = vrot.slane %v12698_v31, 5  ;;  %v8466_v0 = vpop.eup %8465 }
0x26e5   :  { %v1284_v62 = vmul.f32 1.442695, %v1275_v30  ;;  %v1286_v9 = vmul.f32 1.442695, %v12695_v19  ;;  %v1288_v40 = vmul.f32 1.442695, %v12698_v31  ;;  %8469 = vpow2.f32 %v1282_v21  ;;  %v12728_v5 = vpop.eup %8467 }
0x26e6   :  { %v1388_v47 = vsel %vm778_vm10, %v1387_v29, %v12691_v22  ;;  %v1393_v44 = vrot.slane %v12701_v13, 4  ;;  %v1290_v15 = vmul.f32 1.442695, %v12701_v13  ;;  %v1395_v33 = vrot.slane %v12706_v7, 3 }
0x26e7   :  { %v1390_v25 = vsel %vm780_vm11, %v1389_v43, %v1388_v47  ;;  %8471 = vpow2.f32 %v1284_v62  ;;  %v1292_v10 = vmul.f32 1.442695, %v12706_v7  ;;  %v1397_v21 = vrot.slane %v12711_v45, 2 }
0x26e8   :  { %v1392_v12 = vsel %vm782_vm12, %v1391_v63, %v1390_v25  ;;  %8473 = vpow2.f32 %v1286_v9  ;;  %v1294_v29 = vmul.f32 1.442695, %v12711_v45  ;;  %v1399_v47 = vrot.slane %v12714_v14, 1 }
0x26e9   :  { %v1394_v32 = vsel %vm784_vm13, %v1393_v44, %v1392_v12  ;;  %8475 = vpow2.f32 %v1288_v40  ;;  %v1296_v63 = vmul.f32 1.442695, %v12714_v14  ;;  %v3957_v25 = vmul.f32 %v8454_v23, %v12639_v53  ;;  %v14338_v40 = vld [vmem:[#allocation64_spill] sm:$0xff] }
0x26ea   :  { %v1396_v43 = vsel %vm786_vm14, %v1395_v33, %v1394_v32  ;;  %8477 = vpow2.f32 %v1290_v15  ;;  %v14336_v44 = vrot.slane %v12619_v49, 5  ;;  %v3973_v33 = vsel %vm782_vm12, %v3972_v1, %v3971_v41 }
0x26eb   :  { %v1398_v62 = vsel %vm14335_vm2, %v1397_v21, %v1396_v43  ;;  %8479 = vpow2.f32 %v1292_v10  ;;  %v2643_v32 = vrot.slane %v2627_v8, 6  ;;  %v8470_v48 = vpop.eup %8469  ;;  %vm14339_vm0 = vcmp.eq.s32.totalorder %v8896_v36, %v14338_v40  ;;  %vm14349_vm2 = vmmov %vm14340_vm5 }
0x26ec   :  { %v4046_v12 = vsel %vm782_vm12, %v14336_v44, %v12679_v37  ;;  %v1400_v9 = vsel %vm14337_vm3, %v1399_v47, %v1398_v62  ;;  %8481 = vpow2.f32 %v1294_v29  ;;  %v2628_v15 = vmul.f32 %v8462_v56, %v12582_v61 }
0x26ed   :  { %v1402_v50 = vsel %vm14339_vm0, %v1400_v9, 0.0  ;;  %v2642_v23 = vsel %vm778_vm10, %v2641_v28, %v12658_v59  ;;  %v8472_v49 = vpop.eup %8471  ;;  %8483 = vpow2.f32 %v1296_v63  ;;  %v3958_v10 = vmul.f32 %v8458_v17, %v12644_v26  ;;  %vm14350_vm0 = vmmov %vm14337_vm3 }
0x26ee   :  { %v1403_v37 = vsel %vm14340_vm5, %v1402_v50, 0.0  ;;  %v3974_v41 = vrot.slane %v12683_v11, 4  ;;  %v8474_v1 = vpop.eup %8473  ;;  %v1299_v8 = vmul.f32 %v8472_v49, %v1275_v30  ;;  %v3959_v21 = vmul.f32 %v8460_v57, %v12647_v24  ;;  %vm14351_vm5 = vmmov %vm14349_vm2 }
0x26ef   :  { %1404 = vadd.xlane.f32.xlu2 %v1403_v37  ;;  %v3976_v43 = vrot.slane %v3957_v25, 3  ;;  %8485 = vpow2.f32 %v12675_v42  ;;  %v8476_v61 = vpop.eup %8475  ;;  %v1300_v56 = vmul.f32 %v8474_v1, %v12695_v19  ;;  %v2629_v50 = vmul.f32 %v8464_v55, %v12592_v18 }
0x26f0   :  { %v3975_v59 = vsel %vm784_vm13, %v3974_v41, %v3973_v33  ;;  %v2644_v28 = vsel %vm780_vm11, %v2643_v32, %v2642_v23  ;;  %v8478_v17 = vpop.eup %8477  ;;  %v1298_v11 = vmul.f32 %v8470_v48, %v12691_v22  ;;  %v1301_v29 = vmul.f32 %v8476_v61, %v12698_v31 }
0x26f1   :  { %v1314_v30 = vrot.slane %v1299_v8, 7  ;;  %v2645_v47 = vrot.slane %v2628_v15, 5  ;;  %v8480_v57 = vpop.eup %8479  ;;  %v1302_v63 = vmul.f32 %v8478_v17, %v12701_v13  ;;  %v1316_v42 = vrot.slane %v1300_v56, 6 }
0x26f2   :  { %v3978_v62 = vrot.slane %v3958_v10, 2  ;;  %v2630_v19 = vmul.f32 %v8466_v0, %v12606_v39  ;;  %v8482_v25 = vpop.eup %8481  ;;  %v1303_v44 = vmul.f32 %v8480_v57, %v12706_v7  ;;  %v1318_v55 = vrot.slane %v1301_v29, 5 }
0x26f3   :  { %v1315_v18 = vsel %vm778_vm10, %v1314_v30, %v1298_v11  ;;  %v2646_v9 = vsel %vm782_vm12, %v2645_v47, %v2644_v28  ;;  %v8484_v48 = vpop.eup %8483  ;;  %v1304_v22 = vmul.f32 %v8482_v25, %v12711_v45  ;;  %v1320_v33 = vrot.slane %v1302_v63, 4  ;;  %v14352_v63 = vld [vmem:[#allocation128_spill] sm:$0xff] }
0x26f4   :  { %v1317_v31 = vsel %vm780_vm11, %v1316_v42, %v1315_v18  ;;  %v2647_v32 = vrot.slane %v2629_v50, 4  ;;  %v1305_v15 = vmul.f32 %v8484_v48, %v12714_v14  ;;  %v1322_v0 = vrot.slane %v1303_v44, 3 }
0x26f5   :  { %v8486_v13 = vpop.eup %8485  ;;  %v1319_v39 = vsel %vm782_vm12, %v1318_v55, %v1317_v31  ;;  %v3977_v7 = vsel %vm786_vm14, %v3976_v43, %v3975_v59  ;;  %v1324_v49 = vrot.slane %v1304_v22, 2  ;;  %v2631_v37 = vmul.f32 %v12728_v5, %v12615_v60  ;;  %v14355_v55 = vld [vmem:[#allocation28_spill] sm:$0xff] }
0x26f6   :  { %v1321_v23 = vsel %vm784_vm13, %v1320_v33, %v1319_v39  ;;  %v2648_v45 = vsel %vm784_vm13, %v2647_v32, %v2646_v9  ;;  %v1326_v41 = vrot.slane %v1305_v15, 1  ;;  %v2649_v1 = vrot.slane %v2630_v19, 3  ;;  %v14356_v22 = vld [vmem:[#allocation20_spill] sm:$0xff]  ;;  %v14357_v32 = vld [vmem:[#allocation26_spill] sm:$0xff]  ;;  %v14358_v39 = vld [vmem:[#allocation33_spill] sm:$0xff] }
0x26f7   :  { %2731 = vadd.xlane.f32.xlu2 %v12661_v51  ;;  %v1323_v10 = vsel %vm786_vm14, %v1322_v0, %v1321_v23  ;;  %v14341_v14 = vrot.slane %v12630_v35, 4  ;;  %v3979_v61 = vsel %vm14343_vm7, %v3978_v62, %v3977_v7  ;;  %v4049_v56 = vrot.slane %v12639_v53, 3  ;;  %vm14354_vm7 = vmmov %vm14349_vm2  ;;  %v14359_v0 = vld [vmem:[#allocation31_spill] sm:$0xff] }
0x26f8   :  { %v1325_v43 = vsel %vm14342_vm6, %v1324_v49, %v1323_v10  ;;  %v3980_v5 = vrot.slane %v3959_v21, 1  ;;  %v2632_v59 = vmul.f32 %v8486_v13, %v12626_v2  ;;  %v2650_v51 = vsel %vm786_vm14, %v2649_v1, %v2648_v45  ;;  %v14360_v49 = vld [vmem:[#allocation39_spill] sm:$0xff] }
0x26f9   :  { %v4048_v8 = vsel %vm784_vm13, %v14341_v14, %v4046_v12  ;;  %v1327_v60 = vsel %vm14344_vm9, %v1326_v41, %v1325_v43  ;;  %v2651_v28 = vrot.slane %v2631_v37, 2  ;;  %v4051_v17 = vrot.slane %v12644_v26, 2  ;;  %v14361_v10 = vld [vmem:[#allocation35_spill] sm:$0xff]  ;;  %v14362_v14 = vld [vmem:[#allocation40_spill] sm:$0xff] }
0x26fa   :  { %v1329_v50 = vsel %vm14345_vm15, %v1327_v60, 0.0  ;;  %v4050_v35 = vsel %vm786_vm14, %v4049_v56, %v4048_v8  ;;  %v3981_v12 = vsel %vm14346_vm4, %v3980_v5, %v3979_v61  ;;  %v2653_v53 = vrot.slane %v2632_v59, 1 }
0x26fb   :  { %1330 = vadd.xlane.f32.xlu0 %v1329_v50  ;;  %v2652_v11 = vsel %vm14347_vm1, %v2651_v28, %v2650_v51  ;;  %v4052_v29 = vsel %vm14348_vm8, %v4051_v17, %v4050_v35  ;;  %v3983_v21 = vsel %vm14349_vm2, %v3981_v12, 0.0  ;;  %v4053_v2 = vrot.slane %v12647_v24, 1  ;;  %v14363_v12 = vld [vmem:[#allocation78_spill] sm:$0xff] }
0x26fc   :  { %v2654_v30 = vsel %vm14337_vm3, %v2653_v53, %v2652_v11  ;;  %vm14353_vm6 = vcmp.eq.s32.totalorder %v8896_v36, %v14352_v63  ;;  %8487 = vlog2.f32 %v12362_v3  ;;  %v6592_v59 = vmul.f32 1.442695, %v12403_v6 }
0x26fd   :  { %v4054_v47 = vsel %vm14350_vm0, %v4053_v2, %v4052_v29  ;;  %v2656_v57 = vsel %vm14351_vm5, %v2654_v30, 0.0  ;;  %v6594_v51 = vmul.f32 1.442695, %v12387_v58  ;;  %v6596_v28 = vmul.f32 1.442695, %v12392_v27  ;;  %v14364_v2 = vld [vmem:[#allocation73_spill] sm:$0xff] }
0x26fe   :  { %v4056_v26 = vsel %vm14353_vm6, %v4054_v47, 0.0  ;;  %v2739_v17 = vperm.slane %v14363_v12, %v8896_v36  ;;  %v6598_v11 = vmul.f32 1.442695, %v12395_v38  ;;  %v6600_v29 = vmul.f32 1.442695, %v12400_v34 }
0x26ff   :  { %3984 = vadd.xlane.f32.xlu2 %v3983_v21  ;;  %v4057_v42 = vsel %vm14354_vm7, %v4056_v26, 0.0  ;;  %v2740_v30 = vperm.slane %v14364_v2, %v8896_v36  ;;  %v14365_v26 = vld [vmem:[#allocation71_spill] sm:$0xff]  ;;  %vm14383_vm5 = vcmask 1046534   ;;  %vm14384_vm6 = vcmask 1047559  }
0x2702   :  { %v8488_v62 = vpop.eup %8487 }
0x2703   :  { %2657 = vadd.xlane.f32.xlu0 %v2656_v57  ;;  %v5239_v19 = vmul.f32 0.6931472, %v8488_v62  ;;  %v12852_v62 = vsel %vm778_vm10, %v2740_v30, %v2739_v17 }
0x2705   :  { %v5241_v24 = vrot.slane %v5239_v19, 1  ;;  %v5242_v25 = vrot.slane %v5239_v19, 2  ;;  %v5243_v44 = vrot.slane %v5239_v19, 3  ;;  %v5244_v18 = vrot.slane %v5239_v19, 4 }
0x2706   :  { %v12803_v9 = vsub.f32 %v14355_v55, %v5239_v19  ;;  %v5245_v48 = vrot.slane %v5239_v19, 5  ;;  %v5246_v33 = vrot.slane %v5239_v19, 6  ;;  %v5247_v15 = vrot.slane %v5239_v19, 7 }
0x2707   :  { %4058 = vadd.xlane.f32.xlu2 %v4057_v42  ;;  %v12806_v31 = vsub.f32 %v14356_v22, %v5241_v24  ;;  %v12809_v13 = vsub.f32 %v14357_v32, %v5242_v25  ;;  %v12812_v3 = vsub.f32 %v14358_v39, %v5243_v44  ;;  %v12815_v7 = vsub.f32 %v14359_v0, %v5244_v18 }
0x2708   :  { %v5264_v23 = vmul.f32 1.442695, %v12803_v9  ;;  %v12819_v37 = vsub.f32 %v14360_v49, %v5245_v48  ;;  %v12823_v41 = vsub.f32 %v14361_v10, %v5246_v33  ;;  %v12827_v8 = vsub.f32 %v14362_v14, %v5247_v15 }
0x2709   :  { %v5266_v45 = vmul.f32 1.442695, %v12806_v31  ;;  %v5268_v1 = vmul.f32 1.442695, %v12809_v13  ;;  %v5270_v43 = vmul.f32 1.442695, %v12812_v3 }
0x270a   :  { %8489 = vpow2.f32 %v5264_v23  ;;  %v5272_v61 = vmul.f32 1.442695, %v12815_v7  ;;  %v5274_v56 = vmul.f32 1.442695, %v12819_v37  ;;  %v5276_v60 = vmul.f32 1.442695, %v12823_v41 }
0x270b   :  { %8491 = vpow2.f32 %v5266_v45  ;;  %v5278_v5 = vmul.f32 1.442695, %v12827_v8 }
0x270c   :  { %8493 = vpow2.f32 %v5268_v1 }
0x270d   :  { %8495 = vpow2.f32 %v5270_v43 }
0x270e   :  { %8497 = vpow2.f32 %v5272_v61 }
0x270f   :  { %8499 = vpow2.f32 %v5274_v56 }
0x2710   :  { %v8490_v50 = vpop.eup %8489  ;;  %8501 = vpow2.f32 %v5276_v60 }
0x2711   :  { %v8492_v35 = vpop.eup %8491  ;;  %8503 = vpow2.f32 %v5278_v5  ;;  %v12857_v25 = vmul.f32 %v8490_v50, %v12803_v9  ;;  %v14377_v5 = vld [vmem:[#allocation47_spill] sm:$0xff] }
0x2712   :  { %v8494_v53 = vpop.eup %8493  ;;  %8505 = vpow2.f32 %v6592_v59  ;;  %v12860_v44 = vmul.f32 %v8492_v35, %v12806_v31  ;;  %v14380_v50 = vld [vmem:[#allocation79_spill] sm:$0xff] }
0x2713   :  { %v12841_v21 = vpop.eup %8495  ;;  %8507 = vpow2.f32 %v6594_v51  ;;  %v12863_v18 = vmul.f32 %v8494_v53, %v12809_v13 }
0x2714   :  { %v12845_v47 = vpop.eup %8497  ;;  %8509 = vpow2.f32 %v6596_v28  ;;  %v5296_v12 = vrot.slane %v12860_v44, 7 }
0x2715   :  { %v12847_v57 = vpop.eup %8499  ;;  %8511 = vpow2.f32 %v6598_v11 }
0x2716   :  { %v12854_v19 = vpop.eup %8501  ;;  %8513 = vpow2.f32 %v6600_v29 }
0x2717   :  { %v12865_v55 = vpop.eup %8503 }
0x2718   :  { %v12870_v15 = vpop.eup %8505 }
0x2719   :  { %v8508_v45 = vpop.eup %8507 }
0x271a   :  { %v12884_v43 = vpop.eup %8509 }
0x271b   :  { %v12906_v51 = vpop.eup %8511 }
0x271c   :  { %v12917_v17 = vpop.eup %8513 }
0x2734   :  { %v7827_v24 = vpop.xlane.xlu2 %7826 }
0x2735   :  { %v7829_v48 = vrot.slane %v7827_v24, 1  ;;  %v7830_v22 = vrot.slane %v7827_v24, 2  ;;  %v12868_v33 = vsub.f32 %v12538_v52, %v7827_v24  ;;  %v7831_v32 = vrot.slane %v7827_v24, 3 }
0x2736   :  { %v7832_v39 = vrot.slane %v7827_v24, 4  ;;  %v7833_v0 = vrot.slane %v7827_v24, 5  ;;  %v7834_v23 = vrot.slane %v7827_v24, 6  ;;  %v7835_v49 = vrot.slane %v7827_v24, 7 }
0x2737   :  { %14366 = vst [vmem:[#allocation81_spill] sm:$0xff] %v12868_v33  ;;  %v7852_v10 = vmul.f32 1.442695, %v12868_v33  ;;  %vm7971_vm9 = vcmp.eq.f32.partialorder %v12538_v52, %v7827_v24  ;;  %vm12875_vm15 = vcmp.eq.f32.partialorder %v12532_v16, %v7829_v48  ;;  %vm12880_vm4 = vcmp.eq.f32.partialorder %v12529_v54, %v7830_v22 }
0x2738   :  { %vm12887_vm1 = vcmp.eq.f32.partialorder %v12534_v46, %v7831_v32  ;;  %vm12892_vm8 = vcmp.eq.f32.partialorder %v12545_v4, %v7832_v39  ;;  %vm12897_vm2 = vcmp.eq.f32.partialorder %v12543_v20, %v7833_v0  ;;  %vm12902_vm3 = vcmp.eq.f32.partialorder %v14377_v5, %v7834_v23 }
0x2739   :  { %8515 = vpow2.f32 %v7852_v10  ;;  %vm12909_vm0 = vcmp.eq.f32.partialorder %v14380_v50, %v7835_v49  ;;  %v7980_v35 = vsel %vm12875_vm15, %v8896_v36, 10  ;;  %v7981_v11 = vsel %vm12880_vm4, %v8896_v36, 10  ;;  %vm14392_vm15 = vmmov %vm14384_vm6 }
0x273a   :  { %v7982_v53 = vsel %vm12887_vm1, %v8896_v36, 10  ;;  %v7983_v29 = vsel %vm12892_vm8, %v8896_v36, 10  ;;  %v7984_v2 = vsel %vm12897_vm2, %v8896_v36, 10  ;;  %v7979_v30 = vsel %vm7971_vm9, %v8896_v36, 10  ;;  %vm14391_vm9 = vmmov %vm14383_vm5 }
0x273b   :  { %v7985_v44 = vsel %vm12902_vm3, %v8896_v36, 10  ;;  %v7987_v10 = vrot.slane %v7980_v35, 7  ;;  %v7989_v1 = vrot.slane %v7981_v11, 6  ;;  %v7986_v14 = vsel %vm12909_vm0, %v8896_v36, 10  ;;  %vm14394_vm4 = vmmov %vm14354_vm7 }
0x273c   :  { %v7991_v61 = vrot.slane %v7982_v53, 5  ;;  %v7993_v56 = vrot.slane %v7983_v29, 4  ;;  %v7995_v42 = vrot.slane %v7984_v2, 3  ;;  %v7997_v33 = vrot.slane %v7985_v44, 2  ;;  %vm14396_vm1 = vmmov %vm14383_vm5 }
0x273d   :  { %v7988_v60 = vsel %vm778_vm10, %v7987_v10, %v7979_v30  ;;  %v12942_v63 = vsub.f32 %v12532_v16, %v7829_v48  ;;  %v12945_v52 = vsub.f32 %v12529_v54, %v7830_v22  ;;  %v12949_v59 = vsub.f32 %v12534_v46, %v7831_v32  ;;  %v14385_v10 = vld [vmem:[#allocation36_spill] sm:$0xff]  ;;  %vm14398_vm8 = vmmov %vm14384_vm6 }
0x273e   :  { %v7990_v24 = vsel %vm780_vm11, %v7989_v1, %v7988_v60  ;;  %v12952_v28 = vsub.f32 %v12545_v4, %v7832_v39  ;;  %v12955_v35 = vsub.f32 %v12543_v20, %v7833_v0  ;;  %v12959_v16 = vsub.f32 %v14377_v5, %v7834_v23  ;;  %vm14399_vm2 = vmmov %vm14396_vm1 }
0x273f   :  { %v8516_v11 = vpop.eup %8515  ;;  %v7992_v53 = vsel %vm782_vm12, %v7991_v61, %v7990_v24  ;;  %v12962_v54 = vsub.f32 %v14380_v50, %v7835_v49  ;;  %v7854_v48 = vmul.f32 1.442695, %v12942_v63  ;;  %v7856_v22 = vmul.f32 1.442695, %v12945_v52  ;;  %vm14400_vm3 = vmmov %vm14394_vm4 }
0x2740   :  { %v7994_v46 = vsel %vm784_vm13, %v7993_v56, %v7992_v53  ;;  %v7858_v4 = vmul.f32 1.442695, %v12949_v59  ;;  %v7860_v20 = vmul.f32 1.442695, %v12952_v28  ;;  %v7999_v39 = vrot.slane %v7986_v14, 1  ;;  %v14386_v14 = vld [vmem:[#allocation75_spill] sm:$0xff]  ;;  %vm14401_vm0 = vmmov %vm14384_vm6 }
0x2741   :  { %v7996_v32 = vsel %vm786_vm14, %v7995_v42, %v7994_v46  ;;  %8517 = vpow2.f32 %v7854_v48  ;;  %v7862_v0 = vmul.f32 1.442695, %v12955_v35  ;;  %v7864_v49 = vmul.f32 1.442695, %v12959_v16  ;;  %v14389_v46 = vld [vmem:[#allocation41_spill] sm:$0xff] }
0x2742   :  { %v7998_v23 = vsel %vm14383_vm5, %v7997_v33, %v7996_v32  ;;  %8519 = vpow2.f32 %v7856_v22  ;;  %v5283_v5 = vmul.f32 %v12841_v21, %v12812_v3  ;;  %v7866_v29 = vmul.f32 1.442695, %v12962_v54  ;;  %vm14402_vm5 = vmmov %vm14396_vm1 }
0x2743   :  { %v8000_v50 = vsel %vm14384_vm6, %v7999_v39, %v7998_v23  ;;  %8521 = vpow2.f32 %v7858_v4  ;;  %v5298_v2 = vrot.slane %v12863_v18, 6  ;;  %v5297_v33 = vsel %vm778_vm10, %v5296_v12, %v12857_v25  ;;  %v14388_v25 = vld [vmem:[#allocation45_spill] sm:$0xff] }
0x2744   :  { %v12979_v42 = vsel %vm14354_vm7, %v8000_v50, 2147483647  ;;  %8523 = vpow2.f32 %v7860_v20  ;;  %v6609_v30 = vmul.f32 %v8508_v45, %v12387_v58  ;;  %v5284_v21 = vmul.f32 %v12845_v47, %v12815_v7  ;;  %vm14404_vm7 = vmmov %vm14401_vm0 }
0x2745   :  { %v8003_v44 = vshra.s32 %v12979_v42, 16  ;;  %8525 = vpow2.f32 %v7862_v0  ;;  %v6602_v1 = vmul.f32 1.442695, %v14385_v10  ;;  %v2742_v18 = vperm.slane %v14386_v14, %v8896_v36  ;;  %v14390_v14 = vld [vmem:[#allocation6_spill] sm:$0xff] }
0x2746   :  { %v14387_v61 = vperm.slane %v14365_v26, %v8896_v36  ;;  %8527 = vpow2.f32 %v7864_v49  ;;  %v6604_v58 = vmul.f32 1.442695, %v14388_v25  ;;  %v5299_v47 = vsel %vm780_vm11, %v5298_v2, %v5297_v33 }
0x2747   :  { %v8518_v45 = vpop.eup %8517  ;;  %v12996_v12 = vcvt.s32.f32 %v8003_v44  ;;  %8529 = vpow2.f32 %v7866_v29  ;;  %v6610_v60 = vmul.f32 %v12884_v43, %v12392_v27  ;;  %v5300_v48 = vrot.slane %v5283_v5, 5 }
0x2748   :  { %v2748_v56 = vsel %vm780_vm11, %v14387_v61, %v12852_v62  ;;  %v8520_v24 = vpop.eup %8519  ;;  %v7876_v53 = vrot.slane %v8518_v45, 7  ;;  %v6606_v22 = vmul.f32 1.442695, %v14389_v46  ;;  %v6624_v26 = vrot.slane %v6609_v30, 7 }
0x2749   :  { %v8522_v4 = vpop.eup %8521  ;;  %8006 = vmin.xlane.f32.xlu0 %v12996_v12  ;;  %v7878_v62 = vrot.slane %v8520_v24, 6  ;;  %v5285_v20 = vmul.f32 %v12847_v57, %v12819_v37  ;;  %v5302_v32 = vrot.slane %v5284_v21, 4  ;;  %8531 = vpow2.f32 %v6602_v1 }
0x274a   :  { %v8524_v39 = vpop.eup %8523  ;;  %v7877_v0 = vsel %vm778_vm10, %v7876_v53, %v8516_v11  ;;  %v7880_v23 = vrot.slane %v8522_v4, 5  ;;  %v5301_v27 = vsel %vm782_vm12, %v5300_v48, %v5299_v47  ;;  %v6608_v43 = vmul.f32 %v12870_v15, %v12403_v6 }
0x274b   :  { %v8526_v49 = vpop.eup %8525  ;;  %v7879_v5 = vsel %vm780_vm11, %v7878_v62, %v7877_v0  ;;  %v7882_v50 = vrot.slane %v8524_v39, 4  ;;  %8533 = vpow2.f32 %v6604_v58  ;;  %v6626_v29 = vrot.slane %v6610_v60, 6  ;;  %v14393_v62 = vld [vmem:[#allocation5_spill] sm:$0xff] }
0x274c   :  { %v8528_v2 = vpop.eup %8527  ;;  %v7881_v57 = vsel %vm782_vm12, %v7880_v23, %v7879_v5  ;;  %v7884_v33 = vrot.slane %v8526_v49, 3  ;;  %v6611_v30 = vmul.f32 %v12906_v51, %v12395_v38  ;;  %v6625_v11 = vsel %vm778_vm10, %v6624_v26, %v6608_v43 }
0x274d   :  { %v8530_v44 = vpop.eup %8529  ;;  %v7883_v21 = vsel %vm784_vm13, %v7882_v50, %v7881_v57  ;;  %v7886_v1 = vrot.slane %v8528_v2, 2  ;;  %v5286_v6 = vmul.f32 %v12854_v19, %v12823_v41  ;;  %v5303_v15 = vsel %vm784_vm13, %v5302_v32, %v5301_v27 }
0x274e   :  { %v2743_v61 = vperm.slane %v14390_v14, %v8896_v36  ;;  %v7885_v58 = vsel %vm786_vm14, %v7884_v33, %v7883_v21  ;;  %v7888_v45 = vrot.slane %v8530_v44, 1  ;;  %v5304_v47 = vrot.slane %v5285_v20, 3 }
0x274f   :  { %v8532_v60 = vpop.eup %8531  ;;  %v7887_v38 = vsel %vm14391_vm9, %v7886_v1, %v7885_v58  ;;  %8535 = vpow2.f32 %v6606_v22  ;;  %v6612_v51 = vmul.f32 %v12917_v17, %v12400_v34  ;;  %v6627_v24 = vsel %vm780_vm11, %v6626_v29, %v6625_v11  ;;  %v14395_v17 = vld [vmem:[#allocation100_spill] sm:$0xff] }
0x2750   :  { %v7889_v19 = vsel %vm14392_vm15, %v7888_v45, %v7887_v38  ;;  %v5287_v53 = vmul.f32 %v12865_v55, %v12827_v8  ;;  %v5305_v48 = vsel %vm786_vm14, %v5304_v47, %v5303_v15  ;;  %v6628_v26 = vrot.slane %v6611_v30, 5 }
0x2751   :  { %v8534_v4 = vpop.eup %8533  ;;  %v2744_v20 = vperm.slane %v14393_v62, %v8896_v36  ;;  %v2749_v32 = vsel %vm782_vm12, %v2742_v18, %v2748_v56  ;;  %v7891_v22 = vsel %vm14394_vm4, %v7889_v19, 0.0  ;;  %v5306_v39 = vrot.slane %v5286_v6, 2  ;;  %v14397_v18 = vld [vmem:[#allocation7_spill] sm:$0xff]  ;;  %vm14405_vm4 = vmmov %vm14400_vm3 }
0x2752   :  { %v2750_v34 = vsel %vm784_vm13, %v2743_v61, %v2749_v32  ;;  %v2745_v0 = vperm.slane %v14395_v17, %v8896_v36  ;;  %7892 = vadd.xlane.f32.xlu2 %v7891_v22  ;;  %v6613_v55 = vmul.f32 %v8532_v60, %v14385_v10  ;;  %v6629_v23 = vsel %vm782_vm12, %v6628_v26, %v6627_v24  ;;  %v14406_v24 = vld [vmem:[#allocation9_spill] sm:$0xff] }
0x2753   :  { %v5307_v27 = vsel %vm14396_vm1, %v5306_v39, %v5305_v48  ;;  %v6630_v43 = vrot.slane %v6612_v51, 4  ;;  %v5308_v49 = vrot.slane %v5287_v53, 1  ;;  %v2746_v56 = vperm.slane %v14397_v18, %v8896_v36 }
0x2754   :  { %v2751_v50 = vsel %vm786_vm14, %v2744_v20, %v2750_v34  ;;  %v6614_v29 = vmul.f32 %v8534_v4, %v14388_v25  ;;  %v6632_v33 = vrot.slane %v6613_v55, 3  ;;  %vm14403_vm6 = vcmask 48128   ;;  %v14408_v4 = vld [vmem:[#allocation18_spill] sm:$0xff] }
0x2755   :  { %v8536_v5 = vpop.eup %8535  ;;  %v6631_v2 = vsel %vm784_vm13, %v6630_v43, %v6629_v23  ;;  %v5309_v57 = vsel %vm14398_vm8, %v5308_v49, %v5307_v27  ;;  %v2752_v10 = vsel %vm14399_vm2, %v2745_v0, %v2751_v50  ;;  %v1407_v14 = vcvt.s32.f32 %v14338_v40  ;;  %v14409_v20 = vld [vmem:[#allocation14_spill] sm:$0xff]  ;;  %vm14410_vm8 = vmmov %vm14399_vm2  ;;  %v1430_v43 = vpop.permute.xlu1 %1429 }
0x2756   :  { %v6615_v30 = vmul.f32 %v8536_v5, %v14389_v46  ;;  %v6633_v11 = vsel %vm786_vm14, %v6632_v33, %v6631_v2  ;;  %v5311_v44 = vsel %vm14400_vm3, %v5309_v57, 0.0  ;;  %v2753_v21 = vsel %vm14401_vm0, %v2746_v56, %v2752_v10  ;;  %vm14411_vm2 = vmmov %vm14401_vm0 }
0x2757   :  { %v6634_v1 = vrot.slane %v6614_v29, 2  ;;  %v2755_v25 = vsel %vm14403_vm6, %v2753_v21, 0.0  ;;  %vm1406_vm9 = vcmp.eq.s32.totalorder %v8896_v36, 0  ;;  %vm1409_vm15 = vcmp.eq.s32.totalorder %v8896_v36, 6  ;;  %vm14412_vm3 = vmmov %vm14403_vm6  ;;  %v14418_v21 = vld [vmem:[#allocation129_spill] sm:$0xff] }
0x2758   :  { %v6636_v15 = vrot.slane %v6615_v30, 1  ;;  %v1408_v58 = vsel %vm1406_vm9, %v1407_v14, 0.0  ;;  %v5369_v60 = vrot.slane %v12806_v31, 7  ;;  %v5371_v38 = vrot.slane %v12809_v13, 6  ;;  %vm14413_vm0 = vmmov %vm14402_vm5  ;;  %v14420_v14 = vld [vmem:[#allocation130_spill] sm:$0xff] }
0x2759   :  { %v6635_v6 = vsel %vm14402_vm5, %v6634_v1, %v6633_v11  ;;  %v6729_v19 = vperm.slane %v14406_v24, %v8896_v36  ;;  %vm14407_vm1 = vcmp.eq.s32.totalorder %v8896_v36, 12  ;;  %v6730_v62 = vperm.slane %v14408_v4, %v8896_v36  ;;  %v14424_v4 = vld [vmem:[#allocation81_spill] sm:$0xff] }
0x275a   :  { %5312 = vadd.xlane.f32.xlu2 %v5311_v44  ;;  %v6637_v61 = vsel %vm14404_vm7, %v6636_v15, %v6635_v6  ;;  %v5370_v40 = vsel %vm778_vm10, %v5369_v60, %v12803_v9  ;;  %v5373_v31 = vrot.slane %v12812_v3, 5  ;;  %v5375_v9 = vrot.slane %v12815_v7, 4  ;;  %vm14414_vm7 = vmmov %vm14411_vm2 }
0x275b   :  { %v6639_v46 = vsel %vm14405_vm4, %v6637_v61, 0.0  ;;  %v5372_v26 = vsel %vm780_vm11, %v5371_v38, %v5370_v40  ;;  %v6736_v13 = vsel %vm14410_vm8, %v6729_v19, %v14409_v20  ;;  %v5377_v34 = vrot.slane %v12819_v37, 3  ;;  %v14415_v37 = vld [vmem:[#allocation140_spill] sm:$0xff] }
0x275c   :  { %v5374_v32 = vsel %vm782_vm12, %v5373_v31, %v5372_v26  ;;  %v6737_v22 = vsel %vm14411_vm2, %v6730_v62, %v6736_v13  ;;  %v5379_v3 = vrot.slane %v12823_v41, 2  ;;  %v5381_v23 = vrot.slane %v12827_v8, 1  ;;  %v14417_v41 = vld [vmem:[#allocation110_spill] sm:$0xff] }
0x275d   :  { %2756 = vrot.lane.b32.xlu0 %v2755_v25, %s8634_s2  ;;  %v5376_v39 = vsel %vm784_vm13, %v5375_v9, %v5374_v32  ;;  %v6739_v17 = vsel %vm14412_vm3, %v6737_v22, 0.0  ;;  %vm1431_vm5 = vcmp.ge.s32.totalorder %v8896_v36, 18  ;;  %vm1432_vm6 = vcmp.lt.s32.totalorder %v8896_v36, 24  ;;  %v14419_v25 = vld [vmem:[#allocation128_spill] sm:$0xff] }
0x275e   :  { %v5378_v0 = vsel %vm786_vm14, %v5377_v34, %v5376_v39  ;;  %vm1433_vm9 = vmand %vm1431_vm5, %vm1432_vm6  ;;  %v2734_v18 = vcvt.s32.f32 %v14417_v41  ;;  %vm2736_vm8 = vcmp.eq.s32.totalorder %v8896_v36, 7  ;;  %v8002_v57 = vand.u32 65535, %v12979_v42 }
0x275f   :  { %v5380_v55 = vsel %vm14413_vm0, %v5379_v3, %v5378_v0  ;;  %v5401_v1 = vperm.slane %v14418_v21, %v8896_v36  ;;  %vm2758_vm3 = vcmp.ge.s32.totalorder %v8896_v36, 24  ;;  %vm2759_vm0 = vcmp.lt.s32.totalorder %v8896_v36, 30 }
0x2760   :  { %v5382_v7 = vsel %vm14414_vm7, %v5381_v23, %v5380_v55  ;;  %v8004_v33 = vcvt.s32.f32 %v8002_v57  ;;  %v4061_v15 = vcvt.s32.f32 %v14419_v25  ;;  %v5402_v61 = vperm.slane %v14420_v14, %v8896_v36  ;;  %vm2760_vm5 = vmand %vm2758_vm3, %vm2759_vm0 }
0x2761   :  { %vm14422_vm6 = vcmask 1046534   ;;  %vm4060_vm7 = vcmp.eq.s32.totalorder %v8896_v36, 2  ;;  %vm4065_vm3 = vcmp.eq.s32.totalorder %v8896_v36, 14  ;;  %v5389_v23 = vcvt.s32.f32 %v14415_v37 }
0x2762   :  { %6640 = vadd.xlane.f32.xlu2 %v6639_v46  ;;  %v1405_v45 = vpop.xlane.xlu2 %1404 }
0x2763   :  { %v1410_v47 = vsel %vm1409_vm15, %v1405_v45, %v1408_v58  ;;  %vm14416_vm15 = vcmp.eq.s32.totalorder %v8896_v36, %v14415_v37 }
0x2764   :  { %v5384_v27 = vsel %vm14416_vm15, %v5382_v7, 0.0  ;;  %vm14423_vm15 = vcmp.eq.s32.totalorder %v8896_v36, 13  ;;  %v4085_v7 = vpop.permute.xlu1 %4084 }
0x2765   :  { %v5385_v5 = vsel %vm14405_vm4, %v5384_v27, 0.0  ;;  %vm14425_vm4 = vcmask 1047559  }
0x276a   :  { %v2732_v8 = vpop.xlane.xlu2 %2731 }
0x276e   :  { %v1331_v51 = vpop.xlane.xlu0 %1330 }
0x276f   :  { %v1332_v53 = vsub.f32 0.0, %v1331_v51 }
0x2771   :  { %v1411_v48 = vsel %vm14407_vm1, %v1332_v53, %v1410_v47  ;;  %vm2733_vm1 = vcmp.eq.s32.totalorder %v8896_v36, 1 }
0x2772   :  { %v1434_v49 = vsel %vm1433_vm9, %v1430_v43, %v1411_v48  ;;  %v13091_v29 = vpop.xlane.xlu2 %3984  ;;  %vm4063_vm9 = vcmp.eq.s32.totalorder %v8896_v36, 8 }
0x2773   :  { %v2735_v56 = vsel %vm2733_vm1, %v2734_v18, %v1434_v49  ;;  %vm4086_vm1 = vcmp.ge.s32.totalorder %v8896_v36, 30  ;;  %v3986_v3 = vsub.f32 0.0, %v13091_v29 }
0x2774   :  { %v2737_v50 = vsel %vm2736_vm8, %v2732_v8, %v2735_v56  ;;  %vm4087_vm8 = vcmp.lt.s32.totalorder %v8896_v36, 36 }
0x2775   :  { %vm4088_vm0 = vmand %vm4086_vm1, %vm4087_vm8  ;;  %vm5414_vm1 = vcmp.ge.s32.totalorder %v8896_v36, 36  ;;  %vm5415_vm8 = vcmp.lt.s32.totalorder %v8896_v36, 42 }
0x2776   :  { %v2658_v2 = vpop.xlane.xlu0 %2657 }
0x2777   :  { %v2659_v6 = vsub.f32 0.0, %v2658_v2 }
0x2779   :  { %v2738_v45 = vsel %vm14423_vm15, %v2659_v6, %v2737_v50  ;;  %vm14430_vm15 = vmmov %vm14425_vm4 }
0x277a   :  { %6740 = vrot.lane.b32.xlu2 %v6739_v17, %s8635_s9  ;;  %v4059_v30 = vpop.xlane.xlu2 %4058 }
0x2787   :  { %5386 = vadd.xlane.f32.xlu0 %v5385_v5 }
0x27bc   :  { %v13094_v10 = vpop.xlane.xlu0 %8006 }
0x27bd   :  { %vm8008_vm2 = vcmp.eq.f32.partialorder %v12996_v12, %v13094_v10  ;;  %v14421_v12 = vld [vmem:[#allocation8_spill] sm:$0xff] }
0x27be   :  { %v8009_v11 = vsel %vm8008_vm2, %v8004_v33, inf  ;;  %v5408_v58 = vsel %vm14422_vm6, %v5401_v1, %v14421_v12  ;;  %vm14426_vm2 = vcmask 48128  }
0x27bf   :  { %8010 = vmin.xlane.f32.xlu1 %v8009_v11 }
0x27c5   :  { %v7893_v44 = vpop.xlane.xlu2 %7892 }
0x27c6   :  { %8537 = vlog2.f32 %v7893_v44 }
0x27cc   :  { %v8538_v42 = vpop.eup %8537 }
0x27cd   :  { %v7895_v46 = vmul.f32 0.6931472, %v8538_v42 }
0x27cf   :  { %v2757_v47 = vpop.permute.xlu0 %2756  ;;  %v7897_v60 = vrot.slane %v7895_v46, 1  ;;  %v7898_v38 = vrot.slane %v7895_v46, 2  ;;  %v7899_v51 = vrot.slane %v7895_v46, 3  ;;  %v7900_v40 = vrot.slane %v7895_v46, 4 }
0x27d0   :  { %v2761_v24 = vsel %vm2760_vm5, %v2757_v47, %v2738_v45  ;;  %v7901_v19 = vrot.slane %v7895_v46, 5  ;;  %v7902_v53 = vrot.slane %v7895_v46, 6  ;;  %v7903_v48 = vrot.slane %v7895_v46, 7 }
0x27d1   :  { %v4062_v26 = vsel %vm4060_vm7, %v4061_v15, %v2761_v24  ;;  %v13112_v62 = vsub.f32 %v14424_v4, %v7895_v46  ;;  %v13115_v31 = vsub.f32 %v12942_v63, %v7897_v60  ;;  %v13118_v20 = vsub.f32 %v12945_v52, %v7898_v38  ;;  %vm14427_vm7 = vmmov %vm14425_vm4 }
0x27d2   :  { %v4064_v13 = vsel %vm4063_vm9, %v4059_v30, %v4062_v26  ;;  %v13121_v32 = vsub.f32 %v12949_v59, %v7899_v51  ;;  %v13124_v9 = vsub.f32 %v12952_v28, %v7900_v40  ;;  %v13127_v22 = vsub.f32 %v12955_v35, %v7901_v19 }
0x27d3   :  { %v13130_v39 = vsub.f32 %v12959_v16, %v7902_v53  ;;  %v7920_v34 = vmul.f32 1.442695, %v13112_v62  ;;  %v7922_v63 = vmul.f32 1.442695, %v13115_v31  ;;  %v5409_v52 = vsel %vm14425_vm4, %v5402_v61, %v5408_v58 }
0x27d4   :  { %v13136_v17 = vsub.f32 %v12962_v54, %v7903_v48  ;;  %v7924_v59 = vmul.f32 1.442695, %v13118_v20  ;;  %v7926_v28 = vmul.f32 1.442695, %v13121_v32  ;;  %v7928_v35 = vmul.f32 1.442695, %v13124_v9 }
0x27d5   :  { %8539 = vpow2.f32 %v7920_v34  ;;  %v7930_v16 = vmul.f32 1.442695, %v13127_v22  ;;  %v5411_v0 = vsel %vm14426_vm2, %v5409_v52, 0.0  ;;  %v7932_v54 = vmul.f32 1.442695, %v13130_v39 }
0x27d6   :  { %8541 = vpow2.f32 %v7922_v63  ;;  %v7934_v55 = vmul.f32 1.442695, %v13136_v17  ;;  %vm5388_vm5 = vcmp.eq.s32.totalorder %v8896_v36, 3  ;;  %v4066_v27 = vsel %vm4065_vm3, %v3986_v3, %v4064_v13  ;;  %vm5416_vm3 = vmand %vm5414_vm1, %vm5415_vm8 }
0x27d7   :  { %8543 = vpow2.f32 %v7924_v59  ;;  %v4089_v49 = vsel %vm4088_vm0, %v4085_v7, %v4066_v27  ;;  %v8025_v38 = vrot.slane %v13115_v31, 7  ;;  %v8027_v51 = vrot.slane %v13118_v20, 6  ;;  %v14431_v59 = vld [vmem:[#allocation76_spill] sm:$0xff] }
0x27d8   :  { %5412 = vrot.lane.b32.xlu1 %v5411_v0, %s8636_s10  ;;  %8545 = vpow2.f32 %v7926_v28  ;;  %v13151_v41 = vsel %vm5388_vm5, %v5389_v23, %v4089_v49  ;;  %v8029_v53 = vrot.slane %v13121_v32, 5  ;;  %vm14428_vm9 = vcmask 80896   ;;  %v5313_v23 = vpop.xlane.xlu2 %5312 }
0x27d9   :  { %8547 = vpow2.f32 %v7928_v35  ;;  %v8026_v19 = vsel %vm778_vm10, %v8025_v38, %v13112_v62  ;;  %v8031_v4 = vrot.slane %v13124_v9, 4  ;;  %v8035_v34 = vrot.slane %v13130_v39, 2 }
0x27da   :  { %8549 = vpow2.f32 %v7930_v16  ;;  %v8028_v26 = vsel %vm780_vm11, %v8027_v51, %v8026_v19  ;;  %vm5391_vm4 = vcmp.eq.s32.totalorder %v8896_v36, 9  ;;  %vm5393_vm2 = vcmp.eq.s32.totalorder %v8896_v36, 15 }
0x27db   :  { %v8540_v43 = vpop.eup %8539  ;;  %8551 = vpow2.f32 %v7932_v54  ;;  %v5314_v7 = vsub.f32 0.0, %v5313_v23  ;;  %vm6716_vm0 = vcmp.eq.s32.totalorder %v8896_v36, 4  ;;  %vm14437_vm5 = vcmask 48128  }
0x27dc   :  { %v8542_v5 = vpop.eup %8541  ;;  %8553 = vpow2.f32 %v7934_v55  ;;  %v7936_v2 = vmul.f32 %v8540_v43, %v13112_v62  ;;  %v8037_v62 = vrot.slane %v13136_v17, 1 }
0x27dd   :  { %v8544_v18 = vpop.eup %8543  ;;  %v7937_v8 = vmul.f32 %v8542_v5, %v13115_v31  ;;  %v8030_v31 = vsel %vm782_vm12, %v8029_v53, %v8028_v26 }
0x27de   :  { %v8546_v56 = vpop.eup %8545  ;;  %v7938_v50 = vmul.f32 %v8544_v18, %v13118_v20  ;;  %v8033_v20 = vrot.slane %v13127_v22, 3  ;;  %v8032_v13 = vsel %vm784_vm13, %v8031_v4, %v8030_v31 }
0x27df   :  { %v8548_v29 = vpop.eup %8547  ;;  %v7939_v37 = vmul.f32 %v8546_v56, %v13121_v32  ;;  %v7952_v57 = vrot.slane %v7937_v8, 7  ;;  %v14436_v8 = vld [vmem:[#allocation50_spill] sm:$0xff] }
0x27e0   :  { %v8550_v33 = vpop.eup %8549  ;;  %v7940_v30 = vmul.f32 %v8548_v29, %v13124_v9  ;;  %v7954_v11 = vrot.slane %v7938_v50, 6  ;;  %v8034_v63 = vsel %vm786_vm14, %v8033_v20, %v8032_v13  ;;  %v14432_v9 = vld [vmem:[#allocation10_spill] sm:$0xff]  ;;  %v8067_v56 = vsel %vm14437_vm5, %v14436_v8, 0.0  ;;  %v6641_v50 = vpop.xlane.xlu2 %6640 }
0x27e1   :  { %v8552_v44 = vpop.eup %8551  ;;  %v7941_v21 = vmul.f32 %v8550_v33, %v13127_v22  ;;  %v7953_v1 = vsel %vm778_vm10, %v7952_v57, %v7936_v2  ;;  %v7956_v6 = vrot.slane %v7939_v37, 5  ;;  %vm14429_vm10 = vmmov %vm14422_vm6  ;;  %v8013_v22 = vcvt.f32.s32 %v13094_v10 }
0x27e2   :  { %v8554_v42 = vpop.eup %8553  ;;  %v7942_v25 = vmul.f32 %v8552_v44, %v13130_v39  ;;  %v7955_v15 = vsel %vm780_vm11, %v7954_v11, %v7953_v1  ;;  %v7958_v14 = vrot.slane %v7940_v30, 4  ;;  %v8036_v32 = vsel %vm14429_vm10, %v8035_v34, %v8034_v63 }
0x27e3   :  { %v7943_v61 = vmul.f32 %v8554_v42, %v13136_v17  ;;  %v7957_v46 = vsel %vm782_vm12, %v7956_v6, %v7955_v15  ;;  %v7960_v12 = vrot.slane %v7941_v21, 3  ;;  %v8038_v52 = vsel %vm14430_vm15, %v8037_v62, %v8036_v32  ;;  %vm14434_vm12 = vmmov %vm14428_vm9 }
0x27e4   :  { %v7959_v58 = vsel %vm784_vm13, %v7958_v14, %v7957_v46  ;;  %v7962_v45 = vrot.slane %v7942_v25, 2  ;;  %vm14433_vm11 = vcmp.eq.s32.totalorder %v8896_v36, %v14432_v9  ;;  %v8014_v39 = vshll.u32 %v8013_v22, 16 }
0x27e5   :  { %v7961_v47 = vsel %vm786_vm14, %v7960_v12, %v7959_v58  ;;  %v7964_v60 = vrot.slane %v7943_v61, 1  ;;  %v6712_v28 = vsel %vm14433_vm11, %v14431_v59, 0.0  ;;  %vm14435_vm14 = vmmov %vm14428_vm9  ;;  %v6717_v27 = vcvt.s32.f32 %v14432_v9 }
0x27e6   :  { %v7963_v40 = vsel %vm14422_vm6, %v7962_v45, %v7961_v47  ;;  %v6713_v35 = vsel %vm14434_vm12, %v6712_v28, 0.0  ;;  %vm6719_vm6 = vcmp.eq.s32.totalorder %v8896_v36, 10  ;;  %vm6743_vm10 = vcmp.lt.s32.totalorder %v8896_v36, 48 }
0x27e7   :  { %v7965_v24 = vsel %vm14427_vm7, %v7964_v60, %v7963_v40  ;;  %vm6721_vm7 = vcmp.eq.s32.totalorder %v8896_v36, 16  ;;  %v6642_v2 = vsub.f32 0.0, %v6641_v50  ;;  %vm8044_vm11 = vcmp.eq.s32.totalorder %v8896_v36, 5 }
0x27e8   :  { %v7967_v48 = vsel %vm14428_vm9, %v7965_v24, 0.0  ;;  %vm6742_vm9 = vcmp.ge.s32.totalorder %v8896_v36, 42  ;;  %v6741_v57 = vpop.permute.xlu2 %6740  ;;  %vm8047_vm12 = vcmp.eq.s32.totalorder %v8896_v36, 11 }
0x27e9   :  { %7968 = vadd.xlane.f32.xlu2 %v7967_v48  ;;  %vm6744_vm15 = vmand %vm6742_vm9, %vm6743_vm10 }
0x27fa   :  { %v5387_v55 = vpop.xlane.xlu0 %5386 }
0x27fb   :  { %v5392_v10 = vsel %vm5391_vm4, %v5387_v55, %v13151_v41  ;;  %vm8049_vm4 = vcmp.eq.s32.totalorder %v8896_v36, 17 }
0x27fc   :  { %v5394_v43 = vsel %vm5393_vm2, %v5314_v7, %v5392_v10 }
0x2802   :  { %6714 = vadd.xlane.f32.xlu1 %v6713_v35 }
0x2832   :  { %v8011_v16 = vpop.xlane.xlu1 %8010 }
0x2833   :  { %v8012_v0 = vcvt.f32.s32 %v8011_v16 }
0x2835   :  { %v8015_v54 = vadd.s32 %v8014_v39, %v8012_v0 }
0x2837   :  { %vm8016_vm13 = vcmp.eq.s32.totalorder %v8896_v36, %v8015_v54  ;;  %v8045_v33 = vcvt.s32.f32 %v8015_v54 }
0x2838   :  { %v8040_v17 = vsel %vm8016_vm13, %v8038_v52, 0.0  ;;  %vm8070_vm13 = vcmp.ge.s32.totalorder %v8896_v36, 48 }
0x2839   :  { %v8041_v3 = vsel %vm14435_vm14, %v8040_v17, 0.0  ;;  %vm8071_vm14 = vcmp.lt.s32.totalorder %v8896_v36, 54 }
0x283a   :  { %8042 = vadd.xlane.f32.xlu0 %v8041_v3  ;;  %vm8072_vm1 = vmand %vm8070_vm13, %vm8071_vm14 }
0x284a   :  { %v5413_v49 = vpop.permute.xlu1 %5412 }
0x284b   :  { %v5417_v5 = vsel %vm5416_vm3, %v5413_v49, %v5394_v43 }
0x284c   :  { %v6718_v18 = vsel %vm6716_vm0, %v6717_v27, %v5417_v5 }
0x284e   :  { %8068 = vrot.lane.b32.xlu0 %v8067_v56, %s8637_s11 }
0x285c   :  { %v7969_v21 = vpop.xlane.xlu2 %7968 }
0x285d   :  { %v7970_v6 = vsub.f32 0.0, %v7969_v21 }
0x2875   :  { %v6715_v41 = vpop.xlane.xlu1 %6714 }
0x2876   :  { %v6720_v29 = vsel %vm6719_vm6, %v6715_v41, %v6718_v18 }
0x2877   :  { %v6722_v37 = vsel %vm6721_vm7, %v6642_v2, %v6720_v29 }
0x2878   :  { %v6745_v30 = vsel %vm6744_vm15, %v6741_v57, %v6722_v37 }
0x2879   :  { %v8046_v11 = vsel %vm8044_vm11, %v8045_v33, %v6745_v30 }
0x28ad   :  { %v8043_v44 = vpop.xlane.xlu0 %8042 }
0x28ae   :  { %v8048_v1 = vsel %vm8047_vm12, %v8043_v44, %v8046_v11 }
0x28af   :  { %v8050_v25 = vsel %vm8049_vm4, %v7970_v6, %v8048_v1 }
0x28c0   :  { %v8069_v42 = vpop.permute.xlu0 %8068 }
0x28c1   :  { %v8073_v15 = vsel %vm8072_vm1, %v8069_v42, %v8050_v25 }
0x28c2   :  { %8074 = vst [vmem:[#allocation2] sm:$0xff] %v8073_v15 }
0x28c3   :  { %8085 = dma.vmem_to_hbm [thread:$0]  %s8081_s14, 128, %s8083_s17, [#allocation3]  }
0x28c4   :  { %8624 = dma.done.wait [#allocation3], 128  }
0x28c5   :  { %8625 = vsyncadd [#allocation3], 4294967168 }
0x28c6   :  { %8090 = vsyncpa [#allocation3], 1 }

</bundles_post_ra>
